<compile_context>
chip_gen: v7x
topology: tpu7x:2x2x1
jax: 0.10.0
libtpu: 0.0.40
codegen_flags: <defaults>
</compile_context>

<pallas_src>
import jax
import jax.numpy as jnp
from jax.experimental import pallas as pl
from jax.experimental.pallas import tpu as pltpu

N = 2                       # batch
C_IN, H, W = 32, 16, 16     # conv1 expects 32 channels, 16x16 spatial
K_FLAT = C_IN * H * W       # 8192
C1, C2 = 512, 1024
N_DISC, N_CONT = 100, 2
HEAD_W = N_DISC + 2 * N_CONT   # 104 real head columns (disc | mu | var)
HEAD_PAD = 128                 # lane-dense padded head width
VAR_LO = N_DISC + N_CONT       # 102
VAR_HI = N_DISC + 2 * N_CONT   # 104
TK = 4096                      # bf16 K tile -> 2 grid steps
EPS = 1e-5


def qhead_kernel(x_ref, w1_ref, g1_ref, b1_ref,
                 w2_ref, bias2_ref, g2_ref, b2_ref,
                 wh_ref, bh_ref,
                 out_ref, acc_ref):
    k = pl.program_id(0)

    @pl.when(k == 0)
    def _():
        acc_ref[...] = jnp.zeros_like(acc_ref)

    # conv1 (16x16 kernel, bias=False) == matmul over flattened C*H*W.
    # bf16 x bf16 on the MXU, accumulated in f32.
    acc_ref[...] += jnp.dot(x_ref[...], w1_ref[...],
                            preferred_element_type=jnp.float32)

    @pl.when(k == pl.num_programs(0) - 1)
    def _():
        h1 = acc_ref[...]                                       # (N, 512) f32

        # bn1: BatchNorm2d(512), train mode (biased batch stats over N)
        m1 = jnp.mean(h1, axis=0, keepdims=True)
        v1 = jnp.mean((h1 - m1) ** 2, axis=0, keepdims=True)
        h1 = (h1 - m1) * jax.lax.rsqrt(v1 + EPS) * g1_ref[...] + b1_ref[...]

        # conv2: 1x1 conv == matmul + bias
        h2 = jnp.dot(h1, w2_ref[...],
                     preferred_element_type=jnp.float32) + bias2_ref[...]

        # bn2
        m2 = jnp.mean(h2, axis=0, keepdims=True)
        v2 = jnp.mean((h2 - m2) ** 2, axis=0, keepdims=True)
        h2 = (h2 - m2) * jax.lax.rsqrt(v2 + EPS) * g2_ref[...] + b2_ref[...]

        # leaky_relu(negative_slope=0.1) -- matches F.leaky_relu(..., 0.1)
        a = jnp.where(h2 > 0, h2, 0.1 * h2)

        # fused heads: one lane-dense (1024, 128) matmul instead of three
        # lane-sparse ones. exp() is applied only to the var columns.
        heads = jnp.dot(a, wh_ref[...],
                        preferred_element_type=jnp.float32) + bh_ref[...]
        col = jax.lax.broadcasted_iota(jnp.int32, heads.shape, 1)
        is_var = (col >= VAR_LO) & (col < VAR_HI)
        out_ref[...] = jnp.where(is_var, jnp.exp(heads), heads)


def qhead_forward(x_nchw, p):
    x2d = x_nchw.reshape(N, K_FLAT).astype(jnp.bfloat16)
    nk = K_FLAT // TK

    grid_spec = pltpu.PrefetchScalarGridSpec(
        num_scalar_prefetch=0,
        grid=(nk,),
        in_specs=[
            pl.BlockSpec((N, TK), lambda k: (0, k)),        # x tile (bf16)
            pl.BlockSpec((TK, C1), lambda k: (k, 0)),       # conv1 weight tile (bf16)
            pl.BlockSpec((1, C1), lambda k: (0, 0)),        # bn1 gamma
            pl.BlockSpec((1, C1), lambda k: (0, 0)),        # bn1 beta
            pl.BlockSpec((C1, C2), lambda k: (0, 0)),       # conv2 weight (f32)
            pl.BlockSpec((1, C2), lambda k: (0, 0)),        # conv2 bias
            pl.BlockSpec((1, C2), lambda k: (0, 0)),        # bn2 gamma
            pl.BlockSpec((1, C2), lambda k: (0, 0)),        # bn2 beta
            pl.BlockSpec((C2, HEAD_PAD), lambda k: (0, 0)), # fused head weight
            pl.BlockSpec((1, HEAD_PAD), lambda k: (0, 0)),  # fused head bias
        ],
        out_specs=pl.BlockSpec((N, HEAD_PAD), lambda k: (0, 0)),
        scratch_shapes=[pltpu.VMEM((N, C1), jnp.float32)],  # conv1 f32 accumulator
    )

    fn = pl.pallas_call(
        qhead_kernel,
        out_shape=jax.ShapeDtypeStruct((N, HEAD_PAD), jnp.float32),
        grid_spec=grid_spec,
        compiler_params=pltpu.CompilerParams(
            dimension_semantics=("arbitrary",),
            vmem_limit_bytes=32 * 1024 * 1024),
    )
    heads = fn(x2d, p["w1t"], p["g1"], p["b1"], p["w2t"], p["bias2"],
               p["g2"], p["b2"], p["wht"], p["bh"])

    disc_logits = heads[:, :N_DISC]
    mu = heads[:, N_DISC:N_DISC + N_CONT]
    var = heads[:, VAR_LO:VAR_HI]          # exp already applied in-kernel
    return disc_logits, mu, var


def init_params(key):
    ks = jax.random.split(key, 13)

    def w(k, shape, fan_in):
        return jax.random.normal(k, shape, jnp.float32) / jnp.sqrt(
            jnp.float32(fan_in))

    # conv weights in PyTorch (O, I, kH, kW) layout, then flattened/transposed
    w1 = w(ks[0], (C1, C_IN, H, W), K_FLAT)       # Conv2d(32, 512, 16, bias=False)
    w2 = w(ks[1], (C2, C1, 1, 1), C1)             # Conv2d(512, 1024, 1)
    wd = w(ks[2], (N_DISC, C2, 1, 1), C2)         # Conv2d(1024, 100, 1)
    wm = w(ks[3], (N_CONT, C2, 1, 1), C2)         # Conv2d(1024, 2, 1)
    wv = w(ks[4], (N_CONT, C2, 1, 1), C2)         # Conv2d(1024, 2, 1)

    # fused lane-dense head weight/bias: [disc | mu | var | zero-pad] -> 128 cols
    wht = jnp.zeros((C2, HEAD_PAD), jnp.float32)
    wht = wht.at[:, :N_DISC].set(wd.reshape(N_DISC, C2).T)
    wht = wht.at[:, N_DISC:N_DISC + N_CONT].set(wm.reshape(N_CONT, C2).T)
    wht = wht.at[:, VAR_LO:VAR_HI].set(wv.reshape(N_CONT, C2).T)

    bd = 0.1 * jax.random.normal(ks[10], (1, N_DISC), jnp.float32)
    bm = 0.1 * jax.random.normal(ks[11], (1, N_CONT), jnp.float32)
    bv = 0.1 * jax.random.normal(ks[12], (1, N_CONT), jnp.float32)
    bh = jnp.zeros((1, HEAD_PAD), jnp.float32)
    bh = bh.at[:, :N_DISC].set(bd)
    bh = bh.at[:, N_DISC:N_DISC + N_CONT].set(bm)
    bh = bh.at[:, VAR_LO:VAR_HI].set(bv)

    return dict(
        w1t=w1.reshape(C1, K_FLAT).T.astype(jnp.bfloat16),   # streamed as bf16
        g1=1.0 + 0.1 * jax.random.normal(ks[5], (1, C1), jnp.float32),
        b1=0.1 * jax.random.normal(ks[6], (1, C1), jnp.float32),
        w2t=w2.reshape(C2, C1).T,
        bias2=0.1 * jax.random.normal(ks[7], (1, C2), jnp.float32),
        g2=1.0 + 0.1 * jax.random.normal(ks[8], (1, C2), jnp.float32),
        b2=0.1 * jax.random.normal(ks[9], (1, C2), jnp.float32),
        wht=wht,
        bh=bh,
    )


def ref_forward(x_nchw, p):
    """Pure-JAX reference (same math, same bf16-quantized conv1 operands)."""
    hp = jax.lax.Precision.HIGHEST
    x2d = x_nchw.reshape(N, K_FLAT).astype(jnp.bfloat16).astype(jnp.float32)
    w1 = p["w1t"].astype(jnp.float32)
    h1 = jnp.dot(x2d, w1, precision=hp)
    m1 = h1.mean(0, keepdims=True)
    v1 = ((h1 - m1) ** 2).mean(0, keepdims=True)
    h1 = (h1 - m1) / jnp.sqrt(v1 + EPS) * p["g1"] + p["b1"]
    h2 = jnp.dot(h1, p["w2t"], precision=hp) + p["bias2"]
    m2 = h2.mean(0, keepdims=True)
    v2 = ((h2 - m2) ** 2).mean(0, keepdims=True)
    h2 = (h2 - m2) / jnp.sqrt(v2 + EPS) * p["g2"] + p["b2"]
    a = jnp.where(h2 > 0, h2, 0.1 * h2)
    heads = jnp.dot(a, p["wht"], precision=hp) + p["bh"]
    disc = heads[:, :N_DISC]
    mu = heads[:, N_DISC:N_DISC + N_CONT]
    var = jnp.exp(heads[:, VAR_LO:VAR_HI])
    return disc, mu, var


if __name__ == "__main__":
    key = jax.random.PRNGKey(0)
    kx, kp = jax.random.split(key)
    x = jax.random.normal(kx, (N, C_IN, H, W), jnp.float32)   # NCHW, like PyTorch
    params = init_params(kp)

    disc, mu, var = jax.block_until_ready(qhead_forward(x, params))

    # sanity check vs pure-JAX reference (same batch-stat BN semantics)
    rd, rm, rv = ref_forward(x, params)
    assert disc.shape == (N, N_DISC) and mu.shape == (N, N_CONT) and var.shape == (N, N_CONT)
    assert float(jnp.max(jnp.abs(disc - rd))) < 1e-2
    assert float(jnp.max(jnp.abs(mu - rm))) < 1e-2
    assert float(jnp.max(jnp.abs(var - rv))) < 1e-2

    print("KERNEL_OK")
</pallas_src>

<mosaic_0001>
module attributes {stable_mosaic.version = 11 : i64} {
  func.func @qhead_kernel(%arg0: i32, %arg1: memref<2x4096xbf16, #tpu.memory_space<vmem>>, %arg2: memref<4096x512xbf16, #tpu.memory_space<vmem>>, %arg3: memref<1x512xf32, #tpu.memory_space<vmem>>, %arg4: memref<1x512xf32, #tpu.memory_space<vmem>>, %arg5: memref<512x1024xf32, #tpu.memory_space<vmem>>, %arg6: memref<1x1024xf32, #tpu.memory_space<vmem>>, %arg7: memref<1x1024xf32, #tpu.memory_space<vmem>>, %arg8: memref<1x1024xf32, #tpu.memory_space<vmem>>, %arg9: memref<1024x128xf32, #tpu.memory_space<vmem>>, %arg10: memref<1x128xf32, #tpu.memory_space<vmem>>, %arg11: memref<2x128xf32, #tpu.memory_space<vmem>>, %arg12: memref<2x512xf32, #tpu.memory_space<vmem>>) attributes {dimension_semantics = [#tpu.dimension_semantics<arbitrary>], iteration_bounds = array<i64: 2>, scalar_prefetch = 0 : i64, scratch_operands = 1 : i64, tpu.core_type = #tpu.core_type<tc>, window_params = [{transform_indices = @transform_0, window_bounds = array<i64: 2, 4096>}, {transform_indices = @transform_1, window_bounds = array<i64: 4096, 512>}, {pipeline_mode = #tpu.pipeline_mode<synchronous>, transform_indices = @transform_2, window_bounds = array<i64: 1, 512>}, {pipeline_mode = #tpu.pipeline_mode<synchronous>, transform_indices = @transform_3, window_bounds = array<i64: 1, 512>}, {pipeline_mode = #tpu.pipeline_mode<synchronous>, transform_indices = @transform_4, window_bounds = array<i64: 512, 1024>}, {pipeline_mode = #tpu.pipeline_mode<synchronous>, transform_indices = @transform_5, window_bounds = array<i64: 1, 1024>}, {pipeline_mode = #tpu.pipeline_mode<synchronous>, transform_indices = @transform_6, window_bounds = array<i64: 1, 1024>}, {pipeline_mode = #tpu.pipeline_mode<synchronous>, transform_indices = @transform_7, window_bounds = array<i64: 1, 1024>}, {pipeline_mode = #tpu.pipeline_mode<synchronous>, transform_indices = @transform_8, window_bounds = array<i64: 1024, 128>}, {pipeline_mode = #tpu.pipeline_mode<synchronous>, transform_indices = @transform_9, window_bounds = array<i64: 1, 128>}, {pipeline_mode = #tpu.pipeline_mode<synchronous>, transform_indices = @transform_10, window_bounds = array<i64: 2, 128>}]} {
    %c0_i32 = arith.constant 0 : i32
    %0 = arith.cmpi eq, %arg0, %c0_i32 : i32
    %1 = arith.extui %0 : i1 to i32
    %c0_i32_0 = arith.constant 0 : i32
    %2 = arith.cmpi ne, %1, %c0_i32_0 : i32
    scf.if %2 {
      %cst_9 = arith.constant 0.000000e+00 : f32
      %12 = vector.broadcast %cst_9 : f32 to vector<2x512xf32>
      %c0_10 = arith.constant 0 : index
      %c0_11 = arith.constant 0 : index
      %13 = vector.load %arg12[%c0_10, %c0_11] : memref<2x512xf32, #tpu.memory_space<vmem>>, vector<2x512xf32>
      tpu.vector_store %arg12[%c0_10, %c0_11], %12 {strides = array<i32>} : memref<2x512xf32, #tpu.memory_space<vmem>>, vector<2x512xf32>,
    } else {
    }
    %c0 = arith.constant 0 : index
    %c0_1 = arith.constant 0 : index
    %3 = vector.load %arg12[%c0, %c0_1] : memref<2x512xf32, #tpu.memory_space<vmem>>, vector<2x512xf32>
    %c0_2 = arith.constant 0 : index
    %c0_3 = arith.constant 0 : index
    %4 = vector.load %arg1[%c0_2, %c0_3] : memref<2x4096xbf16, #tpu.memory_space<vmem>>, vector<2x4096xbf16>
    %c0_4 = arith.constant 0 : index
    %c0_5 = arith.constant 0 : index
    %5 = vector.load %arg2[%c0_4, %c0_5] : memref<4096x512xbf16, #tpu.memory_space<vmem>>, vector<4096x512xbf16>
    %cst = arith.constant dense<0.000000e+00> : vector<2x512xf32>
    %6 = tpu.matmul %4, %5, %cst {dimension_numbers = #tpu.dot_dimension_numbers<[1], [0], [0], [1], [0, 0, 1, 1], [], []>} : vector<2x4096xbf16>, vector<4096x512xbf16>, vector<2x512xf32> -> vector<2x512xf32>
    %7 = arith.addf %3, %6 : vector<2x512xf32>
    %c0_6 = arith.constant 0 : index
    %c0_7 = arith.constant 0 : index
    %8 = vector.load %arg12[%c0_6, %c0_7] : memref<2x512xf32, #tpu.memory_space<vmem>>, vector<2x512xf32>
    tpu.vector_store %arg12[%c0_6, %c0_7], %7 {strides = array<i32>} : memref<2x512xf32, #tpu.memory_space<vmem>>, vector<2x512xf32>,
    %c1_i32 = arith.constant 1 : i32
    %9 = arith.cmpi eq, %arg0, %c1_i32 : i32
    %10 = arith.extui %9 : i1 to i32
    %c0_i32_8 = arith.constant 0 : i32
    %11 = arith.cmpi ne, %10, %c0_i32_8 : i32
    scf.if %11 {
      %c0_9 = arith.constant 0 : index
      %c0_10 = arith.constant 0 : index
      %12 = vector.load %arg12[%c0_9, %c0_10] : memref<2x512xf32, #tpu.memory_space<vmem>>, vector<2x512xf32>
      %cst_11 = arith.constant dense<0.000000e+00> : vector<512xf32>
      %13 = vector.multi_reduction <add>, %12, %cst_11 [0] : vector<2x512xf32> to vector<512xf32>
      %14 = vector.shape_cast %13 : vector<512xf32> to vector<1x512xf32>
      %cst_12 = arith.constant 2.000000e+00 : f32
      %15 = vector.broadcast %cst_12 : f32 to vector<1x512xf32>
      %16 = arith.divf %14, %15 : vector<1x512xf32>
      %17 = vector.broadcast %16 : vector<1x512xf32> to vector<2x512xf32>
      %18 = arith.subf %12, %17 : vector<2x512xf32>
      %19 = arith.mulf %18, %18 : vector<2x512xf32>
      %cst_13 = arith.constant dense<0.000000e+00> : vector<512xf32>
      %20 = vector.multi_reduction <add>, %19, %cst_13 [0] : vector<2x512xf32> to vector<512xf32>
      %21 = vector.shape_cast %20 : vector<512xf32> to vector<1x512xf32>
      %cst_14 = arith.constant 2.000000e+00 : f32
      %22 = vector.broadcast %cst_14 : f32 to vector<1x512xf32>
      %23 = arith.divf %21, %22 : vector<1x512xf32>
      %24 = vector.broadcast %16 : vector<1x512xf32> to vector<2x512xf32>
      %25 = arith.subf %12, %24 : vector<2x512xf32>
      %cst_15 = arith.constant 9.99999974E-6 : f32
      %26 = vector.broadcast %cst_15 : f32 to vector<1x512xf32>
      %27 = arith.addf %23, %26 : vector<1x512xf32>
      %28 = math.rsqrt %27 : vector<1x512xf32>
      %29 = vector.broadcast %28 : vector<1x512xf32> to vector<2x512xf32>
      %30 = arith.mulf %25, %29 : vector<2x512xf32>
      %c0_16 = arith.constant 0 : index
      %c0_17 = arith.constant 0 : index
      %31 = vector.load %arg3[%c0_16, %c0_17] : memref<1x512xf32, #tpu.memory_space<vmem>>, vector<1x512xf32>
      %32 = vector.broadcast %31 : vector<1x512xf32> to vector<2x512xf32>
      %33 = arith.mulf %30, %32 : vector<2x512xf32>
      %c0_18 = arith.constant 0 : index
      %c0_19 = arith.constant 0 : index
      %34 = vector.load %arg4[%c0_18, %c0_19] : memref<1x512xf32, #tpu.memory_space<vmem>>, vector<1x512xf32>
      %35 = vector.broadcast %34 : vector<1x512xf32> to vector<2x512xf32>
      %36 = arith.addf %33, %35 : vector<2x512xf32>
      %c0_20 = arith.constant 0 : index
      %c0_21 = arith.constant 0 : index
      %37 = vector.load %arg5[%c0_20, %c0_21] : memref<512x1024xf32, #tpu.memory_space<vmem>>, vector<512x1024xf32>
      %cst_22 = arith.constant dense<0.000000e+00> : vector<2x1024xf32>
      %38 = tpu.matmul %36, %37, %cst_22 {dimension_numbers = #tpu.dot_dimension_numbers<[1], [0], [0], [1], [0, 0, 1, 1], [], []>} : vector<2x512xf32>, vector<512x1024xf32>, vector<2x1024xf32> -> vector<2x1024xf32>
      %c0_23 = arith.constant 0 : index
      %c0_24 = arith.constant 0 : index
      %39 = vector.load %arg6[%c0_23, %c0_24] : memref<1x1024xf32, #tpu.memory_space<vmem>>, vector<1x1024xf32>
      %40 = vector.broadcast %39 : vector<1x1024xf32> to vector<2x1024xf32>
      %41 = arith.addf %38, %40 : vector<2x1024xf32>
      %cst_25 = arith.constant dense<0.000000e+00> : vector<1024xf32>
      %42 = vector.multi_reduction <add>, %41, %cst_25 [0] : vector<2x1024xf32> to vector<1024xf32>
      %43 = vector.shape_cast %42 : vector<1024xf32> to vector<1x1024xf32>
      %cst_26 = arith.constant 2.000000e+00 : f32
      %44 = vector.broadcast %cst_26 : f32 to vector<1x1024xf32>
      %45 = arith.divf %43, %44 : vector<1x1024xf32>
      %46 = vector.broadcast %45 : vector<1x1024xf32> to vector<2x1024xf32>
      %47 = arith.subf %41, %46 : vector<2x1024xf32>
      %48 = arith.mulf %47, %47 : vector<2x1024xf32>
      %cst_27 = arith.constant dense<0.000000e+00> : vector<1024xf32>
      %49 = vector.multi_reduction <add>, %48, %cst_27 [0] : vector<2x1024xf32> to vector<1024xf32>
      %50 = vector.shape_cast %49 : vector<1024xf32> to vector<1x1024xf32>
      %cst_28 = arith.constant 2.000000e+00 : f32
      %51 = vector.broadcast %cst_28 : f32 to vector<1x1024xf32>
      %52 = arith.divf %50, %51 : vector<1x1024xf32>
      %53 = vector.broadcast %45 : vector<1x1024xf32> to vector<2x1024xf32>
      %54 = arith.subf %41, %53 : vector<2x1024xf32>
      %cst_29 = arith.constant 9.99999974E-6 : f32
      %55 = vector.broadcast %cst_29 : f32 to vector<1x1024xf32>
      %56 = arith.addf %52, %55 : vector<1x1024xf32>
      %57 = math.rsqrt %56 : vector<1x1024xf32>
      %58 = vector.broadcast %57 : vector<1x1024xf32> to vector<2x1024xf32>
      %59 = arith.mulf %54, %58 : vector<2x1024xf32>
      %c0_30 = arith.constant 0 : index
      %c0_31 = arith.constant 0 : index
      %60 = vector.load %arg7[%c0_30, %c0_31] : memref<1x1024xf32, #tpu.memory_space<vmem>>, vector<1x1024xf32>
      %61 = vector.broadcast %60 : vector<1x1024xf32> to vector<2x1024xf32>
      %62 = arith.mulf %59, %61 : vector<2x1024xf32>
      %c0_32 = arith.constant 0 : index
      %c0_33 = arith.constant 0 : index
      %63 = vector.load %arg8[%c0_32, %c0_33] : memref<1x1024xf32, #tpu.memory_space<vmem>>, vector<1x1024xf32>
      %64 = vector.broadcast %63 : vector<1x1024xf32> to vector<2x1024xf32>
      %65 = arith.addf %62, %64 : vector<2x1024xf32>
      %cst_34 = arith.constant 0.000000e+00 : f32
      %66 = vector.broadcast %cst_34 : f32 to vector<2x1024xf32>
      %67 = arith.cmpf ogt, %65, %66 : vector<2x1024xf32>
      %cst_35 = arith.constant 1.000000e-01 : f32
      %68 = vector.broadcast %cst_35 : f32 to vector<2x1024xf32>
      %69 = arith.mulf %68, %65 : vector<2x1024xf32>
      %70 = arith.select %67, %65, %69 : vector<2x1024xi1>, vector<2x1024xf32>
      %c0_36 = arith.constant 0 : index
      %c0_37 = arith.constant 0 : index
      %71 = vector.load %arg9[%c0_36, %c0_37] : memref<1024x128xf32, #tpu.memory_space<vmem>>, vector<1024x128xf32>
      %cst_38 = arith.constant dense<0.000000e+00> : vector<2x128xf32>
      %72 = tpu.matmul %70, %71, %cst_38 {dimension_numbers = #tpu.dot_dimension_numbers<[1], [0], [0], [1], [0, 0, 1, 1], [], []>} : vector<2x1024xf32>, vector<1024x128xf32>, vector<2x128xf32> -> vector<2x128xf32>
      %c0_39 = arith.constant 0 : index
      %c0_40 = arith.constant 0 : index
      %73 = vector.load %arg10[%c0_39, %c0_40] : memref<1x128xf32, #tpu.memory_space<vmem>>, vector<1x128xf32>
      %74 = vector.broadcast %73 : vector<1x128xf32> to vector<2x128xf32>
      %75 = arith.addf %72, %74 : vector<2x128xf32>
      %76 = tpu.iota {dimensions = array<i32: 1>} : vector<2x128xi32>
      %c102_i32 = arith.constant 102 : i32
      %77 = vector.broadcast %c102_i32 : i32 to vector<2x128xi32>
      %78 = arith.cmpi sge, %76, %77 : vector<2x128xi32>
      %c104_i32 = arith.constant 104 : i32
      %79 = vector.broadcast %c104_i32 : i32 to vector<2x128xi32>
      %80 = arith.cmpi slt, %76, %79 : vector<2x128xi32>
      %81 = arith.andi %78, %80 : vector<2x128xi1>
      %82 = math.exp %75 : vector<2x128xf32>
      %83 = arith.select %81, %82, %75 : vector<2x128xi1>, vector<2x128xf32>
      %c0_41 = arith.constant 0 : index
      %c0_42 = arith.constant 0 : index
      %84 = vector.load %arg11[%c0_41, %c0_42] : memref<2x128xf32, #tpu.memory_space<vmem>>, vector<2x128xf32>
      tpu.vector_store %arg11[%c0_41, %c0_42], %83 {strides = array<i32>} : memref<2x128xf32, #tpu.memory_space<vmem>>, vector<2x128xf32>,
    } else {
    }
    return
  }
  func.func @transform_0(%arg0: i32) -> (i32, i32) {
    %c0_i32 = arith.constant 0 : i32
    %c0_i32_0 = arith.constant 0 : i32
    return %c0_i32, %arg0 : i32, i32
  }
  func.func @transform_1(%arg0: i32) -> (i32, i32) {
    %c0_i32 = arith.constant 0 : i32
    %c0_i32_0 = arith.constant 0 : i32
    return %arg0, %c0_i32 : i32, i32
  }
  func.func @transform_2(%arg0: i32) -> (i32, i32) {
    %c0_i32 = arith.constant 0 : i32
    %c0_i32_0 = arith.constant 0 : i32
    %c0_i32_1 = arith.constant 0 : i32
    return %c0_i32, %c0_i32_0 : i32, i32
  }
  func.func @transform_3(%arg0: i32) -> (i32, i32) {
    %c0_i32 = arith.constant 0 : i32
    %c0_i32_0 = arith.constant 0 : i32
    %c0_i32_1 = arith.constant 0 : i32
    return %c0_i32, %c0_i32_0 : i32, i32
  }
  func.func @transform_4(%arg0: i32) -> (i32, i32) {
    %c0_i32 = arith.constant 0 : i32
    %c0_i32_0 = arith.constant 0 : i32
    %c0_i32_1 = arith.constant 0 : i32
    return %c0_i32, %c0_i32_0 : i32, i32
  }
  func.func @transform_5(%arg0: i32) -> (i32, i32) {
    %c0_i32 = arith.constant 0 : i32
    %c0_i32_0 = arith.constant 0 : i32
    %c0_i32_1 = arith.constant 0 : i32
    return %c0_i32, %c0_i32_0 : i32, i32
  }
  func.func @transform_6(%arg0: i32) -> (i32, i32) {
    %c0_i32 = arith.constant 0 : i32
    %c0_i32_0 = arith.constant 0 : i32
    %c0_i32_1 = arith.constant 0 : i32
    return %c0_i32, %c0_i32_0 : i32, i32
  }
  func.func @transform_7(%arg0: i32) -> (i32, i32) {
    %c0_i32 = arith.constant 0 : i32
    %c0_i32_0 = arith.constant 0 : i32
    %c0_i32_1 = arith.constant 0 : i32
    return %c0_i32, %c0_i32_0 : i32, i32
  }
  func.func @transform_8(%arg0: i32) -> (i32, i32) {
    %c0_i32 = arith.constant 0 : i32
    %c0_i32_0 = arith.constant 0 : i32
    %c0_i32_1 = arith.constant 0 : i32
    return %c0_i32, %c0_i32_0 : i32, i32
  }
  func.func @transform_9(%arg0: i32) -> (i32, i32) {
    %c0_i32 = arith.constant 0 : i32
    %c0_i32_0 = arith.constant 0 : i32
    %c0_i32_1 = arith.constant 0 : i32
    return %c0_i32, %c0_i32_0 : i32, i32
  }
  func.func @transform_10(%arg0: i32) -> (i32, i32) {
    %c0_i32 = arith.constant 0 : i32
    %c0_i32_0 = arith.constant 0 : i32
    %c0_i32_1 = arith.constant 0 : i32
    return %c0_i32, %c0_i32_0 : i32, i32
  }
}

</mosaic_0001>

<bundles_post_ra>
// kernel: tpu_custom_call.1
= control target key start
LH: loop header
LB: loop body
LE: loop exit
PB: predicated region body
PF: predicated region fallthrough
CT: control target
= control target key end

     0   :  { %s16403_s0 = inlined_call_operand.hbm [shape: bf16[2,8192], index: 0, kind: input, shape index: {}]   ;;  %s16404_s1 = inlined_call_operand.hbm [shape: bf16[8192,512], index: 1, kind: input, shape index: {}]   ;;  %s16405_s2 = inlined_call_operand.hbm [shape: f32[1,512], index: 2, kind: input, shape index: {}]   ;;  %s16406_s3 = inlined_call_operand.hbm [shape: f32[1,512], index: 3, kind: input, shape index: {}]   ;;  %s16407_s4 = inlined_call_operand.hbm [shape: f32[512,1024], index: 4, kind: input, shape index: {}]   ;;  %s16408_s5 = inlined_call_operand.hbm [shape: f32[1,1024], index: 5, kind: input, shape index: {}]   ;;  %s16409_s6 = inlined_call_operand.hbm [shape: f32[1,1024], index: 6, kind: input, shape index: {}]   ;;  %s16410_s7 = inlined_call_operand.hbm [shape: f32[1,1024], index: 7, kind: input, shape index: {}]   ;;  %s16411_s8 = inlined_call_operand.hbm [shape: f32[1024,128], index: 8, kind: input, shape index: {}]   ;;  %s16412_s9 = inlined_call_operand.hbm [shape: f32[1,128], index: 9, kind: input, shape index: {}]   ;;  %s16413_s10 = inlined_call_operand.hbm [shape: f32[2,128], index: 10, kind: output, shape index: {}]  }
   0x1   :  { %16417 = sst [smem:[#allocation29_spill]] %s16405_s2 }
   0x2   :  { %16418 = sst [smem:[#allocation30_spill]] %s16406_s3 }
   0x3   :  { %16419 = sst [smem:[#allocation31_spill]] %s16408_s5 }
   0x4   :  { %16420 = sst [smem:[#allocation32_spill]] %s16413_s10 }
   0x5   :  { %15 = vsyncpa [#allocation4], 0 }
   0x6   :  { %17 = vsyncpa [#allocation4 + $0x1], 0 }
   0x7   :  { %18 = vsyncpa [#allocation7], 0 }
   0x8   :  { %20 = vsyncpa [#allocation7 + $0x1], 0 }
   0x9   :  { %21 = vsyncpa [#allocation10], 0 }
   0xa   :  { %22 = vsyncpa [#allocation13], 0 }
   0xb   :  { %23 = vsyncpa [#allocation16], 0 }
   0xc   :  { %24 = vsyncpa [#allocation19], 0 }
   0xd   :  { %25 = vsyncpa [#allocation5], 0  ;;  %s14631_s13 = smov 0   ;;  %s14633_s14 = smov 0  }
   0xe   :  { %s14635_s15 = smov 0   ;;  %s14637_s16 = smov 0  }
   0xf LB: > { %s14556_s17 = smov [#allocation8]   ;;  %s14652_s19 = sadd.s32 4294967295, %s14554_s16   ;;  %s14554_s16 = sphi %s14637_s16, %s16446_s16   ;;  %s14550_s15 = sphi %s14635_s15, %s16445_s15   ;;  %s14546_s14 = sphi %s14633_s14, %s16444_s14   ;;  %s14542_s13 = sphi %s14631_s13, %s16443_s13  }
  0x10   : > { %s290_s18 = sshll.u32 %s14556_s17, 4  ;;  %p10494_p0 = scmp.ge.s32.totalorder %s14554_s16, 1  ;;  %s14658_s18 = int_to_ptr.vmem [resolvable:$true] %s290_s18 }
  0x11   : > { %p16415_p1 = scmp.eq.s32.totalorder %s14652_s19, 0  ;;  %p277_p2 = scmp.lt.s32.totalorder %s14554_s16, 3 }
  0x12   : > { %s14557_s21 = smov [#allocation9]   ;;  %s14558_s23 = smov [#allocation12]  }
  0x13   : > { %p14660_p4 = pnand %p10494_p0, %p277_p2  ;;  %s301_s22 = sshll.u32 %s14557_s21, 4  ;;  %s14666_s22 = int_to_ptr.vmem [resolvable:$true] %s301_s22 }
  0x14   : > { %s325_s24 = sshll.u32 %s14558_s23, 4  ;;  %s14559_s26 = smov [#allocation15]   ;;  %s14674_s24 = int_to_ptr.vmem [resolvable:$true] %s325_s24 }
  0x15   : > { %s16421_s20 = scalar_select %p14660_p4, 1, 0 }
  0x16   : > { %p12512_p5 = pneg %p14660_p4  ;;  %s14676_s27 = sshll.u32 %s14559_s26, 4  ;;  %s348_s27 = int_to_ptr.vmem [resolvable:$true] %s14676_s27 }
  0x17   : > { %s16423_s2 = sld [smem:[#allocation29_spill]] }
  0x18   : > { %p14670_p6 = pnand %p12512_p5, %p16415_p1 }
  0x1a   : > { %p14686_p8 = pneg %p14670_p6 }
  0x1d   : > { %s14182_s30 = scalar_lea.hbm %s16423_s2, 64 }
  0x1e   : > { %p14183_p7 = scmp.ne.s32.totalorder %s16423_s2, %s14182_s30  ;;  %p14189_p11 = scmp.lt.u32.totalorder %s14182_s30, %s16423_s2 }
  0x20   : > { %p14185_p9 = pnand %p14686_p8, %p14183_p7 }
  0x22   : > { %p14186_p10 = pneg %p14185_p9 }
  0x24   : > { %p14191_p12 = pnand %p14189_p11, %p14186_p10 }
  0x26   : > { %14194 = shalt.err (!%p14191_p12)
}
  0x27   : > { %s14195_s26 = scalar_lea.vmem %s14658_s18, 64  ;;  %p14203_p5 = scmp.lt.s32.totalorder %s14658_s18, %s14658_s18 }
  0x28   : > { %p14196_p13 = scmp.ne.s32.totalorder %s14658_s18, %s14195_s26  ;;  %p14204_p3 = scmp.lt.s32.totalorder %s14195_s26, %s14195_s26 }
  0x2a   : > { %p14198_p0 = pnand %p14196_p13, %p14686_p8  ;;  %p14205_p7 = por %p14204_p3, %p14203_p5 }
  0x2c   : > { %p14199_p2 = pneg %p14198_p0 }
  0x2e   : > { %p14206_p9 = pnand %p14205_p7, %p14199_p2 }
  0x30   : > { %14209 = shalt.err (!%p14206_p9)
}
  0x31   : > { %12515 = dma.hbm_to_vmem [thread:$0]  (!%p14670_p6), %s16423_s2, 64, %s14658_s18, [#allocation7]  }
  0x32   : > { %s16425_s3 = sld [smem:[#allocation30_spill]] }
  0x38   : > { %s14210_s12 = scalar_lea.hbm %s16425_s3, 64 }
  0x39   : > { %p14211_p10 = scmp.ne.s32.totalorder %s16425_s3, %s14210_s12  ;;  %p14217_p12 = scmp.lt.u32.totalorder %s14210_s12, %s16425_s3 }
  0x3b   : > { %p14213_p3 = pnand %p14211_p10, %p14686_p8 }
  0x3d   : > { %p14214_p11 = pneg %p14213_p3 }
  0x3f   : > { %p14219_p13 = pnand %p14217_p12, %p14214_p11 }
  0x41   : > { %14222 = shalt.err (!%p14219_p13)
}
  0x42   : > { %s14223_s18 = scalar_lea.vmem %s14666_s22, 64  ;;  %p14231_p7 = scmp.lt.s32.totalorder %s14666_s22, %s14666_s22 }
  0x43   : > { %p14224_p0 = scmp.ne.s32.totalorder %s14666_s22, %s14223_s18  ;;  %p14232_p9 = scmp.lt.s32.totalorder %s14223_s18, %s14223_s18 }
  0x45   : > { %p14226_p2 = pnand %p14224_p0, %p14686_p8  ;;  %p14233_p10 = por %p14232_p9, %p14231_p7 }
  0x47   : > { %p14227_p5 = pneg %p14226_p2 }
  0x49   : > { %p14234_p3 = pnand %p14233_p10, %p14227_p5 }
  0x4b   : > { %14237 = shalt.err (!%p14234_p3)
}
  0x4c   : > { %12518 = dma.hbm_to_vmem [thread:$0]  (!%p14670_p6), %s16425_s3, 64, %s14666_s22, [#allocation10]  }
  0x4d   : > { %s16426_s5 = sld [smem:[#allocation31_spill]] }
  0x53   : > { %s14238_s11 = scalar_lea.hbm %s16426_s5, 128 }
  0x54   : > { %p14239_p11 = scmp.ne.s32.totalorder %s16426_s5, %s14238_s11  ;;  %p14245_p0 = scmp.lt.u32.totalorder %s14238_s11, %s16426_s5 }
  0x56   : > { %p14241_p12 = pnand %p14239_p11, %p14686_p8 }
  0x58   : > { %p14242_p13 = pneg %p14241_p12 }
  0x5a   : > { %p14247_p2 = pnand %p14245_p0, %p14242_p13 }
  0x5c   : > { %14250 = shalt.err (!%p14247_p2)
}
  0x5d   : > { %s14251_s22 = scalar_lea.vmem %s14674_s24, 128  ;;  %p14259_p10 = scmp.lt.s32.totalorder %s14674_s24, %s14674_s24 }
  0x5e   : > { %p14252_p5 = scmp.ne.s32.totalorder %s14674_s24, %s14251_s22  ;;  %p14260_p3 = scmp.lt.s32.totalorder %s14251_s22, %s14251_s22 }
  0x60   : > { %p14254_p7 = pnand %p14252_p5, %p14686_p8  ;;  %p14261_p11 = por %p14260_p3, %p14259_p10 }
  0x62   : > { %p14255_p9 = pneg %p14254_p7 }
  0x64   : > { %p14262_p12 = pnand %p14261_p11, %p14255_p9 }
  0x66   : > { %14265 = shalt.err (!%p14262_p12)
}
  0x67   : > { %12524 = dma.hbm_to_vmem [thread:$0]  (!%p14670_p6), %s16426_s5, 128, %s14674_s24, [#allocation13]  }
  0x68   : > { %s14560_s28 = smov [#allocation11]   ;;  %s14266_s12 = scalar_lea.hbm %s16410_s7, 128 }
  0x69   : > { %s311_s29 = sshll.u32 %s14560_s28, 4  ;;  %p14267_p13 = scmp.ne.s32.totalorder %s16410_s7, %s14266_s12  ;;  %s312_s29 = int_to_ptr.vmem [resolvable:$true] %s311_s29 }
  0x6a   : > { %p14273_p5 = scmp.lt.u32.totalorder %s14266_s12, %s16410_s7 }
  0x6b   : > { %p14269_p0 = pnand %p14267_p13, %p14686_p8 }
  0x6d   : > { %p14270_p2 = pneg %p14269_p0 }
  0x6f   : > { %p14275_p7 = pnand %p14273_p5, %p14270_p2 }
  0x71   : > { %14278 = shalt.err (!%p14275_p7)
}
  0x72   : > { %s14279_s24 = scalar_lea.vmem %s348_s27, 128  ;;  %p14287_p11 = scmp.lt.s32.totalorder %s348_s27, %s348_s27 }
  0x73   : > { %p14280_p9 = scmp.ne.s32.totalorder %s348_s27, %s14279_s24  ;;  %p14288_p12 = scmp.lt.s32.totalorder %s14279_s24, %s14279_s24 }
  0x75   : > { %p14282_p10 = pnand %p14280_p9, %p14686_p8  ;;  %p14289_p1 = por %p14288_p12, %p14287_p11 }
  0x77   : > { %p14283_p3 = pneg %p14282_p10 }
  0x79   : > { %p14290_p4 = pnand %p14289_p1, %p14283_p3 }
  0x7b   : > { %14293 = shalt.err (!%p14290_p4)
}
  0x7c   : > { %12530 = dma.hbm_to_vmem [thread:$0]  (!%p14670_p6), %s16410_s7, 128, %s348_s27, [#allocation16]  }
  0x7d   : > { %s14294_s11 = scalar_lea.hbm %s16407_s4, 65536 }
  0x7e   : > { %p14295_p13 = scmp.ne.s32.totalorder %s16407_s4, %s14294_s11  ;;  %p14301_p4 = scmp.lt.u32.totalorder %s14294_s11, %s16407_s4 }
  0x80   : > { %p14297_p0 = pnand %p14295_p13, %p14686_p8 }
  0x82   : > { %p14298_p1 = pneg %p14297_p0 }
  0x84   : > { %p14303_p2 = pnand %p14301_p4, %p14298_p1 }
  0x86   : > { %14306 = shalt.err (!%p14303_p2)
}
  0x87   : > { %s14307_s22 = scalar_lea.vmem %s312_s29, 65536  ;;  %p14315_p10 = scmp.lt.s32.totalorder %s312_s29, %s312_s29 }
  0x88   : > { %p14308_p5 = scmp.ne.s32.totalorder %s312_s29, %s14307_s22  ;;  %p14316_p3 = scmp.lt.s32.totalorder %s14307_s22, %s14307_s22 }
  0x8a   : > { %p14310_p7 = pnand %p14308_p5, %p14686_p8  ;;  %p14317_p11 = por %p14316_p3, %p14315_p10 }
  0x8c   : > { %p14311_p9 = pneg %p14310_p7 }
  0x8e   : > { %p14318_p12 = pnand %p14317_p11, %p14311_p9 }
  0x90   : > { %14321 = shalt.err (!%p14318_p12)
}
  0x91   : > { %s14561_s27 = smov 1024   ;;  %s14562_s24 = smov 64  }
  0x92   : > { %12521 = dma.hbm_to_vmem [thread:$0]  (!%p14670_p6), %s16407_s4, 65536, %s312_s29, [#allocation10], %s14561_s27, %s14561_s27, %s14562_s24  }
  0x93   : > { %s14563_s28 = smov [#allocation14]   ;;  %s14564_s11 = smov [#allocation17]  }
  0x94   : > { %s336_s30 = sshll.u32 %s14563_s28, 4  ;;  %s357_s12 = sshll.u32 %s14564_s11, 4  ;;  %s337_s30 = int_to_ptr.vmem [resolvable:$true] %s336_s30  ;;  %s358_s12 = int_to_ptr.vmem [resolvable:$true] %s357_s12 }
  0x95   : > { %s14322_s26 = scalar_lea.hbm %s16409_s6, 128 }
  0x96   : > { %p14323_p13 = scmp.ne.s32.totalorder %s16409_s6, %s14322_s26  ;;  %p14329_p4 = scmp.lt.u32.totalorder %s14322_s26, %s16409_s6 }
  0x98   : > { %p14325_p0 = pnand %p14323_p13, %p14686_p8 }
  0x9a   : > { %p14326_p1 = pneg %p14325_p0 }
  0x9c   : > { %p14331_p2 = pnand %p14329_p4, %p14326_p1 }
  0x9e   : > { %14334 = shalt.err (!%p14331_p2)
}
  0x9f   : > { %s14335_s29 = scalar_lea.vmem %s337_s30, 128  ;;  %p14343_p10 = scmp.lt.s32.totalorder %s337_s30, %s337_s30 }
  0xa0   : > { %p14336_p5 = scmp.ne.s32.totalorder %s337_s30, %s14335_s29  ;;  %p14344_p3 = scmp.lt.s32.totalorder %s14335_s29, %s14335_s29 }
  0xa2   : > { %p14338_p7 = pnand %p14336_p5, %p14686_p8  ;;  %p14345_p11 = por %p14344_p3, %p14343_p10 }
  0xa4   : > { %p14339_p9 = pneg %p14338_p7 }
  0xa6   : > { %p14346_p12 = pnand %p14345_p11, %p14339_p9 }
  0xa8   : > { %14349 = shalt.err (!%p14346_p12)
}
  0xa9   : > { %12527 = dma.hbm_to_vmem [thread:$0]  (!%p14670_p6), %s16409_s6, 128, %s337_s30, [#allocation13]  }
  0xaa   : > { %s14350_s24 = scalar_lea.hbm %s16411_s8, 16384 }
  0xab   : > { %p14351_p13 = scmp.ne.s32.totalorder %s16411_s8, %s14350_s24  ;;  %p14357_p4 = scmp.lt.u32.totalorder %s14350_s24, %s16411_s8 }
  0xad   : > { %p14353_p0 = pnand %p14351_p13, %p14686_p8 }
  0xaf   : > { %p14354_p1 = pneg %p14353_p0 }
  0xb1   : > { %p14359_p2 = pnand %p14357_p4, %p14354_p1 }
  0xb3   : > { %14362 = shalt.err (!%p14359_p2)
}
  0xb4   : > { %s14363_s21 = scalar_lea.vmem %s358_s12, 16384  ;;  %p14371_p10 = scmp.lt.s32.totalorder %s358_s12, %s358_s12 }
  0xb5   : > { %p14364_p5 = scmp.ne.s32.totalorder %s358_s12, %s14363_s21  ;;  %p14372_p3 = scmp.lt.s32.totalorder %s14363_s21, %s14363_s21 }
  0xb7   : > { %p14366_p7 = pnand %p14364_p5, %p14686_p8  ;;  %p14373_p11 = por %p14372_p3, %p14371_p10 }
  0xb9   : > { %p14367_p9 = pneg %p14366_p7 }
  0xbb   : > { %p14374_p12 = pnand %p14373_p11, %p14367_p9 }
  0xbd   : > { %14377 = shalt.err (!%p14374_p12)
}
  0xbe   : > { %s14565_s30 = smov 128   ;;  %s14566_s23 = smov 8  }
  0xbf   : > { %12533 = dma.hbm_to_vmem [thread:$0]  (!%p14670_p6), %s16411_s8, 16384, %s358_s12, [#allocation16], %s14565_s30, %s14565_s30, %s14566_s23  }
  0xc0   : > { %s14567_s29 = smov [#allocation18]   ;;  %s14378_s5 = scalar_lea.hbm %s16412_s9, 16 }
  0xc1   : > { %s371_s2 = sshll.u32 %s14567_s29, 4  ;;  %p14379_p13 = scmp.ne.s32.totalorder %s16412_s9, %s14378_s5  ;;  %s372_s2 = int_to_ptr.vmem [resolvable:$true] %s371_s2 }
  0xc2   : > { %p14385_p4 = scmp.lt.u32.totalorder %s14378_s5, %s16412_s9 }
  0xc3   : > { %p14381_p0 = pnand %p14379_p13, %p14686_p8 }
  0xc5   : > { %p14382_p1 = pneg %p14381_p0 }
  0xc7   : > { %p14387_p2 = pnand %p14385_p4, %p14382_p1 }
  0xc9   : > { %14390 = shalt.err (!%p14387_p2)
}
  0xca   : > { %s14391_s12 = scalar_lea.vmem %s372_s2, 16  ;;  %s14398_s11 = scalar_lea.vmem %s372_s2, 32 }
  0xcb   : > { %p14392_p5 = scmp.ne.s32.totalorder %s372_s2, %s14391_s12  ;;  %p14399_p10 = scmp.lt.s32.totalorder %s372_s2, %s372_s2 }
  0xcc   : > { %p14400_p3 = scmp.lt.s32.totalorder %s14398_s11, %s14391_s12 }
  0xcd   : > { %p14394_p7 = pnand %p14392_p5, %p14686_p8 }
  0xce   : > { %p14401_p11 = por %p14400_p3, %p14399_p10 }
  0xcf   : > { %p14395_p9 = pneg %p14394_p7 }
  0xd1   : > { %p14402_p12 = pnand %p14401_p11, %p14395_p9 }
  0xd3   : > { %14405 = shalt.err (!%p14402_p12)
}
  0xd4   : > { %12536 = dma.hbm_to_vmem [thread:$0]  (!%p14670_p6), %s16412_s9, 16, %s372_s2, [#allocation19]  }
  0xd5   : > { %s14845_s17 = sadd.s32 1, %s14554_s16   ;;  %s38_s25 = sadd.s32 1, %s14550_s15 }
  0xd6   : > { %s35_s23 = ssub.s32 %s14554_s16, %s14845_s17  ;;  %p45_p8 = scmp.ne.s32.totalorder %s14550_s15, %s14546_s14 }
  0xd7   : > { %p36_p13 = scmp.eq.s32.totalorder %s35_s23, 0  ;;  %p46_p0 = scmp.eq.s32.totalorder %s14554_s16, 0 }
  0xd8   : > { %p51_p1 = scmp.ne.s32.totalorder %s14546_s14, %s14542_s13  ;;  %p12552_p4 = scmp.lt.s32.totalorder %s14554_s16, 2 }
  0xd9   : > { %s14857_s26 = scalar_select %p36_p13, %s14550_s15, %s38_s25  }
  0xda   : > { %p47_p2 = por %p46_p0, %p45_p8  ;;  %p16427_p5 = scmp.eq.s32.totalorder %s14652_s19, 0 }
  0xdb   : > { %s14866_s29 = sand.u32 1, %s14550_s15   ;;  %s11553_s2 = sshll.u32 %s14554_s16, 9 }
  0xdc   : > { %p14861_p7 = por %p16427_p5, %p51_p1  ;;  %s10504_s27 = sshll.u32 %s14866_s29, 5 }
  0xdd   : > { %s14873_s13 = scalar_lea.hbm %s16403_s0, %s11553_s2  ;;  %s386_s24 = scalar_lea.vmem [#allocation3], %s10504_s27 }
  0xde   : > { %s394_s18 = sshll.u32 %s386_s24, 4  ;;  %p14875_p6 = pnand %p12552_p4, %p47_p2  ;;  %s14879_s18 = int_to_ptr.vmem [resolvable:$true] %s394_s18 }
  0xdf   : > { %s10507_s28 = sshll.u32 %s14866_s29, 13  ;;  %s383_s12 = scalar_lea.sflag [#allocation4], %s14866_s29 }
  0xe0   : > { %s14406_s11 = scalar_lea.hbm %s14873_s13, 512  ;;  %p14408_p10 = pneg %p14875_p6 }
  0xe1   : > { %p14407_p9 = scmp.ne.s32.totalorder %s14873_s13, %s14406_s11  ;;  %s14411_s25 = scalar_lea.hbm %s16403_s0, 1024 }
  0xe2   : > { %p14412_p12 = scmp.lt.u32.totalorder %s14873_s13, %s16403_s0  ;;  %p14413_p8 = scmp.lt.u32.totalorder %s14411_s25, %s14406_s11 }
  0xe3   : > { %p14409_p3 = pnand %p14408_p10, %p14407_p9  ;;  %p14415_p0 = scmp.lt.u32.totalorder %s14406_s11, %s14873_s13 }
  0xe4   : > { %p14414_p13 = por %p14413_p8, %p14412_p12 }
  0xe5   : > { %p14410_p11 = pneg %p14409_p3 }
  0xe6   : > { %p14416_p1 = por %p14415_p0, %p14414_p13 }
  0xe8   : > { %p14417_p4 = pnand %p14416_p1, %p14410_p11 }
  0xea   : > { %14420 = shalt.err (!%p14417_p4)
}
  0xeb   : > { %s14421_s27 = scalar_lea.vmem %s14879_s18, 512  ;;  %s14568_s3 = smov [#allocation3]  }
  0xec   : > { %p14422_p2 = scmp.ne.s32.totalorder %s14879_s18, %s14421_s27  ;;  %s14426_s5 = sshll.u32 %s14568_s3, 4  ;;  %s14427_s5 = int_to_ptr.vmem [resolvable:$false] %s14426_s5 }
  0xed   : > { %s14428_s24 = scalar_lea.vmem %s14427_s5, 1024  ;;  %p14429_p3 = scmp.lt.s32.totalorder %s14879_s18, %s14427_s5 }
  0xee   : > { %p14424_p5 = pnand %p14422_p2, %p14408_p10  ;;  %p14430_p12 = scmp.lt.s32.totalorder %s14428_s24, %s14421_s27 }
  0xf0   : > { %p14425_p9 = pneg %p14424_p5  ;;  %p14431_p8 = por %p14430_p12, %p14429_p3 }
  0xf2   : > { %p14432_p13 = pnand %p14431_p8, %p14425_p9 }
  0xf4   : > { %14435 = shalt.err (!%p14432_p13)
}
  0xf5   : > { %12540 = dma.hbm_to_vmem [thread:$0]  (!%p14875_p6), %s14873_s13, 512, %s14879_s18, %s383_s12  }
  0xf6   : > { %s405_s11 = scalar_lea.vmem [#allocation6], %s10507_s28  ;;  %s401_s30 = sand.u32 1, %s14554_s16  }
  0xf7   : > { %s413_s21 = sshll.u32 %s405_s11, 4  ;;  %s11555_s25 = sshll.u32 %s14554_s16, 17  ;;  %s14911_s21 = int_to_ptr.vmem [resolvable:$true] %s413_s21 }
  0xf8   : > { %s14917_s27 = scalar_lea.hbm %s16404_s1, %s11555_s25  ;;  %s14919_s3 = scalar_lea.sflag [#allocation7], %s401_s30 }
  0xf9   : > { %s14436_s5 = scalar_lea.hbm %s14917_s27, 131072  ;;  %s14441_s16 = scalar_lea.hbm %s16404_s1, 262144 }
  0xfa   : > { %p14437_p11 = scmp.ne.s32.totalorder %s14917_s27, %s14436_s5  ;;  %p14442_p4 = scmp.lt.u32.totalorder %s14917_s27, %s16404_s1 }
  0xfb   : > { %p14443_p2 = scmp.lt.u32.totalorder %s14441_s16, %s14436_s5  ;;  %p14445_p9 = scmp.lt.u32.totalorder %s14436_s5, %s14917_s27 }
  0xfc   : > { %p14439_p0 = pnand %p14437_p11, %p14408_p10 }
  0xfd   : > { %p14444_p5 = por %p14443_p2, %p14442_p4 }
  0xfe   : > { %p14440_p1 = pneg %p14439_p0 }
  0xff   : > { %p14446_p3 = por %p14445_p9, %p14444_p5 }
 0x101   : > { %p14447_p12 = pnand %p14446_p3, %p14440_p1 }
 0x103   : > { %14450 = shalt.err (!%p14447_p12)
}
 0x104   : > { %s14451_s12 = scalar_lea.vmem %s14911_s21, 131072  ;;  %s14569_s24 = smov [#allocation6]  }
 0x105   : > { %p14452_p8 = scmp.ne.s32.totalorder %s14911_s21, %s14451_s12  ;;  %s14456_s11 = sshll.u32 %s14569_s24, 4  ;;  %s14457_s11 = int_to_ptr.vmem [resolvable:$false] %s14456_s11 }
 0x106   : > { %s14458_s30 = scalar_lea.vmem %s14457_s11, 262144  ;;  %p14459_p0 = scmp.lt.s32.totalorder %s14911_s21, %s14457_s11 }
 0x107   : > { %p14454_p13 = pnand %p14452_p8, %p14408_p10  ;;  %p14460_p4 = scmp.lt.s32.totalorder %s14458_s30, %s14451_s12 }
 0x109   : > { %p14455_p11 = pneg %p14454_p13  ;;  %p14461_p2 = por %p14460_p4, %p14459_p0 }
 0x10b   : > { %p14462_p5 = pnand %p14461_p2, %p14455_p11 }
 0x10d   : > { %14465 = shalt.err (!%p14462_p5)
}
 0x10e   : > { %s14570_s25 = smov 256   ;;  %s14571_s23 = smov 16  }
 0x10f   : > { %12543 = dma.hbm_to_vmem [thread:$0]  (!%p14875_p6), %s14917_s27, 131072, %s14911_s21, %s14919_s3, %s14570_s25, %s14570_s25, %s14571_s23  }
 0x110   : > { %p16430_p10 = scmp.ne.s32.totalorder %s16421_s20, 0 }
 0x111   : > { %s427_s2 = sand.u32 (!%p16430_p10), 1, %s14546_s14  }
 0x112   : > { %425 = sbr.rel (%p16430_p10) target bundleno = 2381 (0x94d), region = 60  ;;  %s10512_s5 = sshll.u32 (!%p16430_p10), %s427_s2, 5 }
 0x113   : > { %s428_s29 = scalar_lea.sflag (!%p16430_p10), [#allocation4], %s427_s2  ;;  %s14948_s13 = scalar_lea.vmem (!%p16430_p10), [#allocation3], %s10512_s5 }
 0x119   : > { %14509 = dma.done.wait (%p14861_p7), %s428_s29, 512  }
 0x11a   : > { %14511 = vsyncadd (%p14861_p7), %s428_s29, 4294966784  ;;  %s436_s16 = sand.u32 1, %s14652_s19   ;;  %s10513_s10 = sshll.u32 %s427_s2, 13 }
 0x11b   : > { %s437_s21 = scalar_lea.sflag [#allocation7], %s436_s16  ;;  %s14955_s27 = scalar_lea.vmem [#allocation6], %s10513_s10 }
 0x11c   : > { %14513 = dma.done.wait (%p14861_p7), %s437_s21, 131072  }
 0x11d   : > { %14515 = vsyncadd (%p14861_p7), %s437_s21, 4294836224  ;;  %p16431_p6 = scmp.eq.s32.totalorder %s14652_s19, 0 }
 0x11f   : > { %14517 = dma.done.wait (%p16431_p6), [#allocation7], 64   ;;  %p16432_p1 = pmov %p16431_p6 }
 0x121   : > { %14519 = vsyncadd (%p16432_p1), [#allocation7], 4294967232  ;;  %p16433_p9 = pmov %p16432_p1 }
 0x122   : > { %p16434_p3 = pmov %p16432_p1 }
 0x123   : > { %14521 = dma.done.wait (%p16433_p9), [#allocation10], 65600  }
 0x124   : > { %14523 = vsyncadd (%p16434_p3), [#allocation10], 4294901696  ;;  %p16435_p12 = pmov %p16432_p1 }
 0x125   : > { %p16436_p8 = pmov %p16432_p1 }
 0x126   : > { %14525 = dma.done.wait (%p16435_p12), [#allocation13], 256  }
 0x127   : > { %14527 = vsyncadd (%p16436_p8), [#allocation13], 4294967040  ;;  %p16437_p7 = pmov %p16432_p1 }
 0x128   : > { %p16438_p13 = pmov %p16432_p1 }
 0x129   : > { %14529 = dma.done.wait (%p16437_p7), [#allocation16], 16512  }
 0x12a   : > { %14531 = vsyncadd (%p16438_p13), [#allocation16], 4294950784  ;;  %p16439_p11 = pmov %p16432_p1 }
 0x12b   : > { %p16440_p0 = pmov %p16432_p1 }
 0x12c   : > { %14533 = dma.done.wait (%p16439_p11), [#allocation19], 16  }
 0x12d   : > { %14535 = vsyncadd (%p16440_p0), [#allocation19], 4294967280  ;;  %p16441_p4 = scmp.ne.s32.totalorder %s14652_s19, 0 }
 0x12e   : > { %v14572_v0 = vmov (!%p16441_p4), 0.0  }
 0x12f   : > { %514 = sbr.rel (%p16441_p4) target bundleno = 310 (0x136), region = 104  ;;  %515 = vst [vmem:[#allocation2] sm:$0xff] (!%p16441_p4), %v14572_v0 }
 0x136 PF: > { %v12613_v1 = vld [vmem:[%s14955_s27 + $0x4] ss:$16 sps:$4 sm:$0xff]   ;;  %v12615_v2 = vld [vmem:[%s14955_s27 + $0xc] ss:$16 sps:$4 sm:$0xff]   ;;  %v12617_v3 = vld [vmem:[%s14955_s27] ss:$16 sps:$4 sm:$0xff]   ;;  %v1553_v39 = vlaneseq }
 0x137   : > { %6897 = vmatprep.subr.bf16.mxu0 %v12613_v1  ;;  %v12618_v4 = vld [vmem:[%s14955_s27 + $0x8] ss:$16 sps:$4 sm:$0xff]   ;;  %7553 = vmatprep.subr.bf16.mxu1 %v12615_v2  ;;  %v12619_v5 = vld [vmem:[%s14955_s27 + $0x24] ss:$16 sps:$4 sm:$0xff]   ;;  %v12621_v6 = vld [vmem:[%s14955_s27 + $0x2c] ss:$16 sps:$4 sm:$0xff]  }
 0x138   : > { %6898 = vmatpush1.bf16.msra.mxu0 %v12617_v3  ;;  %7554 = vmatpush1.bf16.msra.mxu1 %v12618_v4  ;;  %v12623_v7 = vld [vmem:[%s14955_s27 + $0x20] ss:$16 sps:$4 sm:$0xff]   ;;  %v12624_v8 = vld [vmem:[%s14955_s27 + $0x28] ss:$16 sps:$4 sm:$0xff]   ;;  %v12625_v9 = vld [vmem:[%s14955_s27 + $0x44] ss:$16 sps:$4 sm:$0xff]  }
 0x139   : > { %6899 = vmatprep.subr.bf16.mxu0 %v12619_v5  ;;  %7555 = vmatprep.subr.bf16.mxu1 %v12621_v6  ;;  %v12627_v10 = vld [vmem:[%s14955_s27 + $0x4c] ss:$16 sps:$4 sm:$0xff]   ;;  %v12629_v11 = vld [vmem:[%s14955_s27 + $0x40] ss:$16 sps:$4 sm:$0xff]   ;;  %v12630_v12 = vld [vmem:[%s14955_s27 + $0x48] ss:$16 sps:$4 sm:$0xff]  }
 0x13a   : > { %v12631_v13 = vld [vmem:[%s14955_s27 + $0x64] ss:$16 sps:$4 sm:$0xff]   ;;  %v12633_v14 = vld [vmem:[%s14955_s27 + $0x6c] ss:$16 sps:$4 sm:$0xff]   ;;  %v12635_v15 = vld [vmem:[%s14955_s27 + $0x60] ss:$16 sps:$4 sm:$0xff]  }
 0x13b   : > { %v12636_v16 = vld [vmem:[%s14955_s27 + $0x68] ss:$16 sps:$4 sm:$0xff]   ;;  %v12637_v17 = vld [vmem:[%s14955_s27 + $0x84] ss:$16 sps:$4 sm:$0xff]   ;;  %v12639_v18 = vld [vmem:[%s14955_s27 + $0x8c] ss:$16 sps:$4 sm:$0xff]  }
 0x13c   : > { %6900 = vmatpush1.bf16.msra.mxu0 %v12623_v7  ;;  %7556 = vmatpush1.bf16.msra.mxu1 %v12624_v8  ;;  %v12641_v19 = vld [vmem:[%s14955_s27 + $0x80] ss:$16 sps:$4 sm:$0xff]   ;;  %v12642_v20 = vld [vmem:[%s14955_s27 + $0x88] ss:$16 sps:$4 sm:$0xff]   ;;  %v12643_v21 = vld [vmem:[%s14955_s27 + $0xa4] ss:$16 sps:$4 sm:$0xff]  }
 0x13d   : > { %6901 = vmatprep.subr.bf16.mxu0 %v12625_v9  ;;  %7557 = vmatprep.subr.bf16.mxu1 %v12627_v10  ;;  %v12645_v22 = vld [vmem:[%s14955_s27 + $0xac] ss:$16 sps:$4 sm:$0xff]   ;;  %v12647_v23 = vld [vmem:[%s14955_s27 + $0xa0] ss:$16 sps:$4 sm:$0xff]   ;;  %v12648_v24 = vld [vmem:[%s14955_s27 + $0xa8] ss:$16 sps:$4 sm:$0xff]  }
 0x13e   : > { %v12649_v25 = vld [vmem:[%s14955_s27 + $0xc4] ss:$16 sps:$4 sm:$0xff]   ;;  %v12651_v26 = vld [vmem:[%s14955_s27 + $0xcc] ss:$16 sps:$4 sm:$0xff]   ;;  %v12653_v27 = vld [vmem:[%s14955_s27 + $0xc0] ss:$16 sps:$4 sm:$0xff]  }
 0x13f   : > { %v12654_v28 = vld [vmem:[%s14955_s27 + $0xc8] ss:$16 sps:$4 sm:$0xff]   ;;  %v12655_v29 = vld [vmem:[%s14955_s27 + $0xe4] ss:$16 sps:$4 sm:$0xff]   ;;  %v12657_v30 = vld [vmem:[%s14955_s27 + $0xec] ss:$16 sps:$4 sm:$0xff]  }
 0x140   : > { %6902 = vmatpush1.bf16.msra.mxu0 %v12629_v11  ;;  %7558 = vmatpush1.bf16.msra.mxu1 %v12630_v12  ;;  %v12659_v31 = vld [vmem:[%s14955_s27 + $0xe0] ss:$16 sps:$4 sm:$0xff]   ;;  %v12660_v32 = vld [vmem:[%s14955_s27 + $0xe8] ss:$16 sps:$4 sm:$0xff]   ;;  %v12661_v33 = vld [vmem:[%s14955_s27 + $0x104] ss:$16 sps:$4 sm:$0xff]  }
 0x141   : > { %6903 = vmatprep.subr.bf16.mxu0 %v12631_v13  ;;  %7559 = vmatprep.subr.bf16.mxu1 %v12633_v14  ;;  %v12663_v34 = vld [vmem:[%s14955_s27 + $0x10c] ss:$16 sps:$4 sm:$0xff]   ;;  %v12665_v35 = vld [vmem:[%s14955_s27 + $0x100] ss:$16 sps:$4 sm:$0xff]   ;;  %v12666_v36 = vld [vmem:[%s14955_s27 + $0x108] ss:$16 sps:$4 sm:$0xff]  }
 0x142   : > { %v14573_v37 = vmov 1966171168   ;;  %v12667_v40 = vld [vmem:[%s14955_s27 + $0x124] ss:$16 sps:$4 sm:$0xff]   ;;  %v12669_v41 = vld [vmem:[%s14955_s27 + $0x12c] ss:$16 sps:$4 sm:$0xff]  }
 0x143   : > { %v1551_v38 = vunpack.c.l.s4 %v14573_v37  ;;  %v12671_v42 = vld [vmem:[%s14955_s27 + $0x120] ss:$16 sps:$4 sm:$0xff]   ;;  %v15023_v44 = vshrl.u32 %v1553_v39, 7  ;;  %v12672_v45 = vld [vmem:[%s14955_s27 + $0x128] ss:$16 sps:$4 sm:$0xff]   ;;  %p11547_p2 = scmp.ne.s32.totalorder %s14652_s19, 1 }
 0x144   : > { %6904 = vmatpush1.bf16.msra.mxu0 %v12635_v15  ;;  %7560 = vmatpush1.bf16.msra.mxu1 %v12636_v16  ;;  %v12673_v46 = vld [vmem:[%s14955_s27 + $0x144] ss:$16 sps:$4 sm:$0xff]   ;;  %v12675_v47 = vld [vmem:[%s14955_s27 + $0x14c] ss:$16 sps:$4 sm:$0xff]   ;;  %v12677_v48 = vld [vmem:[%s14955_s27 + $0x140] ss:$16 sps:$4 sm:$0xff]  }
 0x145   : > { %6905 = vmatprep.subr.bf16.mxu0 %v12637_v17  ;;  %7561 = vmatprep.subr.bf16.mxu1 %v12639_v18  ;;  %v1552_v43 = vunpack.c.0.s8 %v1551_v38  ;;  %v12678_v49 = vld [vmem:[%s14955_s27 + $0x148] ss:$16 sps:$4 sm:$0xff]   ;;  %v12679_v51 = vld [vmem:[%s14955_s27 + $0x164] ss:$16 sps:$4 sm:$0xff]   ;;  %v12681_v52 = vld [vmem:[%s14955_s27 + $0x16c] ss:$16 sps:$4 sm:$0xff]  }
 0x146   : > { %v15036_v53 = vld [vmem:[%s14948_s13] sm:$0xff]  ;;  %v12684_v56 = vld [vmem:[%s14955_s27 + $0x168] ss:$16 sps:$4 sm:$0xff]   ;;  %v12687_v58 = vld [vmem:[%s14955_s27 + $0x18c] ss:$16 sps:$4 sm:$0xff]   ;;  %vm8260_vm0 = vcmask (!%p11547_p2), 1041408  }
 0x147   : > { %v15031_v50 = vsub.s32 %v1552_v43, %v15023_v44  ;;  %v12683_v54 = vld [vmem:[%s14955_s27 + $0x160] ss:$16 sps:$4 sm:$0xff]   ;;  %v12685_v57 = vld [vmem:[%s14955_s27 + $0x184] ss:$16 sps:$4 sm:$0xff]   ;;  %v12690_v62 = vld [vmem:[%s14955_s27 + $0x188] ss:$16 sps:$4 sm:$0xff]  }
 0x148   : > { %6906 = vmatpush1.bf16.msra.mxu0 %v12641_v19  ;;  %7562 = vmatpush1.bf16.msra.mxu1 %v12642_v20  ;;  %v12689_v60 = vld [vmem:[%s14955_s27 + $0x180] ss:$16 sps:$4 sm:$0xff]   ;;  %v12691_v63 = vld [vmem:[%s14955_s27 + $0x1a4] ss:$16 sps:$4 sm:$0xff]   ;;  %v12693_v0 = vld [vmem:[%s14955_s27 + $0x1ac] ss:$16 sps:$4 sm:$0xff]  }
 0x149   : > { %6907 = vmatprep.subr.bf16.mxu0 %v12643_v21  ;;  %7563 = vmatprep.subr.bf16.mxu1 %v12645_v22  ;;  %v1556_v55 = vrot.slane %v15036_v53, %v15031_v50  ;;  %v12695_v1 = vld [vmem:[%s14955_s27 + $0x1a0] ss:$16 sps:$4 sm:$0xff]   ;;  %v12696_v2 = vld [vmem:[%s14955_s27 + $0x1a8] ss:$16 sps:$4 sm:$0xff]   ;;  %v12697_v3 = vld [vmem:[%s14955_s27 + $0x1c4] ss:$16 sps:$4 sm:$0xff]  }
 0x14a   : > { %v12699_v4 = vld [vmem:[%s14955_s27 + $0x1cc] ss:$16 sps:$4 sm:$0xff]   ;;  %v12701_v5 = vld [vmem:[%s14955_s27 + $0x1c0] ss:$16 sps:$4 sm:$0xff]   ;;  %v12702_v6 = vld [vmem:[%s14955_s27 + $0x1c8] ss:$16 sps:$4 sm:$0xff]  }
 0x14b   : > { %v1564_v59 = vcombine.high %v1556_v55, %v1556_v55  ;;  %v12703_v7 = vld [vmem:[%s14955_s27 + $0x1e4] ss:$16 sps:$4 sm:$0xff]   ;;  %v12705_v8 = vld [vmem:[%s14955_s27 + $0x1ec] ss:$16 sps:$4 sm:$0xff]   ;;  %v12707_v9 = vld [vmem:[%s14955_s27 + $0x1e0] ss:$16 sps:$4 sm:$0xff]   ;;  %v15063_v14 = vrot.slane %v1556_v55, %v15031_v50 }
 0x14c   : > { %6908 = vmatpush1.bf16.msra.mxu0 %v12647_v23  ;;  %7564 = vmatpush1.bf16.msra.mxu1 %v12648_v24  ;;  %v12708_v10 = vld [vmem:[%s14955_s27 + $0x1e8] ss:$16 sps:$4 sm:$0xff]   ;;  %v12711_v11 = vld [vmem:[%s14955_s27 + $0x204] ss:$16 sps:$4 sm:$0xff]   ;;  %v12714_v12 = vld [vmem:[%s14955_s27 + $0x20c] ss:$16 sps:$4 sm:$0xff]  }
 0x14d   : > { %6909 = vmatprep.subr.bf16.mxu0 %v12649_v25  ;;  %7565 = vmatprep.subr.bf16.mxu1 %v12651_v26  ;;  %v1586_v61 = vrot.slane %v1564_v59, %v15031_v50  ;;  %v12709_v13 = vld [vmem:[%s14955_s27 + $0x200] ss:$16 sps:$4 sm:$0xff]   ;;  %v12712_v15 = vld [vmem:[%s14955_s27 + $0x208] ss:$16 sps:$4 sm:$0xff]   ;;  %v12717_v16 = vld [vmem:[%s14955_s27 + $0x224] ss:$16 sps:$4 sm:$0xff]  }
 0x14e   : > { %v12720_v17 = vld [vmem:[%s14955_s27 + $0x22c] ss:$16 sps:$4 sm:$0xff]   ;;  %v12715_v19 = vld [vmem:[%s14955_s27 + $0x220] ss:$16 sps:$4 sm:$0xff]   ;;  %v12718_v20 = vld [vmem:[%s14955_s27 + $0x228] ss:$16 sps:$4 sm:$0xff]  }
 0x14f   : > { %6929 = vmatprep.mubr.bf16.mxu0 %v1586_v61  ;;  %7585 = vmatprep.mubr.bf16.mxu1 %v1586_v61  ;;  %v1596_v18 = vcombine.high %v1586_v61, %v1586_v61  ;;  %v12723_v21 = vld [vmem:[%s14955_s27 + $0x244] ss:$16 sps:$4 sm:$0xff]   ;;  %v12726_v22 = vld [vmem:[%s14955_s27 + $0x24c] ss:$16 sps:$4 sm:$0xff]   ;;  %v12721_v23 = vld [vmem:[%s14955_s27 + $0x240] ss:$16 sps:$4 sm:$0xff]  }
 0x150   : > { %6910 = vmatpush1.bf16.msra.mxu0 %v12653_v27  ;;  %7566 = vmatpush1.bf16.msra.mxu1 %v12654_v28  ;;  %v12724_v24 = vld [vmem:[%s14955_s27 + $0x248] ss:$16 sps:$4 sm:$0xff]   ;;  %v12729_v25 = vld [vmem:[%s14955_s27 + $0x264] ss:$16 sps:$4 sm:$0xff]   ;;  %v12732_v26 = vld [vmem:[%s14955_s27 + $0x26c] ss:$16 sps:$4 sm:$0xff]  }
 0x151   : > { %6911 = vmatprep.subr.bf16.mxu0 %v12655_v29  ;;  %7567 = vmatprep.subr.bf16.mxu1 %v12657_v30  ;;  %v12727_v27 = vld [vmem:[%s14955_s27 + $0x260] ss:$16 sps:$4 sm:$0xff]   ;;  %v12730_v28 = vld [vmem:[%s14955_s27 + $0x268] ss:$16 sps:$4 sm:$0xff]   ;;  %v12735_v29 = vld [vmem:[%s14955_s27 + $0x284] ss:$16 sps:$4 sm:$0xff]  }
 0x152   : > { %v12738_v30 = vld [vmem:[%s14955_s27 + $0x28c] ss:$16 sps:$4 sm:$0xff]   ;;  %v12747_v37 = vld [vmem:[%s14955_s27 + $0x2c4] ss:$16 sps:$4 sm:$0xff]   ;;  %v12763_v55 = vld [vmem:[%s14955_s27 + $0x320] ss:$16 sps:$4 sm:$0xff]  }
 0x153   : > { %v12750_v38 = vld [vmem:[%s14955_s27 + $0x2cc] ss:$16 sps:$4 sm:$0xff]   ;;  %v12769_v59 = vld [vmem:[%s14955_s27 + $0x340] ss:$16 sps:$4 sm:$0xff]   ;;  %v12777_v61 = vld [vmem:[%s14955_s27 + $0x364] ss:$16 sps:$4 sm:$0xff]  }
 0x154   : > { %6912 = vmatpush1.bf16.msra.mxu0 %v12659_v31  ;;  %7568 = vmatpush1.bf16.msra.mxu1 %v12660_v32  ;;  %v12733_v31 = vld [vmem:[%s14955_s27 + $0x280] ss:$16 sps:$4 sm:$0xff]   ;;  %v12736_v32 = vld [vmem:[%s14955_s27 + $0x288] ss:$16 sps:$4 sm:$0xff]   ;;  %v12756_v43 = vld [vmem:[%s14955_s27 + $0x2ec] ss:$16 sps:$4 sm:$0xff]  }
 0x155   : > { %6913 = vmatprep.subr.bf16.mxu0 %v12661_v33  ;;  %7569 = vmatprep.subr.bf16.mxu1 %v12663_v34  ;;  %v12741_v33 = vld [vmem:[%s14955_s27 + $0x2a4] ss:$16 sps:$4 sm:$0xff]   ;;  %v12744_v34 = vld [vmem:[%s14955_s27 + $0x2ac] ss:$16 sps:$4 sm:$0xff]  }
 0x158   : > { %6914 = vmatpush1.bf16.msra.mxu0 %v12665_v35  ;;  %7570 = vmatpush1.bf16.msra.mxu1 %v12666_v36  ;;  %v12739_v35 = vld [vmem:[%s14955_s27 + $0x2a0] ss:$16 sps:$4 sm:$0xff]   ;;  %v12742_v36 = vld [vmem:[%s14955_s27 + $0x2a8] ss:$16 sps:$4 sm:$0xff]  }
 0x159   : > { %6915 = vmatprep.subr.bf16.mxu0 %v12667_v40  ;;  %7571 = vmatprep.subr.bf16.mxu1 %v12669_v41  ;;  %v12745_v40 = vld [vmem:[%s14955_s27 + $0x2c0] ss:$16 sps:$4 sm:$0xff]   ;;  %v12748_v41 = vld [vmem:[%s14955_s27 + $0x2c8] ss:$16 sps:$4 sm:$0xff]  }
 0x15c   : > { %6916 = vmatpush1.bf16.msra.mxu0 %v12671_v42  ;;  %7572 = vmatpush1.bf16.msra.mxu1 %v12672_v45  ;;  %v12753_v42 = vld [vmem:[%s14955_s27 + $0x2e4] ss:$16 sps:$4 sm:$0xff]   ;;  %v12751_v45 = vld [vmem:[%s14955_s27 + $0x2e0] ss:$16 sps:$4 sm:$0xff]  }
 0x15d   : > { %6917 = vmatprep.subr.bf16.mxu0 %v12673_v46  ;;  %7573 = vmatprep.subr.bf16.mxu1 %v12675_v47  ;;  %v12754_v46 = vld [vmem:[%s14955_s27 + $0x2e8] ss:$16 sps:$4 sm:$0xff]   ;;  %v12759_v47 = vld [vmem:[%s14955_s27 + $0x304] ss:$16 sps:$4 sm:$0xff]  }
 0x160   : > { %6918 = vmatpush1.bf16.msra.mxu0 %v12677_v48  ;;  %7574 = vmatpush1.bf16.msra.mxu1 %v12678_v49  ;;  %v12762_v48 = vld [vmem:[%s14955_s27 + $0x30c] ss:$16 sps:$4 sm:$0xff]   ;;  %v12757_v49 = vld [vmem:[%s14955_s27 + $0x300] ss:$16 sps:$4 sm:$0xff]  }
 0x161   : > { %6919 = vmatprep.subr.bf16.mxu0 %v12679_v51  ;;  %7575 = vmatprep.subr.bf16.mxu1 %v12681_v52  ;;  %v12760_v51 = vld [vmem:[%s14955_s27 + $0x308] ss:$16 sps:$4 sm:$0xff]   ;;  %v12765_v52 = vld [vmem:[%s14955_s27 + $0x324] ss:$16 sps:$4 sm:$0xff]  }
 0x164   : > { %6920 = vmatpush1.bf16.msra.mxu0 %v12683_v54  ;;  %7576 = vmatpush1.bf16.msra.mxu1 %v12684_v56  ;;  %v12768_v54 = vld [vmem:[%s14955_s27 + $0x32c] ss:$16 sps:$4 sm:$0xff]   ;;  %v12766_v56 = vld [vmem:[%s14955_s27 + $0x328] ss:$16 sps:$4 sm:$0xff]  }
 0x165   : > { %6921 = vmatprep.subr.bf16.mxu0 %v12685_v57  ;;  %7577 = vmatprep.subr.bf16.mxu1 %v12687_v58  ;;  %v12771_v57 = vld [vmem:[%s14955_s27 + $0x344] ss:$16 sps:$4 sm:$0xff]   ;;  %v12774_v58 = vld [vmem:[%s14955_s27 + $0x34c] ss:$16 sps:$4 sm:$0xff]  }
 0x168   : > { %6922 = vmatpush1.bf16.msra.mxu0 %v12689_v60  ;;  %7578 = vmatpush1.bf16.msra.mxu1 %v12690_v62  ;;  %v12772_v60 = vld [vmem:[%s14955_s27 + $0x348] ss:$16 sps:$4 sm:$0xff]   ;;  %v12780_v62 = vld [vmem:[%s14955_s27 + $0x36c] ss:$16 sps:$4 sm:$0xff]  }
 0x169   : > { %6923 = vmatprep.subr.bf16.mxu0 %v12691_v63  ;;  %7579 = vmatprep.subr.bf16.mxu1 %v12693_v0  ;;  %v12775_v63 = vld [vmem:[%s14955_s27 + $0x360] ss:$16 sps:$4 sm:$0xff]   ;;  %v12778_v0 = vld [vmem:[%s14955_s27 + $0x368] ss:$16 sps:$4 sm:$0xff]  }
 0x16c   : > { %6924 = vmatpush1.bf16.msra.mxu0 %v12695_v1  ;;  %7580 = vmatpush1.bf16.msra.mxu1 %v12696_v2  ;;  %v12783_v1 = vld [vmem:[%s14955_s27 + $0x384] ss:$16 sps:$4 sm:$0xff]   ;;  %v12786_v2 = vld [vmem:[%s14955_s27 + $0x38c] ss:$16 sps:$4 sm:$0xff]  }
 0x16d   : > { %6925 = vmatprep.subr.bf16.mxu0 %v12697_v3  ;;  %7581 = vmatprep.subr.bf16.mxu1 %v12699_v4  ;;  %v12781_v3 = vld [vmem:[%s14955_s27 + $0x380] ss:$16 sps:$4 sm:$0xff]   ;;  %v12784_v4 = vld [vmem:[%s14955_s27 + $0x388] ss:$16 sps:$4 sm:$0xff]  }
 0x170   : > { %6926 = vmatpush1.bf16.msra.mxu0 %v12701_v5  ;;  %7582 = vmatpush1.bf16.msra.mxu1 %v12702_v6  ;;  %v12789_v5 = vld [vmem:[%s14955_s27 + $0x3a4] ss:$16 sps:$4 sm:$0xff]   ;;  %v12792_v6 = vld [vmem:[%s14955_s27 + $0x3ac] ss:$16 sps:$4 sm:$0xff]  }
 0x171   : > { %6927 = vmatprep.subr.bf16.mxu0 %v12703_v7  ;;  %7583 = vmatprep.subr.bf16.mxu1 %v12705_v8  ;;  %v12787_v7 = vld [vmem:[%s14955_s27 + $0x3a0] ss:$16 sps:$4 sm:$0xff]   ;;  %v12790_v8 = vld [vmem:[%s14955_s27 + $0x3a8] ss:$16 sps:$4 sm:$0xff]  }
 0x174   : > { %6928 = vmatpush1.bf16.msra.mxu0 %v12707_v9  ;;  %7584 = vmatpush1.bf16.msra.mxu1 %v12708_v10  ;;  %v12795_v9 = vld [vmem:[%s14955_s27 + $0x3c4] ss:$16 sps:$4 sm:$0xff]   ;;  %v12798_v10 = vld [vmem:[%s14955_s27 + $0x3cc] ss:$16 sps:$4 sm:$0xff]  }
 0x175   : > { %6938 = vmatprep.subr.bf16.mxu0 %v12711_v11  ;;  %7594 = vmatprep.subr.bf16.mxu1 %v12714_v12  ;;  %v1549_v11 = vcombine.high %v15036_v53, %v15036_v53  ;;  %v12793_v12 = vld [vmem:[%s14955_s27 + $0x3c0] ss:$16 sps:$4 sm:$0xff]   ;;  %v12802_v53 = vld [vmem:[%s14955_s27 + $0x3e8] ss:$16 sps:$4 sm:$0xff]  }
 0x177   : > { %6930 = vmatmul.mubr.bf16.vlgmr.msra.gmra.mrb[0].mxu0 %v15063_v14  ;;  %7586 = vmatmul.mubr.bf16.vlgmr.msra.gmra.mrb[0].mxu1 %v15063_v14 }
 0x178   : > { %6939 = vmatpush1.bf16.msra.mxu0 %v12709_v13  ;;  %7595 = vmatpush1.bf16.msra.mxu1 %v12712_v15  ;;  %v12796_v13 = vld [vmem:[%s14955_s27 + $0x3c8] ss:$16 sps:$4 sm:$0xff]   ;;  %v12801_v15 = vld [vmem:[%s14955_s27 + $0x3e4] ss:$16 sps:$4 sm:$0xff]  }
 0x179   : > { %6940 = vmatprep.subr.bf16.mxu0 %v12717_v16  ;;  %7596 = vmatprep.subr.bf16.mxu1 %v12720_v17  ;;  %v12804_v16 = vld [vmem:[%s14955_s27 + $0x3ec] ss:$16 sps:$4 sm:$0xff]   ;;  %v15129_v17 = vrot.slane %v1549_v11, %v15031_v50  ;;  %v12877_v11 = vld [vmem:[%s14955_s27 + $0x580] ss:$16 sps:$4 sm:$0xff]  }
 0x17a   : > { %6970 = vmatprep.mubr.bf16.mxu0 %v1596_v18  ;;  %7626 = vmatprep.mubr.bf16.mxu1 %v1596_v18  ;;  %v12799_v18 = vld [vmem:[%s14955_s27 + $0x3e0] ss:$16 sps:$4 sm:$0xff]  }
 0x17c   : > { %6941 = vmatpush1.bf16.msra.mxu0 %v12715_v19  ;;  %7597 = vmatpush1.bf16.msra.mxu1 %v12718_v20  ;;  %v12807_v19 = vld [vmem:[%s14955_s27 + $0x404] ss:$16 sps:$4 sm:$0xff]   ;;  %v12810_v20 = vld [vmem:[%s14955_s27 + $0x40c] ss:$16 sps:$4 sm:$0xff]  }
 0x17d   : > { %6942 = vmatprep.subr.bf16.mxu0 %v12723_v21  ;;  %7598 = vmatprep.subr.bf16.mxu1 %v12726_v22  ;;  %v1565_v21 = vcombine.high %v15129_v17, %v15129_v17  ;;  %v12805_v22 = vld [vmem:[%s14955_s27 + $0x400] ss:$16 sps:$4 sm:$0xff]  }
 0x180   : > { %6943 = vmatpush1.bf16.msra.mxu0 %v12721_v23  ;;  %7599 = vmatpush1.bf16.msra.mxu1 %v12724_v24  ;;  %v1594_v23 = vcombine.high %v15063_v14, %v15063_v14  ;;  %v12808_v24 = vld [vmem:[%s14955_s27 + $0x408] ss:$16 sps:$4 sm:$0xff]  }
 0x181   : > { %6944 = vmatprep.subr.bf16.mxu0 %v12729_v25  ;;  %7600 = vmatprep.subr.bf16.mxu1 %v12732_v26  ;;  %v12813_v25 = vld [vmem:[%s14955_s27 + $0x424] ss:$16 sps:$4 sm:$0xff]   ;;  %v12816_v26 = vld [vmem:[%s14955_s27 + $0x42c] ss:$16 sps:$4 sm:$0xff]   ;;  %v12814_v14 = vld [vmem:[%s14955_s27 + $0x428] ss:$16 sps:$4 sm:$0xff]  }
 0x184   : > { %6945 = vmatpush1.bf16.msra.mxu0 %v12727_v27  ;;  %7601 = vmatpush1.bf16.msra.mxu1 %v12730_v28  ;;  %v15144_v27 = vrot.slane %v1565_v21, %v15031_v50  ;;  %v12811_v28 = vld [vmem:[%s14955_s27 + $0x420] ss:$16 sps:$4 sm:$0xff]   ;;  %v12892_v21 = vld [vmem:[%s14955_s27 + $0x5c8] ss:$16 sps:$4 sm:$0xff]  }
 0x185   : > { %6946 = vmatprep.subr.bf16.mxu0 %v12735_v29  ;;  %7602 = vmatprep.subr.bf16.mxu1 %v12738_v30  ;;  %v12819_v29 = vld [vmem:[%s14955_s27 + $0x444] ss:$16 sps:$4 sm:$0xff]   ;;  %v12822_v30 = vld [vmem:[%s14955_s27 + $0x44c] ss:$16 sps:$4 sm:$0xff]  }
 0x188   : > { %6947 = vmatpush1.bf16.msra.mxu0 %v12733_v31  ;;  %7603 = vmatpush1.bf16.msra.mxu1 %v12736_v32  ;;  %v12817_v31 = vld [vmem:[%s14955_s27 + $0x440] ss:$16 sps:$4 sm:$0xff]   ;;  %v12820_v32 = vld [vmem:[%s14955_s27 + $0x448] ss:$16 sps:$4 sm:$0xff]  }
 0x189   : > { %6948 = vmatprep.subr.bf16.mxu0 %v12741_v33  ;;  %7604 = vmatprep.subr.bf16.mxu1 %v12744_v34  ;;  %v12825_v33 = vld [vmem:[%s14955_s27 + $0x464] ss:$16 sps:$4 sm:$0xff]   ;;  %v12828_v34 = vld [vmem:[%s14955_s27 + $0x46c] ss:$16 sps:$4 sm:$0xff]  }
 0x18c   : > { %6949 = vmatpush1.bf16.msra.mxu0 %v12739_v35  ;;  %7605 = vmatpush1.bf16.msra.mxu1 %v12742_v36  ;;  %v12823_v35 = vld [vmem:[%s14955_s27 + $0x460] ss:$16 sps:$4 sm:$0xff]   ;;  %v12826_v36 = vld [vmem:[%s14955_s27 + $0x468] ss:$16 sps:$4 sm:$0xff]  }
 0x18d   : > { %6950 = vmatprep.subr.bf16.mxu0 %v12747_v37  ;;  %7606 = vmatprep.subr.bf16.mxu1 %v12750_v38  ;;  %v12831_v37 = vld [vmem:[%s14955_s27 + $0x484] ss:$16 sps:$4 sm:$0xff]   ;;  %v12834_v38 = vld [vmem:[%s14955_s27 + $0x48c] ss:$16 sps:$4 sm:$0xff]  }
 0x190   : > { %6951 = vmatpush1.bf16.msra.mxu0 %v12745_v40  ;;  %7607 = vmatpush1.bf16.msra.mxu1 %v12748_v41  ;;  %v12829_v40 = vld [vmem:[%s14955_s27 + $0x480] ss:$16 sps:$4 sm:$0xff]   ;;  %v12832_v41 = vld [vmem:[%s14955_s27 + $0x488] ss:$16 sps:$4 sm:$0xff]  }
 0x191   : > { %6952 = vmatprep.subr.bf16.mxu0 %v12753_v42  ;;  %7608 = vmatprep.subr.bf16.mxu1 %v12756_v43  ;;  %v12837_v42 = vld [vmem:[%s14955_s27 + $0x4a4] ss:$16 sps:$4 sm:$0xff]   ;;  %v12840_v43 = vld [vmem:[%s14955_s27 + $0x4ac] ss:$16 sps:$4 sm:$0xff]  }
 0x194   : > { %6953 = vmatpush1.bf16.msra.mxu0 %v12751_v45  ;;  %7609 = vmatpush1.bf16.msra.mxu1 %v12754_v46  ;;  %v12835_v45 = vld [vmem:[%s14955_s27 + $0x4a0] ss:$16 sps:$4 sm:$0xff]   ;;  %v12838_v46 = vld [vmem:[%s14955_s27 + $0x4a8] ss:$16 sps:$4 sm:$0xff]  }
 0x195   : > { %6954 = vmatprep.subr.bf16.mxu0 %v12759_v47  ;;  %7610 = vmatprep.subr.bf16.mxu1 %v12762_v48  ;;  %v12843_v47 = vld [vmem:[%s14955_s27 + $0x4c4] ss:$16 sps:$4 sm:$0xff]   ;;  %v12846_v48 = vld [vmem:[%s14955_s27 + $0x4cc] ss:$16 sps:$4 sm:$0xff]  }
 0x198   : > { %6955 = vmatpush1.bf16.msra.mxu0 %v12757_v49  ;;  %7611 = vmatpush1.bf16.msra.mxu1 %v12760_v51  ;;  %v12841_v49 = vld [vmem:[%s14955_s27 + $0x4c0] ss:$16 sps:$4 sm:$0xff]   ;;  %v12844_v51 = vld [vmem:[%s14955_s27 + $0x4c8] ss:$16 sps:$4 sm:$0xff]  }
 0x199   : > { %6956 = vmatprep.subr.bf16.mxu0 %v12765_v52  ;;  %7612 = vmatprep.subr.bf16.mxu1 %v12768_v54  ;;  %v12849_v52 = vld [vmem:[%s14955_s27 + $0x4e4] ss:$16 sps:$4 sm:$0xff]   ;;  %v12852_v54 = vld [vmem:[%s14955_s27 + $0x4ec] ss:$16 sps:$4 sm:$0xff]  }
 0x19c   : > { %6957 = vmatpush1.bf16.msra.mxu0 %v12763_v55  ;;  %7613 = vmatpush1.bf16.msra.mxu1 %v12766_v56  ;;  %v12847_v55 = vld [vmem:[%s14955_s27 + $0x4e0] ss:$16 sps:$4 sm:$0xff]   ;;  %v12850_v56 = vld [vmem:[%s14955_s27 + $0x4e8] ss:$16 sps:$4 sm:$0xff]  }
 0x19d   : > { %6958 = vmatprep.subr.bf16.mxu0 %v12771_v57  ;;  %7614 = vmatprep.subr.bf16.mxu1 %v12774_v58  ;;  %v12855_v57 = vld [vmem:[%s14955_s27 + $0x504] ss:$16 sps:$4 sm:$0xff]   ;;  %v12858_v58 = vld [vmem:[%s14955_s27 + $0x50c] ss:$16 sps:$4 sm:$0xff]  }
 0x1a0   : > { %6959 = vmatpush1.bf16.msra.mxu0 %v12769_v59  ;;  %7615 = vmatpush1.bf16.msra.mxu1 %v12772_v60  ;;  %v12853_v59 = vld [vmem:[%s14955_s27 + $0x500] ss:$16 sps:$4 sm:$0xff]   ;;  %v12856_v60 = vld [vmem:[%s14955_s27 + $0x508] ss:$16 sps:$4 sm:$0xff]  }
 0x1a1   : > { %6960 = vmatprep.subr.bf16.mxu0 %v12777_v61  ;;  %7616 = vmatprep.subr.bf16.mxu1 %v12780_v62  ;;  %v12861_v61 = vld [vmem:[%s14955_s27 + $0x524] ss:$16 sps:$4 sm:$0xff]   ;;  %v12864_v62 = vld [vmem:[%s14955_s27 + $0x52c] ss:$16 sps:$4 sm:$0xff]  }
 0x1a4   : > { %6961 = vmatpush1.bf16.msra.mxu0 %v12775_v63  ;;  %7617 = vmatpush1.bf16.msra.mxu1 %v12778_v0  ;;  %v12859_v63 = vld [vmem:[%s14955_s27 + $0x520] ss:$16 sps:$4 sm:$0xff]   ;;  %v12862_v0 = vld [vmem:[%s14955_s27 + $0x528] ss:$16 sps:$4 sm:$0xff]  }
 0x1a5   : > { %6962 = vmatprep.subr.bf16.mxu0 %v12783_v1  ;;  %7618 = vmatprep.subr.bf16.mxu1 %v12786_v2  ;;  %v12867_v1 = vld [vmem:[%s14955_s27 + $0x544] ss:$16 sps:$4 sm:$0xff]   ;;  %v12870_v2 = vld [vmem:[%s14955_s27 + $0x54c] ss:$16 sps:$4 sm:$0xff]  }
 0x1a8   : > { %6963 = vmatpush1.bf16.msra.mxu0 %v12781_v3  ;;  %7619 = vmatpush1.bf16.msra.mxu1 %v12784_v4  ;;  %v12865_v3 = vld [vmem:[%s14955_s27 + $0x540] ss:$16 sps:$4 sm:$0xff]   ;;  %v12868_v4 = vld [vmem:[%s14955_s27 + $0x548] ss:$16 sps:$4 sm:$0xff]  }
 0x1a9   : > { %6964 = vmatprep.subr.bf16.mxu0 %v12789_v5  ;;  %7620 = vmatprep.subr.bf16.mxu1 %v12792_v6  ;;  %v12873_v5 = vld [vmem:[%s14955_s27 + $0x564] ss:$16 sps:$4 sm:$0xff]   ;;  %v12876_v6 = vld [vmem:[%s14955_s27 + $0x56c] ss:$16 sps:$4 sm:$0xff]  }
 0x1ac   : > { %6965 = vmatpush1.bf16.msra.mxu0 %v12787_v7  ;;  %7621 = vmatpush1.bf16.msra.mxu1 %v12790_v8  ;;  %v12871_v7 = vld [vmem:[%s14955_s27 + $0x560] ss:$16 sps:$4 sm:$0xff]   ;;  %v12874_v8 = vld [vmem:[%s14955_s27 + $0x568] ss:$16 sps:$4 sm:$0xff]  }
 0x1ad   : > { %6966 = vmatprep.subr.bf16.mxu0 %v12795_v9  ;;  %7622 = vmatprep.subr.bf16.mxu1 %v12798_v10  ;;  %v12879_v9 = vld [vmem:[%s14955_s27 + $0x584] ss:$16 sps:$4 sm:$0xff]   ;;  %v12882_v10 = vld [vmem:[%s14955_s27 + $0x58c] ss:$16 sps:$4 sm:$0xff]  }
 0x1b0   : > { %6967 = vmatpush1.bf16.msra.mxu0 %v12793_v12  ;;  %7623 = vmatpush1.bf16.msra.mxu1 %v12796_v13  ;;  %v12880_v12 = vld [vmem:[%s14955_s27 + $0x588] ss:$16 sps:$4 sm:$0xff]   ;;  %v12885_v13 = vld [vmem:[%s14955_s27 + $0x5a4] ss:$16 sps:$4 sm:$0xff]  }
 0x1b1   : > { %6968 = vmatprep.subr.bf16.mxu0 %v12801_v15  ;;  %7624 = vmatprep.subr.bf16.mxu1 %v12804_v16  ;;  %v12888_v15 = vld [vmem:[%s14955_s27 + $0x5ac] ss:$16 sps:$4 sm:$0xff]   ;;  %v12883_v16 = vld [vmem:[%s14955_s27 + $0x5a0] ss:$16 sps:$4 sm:$0xff]  }
 0x1b4   : > { %6969 = vmatpush1.bf16.msra.mxu0 %v12799_v18  ;;  %7625 = vmatpush1.bf16.msra.mxu1 %v12802_v53  ;;  %v12886_v18 = vld [vmem:[%s14955_s27 + $0x5a8] ss:$16 sps:$4 sm:$0xff]   ;;  %v12891_v53 = vld [vmem:[%s14955_s27 + $0x5c4] ss:$16 sps:$4 sm:$0xff]  }
 0x1b5   : > { %6979 = vmatprep.subr.bf16.mxu0 %v12807_v19  ;;  %7635 = vmatprep.subr.bf16.mxu1 %v12810_v20  ;;  %v12894_v19 = vld [vmem:[%s14955_s27 + $0x5cc] ss:$16 sps:$4 sm:$0xff]   ;;  %v12889_v20 = vld [vmem:[%s14955_s27 + $0x5c0] ss:$16 sps:$4 sm:$0xff]  }
 0x1b7   : > { %6971 = vmatmul.mubr.bf16.vlgmr.msra.gmra.mrb[0].mxu0 %v1594_v23  ;;  %7627 = vmatmul.mubr.bf16.vlgmr.msra.gmra.mrb[0].mxu1 %v1594_v23  ;;  %v12900_v23 = vld [vmem:[%s14955_s27 + $0x5ec] ss:$16 sps:$4 sm:$0xff]  }
 0x1b8   : > { %6980 = vmatpush1.bf16.msra.mxu0 %v12805_v22  ;;  %7636 = vmatpush1.bf16.msra.mxu1 %v12808_v24  ;;  %v12897_v22 = vld [vmem:[%s14955_s27 + $0x5e4] ss:$16 sps:$4 sm:$0xff]   ;;  %v12895_v24 = vld [vmem:[%s14955_s27 + $0x5e0] ss:$16 sps:$4 sm:$0xff]  }
 0x1b9   : > { %6981 = vmatprep.subr.bf16.mxu0 %v12813_v25  ;;  %7637 = vmatprep.subr.bf16.mxu1 %v12816_v26  ;;  %v12898_v25 = vld [vmem:[%s14955_s27 + $0x5e8] ss:$16 sps:$4 sm:$0xff]   ;;  %v12904_v26 = vld [vmem:[%s14955_s27 + $0x604] ss:$16 sps:$4 sm:$0xff]  }
 0x1ba   : > { %7011 = vmatprep.mubr.bf16.mxu0 %v15144_v27  ;;  %7667 = vmatprep.mubr.bf16.mxu1 %v15144_v27 }
 0x1bc   : > { %6982 = vmatpush1.bf16.msra.mxu0 %v12811_v28  ;;  %7638 = vmatpush1.bf16.msra.mxu1 %v12814_v14  ;;  %v12907_v28 = vld [vmem:[%s14955_s27 + $0x60c] ss:$16 sps:$4 sm:$0xff]   ;;  %v12902_v14 = vld [vmem:[%s14955_s27 + $0x600] ss:$16 sps:$4 sm:$0xff]  }
 0x1bd   : > { %6983 = vmatprep.subr.bf16.mxu0 %v12819_v29  ;;  %7639 = vmatprep.subr.bf16.mxu1 %v12822_v30  ;;  %v15211_v29 = vrot.slane %v15129_v17, %v15031_v50  ;;  %v12905_v30 = vld [vmem:[%s14955_s27 + $0x608] ss:$16 sps:$4 sm:$0xff]   ;;  %v12908_v17 = vld [vmem:[%s14955_s27 + $0x620] ss:$16 sps:$4 sm:$0xff]  }
 0x1c0   : > { %6984 = vmatpush1.bf16.msra.mxu0 %v12817_v31  ;;  %7640 = vmatpush1.bf16.msra.mxu1 %v12820_v32  ;;  %v12910_v31 = vld [vmem:[%s14955_s27 + $0x624] ss:$16 sps:$4 sm:$0xff]   ;;  %v12913_v32 = vld [vmem:[%s14955_s27 + $0x62c] ss:$16 sps:$4 sm:$0xff]  }
 0x1c1   : > { %6985 = vmatprep.subr.bf16.mxu0 %v12825_v33  ;;  %7641 = vmatprep.subr.bf16.mxu1 %v12828_v34  ;;  %v1597_v33 = vcombine.high %v15144_v27, %v15144_v27  ;;  %v12911_v34 = vld [vmem:[%s14955_s27 + $0x628] ss:$16 sps:$4 sm:$0xff]   ;;  %v12914_v27 = vld [vmem:[%s14955_s27 + $0x640] ss:$16 sps:$4 sm:$0xff]  }
 0x1c4   : > { %6986 = vmatpush1.bf16.msra.mxu0 %v12823_v35  ;;  %7642 = vmatpush1.bf16.msra.mxu1 %v12826_v36  ;;  %v12916_v35 = vld [vmem:[%s14955_s27 + $0x644] ss:$16 sps:$4 sm:$0xff]   ;;  %v12919_v36 = vld [vmem:[%s14955_s27 + $0x64c] ss:$16 sps:$4 sm:$0xff]  }
 0x1c5   : > { %6987 = vmatprep.subr.bf16.mxu0 %v12831_v37  ;;  %7643 = vmatprep.subr.bf16.mxu1 %v12834_v38  ;;  %v12917_v37 = vld [vmem:[%s14955_s27 + $0x648] ss:$16 sps:$4 sm:$0xff]   ;;  %v12922_v38 = vld [vmem:[%s14955_s27 + $0x664] ss:$16 sps:$4 sm:$0xff]  }
 0x1c8   : > { %6988 = vmatpush1.bf16.msra.mxu0 %v12829_v40  ;;  %7644 = vmatpush1.bf16.msra.mxu1 %v12832_v41  ;;  %v12925_v40 = vld [vmem:[%s14955_s27 + $0x66c] ss:$16 sps:$4 sm:$0xff]   ;;  %v12920_v41 = vld [vmem:[%s14955_s27 + $0x660] ss:$16 sps:$4 sm:$0xff]  }
 0x1c9   : > { %6989 = vmatprep.subr.bf16.mxu0 %v12837_v42  ;;  %7645 = vmatprep.subr.bf16.mxu1 %v12840_v43  ;;  %v12923_v42 = vld [vmem:[%s14955_s27 + $0x668] ss:$16 sps:$4 sm:$0xff]   ;;  %v12928_v43 = vld [vmem:[%s14955_s27 + $0x684] ss:$16 sps:$4 sm:$0xff]  }
 0x1cc   : > { %6990 = vmatpush1.bf16.msra.mxu0 %v12835_v45  ;;  %7646 = vmatpush1.bf16.msra.mxu1 %v12838_v46  ;;  %v12931_v45 = vld [vmem:[%s14955_s27 + $0x68c] ss:$16 sps:$4 sm:$0xff]   ;;  %v12926_v46 = vld [vmem:[%s14955_s27 + $0x680] ss:$16 sps:$4 sm:$0xff]  }
 0x1cd   : > { %6991 = vmatprep.subr.bf16.mxu0 %v12843_v47  ;;  %7647 = vmatprep.subr.bf16.mxu1 %v12846_v48  ;;  %v12929_v47 = vld [vmem:[%s14955_s27 + $0x688] ss:$16 sps:$4 sm:$0xff]   ;;  %v12934_v48 = vld [vmem:[%s14955_s27 + $0x6a4] ss:$16 sps:$4 sm:$0xff]  }
 0x1d0   : > { %6992 = vmatpush1.bf16.msra.mxu0 %v12841_v49  ;;  %7648 = vmatpush1.bf16.msra.mxu1 %v12844_v51  ;;  %v12937_v49 = vld [vmem:[%s14955_s27 + $0x6ac] ss:$16 sps:$4 sm:$0xff]   ;;  %v12932_v51 = vld [vmem:[%s14955_s27 + $0x6a0] ss:$16 sps:$4 sm:$0xff]  }
 0x1d1   : > { %6993 = vmatprep.subr.bf16.mxu0 %v12849_v52  ;;  %7649 = vmatprep.subr.bf16.mxu1 %v12852_v54  ;;  %v12935_v52 = vld [vmem:[%s14955_s27 + $0x6a8] ss:$16 sps:$4 sm:$0xff]   ;;  %v12940_v54 = vld [vmem:[%s14955_s27 + $0x6c4] ss:$16 sps:$4 sm:$0xff]  }
 0x1d4   : > { %6994 = vmatpush1.bf16.msra.mxu0 %v12847_v55  ;;  %7650 = vmatpush1.bf16.msra.mxu1 %v12850_v56  ;;  %v12943_v55 = vld [vmem:[%s14955_s27 + $0x6cc] ss:$16 sps:$4 sm:$0xff]   ;;  %v12938_v56 = vld [vmem:[%s14955_s27 + $0x6c0] ss:$16 sps:$4 sm:$0xff]  }
 0x1d5   : > { %6995 = vmatprep.subr.bf16.mxu0 %v12855_v57  ;;  %7651 = vmatprep.subr.bf16.mxu1 %v12858_v58  ;;  %v12941_v57 = vld [vmem:[%s14955_s27 + $0x6c8] ss:$16 sps:$4 sm:$0xff]   ;;  %v12946_v58 = vld [vmem:[%s14955_s27 + $0x6e4] ss:$16 sps:$4 sm:$0xff]  }
 0x1d8   : > { %6996 = vmatpush1.bf16.msra.mxu0 %v12853_v59  ;;  %7652 = vmatpush1.bf16.msra.mxu1 %v12856_v60  ;;  %v12949_v59 = vld [vmem:[%s14955_s27 + $0x6ec] ss:$16 sps:$4 sm:$0xff]   ;;  %v12944_v60 = vld [vmem:[%s14955_s27 + $0x6e0] ss:$16 sps:$4 sm:$0xff]  }
 0x1d9   : > { %6997 = vmatprep.subr.bf16.mxu0 %v12861_v61  ;;  %7653 = vmatprep.subr.bf16.mxu1 %v12864_v62  ;;  %v12947_v61 = vld [vmem:[%s14955_s27 + $0x6e8] ss:$16 sps:$4 sm:$0xff]   ;;  %v12952_v62 = vld [vmem:[%s14955_s27 + $0x704] ss:$16 sps:$4 sm:$0xff]  }
 0x1dc   : > { %6998 = vmatpush1.bf16.msra.mxu0 %v12859_v63  ;;  %7654 = vmatpush1.bf16.msra.mxu1 %v12862_v0  ;;  %v12955_v63 = vld [vmem:[%s14955_s27 + $0x70c] ss:$16 sps:$4 sm:$0xff]   ;;  %v12950_v0 = vld [vmem:[%s14955_s27 + $0x700] ss:$16 sps:$4 sm:$0xff]  }
 0x1dd   : > { %6999 = vmatprep.subr.bf16.mxu0 %v12867_v1  ;;  %7655 = vmatprep.subr.bf16.mxu1 %v12870_v2  ;;  %v12953_v1 = vld [vmem:[%s14955_s27 + $0x708] ss:$16 sps:$4 sm:$0xff]   ;;  %v12958_v2 = vld [vmem:[%s14955_s27 + $0x724] ss:$16 sps:$4 sm:$0xff]  }
 0x1e0   : > { %7000 = vmatpush1.bf16.msra.mxu0 %v12865_v3  ;;  %7656 = vmatpush1.bf16.msra.mxu1 %v12868_v4  ;;  %v12961_v3 = vld [vmem:[%s14955_s27 + $0x72c] ss:$16 sps:$4 sm:$0xff]   ;;  %v12956_v4 = vld [vmem:[%s14955_s27 + $0x720] ss:$16 sps:$4 sm:$0xff]  }
 0x1e1   : > { %7001 = vmatprep.subr.bf16.mxu0 %v12873_v5  ;;  %7657 = vmatprep.subr.bf16.mxu1 %v12876_v6  ;;  %v12959_v5 = vld [vmem:[%s14955_s27 + $0x728] ss:$16 sps:$4 sm:$0xff]   ;;  %v12964_v6 = vld [vmem:[%s14955_s27 + $0x744] ss:$16 sps:$4 sm:$0xff]  }
 0x1e4   : > { %7002 = vmatpush1.bf16.msra.mxu0 %v12871_v7  ;;  %7658 = vmatpush1.bf16.msra.mxu1 %v12874_v8  ;;  %v12967_v7 = vld [vmem:[%s14955_s27 + $0x74c] ss:$16 sps:$4 sm:$0xff]   ;;  %v12962_v8 = vld [vmem:[%s14955_s27 + $0x740] ss:$16 sps:$4 sm:$0xff]  }
 0x1e5   : > { %7003 = vmatprep.subr.bf16.mxu0 %v12879_v9  ;;  %7659 = vmatprep.subr.bf16.mxu1 %v12882_v10  ;;  %v12965_v9 = vld [vmem:[%s14955_s27 + $0x748] ss:$16 sps:$4 sm:$0xff]   ;;  %v12970_v10 = vld [vmem:[%s14955_s27 + $0x764] ss:$16 sps:$4 sm:$0xff]  }
 0x1e8   : > { %7004 = vmatpush1.bf16.msra.mxu0 %v12877_v11  ;;  %7660 = vmatpush1.bf16.msra.mxu1 %v12880_v12  ;;  %v12973_v11 = vld [vmem:[%s14955_s27 + $0x76c] ss:$16 sps:$4 sm:$0xff]   ;;  %v12968_v12 = vld [vmem:[%s14955_s27 + $0x760] ss:$16 sps:$4 sm:$0xff]  }
 0x1e9   : > { %7005 = vmatprep.subr.bf16.mxu0 %v12885_v13  ;;  %7661 = vmatprep.subr.bf16.mxu1 %v12888_v15  ;;  %v12971_v13 = vld [vmem:[%s14955_s27 + $0x768] ss:$16 sps:$4 sm:$0xff]   ;;  %v12976_v15 = vld [vmem:[%s14955_s27 + $0x784] ss:$16 sps:$4 sm:$0xff]  }
 0x1ec   : > { %7006 = vmatpush1.bf16.msra.mxu0 %v12883_v16  ;;  %7662 = vmatpush1.bf16.msra.mxu1 %v12886_v18  ;;  %v12979_v16 = vld [vmem:[%s14955_s27 + $0x78c] ss:$16 sps:$4 sm:$0xff]   ;;  %v12974_v18 = vld [vmem:[%s14955_s27 + $0x780] ss:$16 sps:$4 sm:$0xff]  }
 0x1ed   : > { %7007 = vmatprep.subr.bf16.mxu0 %v12891_v53  ;;  %7663 = vmatprep.subr.bf16.mxu1 %v12894_v19  ;;  %v12977_v53 = vld [vmem:[%s14955_s27 + $0x788] ss:$16 sps:$4 sm:$0xff]   ;;  %v12982_v19 = vld [vmem:[%s14955_s27 + $0x7a4] ss:$16 sps:$4 sm:$0xff]  }
 0x1f0   : > { %7008 = vmatpush1.bf16.msra.mxu0 %v12889_v20  ;;  %7664 = vmatpush1.bf16.msra.mxu1 %v12892_v21  ;;  %v12985_v20 = vld [vmem:[%s14955_s27 + $0x7ac] ss:$16 sps:$4 sm:$0xff]   ;;  %v12980_v21 = vld [vmem:[%s14955_s27 + $0x7a0] ss:$16 sps:$4 sm:$0xff]  }
 0x1f1   : > { %7009 = vmatprep.subr.bf16.mxu0 %v12897_v22  ;;  %7665 = vmatprep.subr.bf16.mxu1 %v12900_v23  ;;  %v12983_v22 = vld [vmem:[%s14955_s27 + $0x7a8] ss:$16 sps:$4 sm:$0xff]   ;;  %v12988_v23 = vld [vmem:[%s14955_s27 + $0x7c4] ss:$16 sps:$4 sm:$0xff]  }
 0x1f4   : > { %7010 = vmatpush1.bf16.msra.mxu0 %v12895_v24  ;;  %7666 = vmatpush1.bf16.msra.mxu1 %v12898_v25  ;;  %v12991_v24 = vld [vmem:[%s14955_s27 + $0x7cc] ss:$16 sps:$4 sm:$0xff]  }
 0x1f5   : > { %7020 = vmatprep.subr.bf16.mxu0 %v12904_v26  ;;  %7676 = vmatprep.subr.bf16.mxu1 %v12907_v28  ;;  %v15273_v25 = vld.sshfl [vmem:[%s14948_s13 + $0x8] sm:$0xff pattern:$0x75316420]  ;;  %v12986_v26 = vld [vmem:[%s14955_s27 + $0x7c0] ss:$16 sps:$4 sm:$0xff]  }
 0x1f6   : > { %v12989_v28 = vld [vmem:[%s14955_s27 + $0x7c8] ss:$16 sps:$4 sm:$0xff]  }
 0x1f7   : > { %7012 = vmatmul.mubr.bf16.vlgmr.msra.gmra.mrb[0].mxu0 %v15211_v29  ;;  %7668 = vmatmul.mubr.bf16.vlgmr.msra.gmra.mrb[0].mxu1 %v15211_v29 }
 0x1f8   : > { %7021 = vmatpush1.bf16.msra.mxu0 %v12902_v14  ;;  %7677 = vmatpush1.bf16.msra.mxu1 %v12905_v30  ;;  %v12994_v14 = vld [vmem:[%s14955_s27 + $0x7e4] ss:$16 sps:$4 sm:$0xff]   ;;  %v12997_v30 = vld [vmem:[%s14955_s27 + $0x7ec] ss:$16 sps:$4 sm:$0xff]  }
 0x1f9   : > { %7022 = vmatprep.subr.bf16.mxu0 %v12910_v31  ;;  %7678 = vmatprep.subr.bf16.mxu1 %v12913_v32  ;;  %v12992_v31 = vld [vmem:[%s14955_s27 + $0x7e0] ss:$16 sps:$4 sm:$0xff]   ;;  %v12995_v32 = vld [vmem:[%s14955_s27 + $0x7e8] ss:$16 sps:$4 sm:$0xff]  }
 0x1fa   : > { %7052 = vmatprep.mubr.bf16.mxu0 %v1597_v33  ;;  %7708 = vmatprep.mubr.bf16.mxu1 %v1597_v33  ;;  %v13000_v33 = vld [vmem:[%s14955_s27 + $0x804] ss:$16 sps:$4 sm:$0xff]  }
 0x1fc   : > { %7023 = vmatpush1.bf16.msra.mxu0 %v12908_v17  ;;  %7679 = vmatpush1.bf16.msra.mxu1 %v12911_v34  ;;  %v13003_v17 = vld [vmem:[%s14955_s27 + $0x80c] ss:$16 sps:$4 sm:$0xff]   ;;  %v1613_v34 = vcombine.high %v15273_v25, %v15273_v25 }
 0x1fd   : > { %7024 = vmatprep.subr.bf16.mxu0 %v12916_v35  ;;  %7680 = vmatprep.subr.bf16.mxu1 %v12919_v36  ;;  %v1595_v35 = vcombine.high %v15211_v29, %v15211_v29  ;;  %v12998_v36 = vld [vmem:[%s14955_s27 + $0x800] ss:$16 sps:$4 sm:$0xff]  }
 0x1fe   : > { %v13004_v29 = vld [vmem:[%s14955_s27 + $0x820] ss:$16 sps:$4 sm:$0xff]  }
 0x200   : > { %7025 = vmatpush1.bf16.msra.mxu0 %v12914_v27  ;;  %7681 = vmatpush1.bf16.msra.mxu1 %v12917_v37  ;;  %v13001_v27 = vld [vmem:[%s14955_s27 + $0x808] ss:$16 sps:$4 sm:$0xff]   ;;  %v13006_v37 = vld [vmem:[%s14955_s27 + $0x824] ss:$16 sps:$4 sm:$0xff]  }
 0x201   : > { %7026 = vmatprep.subr.bf16.mxu0 %v12922_v38  ;;  %7682 = vmatprep.subr.bf16.mxu1 %v12925_v40  ;;  %v13009_v38 = vld [vmem:[%s14955_s27 + $0x82c] ss:$16 sps:$4 sm:$0xff]   ;;  %v15292_v40 = vrot.slane %v1613_v34, %v15031_v50  ;;  %v13085_v34 = vld [vmem:[%s14955_s27 + $0x9c8] ss:$16 sps:$4 sm:$0xff]  }
 0x204   : > { %7027 = vmatpush1.bf16.msra.mxu0 %v12920_v41  ;;  %7683 = vmatpush1.bf16.msra.mxu1 %v12923_v42  ;;  %v13007_v41 = vld [vmem:[%s14955_s27 + $0x828] ss:$16 sps:$4 sm:$0xff]   ;;  %v13012_v42 = vld [vmem:[%s14955_s27 + $0x844] ss:$16 sps:$4 sm:$0xff]  }
 0x205   : > { %7028 = vmatprep.subr.bf16.mxu0 %v12928_v43  ;;  %7684 = vmatprep.subr.bf16.mxu1 %v12931_v45  ;;  %v13015_v43 = vld [vmem:[%s14955_s27 + $0x84c] ss:$16 sps:$4 sm:$0xff]   ;;  %v13010_v45 = vld [vmem:[%s14955_s27 + $0x840] ss:$16 sps:$4 sm:$0xff]  }
 0x208   : > { %7029 = vmatpush1.bf16.msra.mxu0 %v12926_v46  ;;  %7685 = vmatpush1.bf16.msra.mxu1 %v12929_v47  ;;  %v13013_v46 = vld [vmem:[%s14955_s27 + $0x848] ss:$16 sps:$4 sm:$0xff]   ;;  %v13018_v47 = vld [vmem:[%s14955_s27 + $0x864] ss:$16 sps:$4 sm:$0xff]  }
 0x209   : > { %7030 = vmatprep.subr.bf16.mxu0 %v12934_v48  ;;  %7686 = vmatprep.subr.bf16.mxu1 %v12937_v49  ;;  %v13021_v48 = vld [vmem:[%s14955_s27 + $0x86c] ss:$16 sps:$4 sm:$0xff]   ;;  %v13016_v49 = vld [vmem:[%s14955_s27 + $0x860] ss:$16 sps:$4 sm:$0xff]  }
 0x20c   : > { %7031 = vmatpush1.bf16.msra.mxu0 %v12932_v51  ;;  %7687 = vmatpush1.bf16.msra.mxu1 %v12935_v52  ;;  %v13019_v51 = vld [vmem:[%s14955_s27 + $0x868] ss:$16 sps:$4 sm:$0xff]   ;;  %v13024_v52 = vld [vmem:[%s14955_s27 + $0x884] ss:$16 sps:$4 sm:$0xff]  }
 0x20d   : > { %7032 = vmatprep.subr.bf16.mxu0 %v12940_v54  ;;  %7688 = vmatprep.subr.bf16.mxu1 %v12943_v55  ;;  %v13027_v54 = vld [vmem:[%s14955_s27 + $0x88c] ss:$16 sps:$4 sm:$0xff]   ;;  %v13022_v55 = vld [vmem:[%s14955_s27 + $0x880] ss:$16 sps:$4 sm:$0xff]  }
 0x210   : > { %7033 = vmatpush1.bf16.msra.mxu0 %v12938_v56  ;;  %7689 = vmatpush1.bf16.msra.mxu1 %v12941_v57  ;;  %v13025_v56 = vld [vmem:[%s14955_s27 + $0x888] ss:$16 sps:$4 sm:$0xff]   ;;  %v13030_v57 = vld [vmem:[%s14955_s27 + $0x8a4] ss:$16 sps:$4 sm:$0xff]  }
 0x211   : > { %7034 = vmatprep.subr.bf16.mxu0 %v12946_v58  ;;  %7690 = vmatprep.subr.bf16.mxu1 %v12949_v59  ;;  %v13033_v58 = vld [vmem:[%s14955_s27 + $0x8ac] ss:$16 sps:$4 sm:$0xff]   ;;  %v13028_v59 = vld [vmem:[%s14955_s27 + $0x8a0] ss:$16 sps:$4 sm:$0xff]  }
 0x214   : > { %7035 = vmatpush1.bf16.msra.mxu0 %v12944_v60  ;;  %7691 = vmatpush1.bf16.msra.mxu1 %v12947_v61  ;;  %v13031_v60 = vld [vmem:[%s14955_s27 + $0x8a8] ss:$16 sps:$4 sm:$0xff]   ;;  %v13036_v61 = vld [vmem:[%s14955_s27 + $0x8c4] ss:$16 sps:$4 sm:$0xff]  }
 0x215   : > { %7036 = vmatprep.subr.bf16.mxu0 %v12952_v62  ;;  %7692 = vmatprep.subr.bf16.mxu1 %v12955_v63  ;;  %v13039_v62 = vld [vmem:[%s14955_s27 + $0x8cc] ss:$16 sps:$4 sm:$0xff]   ;;  %v13034_v63 = vld [vmem:[%s14955_s27 + $0x8c0] ss:$16 sps:$4 sm:$0xff]  }
 0x218   : > { %7037 = vmatpush1.bf16.msra.mxu0 %v12950_v0  ;;  %7693 = vmatpush1.bf16.msra.mxu1 %v12953_v1  ;;  %v13037_v0 = vld [vmem:[%s14955_s27 + $0x8c8] ss:$16 sps:$4 sm:$0xff]   ;;  %v13042_v1 = vld [vmem:[%s14955_s27 + $0x8e4] ss:$16 sps:$4 sm:$0xff]  }
 0x219   : > { %7038 = vmatprep.subr.bf16.mxu0 %v12958_v2  ;;  %7694 = vmatprep.subr.bf16.mxu1 %v12961_v3  ;;  %v13045_v2 = vld [vmem:[%s14955_s27 + $0x8ec] ss:$16 sps:$4 sm:$0xff]   ;;  %v13040_v3 = vld [vmem:[%s14955_s27 + $0x8e0] ss:$16 sps:$4 sm:$0xff]  }
 0x21c   : > { %7039 = vmatpush1.bf16.msra.mxu0 %v12956_v4  ;;  %7695 = vmatpush1.bf16.msra.mxu1 %v12959_v5  ;;  %v13043_v4 = vld [vmem:[%s14955_s27 + $0x8e8] ss:$16 sps:$4 sm:$0xff]   ;;  %v13048_v5 = vld [vmem:[%s14955_s27 + $0x904] ss:$16 sps:$4 sm:$0xff]  }
 0x21d   : > { %7040 = vmatprep.subr.bf16.mxu0 %v12964_v6  ;;  %7696 = vmatprep.subr.bf16.mxu1 %v12967_v7  ;;  %v13051_v6 = vld [vmem:[%s14955_s27 + $0x90c] ss:$16 sps:$4 sm:$0xff]   ;;  %v13046_v7 = vld [vmem:[%s14955_s27 + $0x900] ss:$16 sps:$4 sm:$0xff]  }
 0x220   : > { %7041 = vmatpush1.bf16.msra.mxu0 %v12962_v8  ;;  %7697 = vmatpush1.bf16.msra.mxu1 %v12965_v9  ;;  %v13049_v8 = vld [vmem:[%s14955_s27 + $0x908] ss:$16 sps:$4 sm:$0xff]   ;;  %v13054_v9 = vld [vmem:[%s14955_s27 + $0x924] ss:$16 sps:$4 sm:$0xff]  }
 0x221   : > { %7042 = vmatprep.subr.bf16.mxu0 %v12970_v10  ;;  %7698 = vmatprep.subr.bf16.mxu1 %v12973_v11  ;;  %v13057_v10 = vld [vmem:[%s14955_s27 + $0x92c] ss:$16 sps:$4 sm:$0xff]   ;;  %v13052_v11 = vld [vmem:[%s14955_s27 + $0x920] ss:$16 sps:$4 sm:$0xff]  }
 0x224   : > { %7043 = vmatpush1.bf16.msra.mxu0 %v12968_v12  ;;  %7699 = vmatpush1.bf16.msra.mxu1 %v12971_v13  ;;  %v13055_v12 = vld [vmem:[%s14955_s27 + $0x928] ss:$16 sps:$4 sm:$0xff]   ;;  %v13060_v13 = vld [vmem:[%s14955_s27 + $0x944] ss:$16 sps:$4 sm:$0xff]  }
 0x225   : > { %7044 = vmatprep.subr.bf16.mxu0 %v12976_v15  ;;  %7700 = vmatprep.subr.bf16.mxu1 %v12979_v16  ;;  %v13063_v15 = vld [vmem:[%s14955_s27 + $0x94c] ss:$16 sps:$4 sm:$0xff]   ;;  %v13058_v16 = vld [vmem:[%s14955_s27 + $0x940] ss:$16 sps:$4 sm:$0xff]  }
 0x228   : > { %7045 = vmatpush1.bf16.msra.mxu0 %v12974_v18  ;;  %7701 = vmatpush1.bf16.msra.mxu1 %v12977_v53  ;;  %v13061_v18 = vld [vmem:[%s14955_s27 + $0x948] ss:$16 sps:$4 sm:$0xff]   ;;  %v13066_v53 = vld [vmem:[%s14955_s27 + $0x964] ss:$16 sps:$4 sm:$0xff]  }
 0x229   : > { %7046 = vmatprep.subr.bf16.mxu0 %v12982_v19  ;;  %7702 = vmatprep.subr.bf16.mxu1 %v12985_v20  ;;  %v13069_v19 = vld [vmem:[%s14955_s27 + $0x96c] ss:$16 sps:$4 sm:$0xff]   ;;  %v13064_v20 = vld [vmem:[%s14955_s27 + $0x960] ss:$16 sps:$4 sm:$0xff]  }
 0x22c   : > { %7047 = vmatpush1.bf16.msra.mxu0 %v12980_v21  ;;  %7703 = vmatpush1.bf16.msra.mxu1 %v12983_v22  ;;  %v13067_v21 = vld [vmem:[%s14955_s27 + $0x968] ss:$16 sps:$4 sm:$0xff]   ;;  %v13072_v22 = vld [vmem:[%s14955_s27 + $0x984] ss:$16 sps:$4 sm:$0xff]  }
 0x22d   : > { %7048 = vmatprep.subr.bf16.mxu0 %v12988_v23  ;;  %7704 = vmatprep.subr.bf16.mxu1 %v12991_v24  ;;  %v13075_v23 = vld [vmem:[%s14955_s27 + $0x98c] ss:$16 sps:$4 sm:$0xff]   ;;  %v13070_v24 = vld [vmem:[%s14955_s27 + $0x980] ss:$16 sps:$4 sm:$0xff]  }
 0x230   : > { %7049 = vmatpush1.bf16.msra.mxu0 %v12986_v26  ;;  %7705 = vmatpush1.bf16.msra.mxu1 %v12989_v28  ;;  %v13073_v26 = vld [vmem:[%s14955_s27 + $0x988] ss:$16 sps:$4 sm:$0xff]   ;;  %v13078_v28 = vld [vmem:[%s14955_s27 + $0x9a4] ss:$16 sps:$4 sm:$0xff]  }
 0x231   : > { %7050 = vmatprep.subr.bf16.mxu0 %v12994_v14  ;;  %7706 = vmatprep.subr.bf16.mxu1 %v12997_v30  ;;  %v13081_v14 = vld [vmem:[%s14955_s27 + $0x9ac] ss:$16 sps:$4 sm:$0xff]   ;;  %v13076_v30 = vld [vmem:[%s14955_s27 + $0x9a0] ss:$16 sps:$4 sm:$0xff]  }
 0x234   : > { %7051 = vmatpush1.bf16.msra.mxu0 %v12992_v31  ;;  %7707 = vmatpush1.bf16.msra.mxu1 %v12995_v32  ;;  %v13079_v31 = vld [vmem:[%s14955_s27 + $0x9a8] ss:$16 sps:$4 sm:$0xff]   ;;  %v13084_v32 = vld [vmem:[%s14955_s27 + $0x9c4] ss:$16 sps:$4 sm:$0xff]  }
 0x235   : > { %7061 = vmatprep.subr.bf16.mxu0 %v13000_v33  ;;  %7717 = vmatprep.subr.bf16.mxu1 %v13003_v17  ;;  %v13087_v33 = vld [vmem:[%s14955_s27 + $0x9cc] ss:$16 sps:$4 sm:$0xff]   ;;  %v13082_v17 = vld [vmem:[%s14955_s27 + $0x9c0] ss:$16 sps:$4 sm:$0xff]  }
 0x237   : > { %7053 = vmatmul.mubr.bf16.vlgmr.msra.gmra.mrb[0].mxu0 %v1595_v35  ;;  %7709 = vmatmul.mubr.bf16.vlgmr.msra.gmra.mrb[0].mxu1 %v1595_v35  ;;  %v13090_v35 = vld [vmem:[%s14955_s27 + $0x9e4] ss:$16 sps:$4 sm:$0xff]  }
 0x238   : > { %7062 = vmatpush1.bf16.msra.mxu0 %v12998_v36  ;;  %7718 = vmatpush1.bf16.msra.mxu1 %v13001_v27  ;;  %v13093_v36 = vld [vmem:[%s14955_s27 + $0x9ec] ss:$16 sps:$4 sm:$0xff]   ;;  %v13088_v27 = vld [vmem:[%s14955_s27 + $0x9e0] ss:$16 sps:$4 sm:$0xff]  }
 0x239   : > { %7063 = vmatprep.subr.bf16.mxu0 %v13006_v37  ;;  %7719 = vmatprep.subr.bf16.mxu1 %v13009_v38  ;;  %v13091_v37 = vld [vmem:[%s14955_s27 + $0x9e8] ss:$16 sps:$4 sm:$0xff]   ;;  %v13096_v38 = vld [vmem:[%s14955_s27 + $0xa04] ss:$16 sps:$4 sm:$0xff]  }
 0x23a   : > { %7093 = vmatprep.mubr.bf16.mxu0 %v15292_v40  ;;  %7749 = vmatprep.mubr.bf16.mxu1 %v15292_v40 }
 0x23c   : > { %7064 = vmatpush1.bf16.msra.mxu0 %v13004_v29  ;;  %7720 = vmatpush1.bf16.msra.mxu1 %v13007_v41  ;;  %v13099_v29 = vld [vmem:[%s14955_s27 + $0xa0c] ss:$16 sps:$4 sm:$0xff]   ;;  %v15358_v41 = vrot.slane %v15273_v25, %v15031_v50  ;;  %v13100_v25 = vld [vmem:[%s14955_s27 + $0xa20] ss:$16 sps:$4 sm:$0xff]  }
 0x23d   : > { %7065 = vmatprep.subr.bf16.mxu0 %v13012_v42  ;;  %7721 = vmatprep.subr.bf16.mxu1 %v13015_v43  ;;  %v13094_v42 = vld [vmem:[%s14955_s27 + $0xa00] ss:$16 sps:$4 sm:$0xff]   ;;  %v13097_v43 = vld [vmem:[%s14955_s27 + $0xa08] ss:$16 sps:$4 sm:$0xff]  }
 0x240   : > { %7066 = vmatpush1.bf16.msra.mxu0 %v13010_v45  ;;  %7722 = vmatpush1.bf16.msra.mxu1 %v13013_v46  ;;  %v13102_v45 = vld [vmem:[%s14955_s27 + $0xa24] ss:$16 sps:$4 sm:$0xff]   ;;  %v13105_v46 = vld [vmem:[%s14955_s27 + $0xa2c] ss:$16 sps:$4 sm:$0xff]  }
 0x241   : > { %7067 = vmatprep.subr.bf16.mxu0 %v13018_v47  ;;  %7723 = vmatprep.subr.bf16.mxu1 %v13021_v48  ;;  %v1645_v47 = vcombine.high %v15292_v40, %v15292_v40  ;;  %v13103_v48 = vld [vmem:[%s14955_s27 + $0xa28] ss:$16 sps:$4 sm:$0xff]   ;;  %v13106_v40 = vld [vmem:[%s14955_s27 + $0xa40] ss:$16 sps:$4 sm:$0xff]  }
 0x244   : > { %7068 = vmatpush1.bf16.msra.mxu0 %v13016_v49  ;;  %7724 = vmatpush1.bf16.msra.mxu1 %v13019_v51  ;;  %v13108_v49 = vld [vmem:[%s14955_s27 + $0xa44] ss:$16 sps:$4 sm:$0xff]   ;;  %v13111_v51 = vld [vmem:[%s14955_s27 + $0xa4c] ss:$16 sps:$4 sm:$0xff]  }
 0x245   : > { %7069 = vmatprep.subr.bf16.mxu0 %v13024_v52  ;;  %7725 = vmatprep.subr.bf16.mxu1 %v13027_v54  ;;  %v13109_v52 = vld [vmem:[%s14955_s27 + $0xa48] ss:$16 sps:$4 sm:$0xff]   ;;  %v13114_v54 = vld [vmem:[%s14955_s27 + $0xa64] ss:$16 sps:$4 sm:$0xff]  }
 0x248   : > { %7070 = vmatpush1.bf16.msra.mxu0 %v13022_v55  ;;  %7726 = vmatpush1.bf16.msra.mxu1 %v13025_v56  ;;  %v13117_v55 = vld [vmem:[%s14955_s27 + $0xa6c] ss:$16 sps:$4 sm:$0xff]   ;;  %v13112_v56 = vld [vmem:[%s14955_s27 + $0xa60] ss:$16 sps:$4 sm:$0xff]  }
 0x249   : > { %7071 = vmatprep.subr.bf16.mxu0 %v13030_v57  ;;  %7727 = vmatprep.subr.bf16.mxu1 %v13033_v58  ;;  %v13115_v57 = vld [vmem:[%s14955_s27 + $0xa68] ss:$16 sps:$4 sm:$0xff]   ;;  %v13120_v58 = vld [vmem:[%s14955_s27 + $0xa84] ss:$16 sps:$4 sm:$0xff]  }
 0x24c   : > { %7072 = vmatpush1.bf16.msra.mxu0 %v13028_v59  ;;  %7728 = vmatpush1.bf16.msra.mxu1 %v13031_v60  ;;  %v13123_v59 = vld [vmem:[%s14955_s27 + $0xa8c] ss:$16 sps:$4 sm:$0xff]   ;;  %v13118_v60 = vld [vmem:[%s14955_s27 + $0xa80] ss:$16 sps:$4 sm:$0xff]  }
 0x24d   : > { %7073 = vmatprep.subr.bf16.mxu0 %v13036_v61  ;;  %7729 = vmatprep.subr.bf16.mxu1 %v13039_v62  ;;  %v13121_v61 = vld [vmem:[%s14955_s27 + $0xa88] ss:$16 sps:$4 sm:$0xff]   ;;  %v13126_v62 = vld [vmem:[%s14955_s27 + $0xaa4] ss:$16 sps:$4 sm:$0xff]  }
 0x250   : > { %7074 = vmatpush1.bf16.msra.mxu0 %v13034_v63  ;;  %7730 = vmatpush1.bf16.msra.mxu1 %v13037_v0  ;;  %v13129_v63 = vld [vmem:[%s14955_s27 + $0xaac] ss:$16 sps:$4 sm:$0xff]   ;;  %v13124_v0 = vld [vmem:[%s14955_s27 + $0xaa0] ss:$16 sps:$4 sm:$0xff]  }
 0x251   : > { %7075 = vmatprep.subr.bf16.mxu0 %v13042_v1  ;;  %7731 = vmatprep.subr.bf16.mxu1 %v13045_v2  ;;  %v13127_v1 = vld [vmem:[%s14955_s27 + $0xaa8] ss:$16 sps:$4 sm:$0xff]   ;;  %v13132_v2 = vld [vmem:[%s14955_s27 + $0xac4] ss:$16 sps:$4 sm:$0xff]  }
 0x254   : > { %7076 = vmatpush1.bf16.msra.mxu0 %v13040_v3  ;;  %7732 = vmatpush1.bf16.msra.mxu1 %v13043_v4  ;;  %v13135_v3 = vld [vmem:[%s14955_s27 + $0xacc] ss:$16 sps:$4 sm:$0xff]   ;;  %v13130_v4 = vld [vmem:[%s14955_s27 + $0xac0] ss:$16 sps:$4 sm:$0xff]  }
 0x255   : > { %7077 = vmatprep.subr.bf16.mxu0 %v13048_v5  ;;  %7733 = vmatprep.subr.bf16.mxu1 %v13051_v6  ;;  %v13133_v5 = vld [vmem:[%s14955_s27 + $0xac8] ss:$16 sps:$4 sm:$0xff]   ;;  %v13138_v6 = vld [vmem:[%s14955_s27 + $0xae4] ss:$16 sps:$4 sm:$0xff]  }
 0x258   : > { %7078 = vmatpush1.bf16.msra.mxu0 %v13046_v7  ;;  %7734 = vmatpush1.bf16.msra.mxu1 %v13049_v8  ;;  %v13141_v7 = vld [vmem:[%s14955_s27 + $0xaec] ss:$16 sps:$4 sm:$0xff]   ;;  %v13136_v8 = vld [vmem:[%s14955_s27 + $0xae0] ss:$16 sps:$4 sm:$0xff]  }
 0x259   : > { %7079 = vmatprep.subr.bf16.mxu0 %v13054_v9  ;;  %7735 = vmatprep.subr.bf16.mxu1 %v13057_v10  ;;  %v13139_v9 = vld [vmem:[%s14955_s27 + $0xae8] ss:$16 sps:$4 sm:$0xff]   ;;  %v13144_v10 = vld [vmem:[%s14955_s27 + $0xb04] ss:$16 sps:$4 sm:$0xff]  }
 0x25c   : > { %7080 = vmatpush1.bf16.msra.mxu0 %v13052_v11  ;;  %7736 = vmatpush1.bf16.msra.mxu1 %v13055_v12  ;;  %v13147_v11 = vld [vmem:[%s14955_s27 + $0xb0c] ss:$16 sps:$4 sm:$0xff]   ;;  %v13142_v12 = vld [vmem:[%s14955_s27 + $0xb00] ss:$16 sps:$4 sm:$0xff]  }
 0x25d   : > { %7081 = vmatprep.subr.bf16.mxu0 %v13060_v13  ;;  %7737 = vmatprep.subr.bf16.mxu1 %v13063_v15  ;;  %v13145_v13 = vld [vmem:[%s14955_s27 + $0xb08] ss:$16 sps:$4 sm:$0xff]   ;;  %v13150_v15 = vld [vmem:[%s14955_s27 + $0xb24] ss:$16 sps:$4 sm:$0xff]  }
 0x260   : > { %7082 = vmatpush1.bf16.msra.mxu0 %v13058_v16  ;;  %7738 = vmatpush1.bf16.msra.mxu1 %v13061_v18  ;;  %v13153_v16 = vld [vmem:[%s14955_s27 + $0xb2c] ss:$16 sps:$4 sm:$0xff]   ;;  %v13148_v18 = vld [vmem:[%s14955_s27 + $0xb20] ss:$16 sps:$4 sm:$0xff]  }
 0x261   : > { %7083 = vmatprep.subr.bf16.mxu0 %v13066_v53  ;;  %7739 = vmatprep.subr.bf16.mxu1 %v13069_v19  ;;  %v13151_v53 = vld [vmem:[%s14955_s27 + $0xb28] ss:$16 sps:$4 sm:$0xff]   ;;  %v13156_v19 = vld [vmem:[%s14955_s27 + $0xb44] ss:$16 sps:$4 sm:$0xff]  }
 0x264   : > { %7084 = vmatpush1.bf16.msra.mxu0 %v13064_v20  ;;  %7740 = vmatpush1.bf16.msra.mxu1 %v13067_v21  ;;  %v13159_v20 = vld [vmem:[%s14955_s27 + $0xb4c] ss:$16 sps:$4 sm:$0xff]   ;;  %v13154_v21 = vld [vmem:[%s14955_s27 + $0xb40] ss:$16 sps:$4 sm:$0xff]  }
 0x265   : > { %7085 = vmatprep.subr.bf16.mxu0 %v13072_v22  ;;  %7741 = vmatprep.subr.bf16.mxu1 %v13075_v23  ;;  %v13157_v22 = vld [vmem:[%s14955_s27 + $0xb48] ss:$16 sps:$4 sm:$0xff]   ;;  %v13162_v23 = vld [vmem:[%s14955_s27 + $0xb64] ss:$16 sps:$4 sm:$0xff]  }
 0x268   : > { %7086 = vmatpush1.bf16.msra.mxu0 %v13070_v24  ;;  %7742 = vmatpush1.bf16.msra.mxu1 %v13073_v26  ;;  %v13165_v24 = vld [vmem:[%s14955_s27 + $0xb6c] ss:$16 sps:$4 sm:$0xff]   ;;  %v13160_v26 = vld [vmem:[%s14955_s27 + $0xb60] ss:$16 sps:$4 sm:$0xff]  }
 0x269   : > { %7087 = vmatprep.subr.bf16.mxu0 %v13078_v28  ;;  %7743 = vmatprep.subr.bf16.mxu1 %v13081_v14  ;;  %v13163_v28 = vld [vmem:[%s14955_s27 + $0xb68] ss:$16 sps:$4 sm:$0xff]   ;;  %v13168_v14 = vld [vmem:[%s14955_s27 + $0xb84] ss:$16 sps:$4 sm:$0xff]  }
 0x26c   : > { %7088 = vmatpush1.bf16.msra.mxu0 %v13076_v30  ;;  %7744 = vmatpush1.bf16.msra.mxu1 %v13079_v31  ;;  %v13171_v30 = vld [vmem:[%s14955_s27 + $0xb8c] ss:$16 sps:$4 sm:$0xff]   ;;  %v13166_v31 = vld [vmem:[%s14955_s27 + $0xb80] ss:$16 sps:$4 sm:$0xff]  }
 0x26d   : > { %7089 = vmatprep.subr.bf16.mxu0 %v13084_v32  ;;  %7745 = vmatprep.subr.bf16.mxu1 %v13087_v33  ;;  %v13169_v32 = vld [vmem:[%s14955_s27 + $0xb88] ss:$16 sps:$4 sm:$0xff]   ;;  %v13174_v33 = vld [vmem:[%s14955_s27 + $0xba4] ss:$16 sps:$4 sm:$0xff]  }
 0x270   : > { %7090 = vmatpush1.bf16.msra.mxu0 %v13082_v17  ;;  %7746 = vmatpush1.bf16.msra.mxu1 %v13085_v34  ;;  %v13177_v17 = vld [vmem:[%s14955_s27 + $0xbac] ss:$16 sps:$4 sm:$0xff]   ;;  %v13172_v34 = vld [vmem:[%s14955_s27 + $0xba0] ss:$16 sps:$4 sm:$0xff]  }
 0x271   : > { %7091 = vmatprep.subr.bf16.mxu0 %v13090_v35  ;;  %7747 = vmatprep.subr.bf16.mxu1 %v13093_v36  ;;  %v13175_v35 = vld [vmem:[%s14955_s27 + $0xba8] ss:$16 sps:$4 sm:$0xff]   ;;  %v13180_v36 = vld [vmem:[%s14955_s27 + $0xbc4] ss:$16 sps:$4 sm:$0xff]  }
 0x274   : > { %7092 = vmatpush1.bf16.msra.mxu0 %v13088_v27  ;;  %7748 = vmatpush1.bf16.msra.mxu1 %v13091_v37  ;;  %v13183_v27 = vld [vmem:[%s14955_s27 + $0xbcc] ss:$16 sps:$4 sm:$0xff]  }
 0x275   : > { %7102 = vmatprep.subr.bf16.mxu0 %v13096_v38  ;;  %7758 = vmatprep.subr.bf16.mxu1 %v13099_v29  ;;  %v14153_v37 = vld [vmem:[%s14948_s13 + $0x8] sm:$0xff]  ;;  %v13178_v29 = vld [vmem:[%s14955_s27 + $0xbc0] ss:$16 sps:$4 sm:$0xff]  }
 0x276   : > { %v1598_v38 = vcombine.high %v14153_v37, %v14153_v37  ;;  %v13267_v37 = vld [vmem:[%s14955_s27 + $0xd8c] ss:$16 sps:$4 sm:$0xff]  }
 0x277   : > { %7094 = vmatmul.mubr.bf16.vlgmr.msra.gmra.mrb[0].mxu0 %v15358_v41  ;;  %7750 = vmatmul.mubr.bf16.vlgmr.msra.gmra.mrb[0].mxu1 %v15358_v41 }
 0x278   : > { %7103 = vmatpush1.bf16.msra.mxu0 %v13094_v42  ;;  %7759 = vmatpush1.bf16.msra.mxu1 %v13097_v43  ;;  %v13181_v42 = vld [vmem:[%s14955_s27 + $0xbc8] ss:$16 sps:$4 sm:$0xff]   ;;  %v13186_v43 = vld [vmem:[%s14955_s27 + $0xbe4] ss:$16 sps:$4 sm:$0xff]  }
 0x279   : > { %7104 = vmatprep.subr.bf16.mxu0 %v13102_v45  ;;  %7760 = vmatprep.subr.bf16.mxu1 %v13105_v46  ;;  %v13189_v45 = vld [vmem:[%s14955_s27 + $0xbec] ss:$16 sps:$4 sm:$0xff]   ;;  %v15426_v46 = vrot.slane %v1598_v38, %v15031_v50  ;;  %v13262_v38 = vld [vmem:[%s14955_s27 + $0xd80] ss:$16 sps:$4 sm:$0xff]  }
 0x27a   : > { %7134 = vmatprep.mubr.bf16.mxu0 %v1645_v47  ;;  %7790 = vmatprep.mubr.bf16.mxu1 %v1645_v47  ;;  %v13184_v47 = vld [vmem:[%s14955_s27 + $0xbe0] ss:$16 sps:$4 sm:$0xff]  }
 0x27c   : > { %7105 = vmatpush1.bf16.msra.mxu0 %v13100_v25  ;;  %7761 = vmatpush1.bf16.msra.mxu1 %v13103_v48  ;;  %v13187_v25 = vld [vmem:[%s14955_s27 + $0xbe8] ss:$16 sps:$4 sm:$0xff]   ;;  %v13192_v48 = vld [vmem:[%s14955_s27 + $0xc04] ss:$16 sps:$4 sm:$0xff]  }
 0x27d   : > { %7106 = vmatprep.subr.bf16.mxu0 %v13108_v49  ;;  %7762 = vmatprep.subr.bf16.mxu1 %v13111_v51  ;;  %v13195_v49 = vld [vmem:[%s14955_s27 + $0xc0c] ss:$16 sps:$4 sm:$0xff]   ;;  %v1614_v51 = vcombine.high %v15426_v46, %v15426_v46 }
 0x280   : > { %7107 = vmatpush1.bf16.msra.mxu0 %v13106_v40  ;;  %7763 = vmatpush1.bf16.msra.mxu1 %v13109_v52  ;;  %v1643_v40 = vcombine.high %v15358_v41, %v15358_v41  ;;  %v13190_v52 = vld [vmem:[%s14955_s27 + $0xc00] ss:$16 sps:$4 sm:$0xff]  }
 0x281   : > { %7108 = vmatprep.subr.bf16.mxu0 %v13114_v54  ;;  %7764 = vmatprep.subr.bf16.mxu1 %v13117_v55  ;;  %v13193_v54 = vld [vmem:[%s14955_s27 + $0xc08] ss:$16 sps:$4 sm:$0xff]   ;;  %v13198_v55 = vld [vmem:[%s14955_s27 + $0xc24] ss:$16 sps:$4 sm:$0xff]   ;;  %v13196_v41 = vld [vmem:[%s14955_s27 + $0xc20] ss:$16 sps:$4 sm:$0xff]  }
 0x284   : > { %7109 = vmatpush1.bf16.msra.mxu0 %v13112_v56  ;;  %7765 = vmatpush1.bf16.msra.mxu1 %v13115_v57  ;;  %v13201_v56 = vld [vmem:[%s14955_s27 + $0xc2c] ss:$16 sps:$4 sm:$0xff]   ;;  %v15441_v57 = vrot.slane %v1614_v51, %v15031_v50  ;;  %v13277_v51 = vld [vmem:[%s14955_s27 + $0xdc8] ss:$16 sps:$4 sm:$0xff]  }
 0x285   : > { %7110 = vmatprep.subr.bf16.mxu0 %v13120_v58  ;;  %7766 = vmatprep.subr.bf16.mxu1 %v13123_v59  ;;  %v13199_v58 = vld [vmem:[%s14955_s27 + $0xc28] ss:$16 sps:$4 sm:$0xff]   ;;  %v13204_v59 = vld [vmem:[%s14955_s27 + $0xc44] ss:$16 sps:$4 sm:$0xff]  }
 0x288   : > { %7111 = vmatpush1.bf16.msra.mxu0 %v13118_v60  ;;  %7767 = vmatpush1.bf16.msra.mxu1 %v13121_v61  ;;  %v13207_v60 = vld [vmem:[%s14955_s27 + $0xc4c] ss:$16 sps:$4 sm:$0xff]   ;;  %v13202_v61 = vld [vmem:[%s14955_s27 + $0xc40] ss:$16 sps:$4 sm:$0xff]  }
 0x289   : > { %7112 = vmatprep.subr.bf16.mxu0 %v13126_v62  ;;  %7768 = vmatprep.subr.bf16.mxu1 %v13129_v63  ;;  %v13205_v62 = vld [vmem:[%s14955_s27 + $0xc48] ss:$16 sps:$4 sm:$0xff]   ;;  %v13210_v63 = vld [vmem:[%s14955_s27 + $0xc64] ss:$16 sps:$4 sm:$0xff]  }
 0x28c   : > { %7113 = vmatpush1.bf16.msra.mxu0 %v13124_v0  ;;  %7769 = vmatpush1.bf16.msra.mxu1 %v13127_v1  ;;  %v13213_v0 = vld [vmem:[%s14955_s27 + $0xc6c] ss:$16 sps:$4 sm:$0xff]   ;;  %v13208_v1 = vld [vmem:[%s14955_s27 + $0xc60] ss:$16 sps:$4 sm:$0xff]  }
 0x28d   : > { %7114 = vmatprep.subr.bf16.mxu0 %v13132_v2  ;;  %7770 = vmatprep.subr.bf16.mxu1 %v13135_v3  ;;  %v13211_v2 = vld [vmem:[%s14955_s27 + $0xc68] ss:$16 sps:$4 sm:$0xff]   ;;  %v13216_v3 = vld [vmem:[%s14955_s27 + $0xc84] ss:$16 sps:$4 sm:$0xff]  }
 0x290   : > { %7115 = vmatpush1.bf16.msra.mxu0 %v13130_v4  ;;  %7771 = vmatpush1.bf16.msra.mxu1 %v13133_v5  ;;  %v13219_v4 = vld [vmem:[%s14955_s27 + $0xc8c] ss:$16 sps:$4 sm:$0xff]   ;;  %v13214_v5 = vld [vmem:[%s14955_s27 + $0xc80] ss:$16 sps:$4 sm:$0xff]  }
 0x291   : > { %7116 = vmatprep.subr.bf16.mxu0 %v13138_v6  ;;  %7772 = vmatprep.subr.bf16.mxu1 %v13141_v7  ;;  %v13217_v6 = vld [vmem:[%s14955_s27 + $0xc88] ss:$16 sps:$4 sm:$0xff]   ;;  %v13222_v7 = vld [vmem:[%s14955_s27 + $0xca4] ss:$16 sps:$4 sm:$0xff]  }
 0x294   : > { %7117 = vmatpush1.bf16.msra.mxu0 %v13136_v8  ;;  %7773 = vmatpush1.bf16.msra.mxu1 %v13139_v9  ;;  %v13225_v8 = vld [vmem:[%s14955_s27 + $0xcac] ss:$16 sps:$4 sm:$0xff]   ;;  %v13220_v9 = vld [vmem:[%s14955_s27 + $0xca0] ss:$16 sps:$4 sm:$0xff]  }
 0x295   : > { %7118 = vmatprep.subr.bf16.mxu0 %v13144_v10  ;;  %7774 = vmatprep.subr.bf16.mxu1 %v13147_v11  ;;  %v13223_v10 = vld [vmem:[%s14955_s27 + $0xca8] ss:$16 sps:$4 sm:$0xff]   ;;  %v13228_v11 = vld [vmem:[%s14955_s27 + $0xcc4] ss:$16 sps:$4 sm:$0xff]  }
 0x298   : > { %7119 = vmatpush1.bf16.msra.mxu0 %v13142_v12  ;;  %7775 = vmatpush1.bf16.msra.mxu1 %v13145_v13  ;;  %v13231_v12 = vld [vmem:[%s14955_s27 + $0xccc] ss:$16 sps:$4 sm:$0xff]   ;;  %v13226_v13 = vld [vmem:[%s14955_s27 + $0xcc0] ss:$16 sps:$4 sm:$0xff]  }
 0x299   : > { %7120 = vmatprep.subr.bf16.mxu0 %v13150_v15  ;;  %7776 = vmatprep.subr.bf16.mxu1 %v13153_v16  ;;  %v13229_v15 = vld [vmem:[%s14955_s27 + $0xcc8] ss:$16 sps:$4 sm:$0xff]   ;;  %v13234_v16 = vld [vmem:[%s14955_s27 + $0xce4] ss:$16 sps:$4 sm:$0xff]  }
 0x29c   : > { %7121 = vmatpush1.bf16.msra.mxu0 %v13148_v18  ;;  %7777 = vmatpush1.bf16.msra.mxu1 %v13151_v53  ;;  %v13237_v18 = vld [vmem:[%s14955_s27 + $0xcec] ss:$16 sps:$4 sm:$0xff]   ;;  %v13232_v53 = vld [vmem:[%s14955_s27 + $0xce0] ss:$16 sps:$4 sm:$0xff]  }
 0x29d   : > { %7122 = vmatprep.subr.bf16.mxu0 %v13156_v19  ;;  %7778 = vmatprep.subr.bf16.mxu1 %v13159_v20  ;;  %v13235_v19 = vld [vmem:[%s14955_s27 + $0xce8] ss:$16 sps:$4 sm:$0xff]   ;;  %v13240_v20 = vld [vmem:[%s14955_s27 + $0xd04] ss:$16 sps:$4 sm:$0xff]  }
 0x2a0   : > { %7123 = vmatpush1.bf16.msra.mxu0 %v13154_v21  ;;  %7779 = vmatpush1.bf16.msra.mxu1 %v13157_v22  ;;  %v13243_v21 = vld [vmem:[%s14955_s27 + $0xd0c] ss:$16 sps:$4 sm:$0xff]   ;;  %v13238_v22 = vld [vmem:[%s14955_s27 + $0xd00] ss:$16 sps:$4 sm:$0xff]  }
 0x2a1   : > { %7124 = vmatprep.subr.bf16.mxu0 %v13162_v23  ;;  %7780 = vmatprep.subr.bf16.mxu1 %v13165_v24  ;;  %v13241_v23 = vld [vmem:[%s14955_s27 + $0xd08] ss:$16 sps:$4 sm:$0xff]   ;;  %v13246_v24 = vld [vmem:[%s14955_s27 + $0xd24] ss:$16 sps:$4 sm:$0xff]  }
 0x2a4   : > { %7125 = vmatpush1.bf16.msra.mxu0 %v13160_v26  ;;  %7781 = vmatpush1.bf16.msra.mxu1 %v13163_v28  ;;  %v13249_v26 = vld [vmem:[%s14955_s27 + $0xd2c] ss:$16 sps:$4 sm:$0xff]   ;;  %v13244_v28 = vld [vmem:[%s14955_s27 + $0xd20] ss:$16 sps:$4 sm:$0xff]  }
 0x2a5   : > { %7126 = vmatprep.subr.bf16.mxu0 %v13168_v14  ;;  %7782 = vmatprep.subr.bf16.mxu1 %v13171_v30  ;;  %v13247_v14 = vld [vmem:[%s14955_s27 + $0xd28] ss:$16 sps:$4 sm:$0xff]   ;;  %v13252_v30 = vld [vmem:[%s14955_s27 + $0xd44] ss:$16 sps:$4 sm:$0xff]  }
 0x2a8   : > { %7127 = vmatpush1.bf16.msra.mxu0 %v13166_v31  ;;  %7783 = vmatpush1.bf16.msra.mxu1 %v13169_v32  ;;  %v13255_v31 = vld [vmem:[%s14955_s27 + $0xd4c] ss:$16 sps:$4 sm:$0xff]   ;;  %v13250_v32 = vld [vmem:[%s14955_s27 + $0xd40] ss:$16 sps:$4 sm:$0xff]  }
 0x2a9   : > { %7128 = vmatprep.subr.bf16.mxu0 %v13174_v33  ;;  %7784 = vmatprep.subr.bf16.mxu1 %v13177_v17  ;;  %v13253_v33 = vld [vmem:[%s14955_s27 + $0xd48] ss:$16 sps:$4 sm:$0xff]   ;;  %v13258_v17 = vld [vmem:[%s14955_s27 + $0xd64] ss:$16 sps:$4 sm:$0xff]  }
 0x2ac   : > { %7129 = vmatpush1.bf16.msra.mxu0 %v13172_v34  ;;  %7785 = vmatpush1.bf16.msra.mxu1 %v13175_v35  ;;  %v13261_v34 = vld [vmem:[%s14955_s27 + $0xd6c] ss:$16 sps:$4 sm:$0xff]   ;;  %v13256_v35 = vld [vmem:[%s14955_s27 + $0xd60] ss:$16 sps:$4 sm:$0xff]  }
 0x2ad   : > { %7130 = vmatprep.subr.bf16.mxu0 %v13180_v36  ;;  %7786 = vmatprep.subr.bf16.mxu1 %v13183_v27  ;;  %v13259_v36 = vld [vmem:[%s14955_s27 + $0xd68] ss:$16 sps:$4 sm:$0xff]   ;;  %v13264_v27 = vld [vmem:[%s14955_s27 + $0xd84] ss:$16 sps:$4 sm:$0xff]  }
 0x2b0   : > { %7131 = vmatpush1.bf16.msra.mxu0 %v13178_v29  ;;  %7787 = vmatpush1.bf16.msra.mxu1 %v13181_v42  ;;  %v13265_v29 = vld [vmem:[%s14955_s27 + $0xd88] ss:$16 sps:$4 sm:$0xff]   ;;  %v13270_v42 = vld [vmem:[%s14955_s27 + $0xda4] ss:$16 sps:$4 sm:$0xff]  }
 0x2b1   : > { %7132 = vmatprep.subr.bf16.mxu0 %v13186_v43  ;;  %7788 = vmatprep.subr.bf16.mxu1 %v13189_v45  ;;  %v13273_v43 = vld [vmem:[%s14955_s27 + $0xdac] ss:$16 sps:$4 sm:$0xff]   ;;  %v13268_v45 = vld [vmem:[%s14955_s27 + $0xda0] ss:$16 sps:$4 sm:$0xff]  }
 0x2b4   : > { %7133 = vmatpush1.bf16.msra.mxu0 %v13184_v47  ;;  %7789 = vmatpush1.bf16.msra.mxu1 %v13187_v25  ;;  %v13271_v47 = vld [vmem:[%s14955_s27 + $0xda8] ss:$16 sps:$4 sm:$0xff]   ;;  %v13276_v25 = vld [vmem:[%s14955_s27 + $0xdc4] ss:$16 sps:$4 sm:$0xff]  }
 0x2b5   : > { %7143 = vmatprep.subr.bf16.mxu0 %v13192_v48  ;;  %7799 = vmatprep.subr.bf16.mxu1 %v13195_v49  ;;  %v13279_v48 = vld [vmem:[%s14955_s27 + $0xdcc] ss:$16 sps:$4 sm:$0xff]   ;;  %v13274_v49 = vld [vmem:[%s14955_s27 + $0xdc0] ss:$16 sps:$4 sm:$0xff]  }
 0x2b7   : > { %7135 = vmatmul.mubr.bf16.vlgmr.msra.gmra.mrb[0].mxu0 %v1643_v40  ;;  %7791 = vmatmul.mubr.bf16.vlgmr.msra.gmra.mrb[0].mxu1 %v1643_v40  ;;  %v13282_v40 = vld [vmem:[%s14955_s27 + $0xde4] ss:$16 sps:$4 sm:$0xff]  }
 0x2b8   : > { %7144 = vmatpush1.bf16.msra.mxu0 %v13190_v52  ;;  %7800 = vmatpush1.bf16.msra.mxu1 %v13193_v54  ;;  %v13285_v52 = vld [vmem:[%s14955_s27 + $0xdec] ss:$16 sps:$4 sm:$0xff]   ;;  %v13280_v54 = vld [vmem:[%s14955_s27 + $0xde0] ss:$16 sps:$4 sm:$0xff]  }
 0x2b9   : > { %7145 = vmatprep.subr.bf16.mxu0 %v13198_v55  ;;  %7801 = vmatprep.subr.bf16.mxu1 %v13201_v56  ;;  %v13283_v55 = vld [vmem:[%s14955_s27 + $0xde8] ss:$16 sps:$4 sm:$0xff]   ;;  %v13289_v56 = vld [vmem:[%s14955_s27 + $0xe04] ss:$16 sps:$4 sm:$0xff]  }
 0x2ba   : > { %7175 = vmatprep.mubr.bf16.mxu0 %v15441_v57  ;;  %7831 = vmatprep.mubr.bf16.mxu1 %v15441_v57 }
 0x2bc   : > { %7146 = vmatpush1.bf16.msra.mxu0 %v13196_v41  ;;  %7802 = vmatpush1.bf16.msra.mxu1 %v13199_v58  ;;  %v13292_v41 = vld [vmem:[%s14955_s27 + $0xe0c] ss:$16 sps:$4 sm:$0xff]   ;;  %v15507_v58 = vrot.slane %v15426_v46, %v15031_v50  ;;  %v13293_v46 = vld [vmem:[%s14955_s27 + $0xe20] ss:$16 sps:$4 sm:$0xff]  }
 0x2bd   : > { %7147 = vmatprep.subr.bf16.mxu0 %v13204_v59  ;;  %7803 = vmatprep.subr.bf16.mxu1 %v13207_v60  ;;  %v13287_v59 = vld [vmem:[%s14955_s27 + $0xe00] ss:$16 sps:$4 sm:$0xff]   ;;  %v13290_v60 = vld [vmem:[%s14955_s27 + $0xe08] ss:$16 sps:$4 sm:$0xff]  }
 0x2c0   : > { %7148 = vmatpush1.bf16.msra.mxu0 %v13202_v61  ;;  %7804 = vmatpush1.bf16.msra.mxu1 %v13205_v62  ;;  %v13295_v61 = vld [vmem:[%s14955_s27 + $0xe24] ss:$16 sps:$4 sm:$0xff]   ;;  %v13298_v62 = vld [vmem:[%s14955_s27 + $0xe2c] ss:$16 sps:$4 sm:$0xff]  }
 0x2c1   : > { %7149 = vmatprep.subr.bf16.mxu0 %v13210_v63  ;;  %7805 = vmatprep.subr.bf16.mxu1 %v13213_v0  ;;  %v1646_v63 = vcombine.high %v15441_v57, %v15441_v57  ;;  %v13296_v0 = vld [vmem:[%s14955_s27 + $0xe28] ss:$16 sps:$4 sm:$0xff]   ;;  %v13299_v57 = vld [vmem:[%s14955_s27 + $0xe40] ss:$16 sps:$4 sm:$0xff]  }
 0x2c4   : > { %7150 = vmatpush1.bf16.msra.mxu0 %v13208_v1  ;;  %7806 = vmatpush1.bf16.msra.mxu1 %v13211_v2  ;;  %v13301_v1 = vld [vmem:[%s14955_s27 + $0xe44] ss:$16 sps:$4 sm:$0xff]   ;;  %v13304_v2 = vld [vmem:[%s14955_s27 + $0xe4c] ss:$16 sps:$4 sm:$0xff]  }
 0x2c5   : > { %7151 = vmatprep.subr.bf16.mxu0 %v13216_v3  ;;  %7807 = vmatprep.subr.bf16.mxu1 %v13219_v4  ;;  %v13302_v3 = vld [vmem:[%s14955_s27 + $0xe48] ss:$16 sps:$4 sm:$0xff]   ;;  %v13307_v4 = vld [vmem:[%s14955_s27 + $0xe64] ss:$16 sps:$4 sm:$0xff]  }
 0x2c8   : > { %7152 = vmatpush1.bf16.msra.mxu0 %v13214_v5  ;;  %7808 = vmatpush1.bf16.msra.mxu1 %v13217_v6  ;;  %v13310_v5 = vld [vmem:[%s14955_s27 + $0xe6c] ss:$16 sps:$4 sm:$0xff]   ;;  %v13305_v6 = vld [vmem:[%s14955_s27 + $0xe60] ss:$16 sps:$4 sm:$0xff]  }
 0x2c9   : > { %7153 = vmatprep.subr.bf16.mxu0 %v13222_v7  ;;  %7809 = vmatprep.subr.bf16.mxu1 %v13225_v8  ;;  %v13308_v7 = vld [vmem:[%s14955_s27 + $0xe68] ss:$16 sps:$4 sm:$0xff]   ;;  %v13313_v8 = vld [vmem:[%s14955_s27 + $0xe84] ss:$16 sps:$4 sm:$0xff]  }
 0x2cc   : > { %7154 = vmatpush1.bf16.msra.mxu0 %v13220_v9  ;;  %7810 = vmatpush1.bf16.msra.mxu1 %v13223_v10  ;;  %v13316_v9 = vld [vmem:[%s14955_s27 + $0xe8c] ss:$16 sps:$4 sm:$0xff]   ;;  %v13311_v10 = vld [vmem:[%s14955_s27 + $0xe80] ss:$16 sps:$4 sm:$0xff]  }
 0x2cd   : > { %7155 = vmatprep.subr.bf16.mxu0 %v13228_v11  ;;  %7811 = vmatprep.subr.bf16.mxu1 %v13231_v12  ;;  %v13314_v11 = vld [vmem:[%s14955_s27 + $0xe88] ss:$16 sps:$4 sm:$0xff]   ;;  %v13319_v12 = vld [vmem:[%s14955_s27 + $0xea4] ss:$16 sps:$4 sm:$0xff]  }
 0x2d0   : > { %7156 = vmatpush1.bf16.msra.mxu0 %v13226_v13  ;;  %7812 = vmatpush1.bf16.msra.mxu1 %v13229_v15  ;;  %v13322_v13 = vld [vmem:[%s14955_s27 + $0xeac] ss:$16 sps:$4 sm:$0xff]   ;;  %v13317_v15 = vld [vmem:[%s14955_s27 + $0xea0] ss:$16 sps:$4 sm:$0xff]  }
 0x2d1   : > { %7157 = vmatprep.subr.bf16.mxu0 %v13234_v16  ;;  %7813 = vmatprep.subr.bf16.mxu1 %v13237_v18  ;;  %v13320_v16 = vld [vmem:[%s14955_s27 + $0xea8] ss:$16 sps:$4 sm:$0xff]   ;;  %v13325_v18 = vld [vmem:[%s14955_s27 + $0xec4] ss:$16 sps:$4 sm:$0xff]  }
 0x2d4   : > { %7158 = vmatpush1.bf16.msra.mxu0 %v13232_v53  ;;  %7814 = vmatpush1.bf16.msra.mxu1 %v13235_v19  ;;  %v13328_v53 = vld [vmem:[%s14955_s27 + $0xecc] ss:$16 sps:$4 sm:$0xff]   ;;  %v13323_v19 = vld [vmem:[%s14955_s27 + $0xec0] ss:$16 sps:$4 sm:$0xff]  }
 0x2d5   : > { %7159 = vmatprep.subr.bf16.mxu0 %v13240_v20  ;;  %7815 = vmatprep.subr.bf16.mxu1 %v13243_v21  ;;  %v13326_v20 = vld [vmem:[%s14955_s27 + $0xec8] ss:$16 sps:$4 sm:$0xff]   ;;  %v13331_v21 = vld [vmem:[%s14955_s27 + $0xee4] ss:$16 sps:$4 sm:$0xff]  }
 0x2d8   : > { %7160 = vmatpush1.bf16.msra.mxu0 %v13238_v22  ;;  %7816 = vmatpush1.bf16.msra.mxu1 %v13241_v23  ;;  %v13334_v22 = vld [vmem:[%s14955_s27 + $0xeec] ss:$16 sps:$4 sm:$0xff]   ;;  %v13329_v23 = vld [vmem:[%s14955_s27 + $0xee0] ss:$16 sps:$4 sm:$0xff]  }
 0x2d9   : > { %7161 = vmatprep.subr.bf16.mxu0 %v13246_v24  ;;  %7817 = vmatprep.subr.bf16.mxu1 %v13249_v26  ;;  %v13332_v24 = vld [vmem:[%s14955_s27 + $0xee8] ss:$16 sps:$4 sm:$0xff]   ;;  %v13337_v26 = vld [vmem:[%s14955_s27 + $0xf04] ss:$16 sps:$4 sm:$0xff]  }
 0x2dc   : > { %7162 = vmatpush1.bf16.msra.mxu0 %v13244_v28  ;;  %7818 = vmatpush1.bf16.msra.mxu1 %v13247_v14  ;;  %v13340_v28 = vld [vmem:[%s14955_s27 + $0xf0c] ss:$16 sps:$4 sm:$0xff]   ;;  %v13335_v14 = vld [vmem:[%s14955_s27 + $0xf00] ss:$16 sps:$4 sm:$0xff]  }
 0x2dd   : > { %7163 = vmatprep.subr.bf16.mxu0 %v13252_v30  ;;  %7819 = vmatprep.subr.bf16.mxu1 %v13255_v31  ;;  %v13338_v30 = vld [vmem:[%s14955_s27 + $0xf08] ss:$16 sps:$4 sm:$0xff]   ;;  %v13343_v31 = vld [vmem:[%s14955_s27 + $0xf24] ss:$16 sps:$4 sm:$0xff]  }
 0x2e0   : > { %7164 = vmatpush1.bf16.msra.mxu0 %v13250_v32  ;;  %7820 = vmatpush1.bf16.msra.mxu1 %v13253_v33  ;;  %v13346_v32 = vld [vmem:[%s14955_s27 + $0xf2c] ss:$16 sps:$4 sm:$0xff]   ;;  %v13341_v33 = vld [vmem:[%s14955_s27 + $0xf20] ss:$16 sps:$4 sm:$0xff]  }
 0x2e1   : > { %7165 = vmatprep.subr.bf16.mxu0 %v13258_v17  ;;  %7821 = vmatprep.subr.bf16.mxu1 %v13261_v34  ;;  %v13344_v17 = vld [vmem:[%s14955_s27 + $0xf28] ss:$16 sps:$4 sm:$0xff]   ;;  %v13349_v34 = vld [vmem:[%s14955_s27 + $0xf44] ss:$16 sps:$4 sm:$0xff]  }
 0x2e4   : > { %7166 = vmatpush1.bf16.msra.mxu0 %v13256_v35  ;;  %7822 = vmatpush1.bf16.msra.mxu1 %v13259_v36  ;;  %v13352_v35 = vld [vmem:[%s14955_s27 + $0xf4c] ss:$16 sps:$4 sm:$0xff]   ;;  %v13347_v36 = vld [vmem:[%s14955_s27 + $0xf40] ss:$16 sps:$4 sm:$0xff]  }
 0x2e5   : > { %7167 = vmatprep.subr.bf16.mxu0 %v13264_v27  ;;  %7823 = vmatprep.subr.bf16.mxu1 %v13267_v37  ;;  %v13350_v27 = vld [vmem:[%s14955_s27 + $0xf48] ss:$16 sps:$4 sm:$0xff]   ;;  %v13355_v37 = vld [vmem:[%s14955_s27 + $0xf64] ss:$16 sps:$4 sm:$0xff]  }
 0x2e8   : > { %7168 = vmatpush1.bf16.msra.mxu0 %v13262_v38  ;;  %7824 = vmatpush1.bf16.msra.mxu1 %v13265_v29  ;;  %v13358_v38 = vld [vmem:[%s14955_s27 + $0xf6c] ss:$16 sps:$4 sm:$0xff]   ;;  %v13353_v29 = vld [vmem:[%s14955_s27 + $0xf60] ss:$16 sps:$4 sm:$0xff]  }
 0x2e9   : > { %7169 = vmatprep.subr.bf16.mxu0 %v13270_v42  ;;  %7825 = vmatprep.subr.bf16.mxu1 %v13273_v43  ;;  %v13356_v42 = vld [vmem:[%s14955_s27 + $0xf68] ss:$16 sps:$4 sm:$0xff]   ;;  %v13361_v43 = vld [vmem:[%s14955_s27 + $0xf84] ss:$16 sps:$4 sm:$0xff]  }
 0x2ec   : > { %7170 = vmatpush1.bf16.msra.mxu0 %v13268_v45  ;;  %7826 = vmatpush1.bf16.msra.mxu1 %v13271_v47  ;;  %v13364_v45 = vld [vmem:[%s14955_s27 + $0xf8c] ss:$16 sps:$4 sm:$0xff]   ;;  %v13359_v47 = vld [vmem:[%s14955_s27 + $0xf80] ss:$16 sps:$4 sm:$0xff]  }
 0x2ed   : > { %7171 = vmatprep.subr.bf16.mxu0 %v13276_v25  ;;  %7827 = vmatprep.subr.bf16.mxu1 %v13279_v48  ;;  %v13362_v25 = vld [vmem:[%s14955_s27 + $0xf88] ss:$16 sps:$4 sm:$0xff]   ;;  %v13367_v48 = vld [vmem:[%s14955_s27 + $0xfa4] ss:$16 sps:$4 sm:$0xff]  }
 0x2f0   : > { %7172 = vmatpush1.bf16.msra.mxu0 %v13274_v49  ;;  %7828 = vmatpush1.bf16.msra.mxu1 %v13277_v51  ;;  %v13370_v49 = vld [vmem:[%s14955_s27 + $0xfac] ss:$16 sps:$4 sm:$0xff]   ;;  %v13365_v51 = vld [vmem:[%s14955_s27 + $0xfa0] ss:$16 sps:$4 sm:$0xff]  }
 0x2f1   : > { %7173 = vmatprep.subr.bf16.mxu0 %v13282_v40  ;;  %7829 = vmatprep.subr.bf16.mxu1 %v13285_v52  ;;  %v13368_v40 = vld [vmem:[%s14955_s27 + $0xfa8] ss:$16 sps:$4 sm:$0xff]   ;;  %v13373_v52 = vld [vmem:[%s14955_s27 + $0xfc4] ss:$16 sps:$4 sm:$0xff]  }
 0x2f4   : > { %7174 = vmatpush1.bf16.msra.mxu0 %v13280_v54  ;;  %7830 = vmatpush1.bf16.msra.mxu1 %v13283_v55  ;;  %v13376_v54 = vld [vmem:[%s14955_s27 + $0xfcc] ss:$16 sps:$4 sm:$0xff]   ;;  %v15570_v55 = vld [vmem:[%s14948_s13 + $0x10] sm:$0xff] }
 0x2f5   : > { %7184 = vmatprep.subr.bf16.mxu0 %v13289_v56  ;;  %7840 = vmatprep.subr.bf16.mxu1 %v13292_v41  ;;  %v13371_v56 = vld [vmem:[%s14955_s27 + $0xfc0] ss:$16 sps:$4 sm:$0xff]   ;;  %v13374_v41 = vld [vmem:[%s14955_s27 + $0xfc8] ss:$16 sps:$4 sm:$0xff]  }
 0x2f7   : > { %7176 = vmatmul.mubr.bf16.vlgmr.msra.gmra.mrb[0].mxu0 %v15507_v58  ;;  %7832 = vmatmul.mubr.bf16.vlgmr.msra.gmra.mrb[0].mxu1 %v15507_v58 }
 0x2f8   : > { %7185 = vmatpush1.bf16.msra.mxu0 %v13287_v59  ;;  %7841 = vmatpush1.bf16.msra.mxu1 %v13290_v60  ;;  %v13379_v59 = vld [vmem:[%s14955_s27 + $0xfe4] ss:$16 sps:$4 sm:$0xff]   ;;  %v13382_v60 = vld [vmem:[%s14955_s27 + $0xfec] ss:$16 sps:$4 sm:$0xff]  }
 0x2f9   : > { %7186 = vmatprep.subr.bf16.mxu0 %v13295_v61  ;;  %7842 = vmatprep.subr.bf16.mxu1 %v13298_v62  ;;  %v15578_v61 = vrot.slane %v15570_v55, %v15031_v50  ;;  %v13377_v62 = vld [vmem:[%s14955_s27 + $0xfe0] ss:$16 sps:$4 sm:$0xff]  }
 0x2fa   : > { %7216 = vmatprep.mubr.bf16.mxu0 %v1646_v63  ;;  %7872 = vmatprep.mubr.bf16.mxu1 %v1646_v63  ;;  %v13380_v63 = vld [vmem:[%s14955_s27 + $0xfe8] ss:$16 sps:$4 sm:$0xff]  }
 0x2fc   : > { %7187 = vmatpush1.bf16.msra.mxu0 %v13293_v46  ;;  %7843 = vmatpush1.bf16.msra.mxu1 %v13296_v0  ;;  %v13385_v46 = vld [vmem:[%s14955_s27 + $0x1004] ss:$16 sps:$4 sm:$0xff]   ;;  %v13388_v0 = vld [vmem:[%s14955_s27 + $0x100c] ss:$16 sps:$4 sm:$0xff]  }
 0x2fd   : > { %7188 = vmatprep.subr.bf16.mxu0 %v13301_v1  ;;  %7844 = vmatprep.subr.bf16.mxu1 %v13304_v2  ;;  %v1662_v1 = vcombine.high %v15578_v61, %v15578_v61  ;;  %v1644_v2 = vcombine.high %v15507_v58, %v15507_v58  ;;  %v13389_v58 = vld [vmem:[%s14955_s27 + $0x1020] ss:$16 sps:$4 sm:$0xff]  }
 0x300   : > { %7189 = vmatpush1.bf16.msra.mxu0 %v13299_v57  ;;  %7845 = vmatpush1.bf16.msra.mxu1 %v13302_v3  ;;  %v13383_v57 = vld [vmem:[%s14955_s27 + $0x1000] ss:$16 sps:$4 sm:$0xff]   ;;  %v13386_v3 = vld [vmem:[%s14955_s27 + $0x1008] ss:$16 sps:$4 sm:$0xff]  }
 0x301   : > { %7190 = vmatprep.subr.bf16.mxu0 %v13307_v4  ;;  %7846 = vmatprep.subr.bf16.mxu1 %v13310_v5  ;;  %v13391_v4 = vld [vmem:[%s14955_s27 + $0x1024] ss:$16 sps:$4 sm:$0xff]   ;;  %v13394_v5 = vld [vmem:[%s14955_s27 + $0x102c] ss:$16 sps:$4 sm:$0xff]  }
 0x304   : > { %7191 = vmatpush1.bf16.msra.mxu0 %v13305_v6  ;;  %7847 = vmatpush1.bf16.msra.mxu1 %v13308_v7  ;;  %v15593_v6 = vrot.slane %v1662_v1, %v15031_v50  ;;  %v13392_v7 = vld [vmem:[%s14955_s27 + $0x1028] ss:$16 sps:$4 sm:$0xff]   ;;  %v13467_v1 = vld [vmem:[%s14955_s27 + $0x11c0] ss:$16 sps:$4 sm:$0xff]  }
 0x305   : > { %7192 = vmatprep.subr.bf16.mxu0 %v13313_v8  ;;  %7848 = vmatprep.subr.bf16.mxu1 %v13316_v9  ;;  %v13397_v8 = vld [vmem:[%s14955_s27 + $0x1044] ss:$16 sps:$4 sm:$0xff]   ;;  %v13400_v9 = vld [vmem:[%s14955_s27 + $0x104c] ss:$16 sps:$4 sm:$0xff]  }
 0x308   : > { %7193 = vmatpush1.bf16.msra.mxu0 %v13311_v10  ;;  %7849 = vmatpush1.bf16.msra.mxu1 %v13314_v11  ;;  %v13395_v10 = vld [vmem:[%s14955_s27 + $0x1040] ss:$16 sps:$4 sm:$0xff]   ;;  %v13398_v11 = vld [vmem:[%s14955_s27 + $0x1048] ss:$16 sps:$4 sm:$0xff]  }
 0x309   : > { %7194 = vmatprep.subr.bf16.mxu0 %v13319_v12  ;;  %7850 = vmatprep.subr.bf16.mxu1 %v13322_v13  ;;  %v13403_v12 = vld [vmem:[%s14955_s27 + $0x1064] ss:$16 sps:$4 sm:$0xff]   ;;  %v13406_v13 = vld [vmem:[%s14955_s27 + $0x106c] ss:$16 sps:$4 sm:$0xff]  }
 0x30c   : > { %7195 = vmatpush1.bf16.msra.mxu0 %v13317_v15  ;;  %7851 = vmatpush1.bf16.msra.mxu1 %v13320_v16  ;;  %v13401_v15 = vld [vmem:[%s14955_s27 + $0x1060] ss:$16 sps:$4 sm:$0xff]   ;;  %v13404_v16 = vld [vmem:[%s14955_s27 + $0x1068] ss:$16 sps:$4 sm:$0xff]  }
 0x30d   : > { %7196 = vmatprep.subr.bf16.mxu0 %v13325_v18  ;;  %7852 = vmatprep.subr.bf16.mxu1 %v13328_v53  ;;  %v13409_v18 = vld [vmem:[%s14955_s27 + $0x1084] ss:$16 sps:$4 sm:$0xff]   ;;  %v13412_v53 = vld [vmem:[%s14955_s27 + $0x108c] ss:$16 sps:$4 sm:$0xff]  }
 0x310   : > { %7197 = vmatpush1.bf16.msra.mxu0 %v13323_v19  ;;  %7853 = vmatpush1.bf16.msra.mxu1 %v13326_v20  ;;  %v13407_v19 = vld [vmem:[%s14955_s27 + $0x1080] ss:$16 sps:$4 sm:$0xff]   ;;  %v13410_v20 = vld [vmem:[%s14955_s27 + $0x1088] ss:$16 sps:$4 sm:$0xff]  }
 0x311   : > { %7198 = vmatprep.subr.bf16.mxu0 %v13331_v21  ;;  %7854 = vmatprep.subr.bf16.mxu1 %v13334_v22  ;;  %v13415_v21 = vld [vmem:[%s14955_s27 + $0x10a4] ss:$16 sps:$4 sm:$0xff]   ;;  %v13418_v22 = vld [vmem:[%s14955_s27 + $0x10ac] ss:$16 sps:$4 sm:$0xff]  }
 0x314   : > { %7199 = vmatpush1.bf16.msra.mxu0 %v13329_v23  ;;  %7855 = vmatpush1.bf16.msra.mxu1 %v13332_v24  ;;  %v13413_v23 = vld [vmem:[%s14955_s27 + $0x10a0] ss:$16 sps:$4 sm:$0xff]   ;;  %v13416_v24 = vld [vmem:[%s14955_s27 + $0x10a8] ss:$16 sps:$4 sm:$0xff]  }
 0x315   : > { %7200 = vmatprep.subr.bf16.mxu0 %v13337_v26  ;;  %7856 = vmatprep.subr.bf16.mxu1 %v13340_v28  ;;  %v13421_v26 = vld [vmem:[%s14955_s27 + $0x10c4] ss:$16 sps:$4 sm:$0xff]   ;;  %v13424_v28 = vld [vmem:[%s14955_s27 + $0x10cc] ss:$16 sps:$4 sm:$0xff]  }
 0x318   : > { %7201 = vmatpush1.bf16.msra.mxu0 %v13335_v14  ;;  %7857 = vmatpush1.bf16.msra.mxu1 %v13338_v30  ;;  %v13419_v14 = vld [vmem:[%s14955_s27 + $0x10c0] ss:$16 sps:$4 sm:$0xff]   ;;  %v13422_v30 = vld [vmem:[%s14955_s27 + $0x10c8] ss:$16 sps:$4 sm:$0xff]  }
 0x319   : > { %7202 = vmatprep.subr.bf16.mxu0 %v13343_v31  ;;  %7858 = vmatprep.subr.bf16.mxu1 %v13346_v32  ;;  %v13427_v31 = vld [vmem:[%s14955_s27 + $0x10e4] ss:$16 sps:$4 sm:$0xff]   ;;  %v13430_v32 = vld [vmem:[%s14955_s27 + $0x10ec] ss:$16 sps:$4 sm:$0xff]  }
 0x31c   : > { %7203 = vmatpush1.bf16.msra.mxu0 %v13341_v33  ;;  %7859 = vmatpush1.bf16.msra.mxu1 %v13344_v17  ;;  %v13425_v33 = vld [vmem:[%s14955_s27 + $0x10e0] ss:$16 sps:$4 sm:$0xff]   ;;  %v13428_v17 = vld [vmem:[%s14955_s27 + $0x10e8] ss:$16 sps:$4 sm:$0xff]  }
 0x31d   : > { %7204 = vmatprep.subr.bf16.mxu0 %v13349_v34  ;;  %7860 = vmatprep.subr.bf16.mxu1 %v13352_v35  ;;  %v13433_v34 = vld [vmem:[%s14955_s27 + $0x1104] ss:$16 sps:$4 sm:$0xff]   ;;  %v13436_v35 = vld [vmem:[%s14955_s27 + $0x110c] ss:$16 sps:$4 sm:$0xff]  }
 0x320   : > { %7205 = vmatpush1.bf16.msra.mxu0 %v13347_v36  ;;  %7861 = vmatpush1.bf16.msra.mxu1 %v13350_v27  ;;  %v13431_v36 = vld [vmem:[%s14955_s27 + $0x1100] ss:$16 sps:$4 sm:$0xff]   ;;  %v13434_v27 = vld [vmem:[%s14955_s27 + $0x1108] ss:$16 sps:$4 sm:$0xff]  }
 0x321   : > { %7206 = vmatprep.subr.bf16.mxu0 %v13355_v37  ;;  %7862 = vmatprep.subr.bf16.mxu1 %v13358_v38  ;;  %v13439_v37 = vld [vmem:[%s14955_s27 + $0x1124] ss:$16 sps:$4 sm:$0xff]   ;;  %v13442_v38 = vld [vmem:[%s14955_s27 + $0x112c] ss:$16 sps:$4 sm:$0xff]  }
 0x324   : > { %7207 = vmatpush1.bf16.msra.mxu0 %v13353_v29  ;;  %7863 = vmatpush1.bf16.msra.mxu1 %v13356_v42  ;;  %v13437_v29 = vld [vmem:[%s14955_s27 + $0x1120] ss:$16 sps:$4 sm:$0xff]   ;;  %v13440_v42 = vld [vmem:[%s14955_s27 + $0x1128] ss:$16 sps:$4 sm:$0xff]  }
 0x325   : > { %7208 = vmatprep.subr.bf16.mxu0 %v13361_v43  ;;  %7864 = vmatprep.subr.bf16.mxu1 %v13364_v45  ;;  %v13445_v43 = vld [vmem:[%s14955_s27 + $0x1144] ss:$16 sps:$4 sm:$0xff]   ;;  %v13448_v45 = vld [vmem:[%s14955_s27 + $0x114c] ss:$16 sps:$4 sm:$0xff]  }
 0x328   : > { %7209 = vmatpush1.bf16.msra.mxu0 %v13359_v47  ;;  %7865 = vmatpush1.bf16.msra.mxu1 %v13362_v25  ;;  %v13443_v47 = vld [vmem:[%s14955_s27 + $0x1140] ss:$16 sps:$4 sm:$0xff]   ;;  %v13446_v25 = vld [vmem:[%s14955_s27 + $0x1148] ss:$16 sps:$4 sm:$0xff]  }
 0x329   : > { %7210 = vmatprep.subr.bf16.mxu0 %v13367_v48  ;;  %7866 = vmatprep.subr.bf16.mxu1 %v13370_v49  ;;  %v13451_v48 = vld [vmem:[%s14955_s27 + $0x1164] ss:$16 sps:$4 sm:$0xff]   ;;  %v13454_v49 = vld [vmem:[%s14955_s27 + $0x116c] ss:$16 sps:$4 sm:$0xff]  }
 0x32c   : > { %7211 = vmatpush1.bf16.msra.mxu0 %v13365_v51  ;;  %7867 = vmatpush1.bf16.msra.mxu1 %v13368_v40  ;;  %v13449_v51 = vld [vmem:[%s14955_s27 + $0x1160] ss:$16 sps:$4 sm:$0xff]   ;;  %v13452_v40 = vld [vmem:[%s14955_s27 + $0x1168] ss:$16 sps:$4 sm:$0xff]  }
 0x32d   : > { %7212 = vmatprep.subr.bf16.mxu0 %v13373_v52  ;;  %7868 = vmatprep.subr.bf16.mxu1 %v13376_v54  ;;  %v13457_v52 = vld [vmem:[%s14955_s27 + $0x1184] ss:$16 sps:$4 sm:$0xff]   ;;  %v13460_v54 = vld [vmem:[%s14955_s27 + $0x118c] ss:$16 sps:$4 sm:$0xff]  }
 0x330   : > { %7213 = vmatpush1.bf16.msra.mxu0 %v13371_v56  ;;  %7869 = vmatpush1.bf16.msra.mxu1 %v13374_v41  ;;  %v13455_v56 = vld [vmem:[%s14955_s27 + $0x1180] ss:$16 sps:$4 sm:$0xff]   ;;  %v13458_v41 = vld [vmem:[%s14955_s27 + $0x1188] ss:$16 sps:$4 sm:$0xff]  }
 0x331   : > { %7214 = vmatprep.subr.bf16.mxu0 %v13379_v59  ;;  %7870 = vmatprep.subr.bf16.mxu1 %v13382_v60  ;;  %v13463_v59 = vld [vmem:[%s14955_s27 + $0x11a4] ss:$16 sps:$4 sm:$0xff]   ;;  %v13466_v60 = vld [vmem:[%s14955_s27 + $0x11ac] ss:$16 sps:$4 sm:$0xff]  }
 0x334   : > { %7215 = vmatpush1.bf16.msra.mxu0 %v13377_v62  ;;  %7871 = vmatpush1.bf16.msra.mxu1 %v13380_v63  ;;  %v13461_v62 = vld [vmem:[%s14955_s27 + $0x11a0] ss:$16 sps:$4 sm:$0xff]   ;;  %v13464_v63 = vld [vmem:[%s14955_s27 + $0x11a8] ss:$16 sps:$4 sm:$0xff]  }
 0x335   : > { %7225 = vmatprep.subr.bf16.mxu0 %v13385_v46  ;;  %7881 = vmatprep.subr.bf16.mxu1 %v13388_v0  ;;  %v13469_v46 = vld [vmem:[%s14955_s27 + $0x11c4] ss:$16 sps:$4 sm:$0xff]   ;;  %v13472_v0 = vld [vmem:[%s14955_s27 + $0x11cc] ss:$16 sps:$4 sm:$0xff]  }
 0x337   : > { %7217 = vmatmul.mubr.bf16.vlgmr.msra.gmra.mrb[0].mxu0 %v1644_v2  ;;  %7873 = vmatmul.mubr.bf16.vlgmr.msra.gmra.mrb[0].mxu1 %v1644_v2  ;;  %v13470_v2 = vld [vmem:[%s14955_s27 + $0x11c8] ss:$16 sps:$4 sm:$0xff]  }
 0x338   : > { %7226 = vmatpush1.bf16.msra.mxu0 %v13383_v57  ;;  %7882 = vmatpush1.bf16.msra.mxu1 %v13386_v3  ;;  %v13475_v57 = vld [vmem:[%s14955_s27 + $0x11e4] ss:$16 sps:$4 sm:$0xff]   ;;  %v13478_v3 = vld [vmem:[%s14955_s27 + $0x11ec] ss:$16 sps:$4 sm:$0xff]  }
 0x339   : > { %7227 = vmatprep.subr.bf16.mxu0 %v13391_v4  ;;  %7883 = vmatprep.subr.bf16.mxu1 %v13394_v5  ;;  %v13473_v4 = vld [vmem:[%s14955_s27 + $0x11e0] ss:$16 sps:$4 sm:$0xff]   ;;  %v13476_v5 = vld [vmem:[%s14955_s27 + $0x11e8] ss:$16 sps:$4 sm:$0xff]  }
 0x33a   : > { %7257 = vmatprep.mubr.bf16.mxu0 %v15593_v6  ;;  %7913 = vmatprep.mubr.bf16.mxu1 %v15593_v6 }
 0x33c   : > { %7228 = vmatpush1.bf16.msra.mxu0 %v13389_v58  ;;  %7884 = vmatpush1.bf16.msra.mxu1 %v13392_v7  ;;  %v13481_v58 = vld [vmem:[%s14955_s27 + $0x1204] ss:$16 sps:$4 sm:$0xff]   ;;  %v13484_v7 = vld [vmem:[%s14955_s27 + $0x120c] ss:$16 sps:$4 sm:$0xff]  }
 0x33d   : > { %7229 = vmatprep.subr.bf16.mxu0 %v13397_v8  ;;  %7885 = vmatprep.subr.bf16.mxu1 %v13400_v9  ;;  %v15659_v8 = vrot.slane %v15578_v61, %v15031_v50  ;;  %v13479_v9 = vld [vmem:[%s14955_s27 + $0x1200] ss:$16 sps:$4 sm:$0xff]  }
 0x33e   : > { %v13485_v61 = vld [vmem:[%s14955_s27 + $0x1220] ss:$16 sps:$4 sm:$0xff]  }
 0x340   : > { %7230 = vmatpush1.bf16.msra.mxu0 %v13395_v10  ;;  %7886 = vmatpush1.bf16.msra.mxu1 %v13398_v11  ;;  %v13482_v10 = vld [vmem:[%s14955_s27 + $0x1208] ss:$16 sps:$4 sm:$0xff]   ;;  %v13487_v11 = vld [vmem:[%s14955_s27 + $0x1224] ss:$16 sps:$4 sm:$0xff]  }
 0x341   : > { %7231 = vmatprep.subr.bf16.mxu0 %v13403_v12  ;;  %7887 = vmatprep.subr.bf16.mxu1 %v13406_v13  ;;  %v13490_v12 = vld [vmem:[%s14955_s27 + $0x122c] ss:$16 sps:$4 sm:$0xff]   ;;  %v1694_v13 = vcombine.high %v15593_v6, %v15593_v6  ;;  %v13491_v6 = vld [vmem:[%s14955_s27 + $0x1240] ss:$16 sps:$4 sm:$0xff]  }
 0x344   : > { %7232 = vmatpush1.bf16.msra.mxu0 %v13401_v15  ;;  %7888 = vmatpush1.bf16.msra.mxu1 %v13404_v16  ;;  %v13488_v15 = vld [vmem:[%s14955_s27 + $0x1228] ss:$16 sps:$4 sm:$0xff]   ;;  %v13493_v16 = vld [vmem:[%s14955_s27 + $0x1244] ss:$16 sps:$4 sm:$0xff]  }
 0x345   : > { %7233 = vmatprep.subr.bf16.mxu0 %v13409_v18  ;;  %7889 = vmatprep.subr.bf16.mxu1 %v13412_v53  ;;  %v13496_v18 = vld [vmem:[%s14955_s27 + $0x124c] ss:$16 sps:$4 sm:$0xff]   ;;  %v13494_v53 = vld [vmem:[%s14955_s27 + $0x1248] ss:$16 sps:$4 sm:$0xff]  }
 0x348   : > { %7234 = vmatpush1.bf16.msra.mxu0 %v13407_v19  ;;  %7890 = vmatpush1.bf16.msra.mxu1 %v13410_v20  ;;  %v13499_v19 = vld [vmem:[%s14955_s27 + $0x1264] ss:$16 sps:$4 sm:$0xff]   ;;  %v13502_v20 = vld [vmem:[%s14955_s27 + $0x126c] ss:$16 sps:$4 sm:$0xff]  }
 0x349   : > { %7235 = vmatprep.subr.bf16.mxu0 %v13415_v21  ;;  %7891 = vmatprep.subr.bf16.mxu1 %v13418_v22  ;;  %v13497_v21 = vld [vmem:[%s14955_s27 + $0x1260] ss:$16 sps:$4 sm:$0xff]   ;;  %v13500_v22 = vld [vmem:[%s14955_s27 + $0x1268] ss:$16 sps:$4 sm:$0xff]  }
 0x34c   : > { %7236 = vmatpush1.bf16.msra.mxu0 %v13413_v23  ;;  %7892 = vmatpush1.bf16.msra.mxu1 %v13416_v24  ;;  %v13505_v23 = vld [vmem:[%s14955_s27 + $0x1284] ss:$16 sps:$4 sm:$0xff]   ;;  %v13508_v24 = vld [vmem:[%s14955_s27 + $0x128c] ss:$16 sps:$4 sm:$0xff]  }
 0x34d   : > { %7237 = vmatprep.subr.bf16.mxu0 %v13421_v26  ;;  %7893 = vmatprep.subr.bf16.mxu1 %v13424_v28  ;;  %v13503_v26 = vld [vmem:[%s14955_s27 + $0x1280] ss:$16 sps:$4 sm:$0xff]   ;;  %v13506_v28 = vld [vmem:[%s14955_s27 + $0x1288] ss:$16 sps:$4 sm:$0xff]  }
 0x350   : > { %7238 = vmatpush1.bf16.msra.mxu0 %v13419_v14  ;;  %7894 = vmatpush1.bf16.msra.mxu1 %v13422_v30  ;;  %v13511_v14 = vld [vmem:[%s14955_s27 + $0x12a4] ss:$16 sps:$4 sm:$0xff]   ;;  %v13514_v30 = vld [vmem:[%s14955_s27 + $0x12ac] ss:$16 sps:$4 sm:$0xff]  }
 0x351   : > { %7239 = vmatprep.subr.bf16.mxu0 %v13427_v31  ;;  %7895 = vmatprep.subr.bf16.mxu1 %v13430_v32  ;;  %v13509_v31 = vld [vmem:[%s14955_s27 + $0x12a0] ss:$16 sps:$4 sm:$0xff]   ;;  %v13512_v32 = vld [vmem:[%s14955_s27 + $0x12a8] ss:$16 sps:$4 sm:$0xff]  }
 0x354   : > { %7240 = vmatpush1.bf16.msra.mxu0 %v13425_v33  ;;  %7896 = vmatpush1.bf16.msra.mxu1 %v13428_v17  ;;  %v13517_v33 = vld [vmem:[%s14955_s27 + $0x12c4] ss:$16 sps:$4 sm:$0xff]   ;;  %v13520_v17 = vld [vmem:[%s14955_s27 + $0x12cc] ss:$16 sps:$4 sm:$0xff]  }
 0x355   : > { %7241 = vmatprep.subr.bf16.mxu0 %v13433_v34  ;;  %7897 = vmatprep.subr.bf16.mxu1 %v13436_v35  ;;  %v13515_v34 = vld [vmem:[%s14955_s27 + $0x12c0] ss:$16 sps:$4 sm:$0xff]   ;;  %v13518_v35 = vld [vmem:[%s14955_s27 + $0x12c8] ss:$16 sps:$4 sm:$0xff]  }
 0x358   : > { %7242 = vmatpush1.bf16.msra.mxu0 %v13431_v36  ;;  %7898 = vmatpush1.bf16.msra.mxu1 %v13434_v27  ;;  %v13523_v36 = vld [vmem:[%s14955_s27 + $0x12e4] ss:$16 sps:$4 sm:$0xff]   ;;  %v13526_v27 = vld [vmem:[%s14955_s27 + $0x12ec] ss:$16 sps:$4 sm:$0xff]  }
 0x359   : > { %7243 = vmatprep.subr.bf16.mxu0 %v13439_v37  ;;  %7899 = vmatprep.subr.bf16.mxu1 %v13442_v38  ;;  %v13521_v37 = vld [vmem:[%s14955_s27 + $0x12e0] ss:$16 sps:$4 sm:$0xff]   ;;  %v13524_v38 = vld [vmem:[%s14955_s27 + $0x12e8] ss:$16 sps:$4 sm:$0xff]  }
 0x35c   : > { %7244 = vmatpush1.bf16.msra.mxu0 %v13437_v29  ;;  %7900 = vmatpush1.bf16.msra.mxu1 %v13440_v42  ;;  %v13529_v29 = vld [vmem:[%s14955_s27 + $0x1304] ss:$16 sps:$4 sm:$0xff]   ;;  %v13532_v42 = vld [vmem:[%s14955_s27 + $0x130c] ss:$16 sps:$4 sm:$0xff]  }
 0x35d   : > { %7245 = vmatprep.subr.bf16.mxu0 %v13445_v43  ;;  %7901 = vmatprep.subr.bf16.mxu1 %v13448_v45  ;;  %v13527_v43 = vld [vmem:[%s14955_s27 + $0x1300] ss:$16 sps:$4 sm:$0xff]   ;;  %v13530_v45 = vld [vmem:[%s14955_s27 + $0x1308] ss:$16 sps:$4 sm:$0xff]  }
 0x360   : > { %7246 = vmatpush1.bf16.msra.mxu0 %v13443_v47  ;;  %7902 = vmatpush1.bf16.msra.mxu1 %v13446_v25  ;;  %v13535_v47 = vld [vmem:[%s14955_s27 + $0x1324] ss:$16 sps:$4 sm:$0xff]   ;;  %v13538_v25 = vld [vmem:[%s14955_s27 + $0x132c] ss:$16 sps:$4 sm:$0xff]  }
 0x361   : > { %7247 = vmatprep.subr.bf16.mxu0 %v13451_v48  ;;  %7903 = vmatprep.subr.bf16.mxu1 %v13454_v49  ;;  %v13533_v48 = vld [vmem:[%s14955_s27 + $0x1320] ss:$16 sps:$4 sm:$0xff]   ;;  %v13536_v49 = vld [vmem:[%s14955_s27 + $0x1328] ss:$16 sps:$4 sm:$0xff]  }
 0x364   : > { %7248 = vmatpush1.bf16.msra.mxu0 %v13449_v51  ;;  %7904 = vmatpush1.bf16.msra.mxu1 %v13452_v40  ;;  %v13541_v51 = vld [vmem:[%s14955_s27 + $0x1344] ss:$16 sps:$4 sm:$0xff]   ;;  %v13544_v40 = vld [vmem:[%s14955_s27 + $0x134c] ss:$16 sps:$4 sm:$0xff]  }
 0x365   : > { %7249 = vmatprep.subr.bf16.mxu0 %v13457_v52  ;;  %7905 = vmatprep.subr.bf16.mxu1 %v13460_v54  ;;  %v13539_v52 = vld [vmem:[%s14955_s27 + $0x1340] ss:$16 sps:$4 sm:$0xff]   ;;  %v13542_v54 = vld [vmem:[%s14955_s27 + $0x1348] ss:$16 sps:$4 sm:$0xff]  }
 0x368   : > { %7250 = vmatpush1.bf16.msra.mxu0 %v13455_v56  ;;  %7906 = vmatpush1.bf16.msra.mxu1 %v13458_v41  ;;  %v13547_v56 = vld [vmem:[%s14955_s27 + $0x1364] ss:$16 sps:$4 sm:$0xff]   ;;  %v13550_v41 = vld [vmem:[%s14955_s27 + $0x136c] ss:$16 sps:$4 sm:$0xff]  }
 0x369   : > { %7251 = vmatprep.subr.bf16.mxu0 %v13463_v59  ;;  %7907 = vmatprep.subr.bf16.mxu1 %v13466_v60  ;;  %v13545_v59 = vld [vmem:[%s14955_s27 + $0x1360] ss:$16 sps:$4 sm:$0xff]   ;;  %v13548_v60 = vld [vmem:[%s14955_s27 + $0x1368] ss:$16 sps:$4 sm:$0xff]  }
 0x36c   : > { %7252 = vmatpush1.bf16.msra.mxu0 %v13461_v62  ;;  %7908 = vmatpush1.bf16.msra.mxu1 %v13464_v63  ;;  %v13553_v62 = vld [vmem:[%s14955_s27 + $0x1384] ss:$16 sps:$4 sm:$0xff]   ;;  %v13556_v63 = vld [vmem:[%s14955_s27 + $0x138c] ss:$16 sps:$4 sm:$0xff]  }
 0x36d   : > { %7253 = vmatprep.subr.bf16.mxu0 %v13469_v46  ;;  %7909 = vmatprep.subr.bf16.mxu1 %v13472_v0  ;;  %v13551_v46 = vld [vmem:[%s14955_s27 + $0x1380] ss:$16 sps:$4 sm:$0xff]   ;;  %v13554_v0 = vld [vmem:[%s14955_s27 + $0x1388] ss:$16 sps:$4 sm:$0xff]  }
 0x370   : > { %7254 = vmatpush1.bf16.msra.mxu0 %v13467_v1  ;;  %7910 = vmatpush1.bf16.msra.mxu1 %v13470_v2  ;;  %v13559_v1 = vld [vmem:[%s14955_s27 + $0x13a4] ss:$16 sps:$4 sm:$0xff]   ;;  %v13562_v2 = vld [vmem:[%s14955_s27 + $0x13ac] ss:$16 sps:$4 sm:$0xff]  }
 0x371   : > { %7255 = vmatprep.subr.bf16.mxu0 %v13475_v57  ;;  %7911 = vmatprep.subr.bf16.mxu1 %v13478_v3  ;;  %v13557_v57 = vld [vmem:[%s14955_s27 + $0x13a0] ss:$16 sps:$4 sm:$0xff]   ;;  %v13560_v3 = vld [vmem:[%s14955_s27 + $0x13a8] ss:$16 sps:$4 sm:$0xff]  }
 0x374   : > { %7256 = vmatpush1.bf16.msra.mxu0 %v13473_v4  ;;  %7912 = vmatpush1.bf16.msra.mxu1 %v13476_v5  ;;  %v13565_v4 = vld [vmem:[%s14955_s27 + $0x13c4] ss:$16 sps:$4 sm:$0xff]   ;;  %v13568_v5 = vld [vmem:[%s14955_s27 + $0x13cc] ss:$16 sps:$4 sm:$0xff]  }
 0x375   : > { %7266 = vmatprep.subr.bf16.mxu0 %v13481_v58  ;;  %7922 = vmatprep.subr.bf16.mxu1 %v13484_v7  ;;  %v1647_v58 = vcombine.high %v15570_v55, %v15570_v55  ;;  %v13563_v7 = vld [vmem:[%s14955_s27 + $0x13c0] ss:$16 sps:$4 sm:$0xff]  }
 0x376   : > { %v13569_v55 = vld [vmem:[%s14955_s27 + $0x13e0] ss:$16 sps:$4 sm:$0xff]  }
 0x377   : > { %7258 = vmatmul.mubr.bf16.vlgmr.msra.gmra.mrb[0].mxu0 %v15659_v8  ;;  %7914 = vmatmul.mubr.bf16.vlgmr.msra.gmra.mrb[0].mxu1 %v15659_v8 }
 0x378   : > { %7267 = vmatpush1.bf16.msra.mxu0 %v13479_v9  ;;  %7923 = vmatpush1.bf16.msra.mxu1 %v13482_v10  ;;  %v13566_v9 = vld [vmem:[%s14955_s27 + $0x13c8] ss:$16 sps:$4 sm:$0xff]   ;;  %v13571_v10 = vld [vmem:[%s14955_s27 + $0x13e4] ss:$16 sps:$4 sm:$0xff]  }
 0x379   : > { %7268 = vmatprep.subr.bf16.mxu0 %v13487_v11  ;;  %7924 = vmatprep.subr.bf16.mxu1 %v13490_v12  ;;  %v13574_v11 = vld [vmem:[%s14955_s27 + $0x13ec] ss:$16 sps:$4 sm:$0xff]   ;;  %v15728_v12 = vrot.slane %v1647_v58, %v15031_v50  ;;  %v13647_v58 = vld [vmem:[%s14955_s27 + $0x1580] ss:$16 sps:$4 sm:$0xff]  }
 0x37a   : > { %7298 = vmatprep.mubr.bf16.mxu0 %v1694_v13  ;;  %7954 = vmatprep.mubr.bf16.mxu1 %v1694_v13  ;;  %v13572_v13 = vld [vmem:[%s14955_s27 + $0x13e8] ss:$16 sps:$4 sm:$0xff]  }
 0x37c   : > { %7269 = vmatpush1.bf16.msra.mxu0 %v13485_v61  ;;  %7925 = vmatpush1.bf16.msra.mxu1 %v13488_v15  ;;  %v13577_v61 = vld [vmem:[%s14955_s27 + $0x1404] ss:$16 sps:$4 sm:$0xff]   ;;  %v13580_v15 = vld [vmem:[%s14955_s27 + $0x140c] ss:$16 sps:$4 sm:$0xff]  }
 0x37d   : > { %7270 = vmatprep.subr.bf16.mxu0 %v13493_v16  ;;  %7926 = vmatprep.subr.bf16.mxu1 %v13496_v18  ;;  %v1663_v16 = vcombine.high %v15728_v12, %v15728_v12  ;;  %v1692_v18 = vcombine.high %v15659_v8, %v15659_v8  ;;  %v13581_v8 = vld [vmem:[%s14955_s27 + $0x1420] ss:$16 sps:$4 sm:$0xff]  }
 0x380   : > { %7271 = vmatpush1.bf16.msra.mxu0 %v13491_v6  ;;  %7927 = vmatpush1.bf16.msra.mxu1 %v13494_v53  ;;  %v13575_v6 = vld [vmem:[%s14955_s27 + $0x1400] ss:$16 sps:$4 sm:$0xff]   ;;  %v13578_v53 = vld [vmem:[%s14955_s27 + $0x1408] ss:$16 sps:$4 sm:$0xff]  }
 0x381   : > { %7272 = vmatprep.subr.bf16.mxu0 %v13499_v19  ;;  %7928 = vmatprep.subr.bf16.mxu1 %v13502_v20  ;;  %v13583_v19 = vld [vmem:[%s14955_s27 + $0x1424] ss:$16 sps:$4 sm:$0xff]   ;;  %v13586_v20 = vld [vmem:[%s14955_s27 + $0x142c] ss:$16 sps:$4 sm:$0xff]  }
 0x384   : > { %7273 = vmatpush1.bf16.msra.mxu0 %v13497_v21  ;;  %7929 = vmatpush1.bf16.msra.mxu1 %v13500_v22  ;;  %v15743_v21 = vrot.slane %v1663_v16, %v15031_v50  ;;  %v13584_v22 = vld [vmem:[%s14955_s27 + $0x1428] ss:$16 sps:$4 sm:$0xff]  }
 0x385   : > { %7274 = vmatprep.subr.bf16.mxu0 %v13505_v23  ;;  %7930 = vmatprep.subr.bf16.mxu1 %v13508_v24  ;;  %v13589_v23 = vld [vmem:[%s14955_s27 + $0x1444] ss:$16 sps:$4 sm:$0xff]   ;;  %v13592_v24 = vld [vmem:[%s14955_s27 + $0x144c] ss:$16 sps:$4 sm:$0xff]   ;;  %v13662_v16 = vld [vmem:[%s14955_s27 + $0x15c8] ss:$16 sps:$4 sm:$0xff]  }
 0x388   : > { %7275 = vmatpush1.bf16.msra.mxu0 %v13503_v26  ;;  %7931 = vmatpush1.bf16.msra.mxu1 %v13506_v28  ;;  %v13587_v26 = vld [vmem:[%s14955_s27 + $0x1440] ss:$16 sps:$4 sm:$0xff]   ;;  %v13590_v28 = vld [vmem:[%s14955_s27 + $0x1448] ss:$16 sps:$4 sm:$0xff]  }
 0x389   : > { %7276 = vmatprep.subr.bf16.mxu0 %v13511_v14  ;;  %7932 = vmatprep.subr.bf16.mxu1 %v13514_v30  ;;  %v13595_v14 = vld [vmem:[%s14955_s27 + $0x1464] ss:$16 sps:$4 sm:$0xff]   ;;  %v13598_v30 = vld [vmem:[%s14955_s27 + $0x146c] ss:$16 sps:$4 sm:$0xff]  }
 0x38c   : > { %7277 = vmatpush1.bf16.msra.mxu0 %v13509_v31  ;;  %7933 = vmatpush1.bf16.msra.mxu1 %v13512_v32  ;;  %v13593_v31 = vld [vmem:[%s14955_s27 + $0x1460] ss:$16 sps:$4 sm:$0xff]   ;;  %v13596_v32 = vld [vmem:[%s14955_s27 + $0x1468] ss:$16 sps:$4 sm:$0xff]  }
 0x38d   : > { %7278 = vmatprep.subr.bf16.mxu0 %v13517_v33  ;;  %7934 = vmatprep.subr.bf16.mxu1 %v13520_v17  ;;  %v13601_v33 = vld [vmem:[%s14955_s27 + $0x1484] ss:$16 sps:$4 sm:$0xff]   ;;  %v13604_v17 = vld [vmem:[%s14955_s27 + $0x148c] ss:$16 sps:$4 sm:$0xff]  }
 0x390   : > { %7279 = vmatpush1.bf16.msra.mxu0 %v13515_v34  ;;  %7935 = vmatpush1.bf16.msra.mxu1 %v13518_v35  ;;  %v13599_v34 = vld [vmem:[%s14955_s27 + $0x1480] ss:$16 sps:$4 sm:$0xff]   ;;  %v13602_v35 = vld [vmem:[%s14955_s27 + $0x1488] ss:$16 sps:$4 sm:$0xff]  }
 0x391   : > { %7280 = vmatprep.subr.bf16.mxu0 %v13523_v36  ;;  %7936 = vmatprep.subr.bf16.mxu1 %v13526_v27  ;;  %v13607_v36 = vld [vmem:[%s14955_s27 + $0x14a4] ss:$16 sps:$4 sm:$0xff]   ;;  %v13610_v27 = vld [vmem:[%s14955_s27 + $0x14ac] ss:$16 sps:$4 sm:$0xff]  }
 0x394   : > { %7281 = vmatpush1.bf16.msra.mxu0 %v13521_v37  ;;  %7937 = vmatpush1.bf16.msra.mxu1 %v13524_v38  ;;  %v13605_v37 = vld [vmem:[%s14955_s27 + $0x14a0] ss:$16 sps:$4 sm:$0xff]   ;;  %v13608_v38 = vld [vmem:[%s14955_s27 + $0x14a8] ss:$16 sps:$4 sm:$0xff]  }
 0x395   : > { %7282 = vmatprep.subr.bf16.mxu0 %v13529_v29  ;;  %7938 = vmatprep.subr.bf16.mxu1 %v13532_v42  ;;  %v13613_v29 = vld [vmem:[%s14955_s27 + $0x14c4] ss:$16 sps:$4 sm:$0xff]   ;;  %v13616_v42 = vld [vmem:[%s14955_s27 + $0x14cc] ss:$16 sps:$4 sm:$0xff]  }
 0x398   : > { %7283 = vmatpush1.bf16.msra.mxu0 %v13527_v43  ;;  %7939 = vmatpush1.bf16.msra.mxu1 %v13530_v45  ;;  %v13611_v43 = vld [vmem:[%s14955_s27 + $0x14c0] ss:$16 sps:$4 sm:$0xff]   ;;  %v13614_v45 = vld [vmem:[%s14955_s27 + $0x14c8] ss:$16 sps:$4 sm:$0xff]  }
 0x399   : > { %7284 = vmatprep.subr.bf16.mxu0 %v13535_v47  ;;  %7940 = vmatprep.subr.bf16.mxu1 %v13538_v25  ;;  %v13619_v47 = vld [vmem:[%s14955_s27 + $0x14e4] ss:$16 sps:$4 sm:$0xff]   ;;  %v13622_v25 = vld [vmem:[%s14955_s27 + $0x14ec] ss:$16 sps:$4 sm:$0xff]  }
 0x39c   : > { %7285 = vmatpush1.bf16.msra.mxu0 %v13533_v48  ;;  %7941 = vmatpush1.bf16.msra.mxu1 %v13536_v49  ;;  %v13617_v48 = vld [vmem:[%s14955_s27 + $0x14e0] ss:$16 sps:$4 sm:$0xff]   ;;  %v13620_v49 = vld [vmem:[%s14955_s27 + $0x14e8] ss:$16 sps:$4 sm:$0xff]  }
 0x39d   : > { %7286 = vmatprep.subr.bf16.mxu0 %v13541_v51  ;;  %7942 = vmatprep.subr.bf16.mxu1 %v13544_v40  ;;  %v13625_v51 = vld [vmem:[%s14955_s27 + $0x1504] ss:$16 sps:$4 sm:$0xff]   ;;  %v13628_v40 = vld [vmem:[%s14955_s27 + $0x150c] ss:$16 sps:$4 sm:$0xff]  }
 0x3a0   : > { %7287 = vmatpush1.bf16.msra.mxu0 %v13539_v52  ;;  %7943 = vmatpush1.bf16.msra.mxu1 %v13542_v54  ;;  %v13623_v52 = vld [vmem:[%s14955_s27 + $0x1500] ss:$16 sps:$4 sm:$0xff]   ;;  %v13626_v54 = vld [vmem:[%s14955_s27 + $0x1508] ss:$16 sps:$4 sm:$0xff]  }
 0x3a1   : > { %7288 = vmatprep.subr.bf16.mxu0 %v13547_v56  ;;  %7944 = vmatprep.subr.bf16.mxu1 %v13550_v41  ;;  %v13631_v56 = vld [vmem:[%s14955_s27 + $0x1524] ss:$16 sps:$4 sm:$0xff]   ;;  %v13634_v41 = vld [vmem:[%s14955_s27 + $0x152c] ss:$16 sps:$4 sm:$0xff]  }
 0x3a4   : > { %7289 = vmatpush1.bf16.msra.mxu0 %v13545_v59  ;;  %7945 = vmatpush1.bf16.msra.mxu1 %v13548_v60  ;;  %v13629_v59 = vld [vmem:[%s14955_s27 + $0x1520] ss:$16 sps:$4 sm:$0xff]   ;;  %v13632_v60 = vld [vmem:[%s14955_s27 + $0x1528] ss:$16 sps:$4 sm:$0xff]  }
 0x3a5   : > { %7290 = vmatprep.subr.bf16.mxu0 %v13553_v62  ;;  %7946 = vmatprep.subr.bf16.mxu1 %v13556_v63  ;;  %v13637_v62 = vld [vmem:[%s14955_s27 + $0x1544] ss:$16 sps:$4 sm:$0xff]   ;;  %v13640_v63 = vld [vmem:[%s14955_s27 + $0x154c] ss:$16 sps:$4 sm:$0xff]  }
 0x3a8   : > { %7291 = vmatpush1.bf16.msra.mxu0 %v13551_v46  ;;  %7947 = vmatpush1.bf16.msra.mxu1 %v13554_v0  ;;  %v13635_v46 = vld [vmem:[%s14955_s27 + $0x1540] ss:$16 sps:$4 sm:$0xff]   ;;  %v13638_v0 = vld [vmem:[%s14955_s27 + $0x1548] ss:$16 sps:$4 sm:$0xff]  }
 0x3a9   : > { %7292 = vmatprep.subr.bf16.mxu0 %v13559_v1  ;;  %7948 = vmatprep.subr.bf16.mxu1 %v13562_v2  ;;  %v13643_v1 = vld [vmem:[%s14955_s27 + $0x1564] ss:$16 sps:$4 sm:$0xff]   ;;  %v13646_v2 = vld [vmem:[%s14955_s27 + $0x156c] ss:$16 sps:$4 sm:$0xff]  }
 0x3ac   : > { %7293 = vmatpush1.bf16.msra.mxu0 %v13557_v57  ;;  %7949 = vmatpush1.bf16.msra.mxu1 %v13560_v3  ;;  %v13641_v57 = vld [vmem:[%s14955_s27 + $0x1560] ss:$16 sps:$4 sm:$0xff]   ;;  %v13644_v3 = vld [vmem:[%s14955_s27 + $0x1568] ss:$16 sps:$4 sm:$0xff]  }
 0x3ad   : > { %7294 = vmatprep.subr.bf16.mxu0 %v13565_v4  ;;  %7950 = vmatprep.subr.bf16.mxu1 %v13568_v5  ;;  %v13649_v4 = vld [vmem:[%s14955_s27 + $0x1584] ss:$16 sps:$4 sm:$0xff]   ;;  %v13652_v5 = vld [vmem:[%s14955_s27 + $0x158c] ss:$16 sps:$4 sm:$0xff]  }
 0x3b0   : > { %7295 = vmatpush1.bf16.msra.mxu0 %v13563_v7  ;;  %7951 = vmatpush1.bf16.msra.mxu1 %v13566_v9  ;;  %v13650_v7 = vld [vmem:[%s14955_s27 + $0x1588] ss:$16 sps:$4 sm:$0xff]   ;;  %v13655_v9 = vld [vmem:[%s14955_s27 + $0x15a4] ss:$16 sps:$4 sm:$0xff]  }
 0x3b1   : > { %7296 = vmatprep.subr.bf16.mxu0 %v13571_v10  ;;  %7952 = vmatprep.subr.bf16.mxu1 %v13574_v11  ;;  %v13658_v10 = vld [vmem:[%s14955_s27 + $0x15ac] ss:$16 sps:$4 sm:$0xff]   ;;  %v13653_v11 = vld [vmem:[%s14955_s27 + $0x15a0] ss:$16 sps:$4 sm:$0xff]  }
 0x3b4   : > { %7297 = vmatpush1.bf16.msra.mxu0 %v13569_v55  ;;  %7953 = vmatpush1.bf16.msra.mxu1 %v13572_v13  ;;  %v13656_v55 = vld [vmem:[%s14955_s27 + $0x15a8] ss:$16 sps:$4 sm:$0xff]   ;;  %v13661_v13 = vld [vmem:[%s14955_s27 + $0x15c4] ss:$16 sps:$4 sm:$0xff]  }
 0x3b5   : > { %7307 = vmatprep.subr.bf16.mxu0 %v13577_v61  ;;  %7963 = vmatprep.subr.bf16.mxu1 %v13580_v15  ;;  %v13664_v61 = vld [vmem:[%s14955_s27 + $0x15cc] ss:$16 sps:$4 sm:$0xff]   ;;  %v13659_v15 = vld [vmem:[%s14955_s27 + $0x15c0] ss:$16 sps:$4 sm:$0xff]  }
 0x3b7   : > { %7299 = vmatmul.mubr.bf16.vlgmr.msra.gmra.mrb[0].mxu0 %v1692_v18  ;;  %7955 = vmatmul.mubr.bf16.vlgmr.msra.gmra.mrb[0].mxu1 %v1692_v18  ;;  %v13667_v18 = vld [vmem:[%s14955_s27 + $0x15e4] ss:$16 sps:$4 sm:$0xff]  }
 0x3b8   : > { %7308 = vmatpush1.bf16.msra.mxu0 %v13575_v6  ;;  %7964 = vmatpush1.bf16.msra.mxu1 %v13578_v53  ;;  %v13670_v6 = vld [vmem:[%s14955_s27 + $0x15ec] ss:$16 sps:$4 sm:$0xff]   ;;  %v13665_v53 = vld [vmem:[%s14955_s27 + $0x15e0] ss:$16 sps:$4 sm:$0xff]  }
 0x3b9   : > { %7309 = vmatprep.subr.bf16.mxu0 %v13583_v19  ;;  %7965 = vmatprep.subr.bf16.mxu1 %v13586_v20  ;;  %v13668_v19 = vld [vmem:[%s14955_s27 + $0x15e8] ss:$16 sps:$4 sm:$0xff]   ;;  %v13674_v20 = vld [vmem:[%s14955_s27 + $0x1604] ss:$16 sps:$4 sm:$0xff]  }
 0x3ba   : > { %7339 = vmatprep.mubr.bf16.mxu0 %v15743_v21  ;;  %7995 = vmatprep.mubr.bf16.mxu1 %v15743_v21 }
 0x3bc   : > { %7310 = vmatpush1.bf16.msra.mxu0 %v13581_v8  ;;  %7966 = vmatpush1.bf16.msra.mxu1 %v13584_v22  ;;  %v13677_v8 = vld [vmem:[%s14955_s27 + $0x160c] ss:$16 sps:$4 sm:$0xff]   ;;  %v15809_v22 = vrot.slane %v15728_v12, %v15031_v50  ;;  %v13678_v12 = vld [vmem:[%s14955_s27 + $0x1620] ss:$16 sps:$4 sm:$0xff]  }
 0x3bd   : > { %7311 = vmatprep.subr.bf16.mxu0 %v13589_v23  ;;  %7967 = vmatprep.subr.bf16.mxu1 %v13592_v24  ;;  %v13672_v23 = vld [vmem:[%s14955_s27 + $0x1600] ss:$16 sps:$4 sm:$0xff]   ;;  %v13675_v24 = vld [vmem:[%s14955_s27 + $0x1608] ss:$16 sps:$4 sm:$0xff]  }
 0x3c0   : > { %7312 = vmatpush1.bf16.msra.mxu0 %v13587_v26  ;;  %7968 = vmatpush1.bf16.msra.mxu1 %v13590_v28  ;;  %v13680_v26 = vld [vmem:[%s14955_s27 + $0x1624] ss:$16 sps:$4 sm:$0xff]   ;;  %v13683_v28 = vld [vmem:[%s14955_s27 + $0x162c] ss:$16 sps:$4 sm:$0xff]  }
 0x3c1   : > { %7313 = vmatprep.subr.bf16.mxu0 %v13595_v14  ;;  %7969 = vmatprep.subr.bf16.mxu1 %v13598_v30  ;;  %v1695_v14 = vcombine.high %v15743_v21, %v15743_v21  ;;  %v13681_v30 = vld [vmem:[%s14955_s27 + $0x1628] ss:$16 sps:$4 sm:$0xff]   ;;  %v13684_v21 = vld [vmem:[%s14955_s27 + $0x1640] ss:$16 sps:$4 sm:$0xff]  }
 0x3c4   : > { %7314 = vmatpush1.bf16.msra.mxu0 %v13593_v31  ;;  %7970 = vmatpush1.bf16.msra.mxu1 %v13596_v32  ;;  %v13686_v31 = vld [vmem:[%s14955_s27 + $0x1644] ss:$16 sps:$4 sm:$0xff]   ;;  %v13689_v32 = vld [vmem:[%s14955_s27 + $0x164c] ss:$16 sps:$4 sm:$0xff]  }
 0x3c5   : > { %7315 = vmatprep.subr.bf16.mxu0 %v13601_v33  ;;  %7971 = vmatprep.subr.bf16.mxu1 %v13604_v17  ;;  %v13687_v33 = vld [vmem:[%s14955_s27 + $0x1648] ss:$16 sps:$4 sm:$0xff]   ;;  %v13692_v17 = vld [vmem:[%s14955_s27 + $0x1664] ss:$16 sps:$4 sm:$0xff]  }
 0x3c8   : > { %7316 = vmatpush1.bf16.msra.mxu0 %v13599_v34  ;;  %7972 = vmatpush1.bf16.msra.mxu1 %v13602_v35  ;;  %v13695_v34 = vld [vmem:[%s14955_s27 + $0x166c] ss:$16 sps:$4 sm:$0xff]   ;;  %v13690_v35 = vld [vmem:[%s14955_s27 + $0x1660] ss:$16 sps:$4 sm:$0xff]  }
 0x3c9   : > { %7317 = vmatprep.subr.bf16.mxu0 %v13607_v36  ;;  %7973 = vmatprep.subr.bf16.mxu1 %v13610_v27  ;;  %v13693_v36 = vld [vmem:[%s14955_s27 + $0x1668] ss:$16 sps:$4 sm:$0xff]   ;;  %v13698_v27 = vld [vmem:[%s14955_s27 + $0x1684] ss:$16 sps:$4 sm:$0xff]  }
 0x3cc   : > { %7318 = vmatpush1.bf16.msra.mxu0 %v13605_v37  ;;  %7974 = vmatpush1.bf16.msra.mxu1 %v13608_v38  ;;  %v13701_v37 = vld [vmem:[%s14955_s27 + $0x168c] ss:$16 sps:$4 sm:$0xff]   ;;  %v13696_v38 = vld [vmem:[%s14955_s27 + $0x1680] ss:$16 sps:$4 sm:$0xff]  }
 0x3cd   : > { %7319 = vmatprep.subr.bf16.mxu0 %v13613_v29  ;;  %7975 = vmatprep.subr.bf16.mxu1 %v13616_v42  ;;  %v13699_v29 = vld [vmem:[%s14955_s27 + $0x1688] ss:$16 sps:$4 sm:$0xff]   ;;  %v13704_v42 = vld [vmem:[%s14955_s27 + $0x16a4] ss:$16 sps:$4 sm:$0xff]  }
 0x3d0   : > { %7320 = vmatpush1.bf16.msra.mxu0 %v13611_v43  ;;  %7976 = vmatpush1.bf16.msra.mxu1 %v13614_v45  ;;  %v13707_v43 = vld [vmem:[%s14955_s27 + $0x16ac] ss:$16 sps:$4 sm:$0xff]   ;;  %v13702_v45 = vld [vmem:[%s14955_s27 + $0x16a0] ss:$16 sps:$4 sm:$0xff]  }
 0x3d1   : > { %7321 = vmatprep.subr.bf16.mxu0 %v13619_v47  ;;  %7977 = vmatprep.subr.bf16.mxu1 %v13622_v25  ;;  %v13705_v47 = vld [vmem:[%s14955_s27 + $0x16a8] ss:$16 sps:$4 sm:$0xff]   ;;  %v13710_v25 = vld [vmem:[%s14955_s27 + $0x16c4] ss:$16 sps:$4 sm:$0xff]  }
 0x3d4   : > { %7322 = vmatpush1.bf16.msra.mxu0 %v13617_v48  ;;  %7978 = vmatpush1.bf16.msra.mxu1 %v13620_v49  ;;  %v13713_v48 = vld [vmem:[%s14955_s27 + $0x16cc] ss:$16 sps:$4 sm:$0xff]   ;;  %v13708_v49 = vld [vmem:[%s14955_s27 + $0x16c0] ss:$16 sps:$4 sm:$0xff]  }
 0x3d5   : > { %7323 = vmatprep.subr.bf16.mxu0 %v13625_v51  ;;  %7979 = vmatprep.subr.bf16.mxu1 %v13628_v40  ;;  %v13711_v51 = vld [vmem:[%s14955_s27 + $0x16c8] ss:$16 sps:$4 sm:$0xff]   ;;  %v13716_v40 = vld [vmem:[%s14955_s27 + $0x16e4] ss:$16 sps:$4 sm:$0xff]  }
 0x3d8   : > { %7324 = vmatpush1.bf16.msra.mxu0 %v13623_v52  ;;  %7980 = vmatpush1.bf16.msra.mxu1 %v13626_v54  ;;  %v13719_v52 = vld [vmem:[%s14955_s27 + $0x16ec] ss:$16 sps:$4 sm:$0xff]   ;;  %v13714_v54 = vld [vmem:[%s14955_s27 + $0x16e0] ss:$16 sps:$4 sm:$0xff]  }
 0x3d9   : > { %7325 = vmatprep.subr.bf16.mxu0 %v13631_v56  ;;  %7981 = vmatprep.subr.bf16.mxu1 %v13634_v41  ;;  %v13717_v56 = vld [vmem:[%s14955_s27 + $0x16e8] ss:$16 sps:$4 sm:$0xff]   ;;  %v13722_v41 = vld [vmem:[%s14955_s27 + $0x1704] ss:$16 sps:$4 sm:$0xff]  }
 0x3dc   : > { %7326 = vmatpush1.bf16.msra.mxu0 %v13629_v59  ;;  %7982 = vmatpush1.bf16.msra.mxu1 %v13632_v60  ;;  %v13725_v59 = vld [vmem:[%s14955_s27 + $0x170c] ss:$16 sps:$4 sm:$0xff]   ;;  %v13720_v60 = vld [vmem:[%s14955_s27 + $0x1700] ss:$16 sps:$4 sm:$0xff]  }
 0x3dd   : > { %7327 = vmatprep.subr.bf16.mxu0 %v13637_v62  ;;  %7983 = vmatprep.subr.bf16.mxu1 %v13640_v63  ;;  %v13723_v62 = vld [vmem:[%s14955_s27 + $0x1708] ss:$16 sps:$4 sm:$0xff]   ;;  %v13728_v63 = vld [vmem:[%s14955_s27 + $0x1724] ss:$16 sps:$4 sm:$0xff]  }
 0x3e0   : > { %7328 = vmatpush1.bf16.msra.mxu0 %v13635_v46  ;;  %7984 = vmatpush1.bf16.msra.mxu1 %v13638_v0  ;;  %v13731_v46 = vld [vmem:[%s14955_s27 + $0x172c] ss:$16 sps:$4 sm:$0xff]   ;;  %v13726_v0 = vld [vmem:[%s14955_s27 + $0x1720] ss:$16 sps:$4 sm:$0xff]  }
 0x3e1   : > { %7329 = vmatprep.subr.bf16.mxu0 %v13643_v1  ;;  %7985 = vmatprep.subr.bf16.mxu1 %v13646_v2  ;;  %v13729_v1 = vld [vmem:[%s14955_s27 + $0x1728] ss:$16 sps:$4 sm:$0xff]   ;;  %v13734_v2 = vld [vmem:[%s14955_s27 + $0x1744] ss:$16 sps:$4 sm:$0xff]  }
 0x3e4   : > { %7330 = vmatpush1.bf16.msra.mxu0 %v13641_v57  ;;  %7986 = vmatpush1.bf16.msra.mxu1 %v13644_v3  ;;  %v13737_v57 = vld [vmem:[%s14955_s27 + $0x174c] ss:$16 sps:$4 sm:$0xff]   ;;  %v13732_v3 = vld [vmem:[%s14955_s27 + $0x1740] ss:$16 sps:$4 sm:$0xff]  }
 0x3e5   : > { %7331 = vmatprep.subr.bf16.mxu0 %v13649_v4  ;;  %7987 = vmatprep.subr.bf16.mxu1 %v13652_v5  ;;  %v13735_v4 = vld [vmem:[%s14955_s27 + $0x1748] ss:$16 sps:$4 sm:$0xff]   ;;  %v13740_v5 = vld [vmem:[%s14955_s27 + $0x1764] ss:$16 sps:$4 sm:$0xff]  }
 0x3e8   : > { %7332 = vmatpush1.bf16.msra.mxu0 %v13647_v58  ;;  %7988 = vmatpush1.bf16.msra.mxu1 %v13650_v7  ;;  %v13743_v58 = vld [vmem:[%s14955_s27 + $0x176c] ss:$16 sps:$4 sm:$0xff]   ;;  %v13738_v7 = vld [vmem:[%s14955_s27 + $0x1760] ss:$16 sps:$4 sm:$0xff]  }
 0x3e9   : > { %7333 = vmatprep.subr.bf16.mxu0 %v13655_v9  ;;  %7989 = vmatprep.subr.bf16.mxu1 %v13658_v10  ;;  %v13741_v9 = vld [vmem:[%s14955_s27 + $0x1768] ss:$16 sps:$4 sm:$0xff]   ;;  %v13746_v10 = vld [vmem:[%s14955_s27 + $0x1784] ss:$16 sps:$4 sm:$0xff]  }
 0x3ec   : > { %7334 = vmatpush1.bf16.msra.mxu0 %v13653_v11  ;;  %7990 = vmatpush1.bf16.msra.mxu1 %v13656_v55  ;;  %v13749_v11 = vld [vmem:[%s14955_s27 + $0x178c] ss:$16 sps:$4 sm:$0xff]   ;;  %v13744_v55 = vld [vmem:[%s14955_s27 + $0x1780] ss:$16 sps:$4 sm:$0xff]  }
 0x3ed   : > { %7335 = vmatprep.subr.bf16.mxu0 %v13661_v13  ;;  %7991 = vmatprep.subr.bf16.mxu1 %v13664_v61  ;;  %v13747_v13 = vld [vmem:[%s14955_s27 + $0x1788] ss:$16 sps:$4 sm:$0xff]   ;;  %v13752_v61 = vld [vmem:[%s14955_s27 + $0x17a4] ss:$16 sps:$4 sm:$0xff]  }
 0x3f0   : > { %7336 = vmatpush1.bf16.msra.mxu0 %v13659_v15  ;;  %7992 = vmatpush1.bf16.msra.mxu1 %v13662_v16  ;;  %v13755_v15 = vld [vmem:[%s14955_s27 + $0x17ac] ss:$16 sps:$4 sm:$0xff]   ;;  %v13750_v16 = vld [vmem:[%s14955_s27 + $0x17a0] ss:$16 sps:$4 sm:$0xff]  }
 0x3f1   : > { %7337 = vmatprep.subr.bf16.mxu0 %v13667_v18  ;;  %7993 = vmatprep.subr.bf16.mxu1 %v13670_v6  ;;  %v13753_v18 = vld [vmem:[%s14955_s27 + $0x17a8] ss:$16 sps:$4 sm:$0xff]   ;;  %v13758_v6 = vld [vmem:[%s14955_s27 + $0x17c4] ss:$16 sps:$4 sm:$0xff]  }
 0x3f4   : > { %7338 = vmatpush1.bf16.msra.mxu0 %v13665_v53  ;;  %7994 = vmatpush1.bf16.msra.mxu1 %v13668_v19  ;;  %v13761_v53 = vld [vmem:[%s14955_s27 + $0x17cc] ss:$16 sps:$4 sm:$0xff]  }
 0x3f5   : > { %7348 = vmatprep.subr.bf16.mxu0 %v13674_v20  ;;  %8004 = vmatprep.subr.bf16.mxu1 %v13677_v8  ;;  %v15872_v19 = vld [vmem:[%s14948_s13 + $0x18] sm:$0xff]  ;;  %v13756_v20 = vld [vmem:[%s14955_s27 + $0x17c0] ss:$16 sps:$4 sm:$0xff]  }
 0x3f6   : > { %v13759_v8 = vld [vmem:[%s14955_s27 + $0x17c8] ss:$16 sps:$4 sm:$0xff]  }
 0x3f7   : > { %7340 = vmatmul.mubr.bf16.vlgmr.msra.gmra.mrb[0].mxu0 %v15809_v22  ;;  %7996 = vmatmul.mubr.bf16.vlgmr.msra.gmra.mrb[0].mxu1 %v15809_v22 }
 0x3f8   : > { %7349 = vmatpush1.bf16.msra.mxu0 %v13672_v23  ;;  %8005 = vmatpush1.bf16.msra.mxu1 %v13675_v24  ;;  %v13764_v23 = vld [vmem:[%s14955_s27 + $0x17e4] ss:$16 sps:$4 sm:$0xff]   ;;  %v13767_v24 = vld [vmem:[%s14955_s27 + $0x17ec] ss:$16 sps:$4 sm:$0xff]  }
 0x3f9   : > { %7350 = vmatprep.subr.bf16.mxu0 %v13680_v26  ;;  %8006 = vmatprep.subr.bf16.mxu1 %v13683_v28  ;;  %v15880_v26 = vrot.slane %v15872_v19, %v15031_v50  ;;  %v13762_v28 = vld [vmem:[%s14955_s27 + $0x17e0] ss:$16 sps:$4 sm:$0xff]  }
 0x3fa   : > { %7380 = vmatprep.mubr.bf16.mxu0 %v1695_v14  ;;  %8036 = vmatprep.mubr.bf16.mxu1 %v1695_v14  ;;  %v13765_v14 = vld [vmem:[%s14955_s27 + $0x17e8] ss:$16 sps:$4 sm:$0xff]  }
 0x3fc   : > { %7351 = vmatpush1.bf16.msra.mxu0 %v13678_v12  ;;  %8007 = vmatpush1.bf16.msra.mxu1 %v13681_v30  ;;  %v13770_v12 = vld [vmem:[%s14955_s27 + $0x1804] ss:$16 sps:$4 sm:$0xff]   ;;  %v13773_v30 = vld [vmem:[%s14955_s27 + $0x180c] ss:$16 sps:$4 sm:$0xff]  }
 0x3fd   : > { %7352 = vmatprep.subr.bf16.mxu0 %v13686_v31  ;;  %8008 = vmatprep.subr.bf16.mxu1 %v13689_v32  ;;  %v1711_v31 = vcombine.high %v15880_v26, %v15880_v26  ;;  %v1693_v32 = vcombine.high %v15809_v22, %v15809_v22  ;;  %v13774_v22 = vld [vmem:[%s14955_s27 + $0x1820] ss:$16 sps:$4 sm:$0xff]  }
 0x400   : > { %7353 = vmatpush1.bf16.msra.mxu0 %v13684_v21  ;;  %8009 = vmatpush1.bf16.msra.mxu1 %v13687_v33  ;;  %v13768_v21 = vld [vmem:[%s14955_s27 + $0x1800] ss:$16 sps:$4 sm:$0xff]   ;;  %v13771_v33 = vld [vmem:[%s14955_s27 + $0x1808] ss:$16 sps:$4 sm:$0xff]  }
 0x401   : > { %7354 = vmatprep.subr.bf16.mxu0 %v13692_v17  ;;  %8010 = vmatprep.subr.bf16.mxu1 %v13695_v34  ;;  %v13776_v17 = vld [vmem:[%s14955_s27 + $0x1824] ss:$16 sps:$4 sm:$0xff]   ;;  %v13779_v34 = vld [vmem:[%s14955_s27 + $0x182c] ss:$16 sps:$4 sm:$0xff]  }
 0x404   : > { %7355 = vmatpush1.bf16.msra.mxu0 %v13690_v35  ;;  %8011 = vmatpush1.bf16.msra.mxu1 %v13693_v36  ;;  %v15895_v35 = vrot.slane %v1711_v31, %v15031_v50  ;;  %v13777_v36 = vld [vmem:[%s14955_s27 + $0x1828] ss:$16 sps:$4 sm:$0xff]   ;;  %v13852_v31 = vld [vmem:[%s14955_s27 + $0x19c0] ss:$16 sps:$4 sm:$0xff]  }
 0x405   : > { %7356 = vmatprep.subr.bf16.mxu0 %v13698_v27  ;;  %8012 = vmatprep.subr.bf16.mxu1 %v13701_v37  ;;  %v13782_v27 = vld [vmem:[%s14955_s27 + $0x1844] ss:$16 sps:$4 sm:$0xff]   ;;  %v13785_v37 = vld [vmem:[%s14955_s27 + $0x184c] ss:$16 sps:$4 sm:$0xff]  }
 0x408   : > { %7357 = vmatpush1.bf16.msra.mxu0 %v13696_v38  ;;  %8013 = vmatpush1.bf16.msra.mxu1 %v13699_v29  ;;  %v13780_v38 = vld [vmem:[%s14955_s27 + $0x1840] ss:$16 sps:$4 sm:$0xff]   ;;  %v13783_v29 = vld [vmem:[%s14955_s27 + $0x1848] ss:$16 sps:$4 sm:$0xff]  }
 0x409   : > { %7358 = vmatprep.subr.bf16.mxu0 %v13704_v42  ;;  %8014 = vmatprep.subr.bf16.mxu1 %v13707_v43  ;;  %v13788_v42 = vld [vmem:[%s14955_s27 + $0x1864] ss:$16 sps:$4 sm:$0xff]   ;;  %v13791_v43 = vld [vmem:[%s14955_s27 + $0x186c] ss:$16 sps:$4 sm:$0xff]  }
 0x40c   : > { %7359 = vmatpush1.bf16.msra.mxu0 %v13702_v45  ;;  %8015 = vmatpush1.bf16.msra.mxu1 %v13705_v47  ;;  %v13786_v45 = vld [vmem:[%s14955_s27 + $0x1860] ss:$16 sps:$4 sm:$0xff]   ;;  %v13789_v47 = vld [vmem:[%s14955_s27 + $0x1868] ss:$16 sps:$4 sm:$0xff]  }
 0x40d   : > { %7360 = vmatprep.subr.bf16.mxu0 %v13710_v25  ;;  %8016 = vmatprep.subr.bf16.mxu1 %v13713_v48  ;;  %v13794_v25 = vld [vmem:[%s14955_s27 + $0x1884] ss:$16 sps:$4 sm:$0xff]   ;;  %v13797_v48 = vld [vmem:[%s14955_s27 + $0x188c] ss:$16 sps:$4 sm:$0xff]  }
 0x410   : > { %7361 = vmatpush1.bf16.msra.mxu0 %v13708_v49  ;;  %8017 = vmatpush1.bf16.msra.mxu1 %v13711_v51  ;;  %v13792_v49 = vld [vmem:[%s14955_s27 + $0x1880] ss:$16 sps:$4 sm:$0xff]   ;;  %v13795_v51 = vld [vmem:[%s14955_s27 + $0x1888] ss:$16 sps:$4 sm:$0xff]  }
 0x411   : > { %7362 = vmatprep.subr.bf16.mxu0 %v13716_v40  ;;  %8018 = vmatprep.subr.bf16.mxu1 %v13719_v52  ;;  %v13800_v40 = vld [vmem:[%s14955_s27 + $0x18a4] ss:$16 sps:$4 sm:$0xff]   ;;  %v13803_v52 = vld [vmem:[%s14955_s27 + $0x18ac] ss:$16 sps:$4 sm:$0xff]  }
 0x414   : > { %7363 = vmatpush1.bf16.msra.mxu0 %v13714_v54  ;;  %8019 = vmatpush1.bf16.msra.mxu1 %v13717_v56  ;;  %v13798_v54 = vld [vmem:[%s14955_s27 + $0x18a0] ss:$16 sps:$4 sm:$0xff]   ;;  %v13801_v56 = vld [vmem:[%s14955_s27 + $0x18a8] ss:$16 sps:$4 sm:$0xff]  }
 0x415   : > { %7364 = vmatprep.subr.bf16.mxu0 %v13722_v41  ;;  %8020 = vmatprep.subr.bf16.mxu1 %v13725_v59  ;;  %v13806_v41 = vld [vmem:[%s14955_s27 + $0x18c4] ss:$16 sps:$4 sm:$0xff]   ;;  %v13809_v59 = vld [vmem:[%s14955_s27 + $0x18cc] ss:$16 sps:$4 sm:$0xff]  }
 0x418   : > { %7365 = vmatpush1.bf16.msra.mxu0 %v13720_v60  ;;  %8021 = vmatpush1.bf16.msra.mxu1 %v13723_v62  ;;  %v13804_v60 = vld [vmem:[%s14955_s27 + $0x18c0] ss:$16 sps:$4 sm:$0xff]   ;;  %v13807_v62 = vld [vmem:[%s14955_s27 + $0x18c8] ss:$16 sps:$4 sm:$0xff]  }
 0x419   : > { %7366 = vmatprep.subr.bf16.mxu0 %v13728_v63  ;;  %8022 = vmatprep.subr.bf16.mxu1 %v13731_v46  ;;  %v13812_v63 = vld [vmem:[%s14955_s27 + $0x18e4] ss:$16 sps:$4 sm:$0xff]   ;;  %v13815_v46 = vld [vmem:[%s14955_s27 + $0x18ec] ss:$16 sps:$4 sm:$0xff]  }
 0x41c   : > { %7367 = vmatpush1.bf16.msra.mxu0 %v13726_v0  ;;  %8023 = vmatpush1.bf16.msra.mxu1 %v13729_v1  ;;  %v13810_v0 = vld [vmem:[%s14955_s27 + $0x18e0] ss:$16 sps:$4 sm:$0xff]   ;;  %v13813_v1 = vld [vmem:[%s14955_s27 + $0x18e8] ss:$16 sps:$4 sm:$0xff]  }
 0x41d   : > { %7368 = vmatprep.subr.bf16.mxu0 %v13734_v2  ;;  %8024 = vmatprep.subr.bf16.mxu1 %v13737_v57  ;;  %v13818_v2 = vld [vmem:[%s14955_s27 + $0x1904] ss:$16 sps:$4 sm:$0xff]   ;;  %v13821_v57 = vld [vmem:[%s14955_s27 + $0x190c] ss:$16 sps:$4 sm:$0xff]  }
 0x420   : > { %7369 = vmatpush1.bf16.msra.mxu0 %v13732_v3  ;;  %8025 = vmatpush1.bf16.msra.mxu1 %v13735_v4  ;;  %v13816_v3 = vld [vmem:[%s14955_s27 + $0x1900] ss:$16 sps:$4 sm:$0xff]   ;;  %v13819_v4 = vld [vmem:[%s14955_s27 + $0x1908] ss:$16 sps:$4 sm:$0xff]  }
 0x421   : > { %7370 = vmatprep.subr.bf16.mxu0 %v13740_v5  ;;  %8026 = vmatprep.subr.bf16.mxu1 %v13743_v58  ;;  %v13824_v5 = vld [vmem:[%s14955_s27 + $0x1924] ss:$16 sps:$4 sm:$0xff]   ;;  %v13827_v58 = vld [vmem:[%s14955_s27 + $0x192c] ss:$16 sps:$4 sm:$0xff]  }
 0x424   : > { %7371 = vmatpush1.bf16.msra.mxu0 %v13738_v7  ;;  %8027 = vmatpush1.bf16.msra.mxu1 %v13741_v9  ;;  %v13822_v7 = vld [vmem:[%s14955_s27 + $0x1920] ss:$16 sps:$4 sm:$0xff]   ;;  %v13825_v9 = vld [vmem:[%s14955_s27 + $0x1928] ss:$16 sps:$4 sm:$0xff]  }
 0x425   : > { %7372 = vmatprep.subr.bf16.mxu0 %v13746_v10  ;;  %8028 = vmatprep.subr.bf16.mxu1 %v13749_v11  ;;  %v13830_v10 = vld [vmem:[%s14955_s27 + $0x1944] ss:$16 sps:$4 sm:$0xff]   ;;  %v13833_v11 = vld [vmem:[%s14955_s27 + $0x194c] ss:$16 sps:$4 sm:$0xff]  }
 0x428   : > { %7373 = vmatpush1.bf16.msra.mxu0 %v13744_v55  ;;  %8029 = vmatpush1.bf16.msra.mxu1 %v13747_v13  ;;  %v13828_v55 = vld [vmem:[%s14955_s27 + $0x1940] ss:$16 sps:$4 sm:$0xff]   ;;  %v13831_v13 = vld [vmem:[%s14955_s27 + $0x1948] ss:$16 sps:$4 sm:$0xff]  }
 0x429   : > { %7374 = vmatprep.subr.bf16.mxu0 %v13752_v61  ;;  %8030 = vmatprep.subr.bf16.mxu1 %v13755_v15  ;;  %v13836_v61 = vld [vmem:[%s14955_s27 + $0x1964] ss:$16 sps:$4 sm:$0xff]   ;;  %v13839_v15 = vld [vmem:[%s14955_s27 + $0x196c] ss:$16 sps:$4 sm:$0xff]  }
 0x42c   : > { %7375 = vmatpush1.bf16.msra.mxu0 %v13750_v16  ;;  %8031 = vmatpush1.bf16.msra.mxu1 %v13753_v18  ;;  %v13834_v16 = vld [vmem:[%s14955_s27 + $0x1960] ss:$16 sps:$4 sm:$0xff]   ;;  %v13837_v18 = vld [vmem:[%s14955_s27 + $0x1968] ss:$16 sps:$4 sm:$0xff]  }
 0x42d   : > { %7376 = vmatprep.subr.bf16.mxu0 %v13758_v6  ;;  %8032 = vmatprep.subr.bf16.mxu1 %v13761_v53  ;;  %v13842_v6 = vld [vmem:[%s14955_s27 + $0x1984] ss:$16 sps:$4 sm:$0xff]   ;;  %v13845_v53 = vld [vmem:[%s14955_s27 + $0x198c] ss:$16 sps:$4 sm:$0xff]  }
 0x430   : > { %7377 = vmatpush1.bf16.msra.mxu0 %v13756_v20  ;;  %8033 = vmatpush1.bf16.msra.mxu1 %v13759_v8  ;;  %v13840_v20 = vld [vmem:[%s14955_s27 + $0x1980] ss:$16 sps:$4 sm:$0xff]   ;;  %v13843_v8 = vld [vmem:[%s14955_s27 + $0x1988] ss:$16 sps:$4 sm:$0xff]  }
 0x431   : > { %7378 = vmatprep.subr.bf16.mxu0 %v13764_v23  ;;  %8034 = vmatprep.subr.bf16.mxu1 %v13767_v24  ;;  %v13848_v23 = vld [vmem:[%s14955_s27 + $0x19a4] ss:$16 sps:$4 sm:$0xff]   ;;  %v13851_v24 = vld [vmem:[%s14955_s27 + $0x19ac] ss:$16 sps:$4 sm:$0xff]  }
 0x434   : > { %7379 = vmatpush1.bf16.msra.mxu0 %v13762_v28  ;;  %8035 = vmatpush1.bf16.msra.mxu1 %v13765_v14  ;;  %v13846_v28 = vld [vmem:[%s14955_s27 + $0x19a0] ss:$16 sps:$4 sm:$0xff]   ;;  %v13849_v14 = vld [vmem:[%s14955_s27 + $0x19a8] ss:$16 sps:$4 sm:$0xff]  }
 0x435   : > { %7389 = vmatprep.subr.bf16.mxu0 %v13770_v12  ;;  %8045 = vmatprep.subr.bf16.mxu1 %v13773_v30  ;;  %v13854_v12 = vld [vmem:[%s14955_s27 + $0x19c4] ss:$16 sps:$4 sm:$0xff]   ;;  %v13857_v30 = vld [vmem:[%s14955_s27 + $0x19cc] ss:$16 sps:$4 sm:$0xff]  }
 0x437   : > { %7381 = vmatmul.mubr.bf16.vlgmr.msra.gmra.mrb[0].mxu0 %v1693_v32  ;;  %8037 = vmatmul.mubr.bf16.vlgmr.msra.gmra.mrb[0].mxu1 %v1693_v32  ;;  %v13855_v32 = vld [vmem:[%s14955_s27 + $0x19c8] ss:$16 sps:$4 sm:$0xff]  }
 0x438   : > { %7390 = vmatpush1.bf16.msra.mxu0 %v13768_v21  ;;  %8046 = vmatpush1.bf16.msra.mxu1 %v13771_v33  ;;  %v13860_v21 = vld [vmem:[%s14955_s27 + $0x19e4] ss:$16 sps:$4 sm:$0xff]   ;;  %v13863_v33 = vld [vmem:[%s14955_s27 + $0x19ec] ss:$16 sps:$4 sm:$0xff]  }
 0x439   : > { %7391 = vmatprep.subr.bf16.mxu0 %v13776_v17  ;;  %8047 = vmatprep.subr.bf16.mxu1 %v13779_v34  ;;  %v13858_v17 = vld [vmem:[%s14955_s27 + $0x19e0] ss:$16 sps:$4 sm:$0xff]   ;;  %v13861_v34 = vld [vmem:[%s14955_s27 + $0x19e8] ss:$16 sps:$4 sm:$0xff]  }
 0x43a   : > { %7421 = vmatprep.mubr.bf16.mxu0 %v15895_v35  ;;  %8077 = vmatprep.mubr.bf16.mxu1 %v15895_v35 }
 0x43c   : > { %7392 = vmatpush1.bf16.msra.mxu0 %v13774_v22  ;;  %8048 = vmatpush1.bf16.msra.mxu1 %v13777_v36  ;;  %v13866_v22 = vld [vmem:[%s14955_s27 + $0x1a04] ss:$16 sps:$4 sm:$0xff]   ;;  %v13869_v36 = vld [vmem:[%s14955_s27 + $0x1a0c] ss:$16 sps:$4 sm:$0xff]  }
 0x43d   : > { %7393 = vmatprep.subr.bf16.mxu0 %v13782_v27  ;;  %8049 = vmatprep.subr.bf16.mxu1 %v13785_v37  ;;  %v15961_v27 = vrot.slane %v15880_v26, %v15031_v50  ;;  %v13864_v37 = vld [vmem:[%s14955_s27 + $0x1a00] ss:$16 sps:$4 sm:$0xff]  }
 0x43e   : > { %v13870_v26 = vld [vmem:[%s14955_s27 + $0x1a20] ss:$16 sps:$4 sm:$0xff]  }
 0x440   : > { %7394 = vmatpush1.bf16.msra.mxu0 %v13780_v38  ;;  %8050 = vmatpush1.bf16.msra.mxu1 %v13783_v29  ;;  %v13867_v38 = vld [vmem:[%s14955_s27 + $0x1a08] ss:$16 sps:$4 sm:$0xff]   ;;  %v13872_v29 = vld [vmem:[%s14955_s27 + $0x1a24] ss:$16 sps:$4 sm:$0xff]  }
 0x441   : > { %7395 = vmatprep.subr.bf16.mxu0 %v13788_v42  ;;  %8051 = vmatprep.subr.bf16.mxu1 %v13791_v43  ;;  %v13875_v42 = vld [vmem:[%s14955_s27 + $0x1a2c] ss:$16 sps:$4 sm:$0xff]   ;;  %v1743_v43 = vcombine.high %v15895_v35, %v15895_v35  ;;  %v13876_v35 = vld [vmem:[%s14955_s27 + $0x1a40] ss:$16 sps:$4 sm:$0xff]  }
 0x444   : > { %7396 = vmatpush1.bf16.msra.mxu0 %v13786_v45  ;;  %8052 = vmatpush1.bf16.msra.mxu1 %v13789_v47  ;;  %v13873_v45 = vld [vmem:[%s14955_s27 + $0x1a28] ss:$16 sps:$4 sm:$0xff]   ;;  %v13878_v47 = vld [vmem:[%s14955_s27 + $0x1a44] ss:$16 sps:$4 sm:$0xff]  }
 0x445   : > { %7397 = vmatprep.subr.bf16.mxu0 %v13794_v25  ;;  %8053 = vmatprep.subr.bf16.mxu1 %v13797_v48  ;;  %v13881_v25 = vld [vmem:[%s14955_s27 + $0x1a4c] ss:$16 sps:$4 sm:$0xff]   ;;  %v13879_v48 = vld [vmem:[%s14955_s27 + $0x1a48] ss:$16 sps:$4 sm:$0xff]  }
 0x448   : > { %7398 = vmatpush1.bf16.msra.mxu0 %v13792_v49  ;;  %8054 = vmatpush1.bf16.msra.mxu1 %v13795_v51  ;;  %v13884_v49 = vld [vmem:[%s14955_s27 + $0x1a64] ss:$16 sps:$4 sm:$0xff]   ;;  %v13887_v51 = vld [vmem:[%s14955_s27 + $0x1a6c] ss:$16 sps:$4 sm:$0xff]  }
 0x449   : > { %7399 = vmatprep.subr.bf16.mxu0 %v13800_v40  ;;  %8055 = vmatprep.subr.bf16.mxu1 %v13803_v52  ;;  %v13882_v40 = vld [vmem:[%s14955_s27 + $0x1a60] ss:$16 sps:$4 sm:$0xff]   ;;  %v13885_v52 = vld [vmem:[%s14955_s27 + $0x1a68] ss:$16 sps:$4 sm:$0xff]  }
 0x44c   : > { %7400 = vmatpush1.bf16.msra.mxu0 %v13798_v54  ;;  %8056 = vmatpush1.bf16.msra.mxu1 %v13801_v56  ;;  %v13890_v54 = vld [vmem:[%s14955_s27 + $0x1a84] ss:$16 sps:$4 sm:$0xff]   ;;  %v13893_v56 = vld [vmem:[%s14955_s27 + $0x1a8c] ss:$16 sps:$4 sm:$0xff]  }
 0x44d   : > { %7401 = vmatprep.subr.bf16.mxu0 %v13806_v41  ;;  %8057 = vmatprep.subr.bf16.mxu1 %v13809_v59  ;;  %v13888_v41 = vld [vmem:[%s14955_s27 + $0x1a80] ss:$16 sps:$4 sm:$0xff]   ;;  %v13891_v59 = vld [vmem:[%s14955_s27 + $0x1a88] ss:$16 sps:$4 sm:$0xff]  }
 0x450   : > { %7402 = vmatpush1.bf16.msra.mxu0 %v13804_v60  ;;  %8058 = vmatpush1.bf16.msra.mxu1 %v13807_v62  ;;  %v13896_v60 = vld [vmem:[%s14955_s27 + $0x1aa4] ss:$16 sps:$4 sm:$0xff]   ;;  %v13899_v62 = vld [vmem:[%s14955_s27 + $0x1aac] ss:$16 sps:$4 sm:$0xff]  }
 0x451   : > { %7403 = vmatprep.subr.bf16.mxu0 %v13812_v63  ;;  %8059 = vmatprep.subr.bf16.mxu1 %v13815_v46  ;;  %v13894_v63 = vld [vmem:[%s14955_s27 + $0x1aa0] ss:$16 sps:$4 sm:$0xff]   ;;  %v13897_v46 = vld [vmem:[%s14955_s27 + $0x1aa8] ss:$16 sps:$4 sm:$0xff]  }
 0x454   : > { %7404 = vmatpush1.bf16.msra.mxu0 %v13810_v0  ;;  %8060 = vmatpush1.bf16.msra.mxu1 %v13813_v1  ;;  %v13902_v0 = vld [vmem:[%s14955_s27 + $0x1ac4] ss:$16 sps:$4 sm:$0xff]   ;;  %v13905_v1 = vld [vmem:[%s14955_s27 + $0x1acc] ss:$16 sps:$4 sm:$0xff]  }
 0x455   : > { %7405 = vmatprep.subr.bf16.mxu0 %v13818_v2  ;;  %8061 = vmatprep.subr.bf16.mxu1 %v13821_v57  ;;  %v13900_v2 = vld [vmem:[%s14955_s27 + $0x1ac0] ss:$16 sps:$4 sm:$0xff]   ;;  %v13903_v57 = vld [vmem:[%s14955_s27 + $0x1ac8] ss:$16 sps:$4 sm:$0xff]  }
 0x458   : > { %7406 = vmatpush1.bf16.msra.mxu0 %v13816_v3  ;;  %8062 = vmatpush1.bf16.msra.mxu1 %v13819_v4  ;;  %v13908_v3 = vld [vmem:[%s14955_s27 + $0x1ae4] ss:$16 sps:$4 sm:$0xff]   ;;  %v13911_v4 = vld [vmem:[%s14955_s27 + $0x1aec] ss:$16 sps:$4 sm:$0xff]  }
 0x459   : > { %7407 = vmatprep.subr.bf16.mxu0 %v13824_v5  ;;  %8063 = vmatprep.subr.bf16.mxu1 %v13827_v58  ;;  %v13906_v5 = vld [vmem:[%s14955_s27 + $0x1ae0] ss:$16 sps:$4 sm:$0xff]   ;;  %v13909_v58 = vld [vmem:[%s14955_s27 + $0x1ae8] ss:$16 sps:$4 sm:$0xff]  }
 0x45c   : > { %7408 = vmatpush1.bf16.msra.mxu0 %v13822_v7  ;;  %8064 = vmatpush1.bf16.msra.mxu1 %v13825_v9  ;;  %v13914_v7 = vld [vmem:[%s14955_s27 + $0x1b04] ss:$16 sps:$4 sm:$0xff]   ;;  %v13917_v9 = vld [vmem:[%s14955_s27 + $0x1b0c] ss:$16 sps:$4 sm:$0xff]  }
 0x45d   : > { %7409 = vmatprep.subr.bf16.mxu0 %v13830_v10  ;;  %8065 = vmatprep.subr.bf16.mxu1 %v13833_v11  ;;  %v13912_v10 = vld [vmem:[%s14955_s27 + $0x1b00] ss:$16 sps:$4 sm:$0xff]   ;;  %v13915_v11 = vld [vmem:[%s14955_s27 + $0x1b08] ss:$16 sps:$4 sm:$0xff]  }
 0x460   : > { %7410 = vmatpush1.bf16.msra.mxu0 %v13828_v55  ;;  %8066 = vmatpush1.bf16.msra.mxu1 %v13831_v13  ;;  %v13920_v55 = vld [vmem:[%s14955_s27 + $0x1b24] ss:$16 sps:$4 sm:$0xff]   ;;  %v13923_v13 = vld [vmem:[%s14955_s27 + $0x1b2c] ss:$16 sps:$4 sm:$0xff]  }
 0x461   : > { %7411 = vmatprep.subr.bf16.mxu0 %v13836_v61  ;;  %8067 = vmatprep.subr.bf16.mxu1 %v13839_v15  ;;  %v13918_v61 = vld [vmem:[%s14955_s27 + $0x1b20] ss:$16 sps:$4 sm:$0xff]   ;;  %v13921_v15 = vld [vmem:[%s14955_s27 + $0x1b28] ss:$16 sps:$4 sm:$0xff]  }
 0x464   : > { %7412 = vmatpush1.bf16.msra.mxu0 %v13834_v16  ;;  %8068 = vmatpush1.bf16.msra.mxu1 %v13837_v18  ;;  %v13926_v16 = vld [vmem:[%s14955_s27 + $0x1b44] ss:$16 sps:$4 sm:$0xff]   ;;  %v13929_v18 = vld [vmem:[%s14955_s27 + $0x1b4c] ss:$16 sps:$4 sm:$0xff]  }
 0x465   : > { %7413 = vmatprep.subr.bf16.mxu0 %v13842_v6  ;;  %8069 = vmatprep.subr.bf16.mxu1 %v13845_v53  ;;  %v13924_v6 = vld [vmem:[%s14955_s27 + $0x1b40] ss:$16 sps:$4 sm:$0xff]   ;;  %v13927_v53 = vld [vmem:[%s14955_s27 + $0x1b48] ss:$16 sps:$4 sm:$0xff]  }
 0x468   : > { %7414 = vmatpush1.bf16.msra.mxu0 %v13840_v20  ;;  %8070 = vmatpush1.bf16.msra.mxu1 %v13843_v8  ;;  %v13932_v20 = vld [vmem:[%s14955_s27 + $0x1b64] ss:$16 sps:$4 sm:$0xff]   ;;  %v13935_v8 = vld [vmem:[%s14955_s27 + $0x1b6c] ss:$16 sps:$4 sm:$0xff]  }
 0x469   : > { %7415 = vmatprep.subr.bf16.mxu0 %v13848_v23  ;;  %8071 = vmatprep.subr.bf16.mxu1 %v13851_v24  ;;  %v13930_v23 = vld [vmem:[%s14955_s27 + $0x1b60] ss:$16 sps:$4 sm:$0xff]   ;;  %v13933_v24 = vld [vmem:[%s14955_s27 + $0x1b68] ss:$16 sps:$4 sm:$0xff]  }
 0x46c   : > { %7416 = vmatpush1.bf16.msra.mxu0 %v13846_v28  ;;  %8072 = vmatpush1.bf16.msra.mxu1 %v13849_v14  ;;  %v13938_v28 = vld [vmem:[%s14955_s27 + $0x1b84] ss:$16 sps:$4 sm:$0xff]   ;;  %v13941_v14 = vld [vmem:[%s14955_s27 + $0x1b8c] ss:$16 sps:$4 sm:$0xff]  }
 0x46d   : > { %7417 = vmatprep.subr.bf16.mxu0 %v13854_v12  ;;  %8073 = vmatprep.subr.bf16.mxu1 %v13857_v30  ;;  %v13936_v12 = vld [vmem:[%s14955_s27 + $0x1b80] ss:$16 sps:$4 sm:$0xff]   ;;  %v13939_v30 = vld [vmem:[%s14955_s27 + $0x1b88] ss:$16 sps:$4 sm:$0xff]  }
 0x470   : > { %7418 = vmatpush1.bf16.msra.mxu0 %v13852_v31  ;;  %8074 = vmatpush1.bf16.msra.mxu1 %v13855_v32  ;;  %v13944_v31 = vld [vmem:[%s14955_s27 + $0x1ba4] ss:$16 sps:$4 sm:$0xff]   ;;  %v13947_v32 = vld [vmem:[%s14955_s27 + $0x1bac] ss:$16 sps:$4 sm:$0xff]  }
 0x471   : > { %7419 = vmatprep.subr.bf16.mxu0 %v13860_v21  ;;  %8075 = vmatprep.subr.bf16.mxu1 %v13863_v33  ;;  %v13942_v21 = vld [vmem:[%s14955_s27 + $0x1ba0] ss:$16 sps:$4 sm:$0xff]   ;;  %v13945_v33 = vld [vmem:[%s14955_s27 + $0x1ba8] ss:$16 sps:$4 sm:$0xff]  }
 0x474   : > { %7420 = vmatpush1.bf16.msra.mxu0 %v13858_v17  ;;  %8076 = vmatpush1.bf16.msra.mxu1 %v13861_v34  ;;  %v13950_v17 = vld [vmem:[%s14955_s27 + $0x1bc4] ss:$16 sps:$4 sm:$0xff]   ;;  %v13953_v34 = vld [vmem:[%s14955_s27 + $0x1bcc] ss:$16 sps:$4 sm:$0xff]  }
 0x475   : > { %7430 = vmatprep.subr.bf16.mxu0 %v13866_v22  ;;  %8086 = vmatprep.subr.bf16.mxu1 %v13869_v36  ;;  %v1696_v22 = vcombine.high %v15872_v19, %v15872_v19  ;;  %v13948_v36 = vld [vmem:[%s14955_s27 + $0x1bc0] ss:$16 sps:$4 sm:$0xff]  }
 0x476   : > { %v13954_v19 = vld [vmem:[%s14955_s27 + $0x1be0] ss:$16 sps:$4 sm:$0xff]  }
 0x477   : > { %7422 = vmatmul.mubr.bf16.vlgmr.msra.gmra.mrb[0].mxu0 %v15961_v27  ;;  %8078 = vmatmul.mubr.bf16.vlgmr.msra.gmra.mrb[0].mxu1 %v15961_v27 }
 0x478   : > { %7431 = vmatpush1.bf16.msra.mxu0 %v13864_v37  ;;  %8087 = vmatpush1.bf16.msra.mxu1 %v13867_v38  ;;  %v13951_v37 = vld [vmem:[%s14955_s27 + $0x1bc8] ss:$16 sps:$4 sm:$0xff]   ;;  %v13956_v38 = vld [vmem:[%s14955_s27 + $0x1be4] ss:$16 sps:$4 sm:$0xff]  }
 0x479   : > { %7432 = vmatprep.subr.bf16.mxu0 %v13872_v29  ;;  %8088 = vmatprep.subr.bf16.mxu1 %v13875_v42  ;;  %v13959_v29 = vld [vmem:[%s14955_s27 + $0x1bec] ss:$16 sps:$4 sm:$0xff]   ;;  %v16030_v42 = vrot.slane %v1696_v22, %v15031_v50  ;;  %v14032_v22 = vld [vmem:[%s14955_s27 + $0x1d80] ss:$16 sps:$4 sm:$0xff]  }
 0x47a   : > { %7462 = vmatprep.mubr.bf16.mxu0 %v1743_v43  ;;  %8118 = vmatprep.mubr.bf16.mxu1 %v1743_v43  ;;  %v13957_v43 = vld [vmem:[%s14955_s27 + $0x1be8] ss:$16 sps:$4 sm:$0xff]  }
 0x47c   : > { %7433 = vmatpush1.bf16.msra.mxu0 %v13870_v26  ;;  %8089 = vmatpush1.bf16.msra.mxu1 %v13873_v45  ;;  %v13962_v26 = vld [vmem:[%s14955_s27 + $0x1c04] ss:$16 sps:$4 sm:$0xff]   ;;  %v13965_v45 = vld [vmem:[%s14955_s27 + $0x1c0c] ss:$16 sps:$4 sm:$0xff]  }
 0x47d   : > { %7434 = vmatprep.subr.bf16.mxu0 %v13878_v47  ;;  %8090 = vmatprep.subr.bf16.mxu1 %v13881_v25  ;;  %v1712_v47 = vcombine.high %v16030_v42, %v16030_v42  ;;  %v1741_v25 = vcombine.high %v15961_v27, %v15961_v27  ;;  %v13966_v27 = vld [vmem:[%s14955_s27 + $0x1c20] ss:$16 sps:$4 sm:$0xff]  }
 0x480   : > { %7435 = vmatpush1.bf16.msra.mxu0 %v13876_v35  ;;  %8091 = vmatpush1.bf16.msra.mxu1 %v13879_v48  ;;  %v13960_v35 = vld [vmem:[%s14955_s27 + $0x1c00] ss:$16 sps:$4 sm:$0xff]   ;;  %v13963_v48 = vld [vmem:[%s14955_s27 + $0x1c08] ss:$16 sps:$4 sm:$0xff]  }
 0x481   : > { %7436 = vmatprep.subr.bf16.mxu0 %v13884_v49  ;;  %8092 = vmatprep.subr.bf16.mxu1 %v13887_v51  ;;  %v13968_v49 = vld [vmem:[%s14955_s27 + $0x1c24] ss:$16 sps:$4 sm:$0xff]   ;;  %v13971_v51 = vld [vmem:[%s14955_s27 + $0x1c2c] ss:$16 sps:$4 sm:$0xff]  }
 0x484   : > { %7437 = vmatpush1.bf16.msra.mxu0 %v13882_v40  ;;  %8093 = vmatpush1.bf16.msra.mxu1 %v13885_v52  ;;  %v16045_v40 = vrot.slane %v1712_v47, %v15031_v50  ;;  %v13969_v52 = vld [vmem:[%s14955_s27 + $0x1c28] ss:$16 sps:$4 sm:$0xff]  }
 0x485   : > { %7438 = vmatprep.subr.bf16.mxu0 %v13890_v54  ;;  %8094 = vmatprep.subr.bf16.mxu1 %v13893_v56  ;;  %v13974_v54 = vld [vmem:[%s14955_s27 + $0x1c44] ss:$16 sps:$4 sm:$0xff]   ;;  %v13977_v56 = vld [vmem:[%s14955_s27 + $0x1c4c] ss:$16 sps:$4 sm:$0xff]   ;;  %v14047_v47 = vld [vmem:[%s14955_s27 + $0x1dc8] ss:$16 sps:$4 sm:$0xff]  }
 0x488   : > { %7439 = vmatpush1.bf16.msra.mxu0 %v13888_v41  ;;  %8095 = vmatpush1.bf16.msra.mxu1 %v13891_v59  ;;  %v13972_v41 = vld [vmem:[%s14955_s27 + $0x1c40] ss:$16 sps:$4 sm:$0xff]   ;;  %v13975_v59 = vld [vmem:[%s14955_s27 + $0x1c48] ss:$16 sps:$4 sm:$0xff]  }
 0x489   : > { %7440 = vmatprep.subr.bf16.mxu0 %v13896_v60  ;;  %8096 = vmatprep.subr.bf16.mxu1 %v13899_v62  ;;  %v13980_v60 = vld [vmem:[%s14955_s27 + $0x1c64] ss:$16 sps:$4 sm:$0xff]   ;;  %v13983_v62 = vld [vmem:[%s14955_s27 + $0x1c6c] ss:$16 sps:$4 sm:$0xff]  }
 0x48c   : > { %7441 = vmatpush1.bf16.msra.mxu0 %v13894_v63  ;;  %8097 = vmatpush1.bf16.msra.mxu1 %v13897_v46  ;;  %v13978_v63 = vld [vmem:[%s14955_s27 + $0x1c60] ss:$16 sps:$4 sm:$0xff]   ;;  %v13981_v46 = vld [vmem:[%s14955_s27 + $0x1c68] ss:$16 sps:$4 sm:$0xff]  }
 0x48d   : > { %7442 = vmatprep.subr.bf16.mxu0 %v13902_v0  ;;  %8098 = vmatprep.subr.bf16.mxu1 %v13905_v1  ;;  %v13986_v0 = vld [vmem:[%s14955_s27 + $0x1c84] ss:$16 sps:$4 sm:$0xff]   ;;  %v13989_v1 = vld [vmem:[%s14955_s27 + $0x1c8c] ss:$16 sps:$4 sm:$0xff]  }
 0x490   : > { %7443 = vmatpush1.bf16.msra.mxu0 %v13900_v2  ;;  %8099 = vmatpush1.bf16.msra.mxu1 %v13903_v57  ;;  %v13984_v2 = vld [vmem:[%s14955_s27 + $0x1c80] ss:$16 sps:$4 sm:$0xff]   ;;  %v13987_v57 = vld [vmem:[%s14955_s27 + $0x1c88] ss:$16 sps:$4 sm:$0xff]  }
 0x491   : > { %7444 = vmatprep.subr.bf16.mxu0 %v13908_v3  ;;  %8100 = vmatprep.subr.bf16.mxu1 %v13911_v4  ;;  %v13992_v3 = vld [vmem:[%s14955_s27 + $0x1ca4] ss:$16 sps:$4 sm:$0xff]   ;;  %v13995_v4 = vld [vmem:[%s14955_s27 + $0x1cac] ss:$16 sps:$4 sm:$0xff]  }
 0x494   : > { %7445 = vmatpush1.bf16.msra.mxu0 %v13906_v5  ;;  %8101 = vmatpush1.bf16.msra.mxu1 %v13909_v58  ;;  %v13990_v5 = vld [vmem:[%s14955_s27 + $0x1ca0] ss:$16 sps:$4 sm:$0xff]   ;;  %v13993_v58 = vld [vmem:[%s14955_s27 + $0x1ca8] ss:$16 sps:$4 sm:$0xff]  }
 0x495   : > { %7446 = vmatprep.subr.bf16.mxu0 %v13914_v7  ;;  %8102 = vmatprep.subr.bf16.mxu1 %v13917_v9  ;;  %v13998_v7 = vld [vmem:[%s14955_s27 + $0x1cc4] ss:$16 sps:$4 sm:$0xff]   ;;  %v14001_v9 = vld [vmem:[%s14955_s27 + $0x1ccc] ss:$16 sps:$4 sm:$0xff]  }
 0x498   : > { %7447 = vmatpush1.bf16.msra.mxu0 %v13912_v10  ;;  %8103 = vmatpush1.bf16.msra.mxu1 %v13915_v11  ;;  %v13996_v10 = vld [vmem:[%s14955_s27 + $0x1cc0] ss:$16 sps:$4 sm:$0xff]   ;;  %v13999_v11 = vld [vmem:[%s14955_s27 + $0x1cc8] ss:$16 sps:$4 sm:$0xff]  }
 0x499   : > { %7448 = vmatprep.subr.bf16.mxu0 %v13920_v55  ;;  %8104 = vmatprep.subr.bf16.mxu1 %v13923_v13  ;;  %v14004_v55 = vld [vmem:[%s14955_s27 + $0x1ce4] ss:$16 sps:$4 sm:$0xff]   ;;  %v14007_v13 = vld [vmem:[%s14955_s27 + $0x1cec] ss:$16 sps:$4 sm:$0xff]  }
 0x49c   : > { %7449 = vmatpush1.bf16.msra.mxu0 %v13918_v61  ;;  %8105 = vmatpush1.bf16.msra.mxu1 %v13921_v15  ;;  %v14002_v61 = vld [vmem:[%s14955_s27 + $0x1ce0] ss:$16 sps:$4 sm:$0xff]   ;;  %v14005_v15 = vld [vmem:[%s14955_s27 + $0x1ce8] ss:$16 sps:$4 sm:$0xff]  }
 0x49d   : > { %7450 = vmatprep.subr.bf16.mxu0 %v13926_v16  ;;  %8106 = vmatprep.subr.bf16.mxu1 %v13929_v18  ;;  %v14010_v16 = vld [vmem:[%s14955_s27 + $0x1d04] ss:$16 sps:$4 sm:$0xff]   ;;  %v14013_v18 = vld [vmem:[%s14955_s27 + $0x1d0c] ss:$16 sps:$4 sm:$0xff]  }
 0x4a0   : > { %7451 = vmatpush1.bf16.msra.mxu0 %v13924_v6  ;;  %8107 = vmatpush1.bf16.msra.mxu1 %v13927_v53  ;;  %v14008_v6 = vld [vmem:[%s14955_s27 + $0x1d00] ss:$16 sps:$4 sm:$0xff]   ;;  %v14011_v53 = vld [vmem:[%s14955_s27 + $0x1d08] ss:$16 sps:$4 sm:$0xff]  }
 0x4a1   : > { %7452 = vmatprep.subr.bf16.mxu0 %v13932_v20  ;;  %8108 = vmatprep.subr.bf16.mxu1 %v13935_v8  ;;  %v14016_v20 = vld [vmem:[%s14955_s27 + $0x1d24] ss:$16 sps:$4 sm:$0xff]   ;;  %v14019_v8 = vld [vmem:[%s14955_s27 + $0x1d2c] ss:$16 sps:$4 sm:$0xff]  }
 0x4a4   : > { %7453 = vmatpush1.bf16.msra.mxu0 %v13930_v23  ;;  %8109 = vmatpush1.bf16.msra.mxu1 %v13933_v24  ;;  %v14014_v23 = vld [vmem:[%s14955_s27 + $0x1d20] ss:$16 sps:$4 sm:$0xff]   ;;  %v14017_v24 = vld [vmem:[%s14955_s27 + $0x1d28] ss:$16 sps:$4 sm:$0xff]  }
 0x4a5   : > { %7454 = vmatprep.subr.bf16.mxu0 %v13938_v28  ;;  %8110 = vmatprep.subr.bf16.mxu1 %v13941_v14  ;;  %v14022_v28 = vld [vmem:[%s14955_s27 + $0x1d44] ss:$16 sps:$4 sm:$0xff]   ;;  %v14025_v14 = vld [vmem:[%s14955_s27 + $0x1d4c] ss:$16 sps:$4 sm:$0xff]  }
 0x4a8   : > { %7455 = vmatpush1.bf16.msra.mxu0 %v13936_v12  ;;  %8111 = vmatpush1.bf16.msra.mxu1 %v13939_v30  ;;  %v14020_v12 = vld [vmem:[%s14955_s27 + $0x1d40] ss:$16 sps:$4 sm:$0xff]   ;;  %v14023_v30 = vld [vmem:[%s14955_s27 + $0x1d48] ss:$16 sps:$4 sm:$0xff]  }
 0x4a9   : > { %7456 = vmatprep.subr.bf16.mxu0 %v13944_v31  ;;  %8112 = vmatprep.subr.bf16.mxu1 %v13947_v32  ;;  %v14028_v31 = vld [vmem:[%s14955_s27 + $0x1d64] ss:$16 sps:$4 sm:$0xff]   ;;  %v14031_v32 = vld [vmem:[%s14955_s27 + $0x1d6c] ss:$16 sps:$4 sm:$0xff]  }
 0x4ac   : > { %7457 = vmatpush1.bf16.msra.mxu0 %v13942_v21  ;;  %8113 = vmatpush1.bf16.msra.mxu1 %v13945_v33  ;;  %v14026_v21 = vld [vmem:[%s14955_s27 + $0x1d60] ss:$16 sps:$4 sm:$0xff]   ;;  %v14029_v33 = vld [vmem:[%s14955_s27 + $0x1d68] ss:$16 sps:$4 sm:$0xff]  }
 0x4ad   : > { %7458 = vmatprep.subr.bf16.mxu0 %v13950_v17  ;;  %8114 = vmatprep.subr.bf16.mxu1 %v13953_v34  ;;  %v14034_v17 = vld [vmem:[%s14955_s27 + $0x1d84] ss:$16 sps:$4 sm:$0xff]   ;;  %v14037_v34 = vld [vmem:[%s14955_s27 + $0x1d8c] ss:$16 sps:$4 sm:$0xff]  }
 0x4b0   : > { %7459 = vmatpush1.bf16.msra.mxu0 %v13948_v36  ;;  %8115 = vmatpush1.bf16.msra.mxu1 %v13951_v37  ;;  %v14035_v36 = vld [vmem:[%s14955_s27 + $0x1d88] ss:$16 sps:$4 sm:$0xff]   ;;  %v14040_v37 = vld [vmem:[%s14955_s27 + $0x1da4] ss:$16 sps:$4 sm:$0xff]  }
 0x4b1   : > { %7460 = vmatprep.subr.bf16.mxu0 %v13956_v38  ;;  %8116 = vmatprep.subr.bf16.mxu1 %v13959_v29  ;;  %v14043_v38 = vld [vmem:[%s14955_s27 + $0x1dac] ss:$16 sps:$4 sm:$0xff]   ;;  %v14038_v29 = vld [vmem:[%s14955_s27 + $0x1da0] ss:$16 sps:$4 sm:$0xff]  }
 0x4b4   : > { %7461 = vmatpush1.bf16.msra.mxu0 %v13954_v19  ;;  %8117 = vmatpush1.bf16.msra.mxu1 %v13957_v43  ;;  %v14041_v19 = vld [vmem:[%s14955_s27 + $0x1da8] ss:$16 sps:$4 sm:$0xff]   ;;  %v14046_v43 = vld [vmem:[%s14955_s27 + $0x1dc4] ss:$16 sps:$4 sm:$0xff]  }
 0x4b5   : > { %7471 = vmatprep.subr.bf16.mxu0 %v13962_v26  ;;  %8127 = vmatprep.subr.bf16.mxu1 %v13965_v45  ;;  %v14049_v26 = vld [vmem:[%s14955_s27 + $0x1dcc] ss:$16 sps:$4 sm:$0xff]   ;;  %v14044_v45 = vld [vmem:[%s14955_s27 + $0x1dc0] ss:$16 sps:$4 sm:$0xff]  }
 0x4b7   : > { %7463 = vmatmul.mubr.bf16.vlgmr.msra.gmra.mrb[0].mxu0 %v1741_v25  ;;  %8119 = vmatmul.mubr.bf16.vlgmr.msra.gmra.mrb[0].mxu1 %v1741_v25  ;;  %v14052_v25 = vld [vmem:[%s14955_s27 + $0x1de4] ss:$16 sps:$4 sm:$0xff]  }
 0x4b8   : > { %7472 = vmatpush1.bf16.msra.mxu0 %v13960_v35  ;;  %8128 = vmatpush1.bf16.msra.mxu1 %v13963_v48  ;;  %v14055_v35 = vld [vmem:[%s14955_s27 + $0x1dec] ss:$16 sps:$4 sm:$0xff]   ;;  %v14050_v48 = vld [vmem:[%s14955_s27 + $0x1de0] ss:$16 sps:$4 sm:$0xff]  }
 0x4b9   : > { %7473 = vmatprep.subr.bf16.mxu0 %v13968_v49  ;;  %8129 = vmatprep.subr.bf16.mxu1 %v13971_v51  ;;  %v14053_v49 = vld [vmem:[%s14955_s27 + $0x1de8] ss:$16 sps:$4 sm:$0xff]   ;;  %v14059_v51 = vld [vmem:[%s14955_s27 + $0x1e04] ss:$16 sps:$4 sm:$0xff]  }
 0x4ba   : > { %7503 = vmatprep.mubr.bf16.mxu0 %v16045_v40  ;;  %8159 = vmatprep.mubr.bf16.mxu1 %v16045_v40 }
 0x4bc   : > { %7474 = vmatpush1.bf16.msra.mxu0 %v13966_v27  ;;  %8130 = vmatpush1.bf16.msra.mxu1 %v13969_v52  ;;  %v14062_v27 = vld [vmem:[%s14955_s27 + $0x1e0c] ss:$16 sps:$4 sm:$0xff]   ;;  %v16111_v52 = vrot.slane %v16030_v42, %v15031_v50  ;;  %v14063_v50 = vld [vmem:[%s14955_s27 + $0x1e20] ss:$16 sps:$4 sm:$0xff]   ;;  %v14066_v42 = vld [vmem:[%s14955_s27 + $0x1e28] ss:$16 sps:$4 sm:$0xff]  }
 0x4bd   : > { %7475 = vmatprep.subr.bf16.mxu0 %v13974_v54  ;;  %8131 = vmatprep.subr.bf16.mxu1 %v13977_v56  ;;  %v14057_v54 = vld [vmem:[%s14955_s27 + $0x1e00] ss:$16 sps:$4 sm:$0xff]   ;;  %v14060_v56 = vld [vmem:[%s14955_s27 + $0x1e08] ss:$16 sps:$4 sm:$0xff]  }
 0x4c0   : > { %7476 = vmatpush1.bf16.msra.mxu0 %v13972_v41  ;;  %8132 = vmatpush1.bf16.msra.mxu1 %v13975_v59  ;;  %v14065_v41 = vld [vmem:[%s14955_s27 + $0x1e24] ss:$16 sps:$4 sm:$0xff]   ;;  %v14068_v59 = vld [vmem:[%s14955_s27 + $0x1e2c] ss:$16 sps:$4 sm:$0xff]  }
 0x4c1   : > { %7477 = vmatprep.subr.bf16.mxu0 %v13980_v60  ;;  %8133 = vmatprep.subr.bf16.mxu1 %v13983_v62  ;;  %v1744_v60 = vcombine.high %v16045_v40, %v16045_v40  ;;  %v14071_v62 = vld [vmem:[%s14955_s27 + $0x1e44] ss:$16 sps:$4 sm:$0xff]   ;;  %v14069_v40 = vld [vmem:[%s14955_s27 + $0x1e40] ss:$16 sps:$4 sm:$0xff]  }
 0x4c4   : > { %7478 = vmatpush1.bf16.msra.mxu0 %v13978_v63  ;;  %8134 = vmatpush1.bf16.msra.mxu1 %v13981_v46  ;;  %v14074_v63 = vld [vmem:[%s14955_s27 + $0x1e4c] ss:$16 sps:$4 sm:$0xff]   ;;  %v14072_v46 = vld [vmem:[%s14955_s27 + $0x1e48] ss:$16 sps:$4 sm:$0xff]  }
 0x4c5   : > { %7479 = vmatprep.subr.bf16.mxu0 %v13986_v0  ;;  %8135 = vmatprep.subr.bf16.mxu1 %v13989_v1  ;;  %v14077_v0 = vld [vmem:[%s14955_s27 + $0x1e64] ss:$16 sps:$4 sm:$0xff]   ;;  %v14080_v1 = vld [vmem:[%s14955_s27 + $0x1e6c] ss:$16 sps:$4 sm:$0xff]  }
 0x4c8   : > { %7480 = vmatpush1.bf16.msra.mxu0 %v13984_v2  ;;  %8136 = vmatpush1.bf16.msra.mxu1 %v13987_v57  ;;  %v14075_v2 = vld [vmem:[%s14955_s27 + $0x1e60] ss:$16 sps:$4 sm:$0xff]   ;;  %v14078_v57 = vld [vmem:[%s14955_s27 + $0x1e68] ss:$16 sps:$4 sm:$0xff]  }
 0x4c9   : > { %7481 = vmatprep.subr.bf16.mxu0 %v13992_v3  ;;  %8137 = vmatprep.subr.bf16.mxu1 %v13995_v4  ;;  %v14083_v3 = vld [vmem:[%s14955_s27 + $0x1e84] ss:$16 sps:$4 sm:$0xff]   ;;  %v14086_v4 = vld [vmem:[%s14955_s27 + $0x1e8c] ss:$16 sps:$4 sm:$0xff]  }
 0x4cc   : > { %7482 = vmatpush1.bf16.msra.mxu0 %v13990_v5  ;;  %8138 = vmatpush1.bf16.msra.mxu1 %v13993_v58  ;;  %v14081_v5 = vld [vmem:[%s14955_s27 + $0x1e80] ss:$16 sps:$4 sm:$0xff]   ;;  %v14084_v58 = vld [vmem:[%s14955_s27 + $0x1e88] ss:$16 sps:$4 sm:$0xff]  }
 0x4cd   : > { %7483 = vmatprep.subr.bf16.mxu0 %v13998_v7  ;;  %8139 = vmatprep.subr.bf16.mxu1 %v14001_v9  ;;  %v14089_v7 = vld [vmem:[%s14955_s27 + $0x1ea4] ss:$16 sps:$4 sm:$0xff]   ;;  %v14092_v9 = vld [vmem:[%s14955_s27 + $0x1eac] ss:$16 sps:$4 sm:$0xff]  }
 0x4d0   : > { %7484 = vmatpush1.bf16.msra.mxu0 %v13996_v10  ;;  %8140 = vmatpush1.bf16.msra.mxu1 %v13999_v11  ;;  %v14087_v10 = vld [vmem:[%s14955_s27 + $0x1ea0] ss:$16 sps:$4 sm:$0xff]   ;;  %v14090_v11 = vld [vmem:[%s14955_s27 + $0x1ea8] ss:$16 sps:$4 sm:$0xff]  }
 0x4d1   : > { %7485 = vmatprep.subr.bf16.mxu0 %v14004_v55  ;;  %8141 = vmatprep.subr.bf16.mxu1 %v14007_v13  ;;  %v14095_v55 = vld [vmem:[%s14955_s27 + $0x1ec4] ss:$16 sps:$4 sm:$0xff]   ;;  %v14098_v13 = vld [vmem:[%s14955_s27 + $0x1ecc] ss:$16 sps:$4 sm:$0xff]  }
 0x4d4   : > { %7486 = vmatpush1.bf16.msra.mxu0 %v14002_v61  ;;  %8142 = vmatpush1.bf16.msra.mxu1 %v14005_v15  ;;  %v14093_v61 = vld [vmem:[%s14955_s27 + $0x1ec0] ss:$16 sps:$4 sm:$0xff]   ;;  %v14096_v15 = vld [vmem:[%s14955_s27 + $0x1ec8] ss:$16 sps:$4 sm:$0xff]  }
 0x4d5   : > { %7487 = vmatprep.subr.bf16.mxu0 %v14010_v16  ;;  %8143 = vmatprep.subr.bf16.mxu1 %v14013_v18  ;;  %v14101_v16 = vld [vmem:[%s14955_s27 + $0x1ee4] ss:$16 sps:$4 sm:$0xff]   ;;  %v14104_v18 = vld [vmem:[%s14955_s27 + $0x1eec] ss:$16 sps:$4 sm:$0xff]  }
 0x4d8   : > { %7488 = vmatpush1.bf16.msra.mxu0 %v14008_v6  ;;  %8144 = vmatpush1.bf16.msra.mxu1 %v14011_v53  ;;  %v14099_v6 = vld [vmem:[%s14955_s27 + $0x1ee0] ss:$16 sps:$4 sm:$0xff]   ;;  %v14102_v53 = vld [vmem:[%s14955_s27 + $0x1ee8] ss:$16 sps:$4 sm:$0xff]  }
 0x4d9   : > { %7489 = vmatprep.subr.bf16.mxu0 %v14016_v20  ;;  %8145 = vmatprep.subr.bf16.mxu1 %v14019_v8  ;;  %v14107_v20 = vld [vmem:[%s14955_s27 + $0x1f04] ss:$16 sps:$4 sm:$0xff]   ;;  %v14110_v8 = vld [vmem:[%s14955_s27 + $0x1f0c] ss:$16 sps:$4 sm:$0xff]  }
 0x4dc   : > { %7490 = vmatpush1.bf16.msra.mxu0 %v14014_v23  ;;  %8146 = vmatpush1.bf16.msra.mxu1 %v14017_v24  ;;  %v14105_v23 = vld [vmem:[%s14955_s27 + $0x1f00] ss:$16 sps:$4 sm:$0xff]   ;;  %v14108_v24 = vld [vmem:[%s14955_s27 + $0x1f08] ss:$16 sps:$4 sm:$0xff]  }
 0x4dd   : > { %7491 = vmatprep.subr.bf16.mxu0 %v14022_v28  ;;  %8147 = vmatprep.subr.bf16.mxu1 %v14025_v14  ;;  %v14113_v28 = vld [vmem:[%s14955_s27 + $0x1f24] ss:$16 sps:$4 sm:$0xff]   ;;  %v14116_v14 = vld [vmem:[%s14955_s27 + $0x1f2c] ss:$16 sps:$4 sm:$0xff]  }
 0x4e0   : > { %7492 = vmatpush1.bf16.msra.mxu0 %v14020_v12  ;;  %8148 = vmatpush1.bf16.msra.mxu1 %v14023_v30  ;;  %v14111_v12 = vld [vmem:[%s14955_s27 + $0x1f20] ss:$16 sps:$4 sm:$0xff]   ;;  %v14114_v30 = vld [vmem:[%s14955_s27 + $0x1f28] ss:$16 sps:$4 sm:$0xff]  }
 0x4e1   : > { %7493 = vmatprep.subr.bf16.mxu0 %v14028_v31  ;;  %8149 = vmatprep.subr.bf16.mxu1 %v14031_v32  ;;  %v14119_v31 = vld [vmem:[%s14955_s27 + $0x1f44] ss:$16 sps:$4 sm:$0xff]   ;;  %v14122_v32 = vld [vmem:[%s14955_s27 + $0x1f4c] ss:$16 sps:$4 sm:$0xff]  }
 0x4e4   : > { %7494 = vmatpush1.bf16.msra.mxu0 %v14026_v21  ;;  %8150 = vmatpush1.bf16.msra.mxu1 %v14029_v33  ;;  %v14117_v21 = vld [vmem:[%s14955_s27 + $0x1f40] ss:$16 sps:$4 sm:$0xff]   ;;  %v14120_v33 = vld [vmem:[%s14955_s27 + $0x1f48] ss:$16 sps:$4 sm:$0xff]  }
 0x4e5   : > { %7495 = vmatprep.subr.bf16.mxu0 %v14034_v17  ;;  %8151 = vmatprep.subr.bf16.mxu1 %v14037_v34  ;;  %v14125_v17 = vld [vmem:[%s14955_s27 + $0x1f64] ss:$16 sps:$4 sm:$0xff]   ;;  %v14128_v34 = vld [vmem:[%s14955_s27 + $0x1f6c] ss:$16 sps:$4 sm:$0xff]  }
 0x4e8   : > { %7496 = vmatpush1.bf16.msra.mxu0 %v14032_v22  ;;  %8152 = vmatpush1.bf16.msra.mxu1 %v14035_v36  ;;  %v14123_v22 = vld [vmem:[%s14955_s27 + $0x1f60] ss:$16 sps:$4 sm:$0xff]   ;;  %v14126_v36 = vld [vmem:[%s14955_s27 + $0x1f68] ss:$16 sps:$4 sm:$0xff]  }
 0x4e9   : > { %7497 = vmatprep.subr.bf16.mxu0 %v14040_v37  ;;  %8153 = vmatprep.subr.bf16.mxu1 %v14043_v38  ;;  %v14131_v37 = vld [vmem:[%s14955_s27 + $0x1f84] ss:$16 sps:$4 sm:$0xff]   ;;  %v14134_v38 = vld [vmem:[%s14955_s27 + $0x1f8c] ss:$16 sps:$4 sm:$0xff]  }
 0x4ec   : > { %7498 = vmatpush1.bf16.msra.mxu0 %v14038_v29  ;;  %8154 = vmatpush1.bf16.msra.mxu1 %v14041_v19  ;;  %v14129_v29 = vld [vmem:[%s14955_s27 + $0x1f80] ss:$16 sps:$4 sm:$0xff]   ;;  %v14132_v19 = vld [vmem:[%s14955_s27 + $0x1f88] ss:$16 sps:$4 sm:$0xff]  }
 0x4ed   : > { %7499 = vmatprep.subr.bf16.mxu0 %v14046_v43  ;;  %8155 = vmatprep.subr.bf16.mxu1 %v14049_v26  ;;  %v14137_v43 = vld [vmem:[%s14955_s27 + $0x1fa4] ss:$16 sps:$4 sm:$0xff]   ;;  %v14140_v26 = vld [vmem:[%s14955_s27 + $0x1fac] ss:$16 sps:$4 sm:$0xff]  }
 0x4f0   : > { %7500 = vmatpush1.bf16.msra.mxu0 %v14044_v45  ;;  %8156 = vmatpush1.bf16.msra.mxu1 %v14047_v47  ;;  %v14135_v45 = vld [vmem:[%s14955_s27 + $0x1fa0] ss:$16 sps:$4 sm:$0xff]   ;;  %v14138_v47 = vld [vmem:[%s14955_s27 + $0x1fa8] ss:$16 sps:$4 sm:$0xff]  }
 0x4f1   : > { %7501 = vmatprep.subr.bf16.mxu0 %v14052_v25  ;;  %8157 = vmatprep.subr.bf16.mxu1 %v14055_v35  ;;  %v14143_v25 = vld [vmem:[%s14955_s27 + $0x1fc4] ss:$16 sps:$4 sm:$0xff]   ;;  %v14146_v35 = vld [vmem:[%s14955_s27 + $0x1fcc] ss:$16 sps:$4 sm:$0xff]  }
 0x4f4   : > { %7502 = vmatpush1.bf16.msra.mxu0 %v14050_v48  ;;  %8158 = vmatpush1.bf16.msra.mxu1 %v14053_v49  ;;  %v14141_v48 = vld [vmem:[%s14955_s27 + $0x1fc0] ss:$16 sps:$4 sm:$0xff]   ;;  %v14144_v49 = vld [vmem:[%s14955_s27 + $0x1fc8] ss:$16 sps:$4 sm:$0xff]  }
 0x4f5   : > { %7512 = vmatprep.subr.bf16.mxu0 %v14059_v51  ;;  %8168 = vmatprep.subr.bf16.mxu1 %v14062_v27  ;;  %v14149_v51 = vld [vmem:[%s14955_s27 + $0x1fe4] ss:$16 sps:$4 sm:$0xff]   ;;  %v14152_v27 = vld [vmem:[%s14955_s27 + $0x1fec] ss:$16 sps:$4 sm:$0xff]  }
 0x4f7   : > { %7504 = vmatmul.mubr.bf16.vlgmr.msra.gmra.mrb[0].mxu0 %v16111_v52  ;;  %8160 = vmatmul.mubr.bf16.vlgmr.msra.gmra.mrb[0].mxu1 %v16111_v52 }
 0x4f8   : > { %7513 = vmatpush1.bf16.msra.mxu0 %v14057_v54  ;;  %8169 = vmatpush1.bf16.msra.mxu1 %v14060_v56  ;;  %v14147_v54 = vld [vmem:[%s14955_s27 + $0x1fe0] ss:$16 sps:$4 sm:$0xff]   ;;  %v14150_v56 = vld [vmem:[%s14955_s27 + $0x1fe8] ss:$16 sps:$4 sm:$0xff]  }
 0x4f9   : > { %7514 = vmatprep.subr.bf16.mxu0 %v14065_v41  ;;  %8170 = vmatprep.subr.bf16.mxu1 %v14068_v59  ;;  %v1742_v41 = vcombine.high %v16111_v52, %v16111_v52  ;;  %v14574_v59 = vmov 1983009808  }
 0x4fa   : > { %7544 = vmatprep.mubr.bf16.mxu0 %v1744_v60  ;;  %8200 = vmatprep.mubr.bf16.mxu1 %v1744_v60  ;;  %v8216_v60 = vunpack.c.l.s4 %v14574_v59 }
 0x4fc   : > { %7515 = vmatpush1.bf16.msra.mxu0 %v14063_v50  ;;  %8171 = vmatpush1.bf16.msra.mxu1 %v14066_v42  ;;  %v8217_v50 = vunpack.c.0.s8 %v8216_v60  ;;  %v8527_v60 = vld [vmem:[#allocation11 + $0x190] sm:$0xff] (!%p11547_p2) }
 0x4fd   : > { %7516 = vmatprep.subr.bf16.mxu0 %v14071_v62  ;;  %8172 = vmatprep.subr.bf16.mxu1 %v14074_v63 }
 0x4fe   : > { %v16182_v63 = vsub.s32 %v8217_v50, %v15023_v44  ;;  %v8535_v50 = vld [vmem:[#allocation11 + $0x1d0] sm:$0xff] (!%p11547_p2) }
 0x500   : > { %7517 = vmatpush1.bf16.msra.mxu0 %v14069_v40  ;;  %8173 = vmatpush1.bf16.msra.mxu1 %v14072_v46 }
 0x501   : > { %7518 = vmatprep.subr.bf16.mxu0 %v14077_v0  ;;  %8174 = vmatprep.subr.bf16.mxu1 %v14080_v1 }
 0x504   : > { %7519 = vmatpush1.bf16.msra.mxu0 %v14075_v2  ;;  %8175 = vmatpush1.bf16.msra.mxu1 %v14078_v57 }
 0x505   : > { %7520 = vmatprep.subr.bf16.mxu0 %v14083_v3  ;;  %8176 = vmatprep.subr.bf16.mxu1 %v14086_v4 }
 0x508   : > { %7521 = vmatpush1.bf16.msra.mxu0 %v14081_v5  ;;  %8177 = vmatpush1.bf16.msra.mxu1 %v14084_v58  ;;  %v516_v58 = vld [vmem:[#allocation2] sm:$0xff] }
 0x509   : > { %7522 = vmatprep.subr.bf16.mxu0 %v14089_v7  ;;  %8178 = vmatprep.subr.bf16.mxu1 %v14092_v9 }
 0x50c   : > { %7523 = vmatpush1.bf16.msra.mxu0 %v14087_v10  ;;  %8179 = vmatpush1.bf16.msra.mxu1 %v14090_v11  ;;  %v8478_v10 = vld [vmem:[#allocation11 + $0x8] sm:$0xff] (!%p11547_p2) }
 0x50d   : > { %7524 = vmatprep.subr.bf16.mxu0 %v14095_v55  ;;  %8180 = vmatprep.subr.bf16.mxu1 %v14098_v13  ;;  %v8486_v11 = vld [vmem:[#allocation11 + $0x48] sm:$0xff] (!%p11547_p2)  ;;  %v8480_v55 = vld [vmem:[#allocation11 + $0x18] sm:$0xff] (!%p11547_p2) }
 0x50e   : > { %v11696_v13 = vpack.c.bf16 (!%p11547_p2), %v8486_v11, %v8478_v10  ;;  %v8568_v10 = vld [vmem:[#allocation11 + $0x2d8] sm:$0xff] (!%p11547_p2) }
 0x510   : > { %7525 = vmatpush1.bf16.msra.mxu0 %v14093_v61  ;;  %8181 = vmatpush1.bf16.msra.mxu1 %v14096_v15  ;;  %v8488_v61 = vld [vmem:[#allocation11 + $0x58] sm:$0xff] (!%p11547_p2)  ;;  %v8477_v15 = vld [vmem:[#allocation11] sm:$0xff] (!%p11547_p2) }
 0x511   : > { %7526 = vmatprep.subr.bf16.mxu0 %v14101_v16  ;;  %8182 = vmatprep.subr.bf16.mxu1 %v14104_v18  ;;  %v8485_v16 = vld [vmem:[#allocation11 + $0x40] sm:$0xff] (!%p11547_p2)  ;;  %v11824_v18 = vpack.c.bf16 (!%p11547_p2), %v8488_v61, %v8480_v55 }
 0x512   : > { %v8557_v61 = vld [vmem:[#allocation11 + $0x280] sm:$0xff] (!%p11547_p2) }
 0x514   : > { %7527 = vmatpush1.bf16.msra.mxu0 %v14099_v6  ;;  %8183 = vmatpush1.bf16.msra.mxu1 %v14102_v53  ;;  %v11698_v6 = vpack.c.bf16 (!%p11547_p2), %v8485_v16, %v8477_v15  ;;  %v8479_v53 = vld [vmem:[#allocation11 + $0x10] sm:$0xff] (!%p11547_p2)  ;;  %v8565_v15 = vld [vmem:[#allocation11 + $0x2c0] sm:$0xff] (!%p11547_p2) }
 0x515   : > { %7528 = vmatprep.subr.bf16.mxu0 %v14107_v20  ;;  %8184 = vmatprep.subr.bf16.mxu1 %v14110_v8  ;;  %v8487_v20 = vld [vmem:[#allocation11 + $0x50] sm:$0xff] (!%p11547_p2)  ;;  %v8494_v8 = vld [vmem:[#allocation11 + $0x88] sm:$0xff] (!%p11547_p2) }
 0x516   : > { %v8559_v16 = vld [vmem:[#allocation11 + $0x290] sm:$0xff] (!%p11547_p2) }
 0x518   : > { %7529 = vmatpush1.bf16.msra.mxu0 %v14105_v23  ;;  %8185 = vmatpush1.bf16.msra.mxu1 %v14108_v24  ;;  %v11826_v23 = vpack.c.bf16 (!%p11547_p2), %v8487_v20, %v8479_v53  ;;  %v8502_v24 = vld [vmem:[#allocation11 + $0xc8] sm:$0xff] (!%p11547_p2) }
 0x519   : > { %7530 = vmatprep.subr.bf16.mxu0 %v14113_v28  ;;  %8186 = vmatprep.subr.bf16.mxu1 %v14116_v14  ;;  %v8496_v28 = vld [vmem:[#allocation11 + $0x98] sm:$0xff] (!%p11547_p2)  ;;  %v8574_v53 = vld [vmem:[#allocation11 + $0x308] sm:$0xff] (!%p11547_p2) }
 0x51a   : > { %v8504_v14 = vld [vmem:[#allocation11 + $0xd8] sm:$0xff] (!%p11547_p2)  ;;  %v8582_v20 = vld [vmem:[#allocation11 + $0x348] sm:$0xff] (!%p11547_p2) }
 0x51c   : > { %7531 = vmatpush1.bf16.msra.mxu0 %v14111_v12  ;;  %8187 = vmatpush1.bf16.msra.mxu1 %v14114_v30  ;;  %v11700_v12 = vpack.c.bf16 (!%p11547_p2), %v8502_v24, %v8494_v8  ;;  %v11828_v30 = vpack.c.bf16 (!%p11547_p2), %v8504_v14, %v8496_v28  ;;  %v8576_v8 = vld [vmem:[#allocation11 + $0x318] sm:$0xff] (!%p11547_p2)  ;;  %v11718_v24 = vpack.c.bf16 (!%p11547_p2), %v8565_v15, %v8557_v61  ;;  %v8645_v61 = vld [vmem:[#allocation11 + $0x540] sm:$0xff] (!%p11547_p2)  ;;  %v8639_v15 = vld [vmem:[#allocation11 + $0x510] sm:$0xff] (!%p11547_p2) }
 0x51d   : > { %7532 = vmatprep.subr.bf16.mxu0 %v14119_v31  ;;  %8188 = vmatprep.subr.bf16.mxu1 %v14122_v32  ;;  %v8493_v31 = vld [vmem:[#allocation11 + $0x80] sm:$0xff] (!%p11547_p2)  ;;  %v11720_v14 = vpack.c.bf16 (!%p11547_p2), %v8582_v20, %v8574_v53  ;;  %v8662_v53 = vld [vmem:[#allocation11 + $0x5c8] sm:$0xff] (!%p11547_p2)  ;;  %v8656_v20 = vld [vmem:[#allocation11 + $0x598] sm:$0xff] (!%p11547_p2) }
 0x51e   : > { %v8501_v32 = vld [vmem:[#allocation11 + $0xc0] sm:$0xff] (!%p11547_p2) }
 0x520   : > { %7533 = vmatpush1.bf16.msra.mxu0 %v14117_v21  ;;  %8189 = vmatpush1.bf16.msra.mxu1 %v14120_v33  ;;  %v8495_v21 = vld [vmem:[#allocation11 + $0x90] sm:$0xff] (!%p11547_p2)  ;;  %v11702_v33 = vpack.c.bf16 (!%p11547_p2), %v8501_v32, %v8493_v31 }
 0x521   : > { %7534 = vmatprep.subr.bf16.mxu0 %v14125_v17  ;;  %8190 = vmatprep.subr.bf16.mxu1 %v14128_v34  ;;  %v8503_v17 = vld [vmem:[#allocation11 + $0xd0] sm:$0xff] (!%p11547_p2)  ;;  %v8510_v34 = vld [vmem:[#allocation11 + $0x108] sm:$0xff] (!%p11547_p2) }
 0x522   : > { %v8575_v31 = vld [vmem:[#allocation11 + $0x310] sm:$0xff] (!%p11547_p2) }
 0x524   : > { %7535 = vmatpush1.bf16.msra.mxu0 %v14123_v22  ;;  %8191 = vmatpush1.bf16.msra.mxu1 %v14126_v36  ;;  %v8518_v22 = vld [vmem:[#allocation11 + $0x148] sm:$0xff] (!%p11547_p2)  ;;  %v11830_v36 = vpack.c.bf16 (!%p11547_p2), %v8503_v17, %v8495_v21  ;;  %v8583_v21 = vld [vmem:[#allocation11 + $0x350] sm:$0xff] (!%p11547_p2) }
 0x525   : > { %7536 = vmatprep.subr.bf16.mxu0 %v14131_v37  ;;  %8192 = vmatprep.subr.bf16.mxu1 %v14134_v38  ;;  %v11704_v37 = vpack.c.bf16 (!%p11547_p2), %v8518_v22, %v8510_v34  ;;  %v8512_v38 = vld [vmem:[#allocation11 + $0x118] sm:$0xff] (!%p11547_p2)  ;;  %v8598_v17 = vld [vmem:[#allocation11 + $0x3c8] sm:$0xff] (!%p11547_p2) }
 0x526   : > { %v8592_v34 = vld [vmem:[#allocation11 + $0x398] sm:$0xff] (!%p11547_p2) }
 0x527   : > { %v8600_v22 = vld [vmem:[#allocation11 + $0x3d8] sm:$0xff] (!%p11547_p2) }
 0x528   : > { %7537 = vmatpush1.bf16.msra.mxu0 %v14129_v29  ;;  %8193 = vmatpush1.bf16.msra.mxu1 %v14132_v19  ;;  %v8520_v29 = vld [vmem:[#allocation11 + $0x158] sm:$0xff] (!%p11547_p2)  ;;  %v8509_v19 = vld [vmem:[#allocation11 + $0x100] sm:$0xff] (!%p11547_p2) }
 0x529   : > { %7538 = vmatprep.subr.bf16.mxu0 %v14137_v43  ;;  %8194 = vmatprep.subr.bf16.mxu1 %v14140_v26  ;;  %v11832_v43 = vpack.c.bf16 (!%p11547_p2), %v8520_v29, %v8512_v38  ;;  %v8517_v26 = vld [vmem:[#allocation11 + $0x140] sm:$0xff] (!%p11547_p2) }
 0x52a   : > { %v8589_v29 = vld [vmem:[#allocation11 + $0x380] sm:$0xff] (!%p11547_p2) }
 0x52c   : > { %7539 = vmatpush1.bf16.msra.mxu0 %v14135_v45  ;;  %8195 = vmatpush1.bf16.msra.mxu1 %v14138_v47  ;;  %v8511_v45 = vld [vmem:[#allocation11 + $0x110] sm:$0xff] (!%p11547_p2) }
 0x52d   : > { %7540 = vmatprep.subr.bf16.mxu0 %v14143_v25  ;;  %8196 = vmatprep.subr.bf16.mxu1 %v14146_v35  ;;  %v8519_v47 = vld [vmem:[#allocation11 + $0x150] sm:$0xff] (!%p11547_p2)  ;;  %v11706_v25 = vpack.c.bf16 (!%p11547_p2), %v8517_v26, %v8509_v19  ;;  %v8526_v35 = vld [vmem:[#allocation11 + $0x188] sm:$0xff] (!%p11547_p2)  ;;  %v8597_v19 = vld [vmem:[#allocation11 + $0x3c0] sm:$0xff] (!%p11547_p2)  ;;  %v11852_v26 = vpack.c.bf16 (!%p11547_p2), %v8600_v22, %v8592_v34 }
 0x52e   : > { %v8672_v34 = vld [vmem:[#allocation11 + $0x618] sm:$0xff] (!%p11547_p2) }
 0x52f   : > { %v8680_v22 = vld [vmem:[#allocation11 + $0x658] sm:$0xff] (!%p11547_p2) }
 0x530   : > { %7541 = vmatpush1.bf16.msra.mxu0 %v14141_v48  ;;  %8197 = vmatpush1.bf16.msra.mxu1 %v14144_v49  ;;  %v8534_v48 = vld [vmem:[#allocation11 + $0x1c8] sm:$0xff] (!%p11547_p2)  ;;  %v8528_v49 = vld [vmem:[#allocation11 + $0x198] sm:$0xff] (!%p11547_p2) }
 0x531   : > { %7542 = vmatprep.subr.bf16.mxu0 %v14149_v51  ;;  %8198 = vmatprep.subr.bf16.mxu1 %v14152_v27  ;;  %v11834_v51 = vpack.c.bf16 (!%p11547_p2), %v8519_v47, %v8511_v45  ;;  %v11708_v27 = vpack.c.bf16 (!%p11547_p2), %v8534_v48, %v8526_v35  ;;  %v8599_v45 = vld [vmem:[#allocation11 + $0x3d0] sm:$0xff] (!%p11547_p2)  ;;  %v8606_v47 = vld [vmem:[#allocation11 + $0x408] sm:$0xff] (!%p11547_p2)  ;;  %v8608_v35 = vld [vmem:[#allocation11 + $0x418] sm:$0xff] (!%p11547_p2) }
 0x532   : > { %v8616_v48 = vld [vmem:[#allocation11 + $0x458] sm:$0xff] (!%p11547_p2) }
 0x534   : > { %7543 = vmatpush1.bf16.msra.mxu0 %v14147_v54  ;;  %8199 = vmatpush1.bf16.msra.mxu1 %v14150_v56  ;;  %v8536_v54 = vld [vmem:[#allocation11 + $0x1d8] sm:$0xff] (!%p11547_p2)  ;;  %v8525_v56 = vld [vmem:[#allocation11 + $0x180] sm:$0xff] (!%p11547_p2) }
 0x535   : > { %11697 = vmatprep.subr.bf16.mxu0 (!%p11547_p2), %v11696_v13  ;;  %11825 = vmatprep.subr.bf16.mxu1 (!%p11547_p2), %v11824_v18  ;;  %v11836_v59 = vpack.c.bf16 (!%p11547_p2), %v8536_v54, %v8528_v49  ;;  %v11726_v49 = vpack.c.bf16 (!%p11547_p2), %v8597_v19, %v8589_v29  ;;  %v8605_v54 = vld [vmem:[#allocation11 + $0x400] sm:$0xff] (!%p11547_p2) }
 0x536   : > { %v8669_v19 = vld [vmem:[#allocation11 + $0x600] sm:$0xff] (!%p11547_p2) }
 0x537   : > { %7545 = vmatmul.mubr.bf16.vlgmr.msra.gmra.mrb[0].mxu0 %v1742_v41  ;;  %8201 = vmatmul.mubr.bf16.vlgmr.msra.gmra.mrb[0].mxu1 %v1742_v41  ;;  %v8533_v41 = vld [vmem:[#allocation11 + $0x1c0] sm:$0xff] (!%p11547_p2) }
 0x538   : > { %11699 = vmatpush1.bf16.msra.mxu0 (!%p11547_p2), %v11698_v6  ;;  %11827 = vmatpush1.bf16.msra.mxu1 (!%p11547_p2), %v11826_v23  ;;  %v8567_v6 = vld [vmem:[#allocation11 + $0x2d0] sm:$0xff] (!%p11547_p2)  ;;  %v8584_v23 = vld [vmem:[#allocation11 + $0x358] sm:$0xff] (!%p11547_p2) }
 0x539   : > { %11701 = vmatprep.subr.bf16.mxu0 (!%p11547_p2), %v11700_v12  ;;  %11829 = vmatprep.subr.bf16.mxu1 (!%p11547_p2), %v11828_v30  ;;  %v11846_v28 = vpack.c.bf16 (!%p11547_p2), %v8567_v6, %v8559_v16  ;;  %v8573_v12 = vld [vmem:[#allocation11 + $0x300] sm:$0xff] (!%p11547_p2)  ;;  %v11848_v32 = vpack.c.bf16 (!%p11547_p2), %v8584_v23, %v8576_v8  ;;  %v8654_v6 = vld [vmem:[#allocation11 + $0x588] sm:$0xff] (!%p11547_p2)  ;;  %v8664_v8 = vld [vmem:[#allocation11 + $0x5d8] sm:$0xff] (!%p11547_p2) }
 0x53a   : > { %v8581_v30 = vld [vmem:[#allocation11 + $0x340] sm:$0xff] (!%p11547_p2) }
 0x53c   : > { %11703 = vmatpush1.bf16.msra.mxu0 (!%p11547_p2), %v11702_v33  ;;  %11831 = vmatpush1.bf16.msra.mxu1 (!%p11547_p2), %v11830_v36  ;;  %v8590_v33 = vld [vmem:[#allocation11 + $0x388] sm:$0xff] (!%p11547_p2)  ;;  %v11722_v36 = vpack.c.bf16 (!%p11547_p2), %v8581_v30, %v8573_v12  ;;  %v8661_v12 = vld [vmem:[#allocation11 + $0x5c0] sm:$0xff] (!%p11547_p2)  ;;  %v8655_v30 = vld [vmem:[#allocation11 + $0x590] sm:$0xff] (!%p11547_p2) }
 0x53d   : > { %11705 = vmatprep.subr.bf16.mxu0 (!%p11547_p2), %v11704_v37  ;;  %11833 = vmatprep.subr.bf16.mxu1 (!%p11547_p2), %v11832_v43  ;;  %v11850_v37 = vpack.c.bf16 (!%p11547_p2), %v8583_v21, %v8575_v31  ;;  %v11724_v38 = vpack.c.bf16 (!%p11547_p2), %v8598_v17, %v8590_v33  ;;  %v8591_v43 = vld [vmem:[#allocation11 + $0x390] sm:$0xff] (!%p11547_p2)  ;;  %v8670_v21 = vld [vmem:[#allocation11 + $0x608] sm:$0xff] (!%p11547_p2) }
 0x53e   : > { %v8663_v31 = vld [vmem:[#allocation11 + $0x5d0] sm:$0xff] (!%p11547_p2)  ;;  %v8678_v33 = vld [vmem:[#allocation11 + $0x648] sm:$0xff] (!%p11547_p2) }
 0x53f   : > { %v11870_v29 = vpack.c.bf16 (!%p11547_p2), %v8663_v31, %v8655_v30  ;;  %v8718_v30 = vld [vmem:[#allocation11 + $0x788] sm:$0xff] (!%p11547_p2) }
 0x540   : > { %11707 = vmatpush1.bf16.msra.mxu0 (!%p11547_p2), %v11706_v25  ;;  %11835 = vmatpush1.bf16.msra.mxu1 (!%p11547_p2), %v11834_v51  ;;  %v8614_v25 = vld [vmem:[#allocation11 + $0x448] sm:$0xff] (!%p11547_p2)  ;;  %v11854_v51 = vpack.c.bf16 (!%p11547_p2), %v8599_v45, %v8591_v43  ;;  %v8677_v43 = vld [vmem:[#allocation11 + $0x640] sm:$0xff] (!%p11547_p2)  ;;  %v8671_v45 = vld [vmem:[#allocation11 + $0x610] sm:$0xff] (!%p11547_p2) }
 0x541   : > { %11709 = vmatprep.subr.bf16.mxu0 (!%p11547_p2), %v11708_v27  ;;  %11837 = vmatprep.subr.bf16.mxu1 (!%p11547_p2), %v11836_v59  ;;  %v11728_v27 = vpack.c.bf16 (!%p11547_p2), %v8614_v25, %v8606_v47  ;;  %v11856_v59 = vpack.c.bf16 (!%p11547_p2), %v8616_v48, %v8608_v35  ;;  %v8679_v47 = vld [vmem:[#allocation11 + $0x650] sm:$0xff] (!%p11547_p2)  ;;  %v8686_v25 = vld [vmem:[#allocation11 + $0x688] sm:$0xff] (!%p11547_p2) }
 0x542   : > { %v8726_v31 = vld [vmem:[#allocation11 + $0x7c8] sm:$0xff] (!%p11547_p2) }
 0x60a   : > { %v7546_v42 = vpop.f32.mrb[0].mxu0  ;;  %v8202_v62 = vpop.f32.mrb[0].mxu1 }
 0x60b   : > { %v7548_v40 = vpop.f32.mrb[1].mxu0  ;;  %v8204_v46 = vpop.f32.mrb[1].mxu1 }
 0x60c   : > { %v8213_v0 = vcombine.low %v7546_v42, %v7548_v40  ;;  %v8214_v1 = vcombine.low %v8202_v62, %v8204_v46  ;;  %v7550_v2 = vpop.f32.mrb[2].mxu0  ;;  %v8206_v57 = vpop.f32.mrb[2].mxu1  ;;  %v8542_v42 = vld [vmem:[#allocation11 + $0x208] sm:$0xff] (!%p11547_p2)  ;;  %v8544_v40 = vld [vmem:[#allocation11 + $0x218] sm:$0xff] (!%p11547_p2) }
 0x60d   : > { %v7551_v3 = vpop.f32.mrb[3].mxu0  ;;  %v8207_v52 = vpop.f32.mrb[3].mxu1  ;;  %v8550_v62 = vld [vmem:[#allocation11 + $0x248] sm:$0xff] (!%p11547_p2)  ;;  %v8552_v46 = vld [vmem:[#allocation11 + $0x258] sm:$0xff] (!%p11547_p2)  ;;  %v8541_v57 = vld [vmem:[#allocation11 + $0x200] sm:$0xff] (!%p11547_p2) }
 0x60e   : > { %v8221_v4 = vrot.slane %v8213_v0, %v16182_v63  ;;  %v8228_v5 = vrot.slane %v8214_v1, %v16182_v63  ;;  %8236 = sbr.rel (%p11547_p2) target bundleno = 2350 (0x92e), region = 108  ;;  %v11710_v0 = vpack.c.bf16 (!%p11547_p2), %v8533_v41, %v8525_v56  ;;  %v11838_v1 = vpack.c.bf16 (!%p11547_p2), %v8535_v50, %v8527_v60  ;;  %v8549_v3 = vld [vmem:[#allocation11 + $0x240] sm:$0xff] (!%p11547_p2)  ;;  %v8543_v52 = vld [vmem:[#allocation11 + $0x210] sm:$0xff] (!%p11547_p2)  ;;  %v8622_v50 = vld [vmem:[#allocation11 + $0x488] sm:$0xff] (!%p11547_p2) }
 0x60f   : > { %v11712_v2 = vpack.c.bf16 (!%p11547_p2), %v8550_v62, %v8542_v42  ;;  %v11714_v11 = vpack.c.bf16 (!%p11547_p2), %v8549_v3, %v8541_v57  ;;  %v8613_v56 = vld [vmem:[#allocation11 + $0x440] sm:$0xff] (!%p11547_p2)  ;;  %v8607_v41 = vld [vmem:[#allocation11 + $0x410] sm:$0xff] (!%p11547_p2)  ;;  %v8630_v42 = vld [vmem:[#allocation11 + $0x4c8] sm:$0xff] (!%p11547_p2) }
 0x610   : > { %v8229_v7 = vcombine.low %v8221_v4, %v8228_v5  ;;  %v11840_v4 = vpack.c.bf16 (!%p11547_p2), %v8552_v46, %v8544_v40  ;;  %v8551_v5 = vld [vmem:[#allocation11 + $0x250] sm:$0xff] (!%p11547_p2)  ;;  %11711 = vmatpush1.bf16.msra.mxu0 (!%p11547_p2), %v11710_v0  ;;  %11839 = vmatpush1.bf16.msra.mxu1 (!%p11547_p2), %v11838_v1  ;;  %v8624_v62 = vld [vmem:[#allocation11 + $0x498] sm:$0xff] (!%p11547_p2)  ;;  %v11730_v46 = vpack.c.bf16 (!%p11547_p2), %v8613_v56, %v8605_v54  ;;  %v8629_v57 = vld [vmem:[#allocation11 + $0x4c0] sm:$0xff] (!%p11547_p2) }
 0x611   : > { %11713 = vmatprep.subr.bf16.mxu0 (!%p11547_p2), %v11712_v2  ;;  %v11842_v55 = vpack.c.bf16 (!%p11547_p2), %v8551_v5, %v8543_v52  ;;  %v8615_v60 = vld [vmem:[#allocation11 + $0x450] sm:$0xff] (!%p11547_p2)  ;;  %v8632_v40 = vld [vmem:[#allocation11 + $0x4d8] sm:$0xff] (!%p11547_p2)  ;;  %v11732_v1 = vpack.c.bf16 (!%p11547_p2), %v8630_v42, %v8622_v50  ;;  %v8621_v2 = vld [vmem:[#allocation11 + $0x480] sm:$0xff] (!%p11547_p2)  ;;  %v11746_v42 = vpack.c.bf16 (!%p11547_p2), %v8677_v43, %v8669_v19 }
 0x612   : > { %v8231_v9 = vadd.f32 %v8229_v7, %v516_v58  ;;  %v8558_v58 = vld [vmem:[#allocation11 + $0x288] sm:$0xff] (!%p11547_p2)  ;;  %11841 = vmatprep.subr.bf16.mxu1 (!%p11547_p2), %v11840_v4  ;;  %v11858_v0 = vpack.c.bf16 (!%p11547_p2), %v8615_v60, %v8607_v41  ;;  %v8623_v3 = vld [vmem:[#allocation11 + $0x490] sm:$0xff] (!%p11547_p2)  ;;  %v11860_v52 = vpack.c.bf16 (!%p11547_p2), %v8632_v40, %v8624_v62  ;;  %v8688_v54 = vld [vmem:[#allocation11 + $0x698] sm:$0xff] (!%p11547_p2) }
 0x613   : > { %v8566_v7 = vld [vmem:[#allocation11 + $0x2c8] sm:$0xff] (!%p11547_p2)  ;;  %v8631_v4 = vld [vmem:[#allocation11 + $0x4d0] sm:$0xff] (!%p11547_p2)  ;;  %v8696_v56 = vld [vmem:[#allocation11 + $0x6d8] sm:$0xff] (!%p11547_p2) }
 0x614   : > { %8232 = vst [vmem:[#allocation2] sm:$0xff] %v8231_v9  ;;  %v8560_v9 = vld [vmem:[#allocation11 + $0x298] sm:$0xff] (!%p11547_p2)  ;;  %v11716_v13 = vpack.c.bf16 (!%p11547_p2), %v8566_v7, %v8558_v58  ;;  %11715 = vmatpush1.bf16.msra.mxu0 (!%p11547_p2), %v11714_v11  ;;  %11843 = vmatpush1.bf16.msra.mxu1 (!%p11547_p2), %v11842_v55  ;;  %v8638_v5 = vld [vmem:[#allocation11 + $0x508] sm:$0xff] (!%p11547_p2)  ;;  %v11862_v11 = vpack.c.bf16 (!%p11547_p2), %v8631_v4, %v8623_v3  ;;  %v8685_v62 = vld [vmem:[#allocation11 + $0x680] sm:$0xff] (!%p11547_p2) }
 0x615   : > { %v11844_v18 = vpack.c.bf16 %v8568_v10, %v8560_v9  ;;  %v8646_v58 = vld [vmem:[#allocation11 + $0x548] sm:$0xff]  ;;  %v8640_v7 = vld [vmem:[#allocation11 + $0x518] sm:$0xff]  ;;  %v11734_v10 = vpack.c.bf16 %v8629_v57, %v8621_v2  ;;  %v8693_v40 = vld [vmem:[#allocation11 + $0x6c0] sm:$0xff]  ;;  %v11874_v2 = vpack.c.bf16 %v8679_v47, %v8671_v45  ;;  %v11876_v3 = vpack.c.bf16 %v8696_v56, %v8688_v54 }
 0x616   : > { %11717 = vmatprep.subr.bf16.mxu0 %v11716_v13  ;;  %v8648_v9 = vld [vmem:[#allocation11 + $0x558] sm:$0xff]  ;;  %v11736_v55 = vpack.c.bf16 %v8646_v58, %v8638_v5  ;;  %v8637_v13 = vld [vmem:[#allocation11 + $0x500] sm:$0xff]  ;;  %v8695_v4 = vld [vmem:[#allocation11 + $0x6d0] sm:$0xff]  ;;  %v11756_v45 = vpack.c.bf16 %v8726_v31, %v8718_v30 }
 0x617   : > { %11845 = vmatprep.subr.bf16.mxu1 %v11844_v18  ;;  %v11864_v16 = vpack.c.bf16 %v8648_v9, %v8640_v7  ;;  %v8647_v18 = vld [vmem:[#allocation11 + $0x550] sm:$0xff]  ;;  %v11738_v23 = vpack.c.bf16 %v8645_v61, %v8637_v13  ;;  %v8702_v5 = vld [vmem:[#allocation11 + $0x708] sm:$0xff]  ;;  %v8704_v9 = vld [vmem:[#allocation11 + $0x718] sm:$0xff] }
 0x618   : > { %11719 = vmatpush1.bf16.msra.mxu0 %v11718_v24  ;;  %11847 = vmatpush1.bf16.msra.mxu1 %v11846_v28  ;;  %v8653_v24 = vld [vmem:[#allocation11 + $0x580] sm:$0xff]  ;;  %v11866_v28 = vpack.c.bf16 %v8647_v18, %v8639_v15  ;;  %v8710_v7 = vld [vmem:[#allocation11 + $0x748] sm:$0xff]  ;;  %v11750_v15 = vpack.c.bf16 %v8693_v40, %v8685_v62 }
 0x619   : > { %11721 = vmatprep.subr.bf16.mxu0 %v11720_v14  ;;  %11849 = vmatprep.subr.bf16.mxu1 %v11848_v32  ;;  %v11740_v14 = vpack.c.bf16 %v8662_v53, %v8654_v6  ;;  %v11868_v32 = vpack.c.bf16 %v8664_v8, %v8656_v20  ;;  %v8709_v18 = vld [vmem:[#allocation11 + $0x740] sm:$0xff] }
 0x61b   : > { %v16187_v17 = vld [vmem:[#allocation2] sm:$0xff] }
 0x61c   : > { %11723 = vmatpush1.bf16.msra.mxu0 %v11722_v36  ;;  %11851 = vmatpush1.bf16.msra.mxu1 %v11850_v37  ;;  %v8239_v36 = vcombine.high %v16187_v17, %v16187_v17  ;;  %v8246_v37 = vrot.slane %v16187_v17, %v16182_v63 }
 0x61d   : > { %11725 = vmatprep.subr.bf16.mxu0 %v11724_v38  ;;  %11853 = vmatprep.subr.bf16.mxu1 %v11852_v26  ;;  %v11742_v38 = vpack.c.bf16 %v8661_v12, %v8653_v24  ;;  %v11744_v26 = vpack.c.bf16 %v8678_v33, %v8670_v21  ;;  %v11752_v24 = vpack.c.bf16 %v8710_v7, %v8702_v5  ;;  %v8711_v12 = vld [vmem:[#allocation11 + $0x750] sm:$0xff]  ;;  %v8728_v21 = vld [vmem:[#allocation11 + $0x7d8] sm:$0xff] }
 0x61e   : > { %v8253_v35 = vrot.slane %v8239_v36, %v16182_v63  ;;  %v8254_v48 = vcombine.high %v8246_v37, %v8246_v37 }
 0x620   : > { %11727 = vmatpush1.bf16.msra.mxu0 %v11726_v49  ;;  %11855 = vmatpush1.bf16.msra.mxu1 %v11854_v51  ;;  %v8261_v49 = vsel %vm8260_vm0, %v8246_v37, 0.0  ;;  %v11872_v51 = vpack.c.bf16 %v8680_v22, %v8672_v34  ;;  %v8268_v60 = vsel %vm8260_vm0, %v8254_v48, 0.0  ;;  %v8275_v50 = vsel %vm8260_vm0, %v8253_v35, 0.0  ;;  %v8719_v48 = vld [vmem:[#allocation11 + $0x790] sm:$0xff] }
 0x621   : > { %11729 = vmatprep.subr.bf16.mxu0 %v11728_v27  ;;  %11857 = vmatprep.subr.bf16.mxu1 %v11856_v59  ;;  %v8694_v27 = vld [vmem:[#allocation11 + $0x6c8] sm:$0xff]  ;;  %v8262_v41 = vrot.slane %v8261_v49, 4  ;;  %v8255_v59 = vcombine.high %v8253_v35, %v8253_v35  ;;  %v8725_v35 = vld [vmem:[#allocation11 + $0x7c0] sm:$0xff] }
 0x622   : > { %v11748_v57 = vpack.c.bf16 %v8694_v27, %v8686_v25  ;;  %v8717_v25 = vld [vmem:[#allocation11 + $0x780] sm:$0xff] }
 0x623   : > { %v8282_v58 = vsel %vm8260_vm0, %v8255_v59, 0.0  ;;  %v8742_v59 = vld [vmem:[#allocation11 + $0x848] sm:$0xff] }
 0x624   : > { %11731 = vmatpush1.bf16.msra.mxu0 %v11730_v46  ;;  %11859 = vmatpush1.bf16.msra.mxu1 %v11858_v0  ;;  %v8263_v46 = vadd.f32 %v8262_v41, %v8261_v49  ;;  %v8269_v0 = vrot.slane %v8268_v60, 4  ;;  %v8283_v61 = vrot.slane %v8282_v58, 4  ;;  %v8727_v49 = vld [vmem:[#allocation11 + $0x7d0] sm:$0xff]  ;;  %v8734_v41 = vld [vmem:[#allocation11 + $0x808] sm:$0xff] }
 0x625   : > { %11733 = vmatprep.subr.bf16.mxu0 %v11732_v1  ;;  %11861 = vmatprep.subr.bf16.mxu1 %v11860_v52  ;;  %v8276_v1 = vrot.slane %v8275_v50, 4  ;;  %v8687_v52 = vld [vmem:[#allocation11 + $0x690] sm:$0xff] }
 0x626   : > { %v8284_v8 = vadd.f32 %v8283_v61, %v8282_v58 }
 0x627   : > { %v8277_v13 = vadd.f32 %v8276_v1, %v8275_v50  ;;  %v8744_v50 = vld [vmem:[#allocation11 + $0x858] sm:$0xff]  ;;  %v11760_v1 = vpack.c.bf16 %v8742_v59, %v8734_v41  ;;  %v16215_v41 = vsub.s32 1, %v15023_v44  ;;  %v16218_v59 = vsub.s32 2, %v15023_v44 }
 0x628   : > { %11735 = vmatpush1.bf16.msra.mxu0 %v11734_v10  ;;  %11863 = vmatpush1.bf16.msra.mxu1 %v11862_v11  ;;  %v8712_v10 = vld [vmem:[#allocation11 + $0x758] sm:$0xff]  ;;  %v8264_v11 = vrot.slane %v8263_v46, 2  ;;  %v8285_v36 = vrot.slane %v8284_v8, 2 }
 0x629   : > { %11737 = vmatprep.subr.bf16.mxu0 %v11736_v55  ;;  %11865 = vmatprep.subr.bf16.mxu1 %v11864_v16  ;;  %v8270_v55 = vadd.f32 %v8269_v0, %v8268_v60  ;;  %v8701_v16 = vld [vmem:[#allocation11 + $0x700] sm:$0xff]  ;;  %v8278_v20 = vrot.slane %v8277_v13, 2  ;;  %v8736_v60 = vld [vmem:[#allocation11 + $0x818] sm:$0xff]  ;;  %v11886_v0 = vpack.c.bf16 %v8727_v49, %v8719_v48 }
 0x62a   : > { %v8265_v6 = vadd.f32 %v8264_v11, %v8263_v46  ;;  %v11754_v37 = vpack.c.bf16 %v8709_v18, %v8701_v16  ;;  %v8286_v43 = vadd.f32 %v8285_v36, %v8284_v8 }
 0x62b   : > { %v8271_v53 = vrot.slane %v8270_v55, 2  ;;  %v8279_v22 = vadd.f32 %v8278_v20, %v8277_v13 }
 0x62c   : > { %11739 = vmatpush1.bf16.msra.mxu0 %v11738_v23  ;;  %11867 = vmatpush1.bf16.msra.mxu1 %v11866_v28  ;;  %v11878_v23 = vpack.c.bf16 %v8695_v4, %v8687_v52  ;;  %v11880_v28 = vpack.c.bf16 %v8712_v10, %v8704_v9  ;;  %v8266_v33 = vrot.slane %v8265_v6, 1  ;;  %v8287_v54 = vrot.slane %v8286_v43, 1 }
 0x62d   : > { %11741 = vmatprep.subr.bf16.mxu0 %v11740_v14  ;;  %11869 = vmatprep.subr.bf16.mxu1 %v11868_v32  ;;  %v8703_v14 = vld [vmem:[#allocation11 + $0x710] sm:$0xff]  ;;  %v8720_v32 = vld [vmem:[#allocation11 + $0x798] sm:$0xff]  ;;  %v8272_v34 = vadd.f32 %v8271_v53, %v8270_v55  ;;  %v8280_v19 = vrot.slane %v8279_v22, 1 }
 0x62e   : > { %v11884_v47 = vpack.c.bf16 %v8728_v21, %v8720_v32  ;;  %v8288_v62 = vadd.f32 %v8287_v54, %v8286_v43 }
 0x62f   : > { %v8281_v27 = vadd.f32 %v8280_v19, %v8279_v22 }
 0x630   : > { %11743 = vmatpush1.bf16.msra.mxu0 %v11742_v38  ;;  %11871 = vmatpush1.bf16.msra.mxu1 %v11870_v29  ;;  %v8267_v38 = vadd.f32 %v8266_v33, %v8265_v6  ;;  %v8273_v29 = vrot.slane %v8272_v34, 1 }
 0x631   : > { %11745 = vmatprep.subr.bf16.mxu0 %v11744_v26  ;;  %11873 = vmatprep.subr.bf16.mxu1 %v11872_v51  ;;  %v11882_v26 = vpack.c.bf16 %v8711_v12, %v8703_v14  ;;  %v8292_v46 = vmul.f32 0.5, %v8281_v27 }
 0x632   : > { %v8274_v51 = vadd.f32 %v8273_v29, %v8272_v34  ;;  %v8290_v56 = vmul.f32 0.5, %v8267_v38 }
 0x634   : > { %11747 = vmatpush1.bf16.msra.mxu0 %v11746_v42  ;;  %11875 = vmatpush1.bf16.msra.mxu1 %v11874_v2  ;;  %v11758_v42 = vpack.c.bf16 %v8725_v35, %v8717_v25  ;;  %v8291_v40 = vmul.f32 0.5, %v8274_v51  ;;  %v8293_v2 = vmul.f32 0.5, %v8288_v62 }
 0x635   : > { %11749 = vmatprep.subr.bf16.mxu0 %v11748_v57  ;;  %11877 = vmatprep.subr.bf16.mxu1 %v11876_v3  ;;  %v11888_v3 = vpack.c.bf16 %v8744_v50, %v8736_v60  ;;  %v16221_v60 = vsub.s32 3, %v15023_v44  ;;  %v8403_v50 = vld [vmem:[#allocation8] sm:$0xf] }
 0x636   : > { %v8298_v57 = vcombine.low %v8290_v56, %v8291_v40  ;;  %v8299_v52 = vcombine.low %v8292_v46, %v8293_v2  ;;  %v16212_v56 = vsub.s32 0, %v15023_v44  ;;  %v8412_v40 = vrot.slane %v8403_v50, %v16215_v41 }
 0x637   : > { %v8416_v46 = vrot.slane %v8403_v50, %v16218_v59 }
 0x638   : > { %11751 = vmatpush1.bf16.msra.mxu0 %v11750_v15  ;;  %11879 = vmatpush1.bf16.msra.mxu1 %v11878_v23  ;;  %v8306_v4 = vrot.slane %v8298_v57, %v16182_v63  ;;  %v8313_v5 = vrot.slane %v8299_v52, %v16182_v63  ;;  %v8408_v62 = vrot.slane %v8403_v50, %v16212_v56 }
 0x639   : > { %11753 = vmatprep.subr.bf16.mxu0 %v11752_v24  ;;  %11881 = vmatprep.subr.bf16.mxu1 %v11880_v28 }
 0x63a   : > { %v8314_v58 = vcombine.low %v8306_v4, %v8313_v5  ;;  %v8421_v4 = vcombine.low %v8408_v62, %v8412_v40  ;;  %v8773_v62 = vld [vmem:[#allocation11 + $0x940] sm:$0xff] }
 0x63c   : > { %11755 = vmatpush1.bf16.msra.mxu0 %v11754_v37  ;;  %11883 = vmatpush1.bf16.msra.mxu1 %v11882_v26  ;;  %v16201_v7 = vsub.f32 %v16187_v17, %v8314_v58 }
 0x63d   : > { %11757 = vmatprep.subr.bf16.mxu0 %v11756_v45  ;;  %11885 = vmatprep.subr.bf16.mxu1 %v11884_v47 }
 0x63e   : > { %v8317_v9 = vmul.f32 %v16201_v7, %v16201_v7 }
 0x640   : > { %11759 = vmatpush1.bf16.msra.mxu0 %v11758_v42  ;;  %11887 = vmatpush1.bf16.msra.mxu1 %v11886_v0  ;;  %v8319_v10 = vcombine.high %v8317_v9, %v8317_v9  ;;  %v8326_v11 = vrot.slane %v8317_v9, %v16182_v63  ;;  %v8440_v42 = vld [vmem:[#allocation9] sm:$0xf]  ;;  %v8420_v0 = vrot.slane %v8403_v50, %v16221_v60 }
 0x641   : > { %11761 = vmatprep.subr.bf16.mxu0 %v11760_v1  ;;  %11889 = vmatprep.subr.bf16.mxu1 %v11888_v3  ;;  %v8445_v1 = vrot.slane %v8440_v42, %v16212_v56  ;;  %v8449_v2 = vrot.slane %v8440_v42, %v16215_v41  ;;  %v8453_v57 = vrot.slane %v8440_v42, %v16218_v59 }
 0x642   : > { %v8333_v55 = vrot.slane %v8319_v10, %v16182_v63  ;;  %v8334_v13 = vcombine.high %v8326_v11, %v8326_v11  ;;  %v8340_v61 = vsel %vm8260_vm0, %v8326_v11, 0.0  ;;  %v8457_v3 = vrot.slane %v8440_v42, %v16221_v60  ;;  %v8765_v42 = vld [vmem:[#allocation11 + $0x900] sm:$0xff] }
 0x643   : > { %v8341_v15 = vrot.slane %v8340_v61, 4  ;;  %v8422_v5 = vcombine.low %v8416_v46, %v8420_v0  ;;  %v8458_v11 = vcombine.low %v8445_v1, %v8449_v2  ;;  %v8767_v0 = vld [vmem:[#allocation11 + $0x910] sm:$0xff]  ;;  %v8782_v2 = vld [vmem:[#allocation11 + $0x988] sm:$0xff] }
 0x644   : > { %v8335_v16 = vcombine.high %v8333_v55, %v8333_v55  ;;  %v8347_v18 = vsel %vm8260_vm0, %v8334_v13, 0.0  ;;  %v8354_v6 = vsel %vm8260_vm0, %v8333_v55, 0.0  ;;  %v8459_v55 = vcombine.low %v8453_v57, %v8457_v3  ;;  %v8775_v1 = vld [vmem:[#allocation11 + $0x950] sm:$0xff]  ;;  %v8790_v57 = vld [vmem:[#allocation11 + $0x9c8] sm:$0xff]  ;;  %v8784_v3 = vld [vmem:[#allocation11 + $0x998] sm:$0xff] }
 0x645   : > { %v8342_v53 = vadd.f32 %v8341_v15, %v8340_v61  ;;  %v8348_v17 = vrot.slane %v8347_v18, 4  ;;  %v8355_v20 = vrot.slane %v8354_v6, 4 }
 0x646   : > { %v8361_v8 = vsel %vm8260_vm0, %v8335_v16, 0.0  ;;  %v8429_v16 = vrot.slane %v8421_v4, %v16182_v63  ;;  %v11770_v4 = vpack.c.bf16 %v8773_v62, %v8765_v42  ;;  %v8846_v42 = vld [vmem:[#allocation11 + $0xb88] sm:$0xff] }
 0x647   : > { %v8343_v23 = vrot.slane %v8342_v53, 2  ;;  %v8349_v24 = vadd.f32 %v8348_v17, %v8347_v18  ;;  %v8356_v28 = vadd.f32 %v8355_v20, %v8354_v6  ;;  %v8362_v14 = vrot.slane %v8361_v8, 4  ;;  %v8854_v62 = vld [vmem:[#allocation11 + $0xbc8] sm:$0xff] }
 0x648   : > { %v8436_v18 = vrot.slane %v8422_v5, %v16182_v63  ;;  %v8473_v17 = vrot.slane %v8459_v55, %v16182_v63  ;;  %v11898_v5 = vpack.c.bf16 %v8775_v1, %v8767_v0  ;;  %v8783_v55 = vld [vmem:[#allocation11 + $0x990] sm:$0xff] }
 0x649   : > { %v8344_v12 = vadd.f32 %v8343_v23, %v8342_v53  ;;  %v8350_v30 = vrot.slane %v8349_v24, 2  ;;  %v8357_v31 = vrot.slane %v8356_v28, 2  ;;  %v8363_v32 = vadd.f32 %v8362_v14, %v8361_v8 }
 0x64a   : > { %v8466_v53 = vrot.slane %v8458_v11, %v16182_v63  ;;  %v8437_v8 = vcombine.low %v8429_v16, %v8436_v18  ;;  %v8800_v16 = vld [vmem:[#allocation11 + $0xa18] sm:$0xff] }
 0x64b   : > { %v8345_v21 = vrot.slane %v8344_v12, 1  ;;  %v8351_v33 = vadd.f32 %v8350_v30, %v8349_v24  ;;  %v8358_v34 = vadd.f32 %v8357_v31, %v8356_v28  ;;  %v8364_v22 = vrot.slane %v8363_v32, 2  ;;  %v8741_v30 = vld [vmem:[#allocation11 + $0x840] sm:$0xff]  ;;  %v8735_v31 = vld [vmem:[#allocation11 + $0x810] sm:$0xff]  ;;  %v8808_v18 = vld [vmem:[#allocation11 + $0xa58] sm:$0xff] }
 0x64c   : > { %v8474_v24 = vcombine.low %v8466_v53, %v8473_v17  ;;  %v8797_v17 = vld [vmem:[#allocation11 + $0xa00] sm:$0xff] }
 0x64d   : > { %v8346_v36 = vadd.f32 %v8345_v21, %v8344_v12  ;;  %v8352_v37 = vrot.slane %v8351_v33, 1  ;;  %v8359_v38 = vrot.slane %v8358_v34, 1  ;;  %v8365_v29 = vadd.f32 %v8364_v22, %v8363_v32  ;;  %v8733_v12 = vld [vmem:[#allocation11 + $0x800] sm:$0xff]  ;;  %v8743_v32 = vld [vmem:[#allocation11 + $0x850] sm:$0xff]  ;;  %v8750_v21 = vld [vmem:[#allocation11 + $0x888] sm:$0xff] }
 0x64e   : > { %v8752_v22 = vld [vmem:[#allocation11 + $0x898] sm:$0xff] }
 0x64f   : > { %v8353_v19 = vadd.f32 %v8352_v37, %v8351_v33  ;;  %v8360_v43 = vadd.f32 %v8359_v38, %v8358_v34  ;;  %v8366_v26 = vrot.slane %v8365_v29, 1  ;;  %v8368_v45 = vmul.f32 0.5, %v8346_v36  ;;  %v8758_v34 = vld [vmem:[#allocation11 + $0x8c8] sm:$0xff]  ;;  %v8760_v36 = vld [vmem:[#allocation11 + $0x8d8] sm:$0xff] }
 0x651   : > { %v8367_v47 = vadd.f32 %v8366_v26, %v8365_v29  ;;  %v8369_v25 = vmul.f32 0.5, %v8353_v19  ;;  %v8370_v35 = vmul.f32 0.5, %v8360_v43  ;;  %v8372_v48 = vadd.f32 1e-05, %v8368_v45  ;;  %v8749_v19 = vld [vmem:[#allocation11 + $0x880] sm:$0xff] }
 0x652   : > { %v11890_v29 = vpack.c.bf16 %v8743_v32, %v8735_v31  ;;  %v8757_v43 = vld [vmem:[#allocation11 + $0x8c0] sm:$0xff]  ;;  %v11764_v45 = vpack.c.bf16 %v8758_v34, %v8750_v21  ;;  %v8824_v31 = vld [vmem:[#allocation11 + $0xad8] sm:$0xff] }
 0x653   : > { %v8371_v49 = vmul.f32 0.5, %v8367_v47  ;;  %v8373_v51 = vadd.f32 1e-05, %v8369_v25  ;;  %v8374_v27 = vadd.f32 1e-05, %v8370_v35  ;;  %14155 = vrsqrt.f32 %v8372_v48  ;;  %v8751_v25 = vld [vmem:[#allocation11 + $0x890] sm:$0xff] }
 0x654   : > { %v11892_v47 = vpack.c.bf16 %v8760_v36, %v8752_v22  ;;  %v8759_v35 = vld [vmem:[#allocation11 + $0x8d0] sm:$0xff]  ;;  %v8766_v48 = vld [vmem:[#allocation11 + $0x908] sm:$0xff]  ;;  %v8813_v34 = vld [vmem:[#allocation11 + $0xa80] sm:$0xff] }
 0x655   : > { %v8375_v54 = vadd.f32 1e-05, %v8371_v49  ;;  %14157 = vrsqrt.f32 %v8373_v51  ;;  %v8774_v49 = vld [vmem:[#allocation11 + $0x948] sm:$0xff]  ;;  %v8768_v51 = vld [vmem:[#allocation11 + $0x918] sm:$0xff]  ;;  %v11894_v50 = vpack.c.bf16 %v8759_v35, %v8751_v25  ;;  %v8821_v22 = vld [vmem:[#allocation11 + $0xac0] sm:$0xff] }
 0x656   : > { %14159 = vrsqrt.f32 %v8374_v27  ;;  %v8776_v27 = vld [vmem:[#allocation11 + $0x958] sm:$0xff]  ;;  %v11768_v40 = vpack.c.bf16 %v8774_v49, %v8766_v48  ;;  %v11782_v25 = vpack.c.bf16 %v8821_v22, %v8813_v34  ;;  %v8829_v48 = vld [vmem:[#allocation11 + $0xb00] sm:$0xff]  ;;  %v8894_v34 = vld [vmem:[#allocation11 + $0xd08] sm:$0xff] }
 0x657   : > { %14161 = vrsqrt.f32 %v8375_v54  ;;  %v11896_v46 = vpack.c.bf16 %v8776_v27, %v8768_v51  ;;  %v8837_v49 = vld [vmem:[#allocation11 + $0xb40] sm:$0xff]  ;;  %v8902_v22 = vld [vmem:[#allocation11 + $0xd48] sm:$0xff] }
 0x658   : > { %v11786_v0 = vpack.c.bf16 %v8837_v49, %v8829_v48  ;;  %v8910_v48 = vld [vmem:[#allocation11 + $0xd88] sm:$0xff] }
 0x659   : > { %v8918_v49 = vld [vmem:[#allocation11 + $0xdc8] sm:$0xff] }
 0x65d   : > { %v14156_v52 = vpop.eup %14155 }
 0x65f   : > { %v14158_v58 = vpop.eup %14157 }
 0x660   : > { %v14160_v9 = vpop.eup %14159  ;;  %v8384_v10 = vcombine.low %v14156_v52, %v14158_v58  ;;  %v8792_v52 = vld [vmem:[#allocation11 + $0x9d8] sm:$0xff]  ;;  %v8781_v58 = vld [vmem:[#allocation11 + $0x980] sm:$0xff] }
 0x661   : > { %v14162_v13 = vpop.eup %14161  ;;  %v11900_v11 = vpack.c.bf16 %v8792_v52, %v8784_v3  ;;  %v11788_v3 = vpack.c.bf16 %v8854_v62, %v8846_v42  ;;  %v8909_v42 = vld [vmem:[#allocation11 + $0xd80] sm:$0xff] }
 0x662   : > { %v8385_v61 = vcombine.low %v14160_v9, %v14162_v13  ;;  %v8392_v15 = vrot.slane %v8384_v10, %v16182_v63  ;;  %v8789_v9 = vld [vmem:[#allocation11 + $0x9c0] sm:$0xff]  ;;  %v11772_v10 = vpack.c.bf16 %v8790_v57, %v8782_v2  ;;  %v8791_v13 = vld [vmem:[#allocation11 + $0x9d0] sm:$0xff] }
 0x663   : > { %v11902_v53 = vpack.c.bf16 %v8791_v13, %v8783_v55  ;;  %v8845_v2 = vld [vmem:[#allocation11 + $0xb80] sm:$0xff] }
 0x664   : > { %v8399_v6 = vrot.slane %v8385_v61, %v16182_v63  ;;  %v8798_v61 = vld [vmem:[#allocation11 + $0xa08] sm:$0xff]  ;;  %v8853_v57 = vld [vmem:[#allocation11 + $0xbc0] sm:$0xff] }
 0x665   : > { %v11790_v55 = vpack.c.bf16 %v8853_v57, %v8845_v2  ;;  %v8917_v62 = vld [vmem:[#allocation11 + $0xdc0] sm:$0xff]  ;;  %v8926_v2 = vld [vmem:[#allocation11 + $0xe08] sm:$0xff] }
 0x666   : > { %v8400_v20 = vcombine.low %v8392_v15, %v8399_v6  ;;  %v8806_v15 = vld [vmem:[#allocation11 + $0xa48] sm:$0xff]  ;;  %v11774_v6 = vpack.c.bf16 %v8789_v9, %v8781_v58 }
 0x667   : > { %v8862_v58 = vld [vmem:[#allocation11 + $0xc08] sm:$0xff] }
 0x668   : > { %v8402_v23 = vmul.f32 %v8400_v20, %v16201_v7  ;;  %v11762_v7 = vpack.c.bf16 %v8741_v30, %v8733_v12  ;;  %v8805_v20 = vld [vmem:[#allocation11 + $0xa40] sm:$0xff]  ;;  %v8822_v12 = vld [vmem:[#allocation11 + $0xac8] sm:$0xff]  ;;  %v8816_v30 = vld [vmem:[#allocation11 + $0xa98] sm:$0xff] }
 0x669   : > { %v11778_v32 = vpack.c.bf16 %v8805_v20, %v8797_v17  ;;  %v8870_v9 = vld [vmem:[#allocation11 + $0xc48] sm:$0xff] }
 0x66a   : > { %v8439_v28 = vmul.f32 %v8437_v8, %v8402_v23  ;;  %v11776_v8 = vpack.c.bf16 %v8806_v15, %v8798_v61  ;;  %v11904_v23 = vpack.c.bf16 %v8808_v18, %v8800_v16  ;;  %v8861_v61 = vld [vmem:[#allocation11 + $0xc00] sm:$0xff]  ;;  %v11792_v16 = vpack.c.bf16 %v8870_v9, %v8862_v58  ;;  %v8878_v17 = vld [vmem:[#allocation11 + $0xc88] sm:$0xff] }
 0x66b   : > { %v8869_v15 = vld [vmem:[#allocation11 + $0xc40] sm:$0xff]  ;;  %v8886_v20 = vld [vmem:[#allocation11 + $0xcc8] sm:$0xff] }
 0x66c   : > { %v8476_v14 = vadd.f32 %v8474_v24, %v8439_v28  ;;  %v8799_v24 = vld [vmem:[#allocation11 + $0xa10] sm:$0xff]  ;;  %v8934_v57 = vld [vmem:[#allocation11 + $0xe48] sm:$0xff]  ;;  %v8925_v58 = vld [vmem:[#allocation11 + $0xe00] sm:$0xff] }
 0x66d   : > { %v8807_v28 = vld [vmem:[#allocation11 + $0xa50] sm:$0xff]  ;;  %v8933_v9 = vld [vmem:[#allocation11 + $0xe40] sm:$0xff] }
 0x66e   : > { %v16239_v33 = vrot.slane %v8476_v14, %v16182_v63  ;;  %v9032_v37 = vcombine.high %v8476_v14, %v8476_v14  ;;  %v8814_v14 = vld [vmem:[#allocation11 + $0xa88] sm:$0xff]  ;;  %v11906_v21 = vpack.c.bf16 %v8807_v28, %v8799_v24  ;;  %v11794_v24 = vpack.c.bf16 %v8869_v15, %v8861_v61 }
 0x66f   : > { %v11780_v36 = vpack.c.bf16 %v8822_v12, %v8814_v14  ;;  %v8877_v14 = vld [vmem:[#allocation11 + $0xc80] sm:$0xff]  ;;  %v8942_v61 = vld [vmem:[#allocation11 + $0xe88] sm:$0xff] }
 0x670   : > { %v16243_v38 = vcombine.high %v16239_v33, %v16239_v33  ;;  %v16246_v26 = vrot.slane %v9032_v37, %v16182_v63  ;;  %v11766_v63 = vpack.c.bf16 %v8757_v43, %v8749_v19  ;;  %v11908_v37 = vpack.c.bf16 %v8824_v31, %v8816_v30  ;;  %v8830_v19 = vld [vmem:[#allocation11 + $0xb08] sm:$0xff]  ;;  %v8885_v12 = vld [vmem:[#allocation11 + $0xcc0] sm:$0xff] }
 0x671   : > { %v8838_v43 = vld [vmem:[#allocation11 + $0xb48] sm:$0xff]  ;;  %v11796_v30 = vpack.c.bf16 %v8886_v20, %v8878_v17  ;;  %v8941_v17 = vld [vmem:[#allocation11 + $0xe80] sm:$0xff] }
 0x672   : > { %9117 = vmatprep.mubr.f32.mxu0 %v16243_v38  ;;  %9259 = vmatprep.mubr.f32.mxu1 %v16243_v38  ;;  %v16252_v54 = vcombine.high %v16246_v26, %v16246_v26  ;;  %v11784_v51 = vpack.c.bf16 %v8838_v43, %v8830_v19  ;;  %v8893_v19 = vld [vmem:[#allocation11 + $0xd00] sm:$0xff]  ;;  %v8950_v15 = vld [vmem:[#allocation11 + $0xec8] sm:$0xff] }
 0x673   : > { %9118 = vmatmul.mubr.f32.vlgmr.msra.gmra.mrb[0].mxu0 %v16239_v33  ;;  %9260 = vmatmul.mubr.f32.vlgmr.msra.gmra.mrb[0].mxu1 %v16239_v33  ;;  %v8901_v43 = vld [vmem:[#allocation11 + $0xd40] sm:$0xff] }
 0x674   : > { %11763 = vmatpush1.bf16.msra.mxu0 %v11762_v7  ;;  %11891 = vmatpush1.bf16.msra.mxu1 %v11890_v29  ;;  %v8815_v7 = vld [vmem:[#allocation11 + $0xa90] sm:$0xff]  ;;  %v8949_v20 = vld [vmem:[#allocation11 + $0xec0] sm:$0xff] }
 0x675   : > { %11765 = vmatprep.subr.bf16.mxu0 %v11764_v45  ;;  %11893 = vmatprep.subr.bf16.mxu1 %v11892_v47  ;;  %v8823_v29 = vld [vmem:[#allocation11 + $0xad0] sm:$0xff]  ;;  %v8832_v45 = vld [vmem:[#allocation11 + $0xb18] sm:$0xff] }
 0x676   : > { %9188 = vmatprep.mubr.f32.mxu0 %v16252_v54  ;;  %9330 = vmatprep.mubr.f32.mxu1 %v16252_v54  ;;  %v8840_v47 = vld [vmem:[#allocation11 + $0xb58] sm:$0xff]  ;;  %v11910_v35 = vpack.c.bf16 %v8823_v29, %v8815_v7  ;;  %v11798_v7 = vpack.c.bf16 %v8885_v12, %v8877_v14  ;;  %v8958_v14 = vld [vmem:[#allocation11 + $0xf08] sm:$0xff] }
 0x677   : > { %v11912_v27 = vpack.c.bf16 %v8840_v47, %v8832_v45  ;;  %v11800_v45 = vpack.c.bf16 %v8902_v22, %v8894_v34  ;;  %v8966_v12 = vld [vmem:[#allocation11 + $0xf48] sm:$0xff]  ;;  %v8957_v34 = vld [vmem:[#allocation11 + $0xf00] sm:$0xff] }
 0x678   : > { %11767 = vmatpush1.bf16.msra.mxu0 %v11766_v63  ;;  %11895 = vmatpush1.bf16.msra.mxu1 %v11894_v50  ;;  %v8831_v63 = vld [vmem:[#allocation11 + $0xb10] sm:$0xff]  ;;  %v8965_v22 = vld [vmem:[#allocation11 + $0xf40] sm:$0xff] }
 0x679   : > { %11769 = vmatprep.subr.bf16.mxu0 %v11768_v40  ;;  %11897 = vmatprep.subr.bf16.mxu1 %v11896_v46  ;;  %v8839_v50 = vld [vmem:[#allocation11 + $0xb50] sm:$0xff]  ;;  %v8848_v40 = vld [vmem:[#allocation11 + $0xb98] sm:$0xff] }
 0x67a   : > { %v8856_v46 = vld [vmem:[#allocation11 + $0xbd8] sm:$0xff]  ;;  %v11914_v1 = vpack.c.bf16 %v8839_v50, %v8831_v63  ;;  %v11802_v63 = vpack.c.bf16 %v8901_v43, %v8893_v19  ;;  %v8974_v19 = vld [vmem:[#allocation11 + $0xf88] sm:$0xff] }
 0x67b   : > { %v11916_v52 = vpack.c.bf16 %v8856_v46, %v8848_v40  ;;  %v11804_v40 = vpack.c.bf16 %v8918_v49, %v8910_v48  ;;  %v8982_v43 = vld [vmem:[#allocation11 + $0xfc8] sm:$0xff]  ;;  %v8973_v48 = vld [vmem:[#allocation11 + $0xf80] sm:$0xff] }
 0x67c   : > { %11771 = vmatpush1.bf16.msra.mxu0 %v11770_v4  ;;  %11899 = vmatpush1.bf16.msra.mxu1 %v11898_v5  ;;  %v8847_v4 = vld [vmem:[#allocation11 + $0xb90] sm:$0xff]  ;;  %v8981_v49 = vld [vmem:[#allocation11 + $0xfc0] sm:$0xff] }
 0x67d   : > { %11773 = vmatprep.subr.bf16.mxu0 %v11772_v10  ;;  %11901 = vmatprep.subr.bf16.mxu1 %v11900_v11  ;;  %v8855_v5 = vld [vmem:[#allocation11 + $0xbd0] sm:$0xff]  ;;  %v8864_v10 = vld [vmem:[#allocation11 + $0xc18] sm:$0xff] }
 0x67e   : > { %v8872_v11 = vld [vmem:[#allocation11 + $0xc58] sm:$0xff]  ;;  %v11918_v13 = vpack.c.bf16 %v8855_v5, %v8847_v4  ;;  %v11806_v4 = vpack.c.bf16 %v8917_v62, %v8909_v42  ;;  %v8482_v42 = vld [vmem:[#allocation11 + $0x28] sm:$0xff] }
 0x67f   : > { %v11920_v18 = vpack.c.bf16 %v8872_v11, %v8864_v10  ;;  %v11808_v10 = vpack.c.bf16 %v8934_v57, %v8926_v2  ;;  %v8490_v62 = vld [vmem:[#allocation11 + $0x68] sm:$0xff]  ;;  %v8481_v2 = vld [vmem:[#allocation11 + $0x20] sm:$0xff] }
 0x680   : > { %11775 = vmatpush1.bf16.msra.mxu0 %v11774_v6  ;;  %11903 = vmatpush1.bf16.msra.mxu1 %v11902_v53  ;;  %v8863_v6 = vld [vmem:[#allocation11 + $0xc10] sm:$0xff]  ;;  %v8489_v57 = vld [vmem:[#allocation11 + $0x60] sm:$0xff] }
 0x681   : > { %11777 = vmatprep.subr.bf16.mxu0 %v11776_v8  ;;  %11905 = vmatprep.subr.bf16.mxu1 %v11904_v23  ;;  %v8871_v53 = vld [vmem:[#allocation11 + $0xc50] sm:$0xff]  ;;  %v8880_v8 = vld [vmem:[#allocation11 + $0xc98] sm:$0xff] }
 0x682   : > { %v8888_v23 = vld [vmem:[#allocation11 + $0xcd8] sm:$0xff]  ;;  %v11922_v28 = vpack.c.bf16 %v8871_v53, %v8863_v6  ;;  %v11810_v6 = vpack.c.bf16 %v8933_v9, %v8925_v58  ;;  %v8498_v58 = vld [vmem:[#allocation11 + $0xa8] sm:$0xff] }
 0x683   : > { %v11924_v31 = vpack.c.bf16 %v8888_v23, %v8880_v8  ;;  %v11812_v8 = vpack.c.bf16 %v8950_v15, %v8942_v61  ;;  %v8506_v9 = vld [vmem:[#allocation11 + $0xe8] sm:$0xff]  ;;  %v8497_v61 = vld [vmem:[#allocation11 + $0xa0] sm:$0xff] }
 0x684   : > { %11779 = vmatpush1.bf16.msra.mxu0 %v11778_v32  ;;  %11907 = vmatpush1.bf16.msra.mxu1 %v11906_v21  ;;  %v8879_v32 = vld [vmem:[#allocation11 + $0xc90] sm:$0xff]  ;;  %v8505_v15 = vld [vmem:[#allocation11 + $0xe0] sm:$0xff] }
 0x685   : > { %11781 = vmatprep.subr.bf16.mxu0 %v11780_v36  ;;  %11909 = vmatprep.subr.bf16.mxu1 %v11908_v37  ;;  %v8887_v21 = vld [vmem:[#allocation11 + $0xcd0] sm:$0xff]  ;;  %v8896_v36 = vld [vmem:[#allocation11 + $0xd18] sm:$0xff] }
 0x686   : > { %v8904_v37 = vld [vmem:[#allocation11 + $0xd58] sm:$0xff]  ;;  %v11926_v29 = vpack.c.bf16 %v8887_v21, %v8879_v32  ;;  %v11814_v32 = vpack.c.bf16 %v8949_v20, %v8941_v17  ;;  %v8514_v17 = vld [vmem:[#allocation11 + $0x128] sm:$0xff] }
 0x687   : > { %v11928_v47 = vpack.c.bf16 %v8904_v37, %v8896_v36  ;;  %v11816_v36 = vpack.c.bf16 %v8966_v12, %v8958_v14  ;;  %v8522_v20 = vld [vmem:[#allocation11 + $0x168] sm:$0xff]  ;;  %v8513_v14 = vld [vmem:[#allocation11 + $0x120] sm:$0xff] }
 0x688   : > { %11783 = vmatpush1.bf16.msra.mxu0 %v11782_v25  ;;  %11911 = vmatpush1.bf16.msra.mxu1 %v11910_v35  ;;  %v8895_v25 = vld [vmem:[#allocation11 + $0xd10] sm:$0xff]  ;;  %v8521_v12 = vld [vmem:[#allocation11 + $0x160] sm:$0xff] }
 0x689   : > { %11785 = vmatprep.subr.bf16.mxu0 %v11784_v51  ;;  %11913 = vmatprep.subr.bf16.mxu1 %v11912_v27  ;;  %v8903_v35 = vld [vmem:[#allocation11 + $0xd50] sm:$0xff]  ;;  %v8912_v51 = vld [vmem:[#allocation11 + $0xd98] sm:$0xff] }
 0x68a   : > { %v8920_v27 = vld [vmem:[#allocation11 + $0xdd8] sm:$0xff]  ;;  %v11930_v50 = vpack.c.bf16 %v8903_v35, %v8895_v25  ;;  %v11818_v25 = vpack.c.bf16 %v8965_v22, %v8957_v34  ;;  %v8530_v34 = vld [vmem:[#allocation11 + $0x1a8] sm:$0xff] }
 0x68b   : > { %v11932_v46 = vpack.c.bf16 %v8920_v27, %v8912_v51  ;;  %v11820_v51 = vpack.c.bf16 %v8982_v43, %v8974_v19  ;;  %v8538_v22 = vld [vmem:[#allocation11 + $0x1e8] sm:$0xff]  ;;  %v8529_v19 = vld [vmem:[#allocation11 + $0x1a0] sm:$0xff] }
 0x68c   : > { %11787 = vmatpush1.bf16.msra.mxu0 %v11786_v0  ;;  %11915 = vmatpush1.bf16.msra.mxu1 %v11914_v1  ;;  %v8911_v0 = vld [vmem:[#allocation11 + $0xd90] sm:$0xff]  ;;  %v8537_v43 = vld [vmem:[#allocation11 + $0x1e0] sm:$0xff] }
 0x68d   : > { %11789 = vmatprep.subr.bf16.mxu0 %v11788_v3  ;;  %11917 = vmatprep.subr.bf16.mxu1 %v11916_v52  ;;  %v8919_v1 = vld [vmem:[#allocation11 + $0xdd0] sm:$0xff]  ;;  %v8928_v3 = vld [vmem:[#allocation11 + $0xe18] sm:$0xff] }
 0x68e   : > { %v8936_v52 = vld [vmem:[#allocation11 + $0xe58] sm:$0xff]  ;;  %v11934_v5 = vpack.c.bf16 %v8919_v1, %v8911_v0  ;;  %v11822_v0 = vpack.c.bf16 %v8981_v49, %v8973_v48  ;;  %v8546_v48 = vld [vmem:[#allocation11 + $0x228] sm:$0xff] }
 0x68f   : > { %v11936_v11 = vpack.c.bf16 %v8936_v52, %v8928_v3  ;;  %v11952_v3 = vpack.c.bf16 %v8490_v62, %v8482_v42  ;;  %v8554_v49 = vld [vmem:[#allocation11 + $0x268] sm:$0xff]  ;;  %v8553_v42 = vld [vmem:[#allocation11 + $0x260] sm:$0xff] }
 0x690   : > { %11791 = vmatpush1.bf16.msra.mxu0 %v11790_v55  ;;  %11919 = vmatpush1.bf16.msra.mxu1 %v11918_v13  ;;  %v8927_v55 = vld [vmem:[#allocation11 + $0xe10] sm:$0xff]  ;;  %v11968_v62 = vpack.c.bf16 %v8554_v49, %v8546_v48  ;;  %v8617_v48 = vld [vmem:[#allocation11 + $0x460] sm:$0xff] }
 0x691   : > { %11793 = vmatprep.subr.bf16.mxu0 %v11792_v16  ;;  %11921 = vmatprep.subr.bf16.mxu1 %v11920_v18  ;;  %v8935_v13 = vld [vmem:[#allocation11 + $0xe50] sm:$0xff]  ;;  %v8944_v16 = vld [vmem:[#allocation11 + $0xe98] sm:$0xff] }
 0x692   : > { %v8952_v18 = vld [vmem:[#allocation11 + $0xed8] sm:$0xff]  ;;  %v11938_v53 = vpack.c.bf16 %v8935_v13, %v8927_v55  ;;  %v11954_v55 = vpack.c.bf16 %v8489_v57, %v8481_v2  ;;  %v8570_v2 = vld [vmem:[#allocation11 + $0x2e8] sm:$0xff] }
 0x693   : > { %v11940_v23 = vpack.c.bf16 %v8952_v18, %v8944_v16  ;;  %v11956_v16 = vpack.c.bf16 %v8506_v9, %v8498_v58  ;;  %v8564_v57 = vld [vmem:[#allocation11 + $0x2b8] sm:$0xff]  ;;  %v8569_v58 = vld [vmem:[#allocation11 + $0x2e0] sm:$0xff] }
 0x694   : > { %11795 = vmatpush1.bf16.msra.mxu0 %v11794_v24  ;;  %11923 = vmatpush1.bf16.msra.mxu1 %v11922_v28  ;;  %v8943_v24 = vld [vmem:[#allocation11 + $0xe90] sm:$0xff] }
 0x695   : > { %11797 = vmatprep.subr.bf16.mxu0 %v11796_v30  ;;  %11925 = vmatprep.subr.bf16.mxu1 %v11924_v31  ;;  %v8951_v28 = vld [vmem:[#allocation11 + $0xed0] sm:$0xff]  ;;  %v8960_v30 = vld [vmem:[#allocation11 + $0xf18] sm:$0xff] }
 0x696   : > { %v8968_v31 = vld [vmem:[#allocation11 + $0xf58] sm:$0xff]  ;;  %v11942_v21 = vpack.c.bf16 %v8951_v28, %v8943_v24  ;;  %v11958_v24 = vpack.c.bf16 %v8505_v15, %v8497_v61  ;;  %v8586_v61 = vld [vmem:[#allocation11 + $0x368] sm:$0xff] }
 0x697   : > { %v11944_v37 = vpack.c.bf16 %v8968_v31, %v8960_v30  ;;  %v11960_v30 = vpack.c.bf16 %v8522_v20, %v8514_v17  ;;  %v8580_v15 = vld [vmem:[#allocation11 + $0x338] sm:$0xff]  ;;  %v8585_v17 = vld [vmem:[#allocation11 + $0x360] sm:$0xff] }
 0x698   : > { %11799 = vmatpush1.bf16.msra.mxu0 %v11798_v7  ;;  %11927 = vmatpush1.bf16.msra.mxu1 %v11926_v29  ;;  %v8959_v7 = vld [vmem:[#allocation11 + $0xf10] sm:$0xff] }
 0x699   : > { %11801 = vmatprep.subr.bf16.mxu0 %v11800_v45  ;;  %11929 = vmatprep.subr.bf16.mxu1 %v11928_v47  ;;  %v8967_v29 = vld [vmem:[#allocation11 + $0xf50] sm:$0xff]  ;;  %v8976_v45 = vld [vmem:[#allocation11 + $0xf98] sm:$0xff] }
 0x69a   : > { %v8984_v47 = vld [vmem:[#allocation11 + $0xfd8] sm:$0xff]  ;;  %v11946_v35 = vpack.c.bf16 %v8967_v29, %v8959_v7  ;;  %v11962_v7 = vpack.c.bf16 %v8521_v12, %v8513_v14  ;;  %v8602_v14 = vld [vmem:[#allocation11 + $0x3e8] sm:$0xff] }
 0x69b   : > { %v11948_v27 = vpack.c.bf16 %v8984_v47, %v8976_v45  ;;  %v11964_v45 = vpack.c.bf16 %v8538_v22, %v8530_v34  ;;  %v8596_v12 = vld [vmem:[#allocation11 + $0x3b8] sm:$0xff]  ;;  %v8601_v34 = vld [vmem:[#allocation11 + $0x3e0] sm:$0xff] }
 0x69c   : > { %11803 = vmatpush1.bf16.msra.mxu0 %v11802_v63  ;;  %11931 = vmatpush1.bf16.msra.mxu1 %v11930_v50  ;;  %v8975_v63 = vld [vmem:[#allocation11 + $0xf90] sm:$0xff] }
 0x69d   : > { %11805 = vmatprep.subr.bf16.mxu0 %v11804_v40  ;;  %11933 = vmatprep.subr.bf16.mxu1 %v11932_v46  ;;  %v8983_v50 = vld [vmem:[#allocation11 + $0xfd0] sm:$0xff]  ;;  %v8484_v40 = vld [vmem:[#allocation11 + $0x38] sm:$0xff] }
 0x69e   : > { %v8492_v46 = vld [vmem:[#allocation11 + $0x78] sm:$0xff]  ;;  %v11950_v1 = vpack.c.bf16 %v8983_v50, %v8975_v63  ;;  %v11966_v63 = vpack.c.bf16 %v8537_v43, %v8529_v19  ;;  %v8545_v50 = vld [vmem:[#allocation11 + $0x220] sm:$0xff]  ;;  %v8618_v19 = vld [vmem:[#allocation11 + $0x468] sm:$0xff] }
 0x69f   : > { %v12080_v52 = vpack.c.bf16 %v8492_v46, %v8484_v40  ;;  %v8547_v46 = vld [vmem:[#allocation11 + $0x230] sm:$0xff]  ;;  %v8612_v43 = vld [vmem:[#allocation11 + $0x438] sm:$0xff] }
 0x6a0   : > { %11807 = vmatpush1.bf16.msra.mxu0 %v11806_v4  ;;  %11935 = vmatpush1.bf16.msra.mxu1 %v11934_v5  ;;  %v8483_v4 = vld [vmem:[#allocation11 + $0x30] sm:$0xff] }
 0x6a1   : > { %11809 = vmatprep.subr.bf16.mxu0 %v11808_v10  ;;  %11937 = vmatprep.subr.bf16.mxu1 %v11936_v11  ;;  %v8491_v5 = vld [vmem:[#allocation11 + $0x70] sm:$0xff]  ;;  %v8500_v10 = vld [vmem:[#allocation11 + $0xb8] sm:$0xff] }
 0x6a2   : > { %v8508_v11 = vld [vmem:[#allocation11 + $0xf8] sm:$0xff]  ;;  %v12082_v13 = vpack.c.bf16 %v8491_v5, %v8483_v4  ;;  %v8561_v5 = vld [vmem:[#allocation11 + $0x2a0] sm:$0xff] }
 0x6a3   : > { %v12084_v18 = vpack.c.bf16 %v8508_v11, %v8500_v10  ;;  %v8563_v11 = vld [vmem:[#allocation11 + $0x2b0] sm:$0xff] }
 0x6a4   : > { %11811 = vmatpush1.bf16.msra.mxu0 %v11810_v6  ;;  %11939 = vmatpush1.bf16.msra.mxu1 %v11938_v53  ;;  %v8499_v6 = vld [vmem:[#allocation11 + $0xb0] sm:$0xff] }
 0x6a5   : > { %11813 = vmatprep.subr.bf16.mxu0 %v11812_v8  ;;  %11941 = vmatprep.subr.bf16.mxu1 %v11940_v23  ;;  %v8507_v53 = vld [vmem:[#allocation11 + $0xf0] sm:$0xff]  ;;  %v8516_v8 = vld [vmem:[#allocation11 + $0x138] sm:$0xff] }
 0x6a6   : > { %v8524_v23 = vld [vmem:[#allocation11 + $0x178] sm:$0xff]  ;;  %v12086_v28 = vpack.c.bf16 %v8507_v53, %v8499_v6  ;;  %v8577_v53 = vld [vmem:[#allocation11 + $0x320] sm:$0xff] }
 0x6a7   : > { %v12088_v31 = vpack.c.bf16 %v8524_v23, %v8516_v8  ;;  %v8579_v23 = vld [vmem:[#allocation11 + $0x330] sm:$0xff] }
 0x6a8   : > { %11815 = vmatpush1.bf16.msra.mxu0 %v11814_v32  ;;  %11943 = vmatpush1.bf16.msra.mxu1 %v11942_v21  ;;  %v8515_v32 = vld [vmem:[#allocation11 + $0x130] sm:$0xff] }
 0x6a9   : > { %11817 = vmatprep.subr.bf16.mxu0 %v11816_v36  ;;  %11945 = vmatprep.subr.bf16.mxu1 %v11944_v37  ;;  %v8523_v21 = vld [vmem:[#allocation11 + $0x170] sm:$0xff]  ;;  %v8532_v36 = vld [vmem:[#allocation11 + $0x1b8] sm:$0xff] }
 0x6aa   : > { %v8540_v37 = vld [vmem:[#allocation11 + $0x1f8] sm:$0xff]  ;;  %v12090_v29 = vpack.c.bf16 %v8523_v21, %v8515_v32  ;;  %v8593_v21 = vld [vmem:[#allocation11 + $0x3a0] sm:$0xff] }
 0x6ab   : > { %v12092_v47 = vpack.c.bf16 %v8540_v37, %v8532_v36  ;;  %v8595_v37 = vld [vmem:[#allocation11 + $0x3b0] sm:$0xff] }
 0x6ac   : > { %11819 = vmatpush1.bf16.msra.mxu0 %v11818_v25  ;;  %11947 = vmatpush1.bf16.msra.mxu1 %v11946_v35  ;;  %v8531_v25 = vld [vmem:[#allocation11 + $0x1b0] sm:$0xff] }
 0x6ad   : > { %11821 = vmatprep.subr.bf16.mxu0 %v11820_v51  ;;  %11949 = vmatprep.subr.bf16.mxu1 %v11948_v27  ;;  %v8539_v35 = vld [vmem:[#allocation11 + $0x1f0] sm:$0xff]  ;;  %v8548_v51 = vld [vmem:[#allocation11 + $0x238] sm:$0xff] }
 0x6ae   : > { %v8556_v27 = vld [vmem:[#allocation11 + $0x278] sm:$0xff] }
 0x6af   : > { %v12096_v40 = vpack.c.bf16 %v8556_v27, %v8548_v51  ;;  %v8611_v27 = vld [vmem:[#allocation11 + $0x430] sm:$0xff] }
 0x6b0   : > { %11823 = vmatpush1.bf16.msra.mxu0 %v11822_v0  ;;  %11951 = vmatpush1.bf16.msra.mxu1 %v11950_v1  ;;  %v8555_v0 = vld [vmem:[#allocation11 + $0x270] sm:$0xff]  ;;  %v8562_v1 = vld [vmem:[#allocation11 + $0x2a8] sm:$0xff] }
 0x6b1   : > { %11953 = vmatprep.subr.bf16.mxu0 %v11952_v3  ;;  %12081 = vmatprep.subr.bf16.mxu1 %v12080_v52  ;;  %v8572_v3 = vld [vmem:[#allocation11 + $0x2f8] sm:$0xff]  ;;  %v11970_v52 = vpack.c.bf16 %v8553_v42, %v8545_v50  ;;  %v12098_v4 = vpack.c.bf16 %v8555_v0, %v8547_v46  ;;  %v11972_v9 = vpack.c.bf16 %v8570_v2, %v8562_v1  ;;  %v8634_v50 = vld [vmem:[#allocation11 + $0x4e8] sm:$0xff]  ;;  %v8625_v0 = vld [vmem:[#allocation11 + $0x4a0] sm:$0xff] }
 0x6b2   : > { %v12100_v10 = vpack.c.bf16 %v8572_v3, %v8564_v57  ;;  %v8628_v42 = vld [vmem:[#allocation11 + $0x4b8] sm:$0xff]  ;;  %v8633_v1 = vld [vmem:[#allocation11 + $0x4e0] sm:$0xff]  ;;  %v8627_v3 = vld [vmem:[#allocation11 + $0x4b0] sm:$0xff] }
 0x6b3   : > { %9189 = vmatmul.mubr.f32.vlgmr.msra.gmra.mrb[0].mxu0 %v16246_v26  ;;  %9331 = vmatmul.mubr.f32.vlgmr.msra.gmra.mrb[0].mxu1 %v16246_v26 }
 0x6b4   : > { %11955 = vmatpush1.bf16.msra.mxu0 %v11954_v55  ;;  %12083 = vmatpush1.bf16.msra.mxu1 %v12082_v13  ;;  %v8571_v55 = vld [vmem:[#allocation11 + $0x2f0] sm:$0xff]  ;;  %v8578_v13 = vld [vmem:[#allocation11 + $0x328] sm:$0xff] }
 0x6b5   : > { %11957 = vmatprep.subr.bf16.mxu0 %v11956_v16  ;;  %12085 = vmatprep.subr.bf16.mxu1 %v12084_v18  ;;  %v8588_v16 = vld [vmem:[#allocation11 + $0x378] sm:$0xff]  ;;  %v11974_v18 = vpack.c.bf16 %v8569_v58, %v8561_v5  ;;  %v12102_v6 = vpack.c.bf16 %v8571_v55, %v8563_v11  ;;  %v11976_v20 = vpack.c.bf16 %v8586_v61, %v8578_v13  ;;  %v8650_v5 = vld [vmem:[#allocation11 + $0x568] sm:$0xff]  ;;  %v8641_v55 = vld [vmem:[#allocation11 + $0x520] sm:$0xff] }
 0x6b6   : > { %9401 = vmatprep.mubr.f32.mxu0 %v16243_v38  ;;  %9543 = vmatprep.mubr.f32.mxu1 %v16243_v38  ;;  %v12094_v38 = vpack.c.bf16 %v8539_v35, %v8531_v25  ;;  %v12104_v8 = vpack.c.bf16 %v8588_v16, %v8580_v15  ;;  %v8609_v35 = vld [vmem:[#allocation11 + $0x420] sm:$0xff]  ;;  %v8644_v58 = vld [vmem:[#allocation11 + $0x538] sm:$0xff]  ;;  %v8643_v16 = vld [vmem:[#allocation11 + $0x530] sm:$0xff] }
 0x6b7   : > { %v8649_v13 = vld [vmem:[#allocation11 + $0x560] sm:$0xff] }
 0x6b8   : > { %11959 = vmatpush1.bf16.msra.mxu0 %v11958_v24  ;;  %12087 = vmatpush1.bf16.msra.mxu1 %v12086_v28  ;;  %v8587_v24 = vld [vmem:[#allocation11 + $0x370] sm:$0xff]  ;;  %v8594_v28 = vld [vmem:[#allocation11 + $0x3a8] sm:$0xff] }
 0x6b9   : > { %11961 = vmatprep.subr.bf16.mxu0 %v11960_v30  ;;  %12089 = vmatprep.subr.bf16.mxu1 %v12088_v31  ;;  %v8604_v30 = vld [vmem:[#allocation11 + $0x3f8] sm:$0xff]  ;;  %v11978_v31 = vpack.c.bf16 %v8585_v17, %v8577_v53  ;;  %v12106_v32 = vpack.c.bf16 %v8587_v24, %v8579_v23  ;;  %v11980_v22 = vpack.c.bf16 %v8602_v14, %v8594_v28  ;;  %v8666_v53 = vld [vmem:[#allocation11 + $0x5e8] sm:$0xff]  ;;  %v8657_v24 = vld [vmem:[#allocation11 + $0x5a0] sm:$0xff] }
 0x6ba   : > { %v12108_v36 = vpack.c.bf16 %v8604_v30, %v8596_v12  ;;  %v8660_v17 = vld [vmem:[#allocation11 + $0x5b8] sm:$0xff]  ;;  %v8665_v28 = vld [vmem:[#allocation11 + $0x5e0] sm:$0xff]  ;;  %v8659_v30 = vld [vmem:[#allocation11 + $0x5b0] sm:$0xff] }
 0x6bc   : > { %11963 = vmatpush1.bf16.msra.mxu0 %v11962_v7  ;;  %12091 = vmatpush1.bf16.msra.mxu1 %v12090_v29  ;;  %v8603_v7 = vld [vmem:[#allocation11 + $0x3f0] sm:$0xff]  ;;  %v8610_v29 = vld [vmem:[#allocation11 + $0x428] sm:$0xff] }
 0x6bd   : > { %11965 = vmatprep.subr.bf16.mxu0 %v11964_v45  ;;  %12093 = vmatprep.subr.bf16.mxu1 %v12092_v47  ;;  %v8620_v45 = vld [vmem:[#allocation11 + $0x478] sm:$0xff]  ;;  %v11982_v47 = vpack.c.bf16 %v8601_v34, %v8593_v21  ;;  %v12110_v25 = vpack.c.bf16 %v8603_v7, %v8595_v37  ;;  %v11984_v49 = vpack.c.bf16 %v8618_v19, %v8610_v29  ;;  %v8682_v21 = vld [vmem:[#allocation11 + $0x668] sm:$0xff]  ;;  %v8673_v7 = vld [vmem:[#allocation11 + $0x620] sm:$0xff] }
 0x6be   : > { %v12112_v51 = vpack.c.bf16 %v8620_v45, %v8612_v43  ;;  %v8676_v34 = vld [vmem:[#allocation11 + $0x638] sm:$0xff]  ;;  %v8681_v29 = vld [vmem:[#allocation11 + $0x660] sm:$0xff]  ;;  %v8675_v45 = vld [vmem:[#allocation11 + $0x630] sm:$0xff] }
 0x6c0   : > { %11967 = vmatpush1.bf16.msra.mxu0 %v11966_v63  ;;  %12095 = vmatpush1.bf16.msra.mxu1 %v12094_v38  ;;  %v8619_v63 = vld [vmem:[#allocation11 + $0x470] sm:$0xff]  ;;  %v8626_v38 = vld [vmem:[#allocation11 + $0x4a8] sm:$0xff] }
 0x6c1   : > { %11969 = vmatprep.subr.bf16.mxu0 %v11968_v62  ;;  %12097 = vmatprep.subr.bf16.mxu1 %v12096_v40  ;;  %v8636_v62 = vld [vmem:[#allocation11 + $0x4f8] sm:$0xff]  ;;  %v11986_v40 = vpack.c.bf16 %v8617_v48, %v8609_v35  ;;  %v12114_v46 = vpack.c.bf16 %v8619_v63, %v8611_v27  ;;  %v11988_v2 = vpack.c.bf16 %v8634_v50, %v8626_v38  ;;  %v8698_v35 = vld [vmem:[#allocation11 + $0x6e8] sm:$0xff]  ;;  %v8689_v63 = vld [vmem:[#allocation11 + $0x6a0] sm:$0xff] }
 0x6c2   : > { %v12116_v57 = vpack.c.bf16 %v8636_v62, %v8628_v42  ;;  %v8692_v48 = vld [vmem:[#allocation11 + $0x6b8] sm:$0xff]  ;;  %v8697_v38 = vld [vmem:[#allocation11 + $0x6e0] sm:$0xff]  ;;  %v8691_v62 = vld [vmem:[#allocation11 + $0x6b0] sm:$0xff] }
 0x6c4   : > { %11971 = vmatpush1.bf16.msra.mxu0 %v11970_v52  ;;  %12099 = vmatpush1.bf16.msra.mxu1 %v12098_v4  ;;  %v8635_v52 = vld [vmem:[#allocation11 + $0x4f0] sm:$0xff]  ;;  %v8642_v4 = vld [vmem:[#allocation11 + $0x528] sm:$0xff] }
 0x6c5   : > { %11973 = vmatprep.subr.bf16.mxu0 %v11972_v9  ;;  %12101 = vmatprep.subr.bf16.mxu1 %v12100_v10  ;;  %v8652_v9 = vld [vmem:[#allocation11 + $0x578] sm:$0xff]  ;;  %v11990_v10 = vpack.c.bf16 %v8633_v1, %v8625_v0  ;;  %v12118_v11 = vpack.c.bf16 %v8635_v52, %v8627_v3  ;;  %v11992_v61 = vpack.c.bf16 %v8650_v5, %v8642_v4  ;;  %v8714_v0 = vld [vmem:[#allocation11 + $0x768] sm:$0xff]  ;;  %v8705_v52 = vld [vmem:[#allocation11 + $0x720] sm:$0xff] }
 0x6c6   : > { %v12120_v15 = vpack.c.bf16 %v8652_v9, %v8644_v58  ;;  %v8708_v1 = vld [vmem:[#allocation11 + $0x738] sm:$0xff]  ;;  %v8713_v4 = vld [vmem:[#allocation11 + $0x760] sm:$0xff]  ;;  %v8707_v9 = vld [vmem:[#allocation11 + $0x730] sm:$0xff] }
 0x6c8   : > { %11975 = vmatpush1.bf16.msra.mxu0 %v11974_v18  ;;  %12103 = vmatpush1.bf16.msra.mxu1 %v12102_v6  ;;  %v8651_v18 = vld [vmem:[#allocation11 + $0x570] sm:$0xff]  ;;  %v8658_v6 = vld [vmem:[#allocation11 + $0x5a8] sm:$0xff] }
 0x6c9   : > { %11977 = vmatprep.subr.bf16.mxu0 %v11976_v20  ;;  %12105 = vmatprep.subr.bf16.mxu1 %v12104_v8  ;;  %v8668_v20 = vld [vmem:[#allocation11 + $0x5f8] sm:$0xff]  ;;  %v11994_v8 = vpack.c.bf16 %v8649_v13, %v8641_v55  ;;  %v12122_v23 = vpack.c.bf16 %v8651_v18, %v8643_v16  ;;  %v11996_v14 = vpack.c.bf16 %v8666_v53, %v8658_v6  ;;  %v8730_v55 = vld [vmem:[#allocation11 + $0x7e8] sm:$0xff]  ;;  %v8721_v18 = vld [vmem:[#allocation11 + $0x7a0] sm:$0xff] }
 0x6ca   : > { %v12124_v12 = vpack.c.bf16 %v8668_v20, %v8660_v17  ;;  %v8724_v13 = vld [vmem:[#allocation11 + $0x7b8] sm:$0xff]  ;;  %v8729_v6 = vld [vmem:[#allocation11 + $0x7e0] sm:$0xff]  ;;  %v8723_v20 = vld [vmem:[#allocation11 + $0x7b0] sm:$0xff] }
 0x6cc   : > { %11979 = vmatpush1.bf16.msra.mxu0 %v11978_v31  ;;  %12107 = vmatpush1.bf16.msra.mxu1 %v12106_v32  ;;  %v8667_v31 = vld [vmem:[#allocation11 + $0x5f0] sm:$0xff]  ;;  %v8674_v32 = vld [vmem:[#allocation11 + $0x628] sm:$0xff] }
 0x6cd   : > { %11981 = vmatprep.subr.bf16.mxu0 %v11980_v22  ;;  %12109 = vmatprep.subr.bf16.mxu1 %v12108_v36  ;;  %v8684_v22 = vld [vmem:[#allocation11 + $0x678] sm:$0xff]  ;;  %v11998_v36 = vpack.c.bf16 %v8665_v28, %v8657_v24  ;;  %v12126_v37 = vpack.c.bf16 %v8667_v31, %v8659_v30  ;;  %v12000_v19 = vpack.c.bf16 %v8682_v21, %v8674_v32  ;;  %v8746_v24 = vld [vmem:[#allocation11 + $0x868] sm:$0xff]  ;;  %v8737_v31 = vld [vmem:[#allocation11 + $0x820] sm:$0xff] }
 0x6ce   : > { %v12128_v43 = vpack.c.bf16 %v8684_v22, %v8676_v34  ;;  %v8740_v28 = vld [vmem:[#allocation11 + $0x838] sm:$0xff]  ;;  %v8745_v32 = vld [vmem:[#allocation11 + $0x860] sm:$0xff]  ;;  %v8739_v22 = vld [vmem:[#allocation11 + $0x830] sm:$0xff] }
 0x6d0   : > { %11983 = vmatpush1.bf16.msra.mxu0 %v11982_v47  ;;  %12111 = vmatpush1.bf16.msra.mxu1 %v12110_v25  ;;  %v8683_v47 = vld [vmem:[#allocation11 + $0x670] sm:$0xff]  ;;  %v8690_v25 = vld [vmem:[#allocation11 + $0x6a8] sm:$0xff] }
 0x6d1   : > { %11985 = vmatprep.subr.bf16.mxu0 %v11984_v49  ;;  %12113 = vmatprep.subr.bf16.mxu1 %v12112_v51  ;;  %v8700_v49 = vld [vmem:[#allocation11 + $0x6f8] sm:$0xff]  ;;  %v12002_v51 = vpack.c.bf16 %v8681_v29, %v8673_v7  ;;  %v12130_v27 = vpack.c.bf16 %v8683_v47, %v8675_v45  ;;  %v12004_v50 = vpack.c.bf16 %v8698_v35, %v8690_v25  ;;  %v8762_v7 = vld [vmem:[#allocation11 + $0x8e8] sm:$0xff]  ;;  %v8753_v47 = vld [vmem:[#allocation11 + $0x8a0] sm:$0xff] }
 0x6d2   : > { %v12132_v42 = vpack.c.bf16 %v8700_v49, %v8692_v48  ;;  %v8756_v29 = vld [vmem:[#allocation11 + $0x8b8] sm:$0xff]  ;;  %v8761_v25 = vld [vmem:[#allocation11 + $0x8e0] sm:$0xff]  ;;  %v8755_v49 = vld [vmem:[#allocation11 + $0x8b0] sm:$0xff] }
 0x6d4   : > { %11987 = vmatpush1.bf16.msra.mxu0 %v11986_v40  ;;  %12115 = vmatpush1.bf16.msra.mxu1 %v12114_v46  ;;  %v8699_v40 = vld [vmem:[#allocation11 + $0x6f0] sm:$0xff]  ;;  %v8706_v46 = vld [vmem:[#allocation11 + $0x728] sm:$0xff] }
 0x6d5   : > { %11989 = vmatprep.subr.bf16.mxu0 %v11988_v2  ;;  %12117 = vmatprep.subr.bf16.mxu1 %v12116_v57  ;;  %v8716_v2 = vld [vmem:[#allocation11 + $0x778] sm:$0xff]  ;;  %v12006_v57 = vpack.c.bf16 %v8697_v38, %v8689_v63  ;;  %v12134_v3 = vpack.c.bf16 %v8699_v40, %v8691_v62  ;;  %v12008_v5 = vpack.c.bf16 %v8714_v0, %v8706_v46  ;;  %v8778_v63 = vld [vmem:[#allocation11 + $0x968] sm:$0xff]  ;;  %v8769_v40 = vld [vmem:[#allocation11 + $0x920] sm:$0xff] }
 0x6d6   : > { %v12136_v58 = vpack.c.bf16 %v8716_v2, %v8708_v1  ;;  %v8772_v38 = vld [vmem:[#allocation11 + $0x938] sm:$0xff]  ;;  %v8777_v46 = vld [vmem:[#allocation11 + $0x960] sm:$0xff]  ;;  %v8771_v2 = vld [vmem:[#allocation11 + $0x930] sm:$0xff] }
 0x6d8   : > { %11991 = vmatpush1.bf16.msra.mxu0 %v11990_v10  ;;  %12119 = vmatpush1.bf16.msra.mxu1 %v12118_v11  ;;  %v8715_v10 = vld [vmem:[#allocation11 + $0x770] sm:$0xff]  ;;  %v8722_v11 = vld [vmem:[#allocation11 + $0x7a8] sm:$0xff] }
 0x6d9   : > { %11993 = vmatprep.subr.bf16.mxu0 %v11992_v61  ;;  %12121 = vmatprep.subr.bf16.mxu1 %v12120_v15  ;;  %v8732_v61 = vld [vmem:[#allocation11 + $0x7f8] sm:$0xff]  ;;  %v12010_v15 = vpack.c.bf16 %v8713_v4, %v8705_v52  ;;  %v12138_v16 = vpack.c.bf16 %v8715_v10, %v8707_v9  ;;  %v12012_v53 = vpack.c.bf16 %v8730_v55, %v8722_v11  ;;  %v8794_v52 = vld [vmem:[#allocation11 + $0x9e8] sm:$0xff]  ;;  %v8785_v9 = vld [vmem:[#allocation11 + $0x9a0] sm:$0xff] }
 0x6da   : > { %v12140_v17 = vpack.c.bf16 %v8732_v61, %v8724_v13  ;;  %v8788_v4 = vld [vmem:[#allocation11 + $0x9b8] sm:$0xff]  ;;  %v8793_v10 = vld [vmem:[#allocation11 + $0x9e0] sm:$0xff]  ;;  %v8787_v13 = vld [vmem:[#allocation11 + $0x9b0] sm:$0xff] }
 0x6db   : > { %v8795_v61 = vld [vmem:[#allocation11 + $0x9f0] sm:$0xff] }
 0x6dc   : > { %11995 = vmatpush1.bf16.msra.mxu0 %v11994_v8  ;;  %12123 = vmatpush1.bf16.msra.mxu1 %v12122_v23  ;;  %v8731_v8 = vld [vmem:[#allocation11 + $0x7f0] sm:$0xff]  ;;  %v8738_v23 = vld [vmem:[#allocation11 + $0x828] sm:$0xff] }
 0x6dd   : > { %11997 = vmatprep.subr.bf16.mxu0 %v11996_v14  ;;  %12125 = vmatprep.subr.bf16.mxu1 %v12124_v12  ;;  %v8748_v14 = vld [vmem:[#allocation11 + $0x878] sm:$0xff]  ;;  %v12014_v12 = vpack.c.bf16 %v8729_v6, %v8721_v18  ;;  %v12142_v30 = vpack.c.bf16 %v8731_v8, %v8723_v20  ;;  %v12016_v21 = vpack.c.bf16 %v8746_v24, %v8738_v23  ;;  %v8809_v20 = vld [vmem:[#allocation11 + $0xa60] sm:$0xff]  ;;  %v8803_v24 = vld [vmem:[#allocation11 + $0xa30] sm:$0xff] }
 0x6de   : > { %v12144_v34 = vpack.c.bf16 %v8748_v14, %v8740_v28  ;;  %v8804_v18 = vld [vmem:[#allocation11 + $0xa38] sm:$0xff]  ;;  %v8811_v28 = vld [vmem:[#allocation11 + $0xa70] sm:$0xff]  ;;  %v8818_v14 = vld [vmem:[#allocation11 + $0xaa8] sm:$0xff] }
 0x6df   : > { %v8812_v6 = vld [vmem:[#allocation11 + $0xa78] sm:$0xff] }
 0x6e0   : > { %11999 = vmatpush1.bf16.msra.mxu0 %v11998_v36  ;;  %12127 = vmatpush1.bf16.msra.mxu1 %v12126_v37  ;;  %v8747_v36 = vld [vmem:[#allocation11 + $0x870] sm:$0xff]  ;;  %v8754_v37 = vld [vmem:[#allocation11 + $0x8a8] sm:$0xff]  ;;  %v12160_v23 = vpack.c.bf16 %v8812_v6, %v8804_v18 }
 0x6e1   : > { %12001 = vmatprep.subr.bf16.mxu0 %v12000_v19  ;;  %12129 = vmatprep.subr.bf16.mxu1 %v12128_v43  ;;  %v8764_v19 = vld [vmem:[#allocation11 + $0x8f8] sm:$0xff]  ;;  %v12018_v43 = vpack.c.bf16 %v8745_v32, %v8737_v31  ;;  %v12146_v45 = vpack.c.bf16 %v8747_v36, %v8739_v22  ;;  %v12020_v35 = vpack.c.bf16 %v8762_v7, %v8754_v37  ;;  %v8825_v22 = vld [vmem:[#allocation11 + $0xae0] sm:$0xff]  ;;  %v8819_v7 = vld [vmem:[#allocation11 + $0xab0] sm:$0xff] }
 0x6e2   : > { %v12148_v48 = vpack.c.bf16 %v8764_v19, %v8756_v29  ;;  %v8828_v31 = vld [vmem:[#allocation11 + $0xaf8] sm:$0xff]  ;;  %v8827_v29 = vld [vmem:[#allocation11 + $0xaf0] sm:$0xff]  ;;  %v8834_v19 = vld [vmem:[#allocation11 + $0xb28] sm:$0xff] }
 0x6e3   : > { %v8875_v18 = vld [vmem:[#allocation11 + $0xc70] sm:$0xff]  ;;  %v8882_v6 = vld [vmem:[#allocation11 + $0xca8] sm:$0xff] }
 0x6e4   : > { %12003 = vmatpush1.bf16.msra.mxu0 %v12002_v51  ;;  %12131 = vmatpush1.bf16.msra.mxu1 %v12130_v27  ;;  %v8763_v51 = vld [vmem:[#allocation11 + $0x8f0] sm:$0xff]  ;;  %v8770_v27 = vld [vmem:[#allocation11 + $0x928] sm:$0xff] }
 0x6e5   : > { %12005 = vmatprep.subr.bf16.mxu0 %v12004_v50  ;;  %12133 = vmatprep.subr.bf16.mxu1 %v12132_v42  ;;  %v8780_v50 = vld [vmem:[#allocation11 + $0x978] sm:$0xff]  ;;  %v12022_v42 = vpack.c.bf16 %v8761_v25, %v8753_v47  ;;  %v12150_v62 = vpack.c.bf16 %v8763_v51, %v8755_v49  ;;  %v12024_v0 = vpack.c.bf16 %v8778_v63, %v8770_v27  ;;  %v8841_v49 = vld [vmem:[#allocation11 + $0xb60] sm:$0xff]  ;;  %v8835_v63 = vld [vmem:[#allocation11 + $0xb30] sm:$0xff] }
 0x6e6   : > { %v12152_v1 = vpack.c.bf16 %v8780_v50, %v8772_v38  ;;  %v8844_v47 = vld [vmem:[#allocation11 + $0xb78] sm:$0xff]  ;;  %v8843_v38 = vld [vmem:[#allocation11 + $0xb70] sm:$0xff]  ;;  %v8850_v50 = vld [vmem:[#allocation11 + $0xba8] sm:$0xff] }
 0x6e8   : > { %12007 = vmatpush1.bf16.msra.mxu0 %v12006_v57  ;;  %12135 = vmatpush1.bf16.msra.mxu1 %v12134_v3  ;;  %v8779_v57 = vld [vmem:[#allocation11 + $0x970] sm:$0xff]  ;;  %v8786_v3 = vld [vmem:[#allocation11 + $0x9a8] sm:$0xff] }
 0x6e9   : > { %12009 = vmatprep.subr.bf16.mxu0 %v12008_v5  ;;  %12137 = vmatprep.subr.bf16.mxu1 %v12136_v58  ;;  %v8796_v5 = vld [vmem:[#allocation11 + $0x9f8] sm:$0xff]  ;;  %v12154_v58 = vpack.c.bf16 %v8779_v57, %v8771_v2  ;;  %v12028_v11 = vpack.c.bf16 %v8794_v52, %v8786_v3  ;;  %v8857_v2 = vld [vmem:[#allocation11 + $0xbe0] sm:$0xff]  ;;  %v8851_v52 = vld [vmem:[#allocation11 + $0xbb0] sm:$0xff] }
 0x6ea   : > { %v12156_v55 = vpack.c.bf16 %v8796_v5, %v8788_v4  ;;  %v8859_v4 = vld [vmem:[#allocation11 + $0xbf0] sm:$0xff]  ;;  %v8866_v5 = vld [vmem:[#allocation11 + $0xc28] sm:$0xff] }
 0x6ec   : > { %12011 = vmatpush1.bf16.msra.mxu0 %v12010_v15  ;;  %12139 = vmatpush1.bf16.msra.mxu1 %v12138_v16  ;;  %v8802_v15 = vld [vmem:[#allocation11 + $0xa28] sm:$0xff] }
 0x6ed   : > { %12013 = vmatprep.subr.bf16.mxu0 %v12012_v53  ;;  %12141 = vmatprep.subr.bf16.mxu1 %v12140_v17  ;;  %v8810_v16 = vld [vmem:[#allocation11 + $0xa68] sm:$0xff]  ;;  %v12030_v53 = vpack.c.bf16 %v8793_v10, %v8785_v9  ;;  %v8801_v17 = vld [vmem:[#allocation11 + $0xa20] sm:$0xff]  ;;  %v8876_v9 = vld [vmem:[#allocation11 + $0xc78] sm:$0xff] }
 0x6ee   : > { %v12032_v8 = vpack.c.bf16 %v8810_v16, %v8802_v15  ;;  %v12034_v32 = vpack.c.bf16 %v8809_v20, %v8801_v17  ;;  %v8867_v16 = vld [vmem:[#allocation11 + $0xc30] sm:$0xff]  ;;  %v8892_v17 = vld [vmem:[#allocation11 + $0xcf8] sm:$0xff] }
 0x6f0   : > { %12015 = vmatpush1.bf16.msra.mxu0 %v12014_v12  ;;  %12143 = vmatpush1.bf16.msra.mxu1 %v12142_v30  ;;  %v8826_v12 = vld [vmem:[#allocation11 + $0xae8] sm:$0xff]  ;;  %v8820_v30 = vld [vmem:[#allocation11 + $0xab8] sm:$0xff] }
 0x6f1   : > { %12017 = vmatprep.subr.bf16.mxu0 %v12016_v21  ;;  %12145 = vmatprep.subr.bf16.mxu1 %v12144_v34  ;;  %v12162_v21 = vpack.c.bf16 %v8811_v28, %v8803_v24  ;;  %v8817_v34 = vld [vmem:[#allocation11 + $0xaa0] sm:$0xff]  ;;  %v12036_v36 = vpack.c.bf16 %v8826_v12, %v8818_v14  ;;  %v12164_v37 = vpack.c.bf16 %v8828_v31, %v8820_v30  ;;  %v8883_v12 = vld [vmem:[#allocation11 + $0xcb0] sm:$0xff]  ;;  %v8898_v31 = vld [vmem:[#allocation11 + $0xd28] sm:$0xff] }
 0x6f2   : > { %v12038_v25 = vpack.c.bf16 %v8825_v22, %v8817_v34  ;;  %v8889_v24 = vld [vmem:[#allocation11 + $0xce0] sm:$0xff]  ;;  %v8891_v30 = vld [vmem:[#allocation11 + $0xcf0] sm:$0xff]  ;;  %v8908_v34 = vld [vmem:[#allocation11 + $0xd78] sm:$0xff] }
 0x6f3   : > { %9402 = vmatmul.mubr.f32.vlgmr.msra.gmra.mrb[2].mxu0 %v16239_v33  ;;  %9544 = vmatmul.mubr.f32.vlgmr.msra.gmra.mrb[2].mxu1 %v16239_v33  ;;  %v12026_v33 = vpack.c.bf16 %v8777_v46, %v8769_v40  ;;  %v8860_v40 = vld [vmem:[#allocation11 + $0xbf8] sm:$0xff] }
 0x6f4   : > { %12019 = vmatpush1.bf16.msra.mxu0 %v12018_v43  ;;  %12147 = vmatpush1.bf16.msra.mxu1 %v12146_v45  ;;  %v8842_v43 = vld [vmem:[#allocation11 + $0xb68] sm:$0xff]  ;;  %v8836_v45 = vld [vmem:[#allocation11 + $0xb38] sm:$0xff] }
 0x6f5   : > { %12021 = vmatprep.subr.bf16.mxu0 %v12020_v35  ;;  %12149 = vmatprep.subr.bf16.mxu1 %v12148_v48  ;;  %v12166_v35 = vpack.c.bf16 %v8827_v29, %v8819_v7  ;;  %v8833_v48 = vld [vmem:[#allocation11 + $0xb20] sm:$0xff]  ;;  %v12040_v51 = vpack.c.bf16 %v8842_v43, %v8834_v19  ;;  %v12168_v27 = vpack.c.bf16 %v8844_v47, %v8836_v45  ;;  %v8899_v43 = vld [vmem:[#allocation11 + $0xd30] sm:$0xff]  ;;  %v8914_v47 = vld [vmem:[#allocation11 + $0xda8] sm:$0xff] }
 0x6f6   : > { %9472 = vmatprep.mubr.f32.mxu0 %v16252_v54  ;;  %9614 = vmatprep.mubr.f32.mxu1 %v16252_v54  ;;  %v12158_v54 = vpack.c.bf16 %v8795_v61, %v8787_v13  ;;  %v12042_v46 = vpack.c.bf16 %v8841_v49, %v8833_v48  ;;  %v8873_v13 = vld [vmem:[#allocation11 + $0xc60] sm:$0xff]  ;;  %v8907_v45 = vld [vmem:[#allocation11 + $0xd70] sm:$0xff]  ;;  %v8924_v48 = vld [vmem:[#allocation11 + $0xdf8] sm:$0xff] }
 0x6f7   : > { %v8905_v7 = vld [vmem:[#allocation11 + $0xd60] sm:$0xff] }
 0x6f8   : > { %12023 = vmatpush1.bf16.msra.mxu0 %v12022_v42  ;;  %12151 = vmatpush1.bf16.msra.mxu1 %v12150_v62  ;;  %v8858_v42 = vld [vmem:[#allocation11 + $0xbe8] sm:$0xff]  ;;  %v8852_v62 = vld [vmem:[#allocation11 + $0xbb8] sm:$0xff] }
 0x6f9   : > { %12025 = vmatprep.subr.bf16.mxu0 %v12024_v0  ;;  %12153 = vmatprep.subr.bf16.mxu1 %v12152_v1  ;;  %v12170_v0 = vpack.c.bf16 %v8843_v38, %v8835_v63  ;;  %v8849_v1 = vld [vmem:[#allocation11 + $0xba0] sm:$0xff]  ;;  %v12044_v57 = vpack.c.bf16 %v8858_v42, %v8850_v50  ;;  %v12172_v3 = vpack.c.bf16 %v8860_v40, %v8852_v62  ;;  %v8915_v42 = vld [vmem:[#allocation11 + $0xdb0] sm:$0xff]  ;;  %v8930_v40 = vld [vmem:[#allocation11 + $0xe28] sm:$0xff] }
 0x6fa   : > { %v12046_v10 = vpack.c.bf16 %v8857_v2, %v8849_v1  ;;  %v8921_v63 = vld [vmem:[#allocation11 + $0xde0] sm:$0xff]  ;;  %v8923_v62 = vld [vmem:[#allocation11 + $0xdf0] sm:$0xff]  ;;  %v8940_v1 = vld [vmem:[#allocation11 + $0xe78] sm:$0xff] }
 0x6fc   : > { %12027 = vmatpush1.bf16.msra.mxu0 %v12026_v33  ;;  %12155 = vmatpush1.bf16.msra.mxu1 %v12154_v58  ;;  %v8874_v33 = vld [vmem:[#allocation11 + $0xc68] sm:$0xff]  ;;  %v8868_v58 = vld [vmem:[#allocation11 + $0xc38] sm:$0xff] }
 0x6fd   : > { %12029 = vmatprep.subr.bf16.mxu0 %v12028_v11  ;;  %12157 = vmatprep.subr.bf16.mxu1 %v12156_v55  ;;  %v12174_v11 = vpack.c.bf16 %v8859_v4, %v8851_v52  ;;  %v8865_v55 = vld [vmem:[#allocation11 + $0xc20] sm:$0xff]  ;;  %v12048_v61 = vpack.c.bf16 %v8874_v33, %v8866_v5  ;;  %v12176_v15 = vpack.c.bf16 %v8876_v9, %v8868_v58  ;;  %v8931_v33 = vld [vmem:[#allocation11 + $0xe30] sm:$0xff]  ;;  %v8946_v9 = vld [vmem:[#allocation11 + $0xea8] sm:$0xff] }
 0x6fe   : > { %v12050_v20 = vpack.c.bf16 %v8873_v13, %v8865_v55  ;;  %v8937_v52 = vld [vmem:[#allocation11 + $0xe60] sm:$0xff]  ;;  %v8939_v58 = vld [vmem:[#allocation11 + $0xe70] sm:$0xff]  ;;  %v8956_v55 = vld [vmem:[#allocation11 + $0xef8] sm:$0xff] }
 0x700   : > { %12031 = vmatpush1.bf16.msra.mxu0 %v12030_v53  ;;  %12159 = vmatpush1.bf16.msra.mxu1 %v12158_v54  ;;  %v8890_v53 = vld [vmem:[#allocation11 + $0xce8] sm:$0xff]  ;;  %v8884_v54 = vld [vmem:[#allocation11 + $0xcb8] sm:$0xff] }
 0x701   : > { %12033 = vmatprep.subr.bf16.mxu0 %v12032_v8  ;;  %12161 = vmatprep.subr.bf16.mxu1 %v12160_v23  ;;  %v12178_v8 = vpack.c.bf16 %v8875_v18, %v8867_v16  ;;  %v8881_v23 = vld [vmem:[#allocation11 + $0xca0] sm:$0xff]  ;;  %v12052_v28 = vpack.c.bf16 %v8890_v53, %v8882_v6  ;;  %v12180_v14 = vpack.c.bf16 %v8892_v17, %v8884_v54  ;;  %v8947_v53 = vld [vmem:[#allocation11 + $0xeb0] sm:$0xff]  ;;  %v8962_v17 = vld [vmem:[#allocation11 + $0xf28] sm:$0xff] }
 0x702   : > { %v12054_v22 = vpack.c.bf16 %v8889_v24, %v8881_v23  ;;  %v8953_v16 = vld [vmem:[#allocation11 + $0xee0] sm:$0xff]  ;;  %v8955_v54 = vld [vmem:[#allocation11 + $0xef0] sm:$0xff]  ;;  %v8972_v23 = vld [vmem:[#allocation11 + $0xf78] sm:$0xff] }
 0x704   : > { %12035 = vmatpush1.bf16.msra.mxu0 %v12034_v32  ;;  %12163 = vmatpush1.bf16.msra.mxu1 %v12162_v21  ;;  %v8906_v32 = vld [vmem:[#allocation11 + $0xd68] sm:$0xff]  ;;  %v8900_v21 = vld [vmem:[#allocation11 + $0xd38] sm:$0xff] }
 0x705   : > { %12037 = vmatprep.subr.bf16.mxu0 %v12036_v36  ;;  %12165 = vmatprep.subr.bf16.mxu1 %v12164_v37  ;;  %v12182_v36 = vpack.c.bf16 %v8891_v30, %v8883_v12  ;;  %v8897_v37 = vld [vmem:[#allocation11 + $0xd20] sm:$0xff]  ;;  %v12056_v29 = vpack.c.bf16 %v8906_v32, %v8898_v31  ;;  %v12184_v19 = vpack.c.bf16 %v8908_v34, %v8900_v21  ;;  %v8963_v32 = vld [vmem:[#allocation11 + $0xf30] sm:$0xff]  ;;  %v8978_v34 = vld [vmem:[#allocation11 + $0xfa8] sm:$0xff] }
 0x706   : > { %v12058_v49 = vpack.c.bf16 %v8905_v7, %v8897_v37  ;;  %v8969_v12 = vld [vmem:[#allocation11 + $0xf60] sm:$0xff]  ;;  %v8971_v21 = vld [vmem:[#allocation11 + $0xf70] sm:$0xff]  ;;  %v8988_v37 = vld [vmem:[#allocation11 + $0xff8] sm:$0xff] }
 0x708   : > { %12039 = vmatpush1.bf16.msra.mxu0 %v12038_v25  ;;  %12167 = vmatpush1.bf16.msra.mxu1 %v12166_v35  ;;  %v8922_v25 = vld [vmem:[#allocation11 + $0xde8] sm:$0xff]  ;;  %v8916_v35 = vld [vmem:[#allocation11 + $0xdb8] sm:$0xff] }
 0x709   : > { %12041 = vmatprep.subr.bf16.mxu0 %v12040_v51  ;;  %12169 = vmatprep.subr.bf16.mxu1 %v12168_v27  ;;  %v12186_v51 = vpack.c.bf16 %v8907_v45, %v8899_v43  ;;  %v8913_v27 = vld [vmem:[#allocation11 + $0xda0] sm:$0xff]  ;;  %v12060_v38 = vpack.c.bf16 %v8922_v25, %v8914_v47  ;;  %v12188_v50 = vpack.c.bf16 %v8924_v48, %v8916_v35  ;;  %v8979_v25 = vld [vmem:[#allocation11 + $0xfb0] sm:$0xff]  ;;  %v9929_v48 = vld [vmem:[#allocation17 + $0x80] sm:$0xff] }
 0x70a   : > { %v12062_v2 = vpack.c.bf16 %v8921_v63, %v8913_v27  ;;  %v8985_v43 = vld [vmem:[#allocation11 + $0xfe0] sm:$0xff]  ;;  %v8987_v35 = vld [vmem:[#allocation11 + $0xff0] sm:$0xff] }
 0x70b   : > { %v9962_v27 = vld [vmem:[#allocation17 + $0x188] sm:$0xff] }
 0x70c   : > { %12043 = vmatpush1.bf16.msra.mxu0 %v12042_v46  ;;  %12171 = vmatpush1.bf16.msra.mxu1 %v12170_v0  ;;  %v8938_v46 = vld [vmem:[#allocation11 + $0xe68] sm:$0xff]  ;;  %v8932_v0 = vld [vmem:[#allocation11 + $0xe38] sm:$0xff] }
 0x70d   : > { %12045 = vmatprep.subr.bf16.mxu0 %v12044_v57  ;;  %12173 = vmatprep.subr.bf16.mxu1 %v12172_v3  ;;  %v12190_v57 = vpack.c.bf16 %v8923_v62, %v8915_v42  ;;  %v8929_v3 = vld [vmem:[#allocation11 + $0xe20] sm:$0xff]  ;;  %v12064_v4 = vpack.c.bf16 %v8938_v46, %v8930_v40  ;;  %v12192_v5 = vpack.c.bf16 %v8940_v1, %v8932_v0  ;;  %v9945_v46 = vld [vmem:[#allocation17 + $0x100] sm:$0xff]  ;;  %v9931_v1 = vld [vmem:[#allocation17 + $0x90] sm:$0xff] }
 0x70e   : > { %v12066_v13 = vpack.c.bf16 %v8937_v52, %v8929_v3  ;;  %v9914_v42 = vld [vmem:[#allocation17 + $0x8] sm:$0xff]  ;;  %v9964_v3 = vld [vmem:[#allocation17 + $0x198] sm:$0xff] }
 0x70f   : > { %v9946_v0 = vld [vmem:[#allocation17 + $0x108] sm:$0xff] }
 0x710   : > { %12047 = vmatpush1.bf16.msra.mxu0 %v12046_v10  ;;  %12175 = vmatpush1.bf16.msra.mxu1 %v12174_v11  ;;  %v8954_v10 = vld [vmem:[#allocation11 + $0xee8] sm:$0xff]  ;;  %v8948_v11 = vld [vmem:[#allocation11 + $0xeb8] sm:$0xff] }
 0x711   : > { %12049 = vmatprep.subr.bf16.mxu0 %v12048_v61  ;;  %12177 = vmatprep.subr.bf16.mxu1 %v12176_v15  ;;  %v12194_v61 = vpack.c.bf16 %v8939_v58, %v8931_v33  ;;  %v8945_v15 = vld [vmem:[#allocation11 + $0xea0] sm:$0xff]  ;;  %v12068_v18 = vpack.c.bf16 %v8954_v10, %v8946_v9  ;;  %v12196_v6 = vpack.c.bf16 %v8956_v55, %v8948_v11  ;;  %v9916_v33 = vld [vmem:[#allocation17 + $0x18] sm:$0xff]  ;;  %v9947_v10 = vld [vmem:[#allocation17 + $0x110] sm:$0xff] }
 0x712   : > { %v12070_v24 = vpack.c.bf16 %v8953_v16, %v8945_v15  ;;  %v9948_v11 = vld [vmem:[#allocation17 + $0x118] sm:$0xff]  ;;  %v9933_v55 = vld [vmem:[#allocation17 + $0xa0] sm:$0xff]  ;;  %v9966_v15 = vld [vmem:[#allocation17 + $0x1a8] sm:$0xff] }
 0x714   : > { %12051 = vmatpush1.bf16.msra.mxu0 %v12050_v20  ;;  %12179 = vmatpush1.bf16.msra.mxu1 %v12178_v8  ;;  %v8970_v20 = vld [vmem:[#allocation11 + $0xf68] sm:$0xff]  ;;  %v8964_v8 = vld [vmem:[#allocation11 + $0xf38] sm:$0xff] }
 0x715   : > { %12053 = vmatprep.subr.bf16.mxu0 %v12052_v28  ;;  %12181 = vmatprep.subr.bf16.mxu1 %v12180_v14  ;;  %v12198_v28 = vpack.c.bf16 %v8955_v54, %v8947_v53  ;;  %v8961_v14 = vld [vmem:[#allocation11 + $0xf20] sm:$0xff]  ;;  %v12072_v30 = vpack.c.bf16 %v8970_v20, %v8962_v17  ;;  %v12200_v31 = vpack.c.bf16 %v8972_v23, %v8964_v8  ;;  %v9949_v20 = vld [vmem:[#allocation17 + $0x120] sm:$0xff]  ;;  %v9935_v23 = vld [vmem:[#allocation17 + $0xb0] sm:$0xff] }
 0x716   : > { %v12074_v7 = vpack.c.bf16 %v8969_v12, %v8961_v14  ;;  %v9918_v53 = vld [vmem:[#allocation17 + $0x28] sm:$0xff]  ;;  %v9968_v14 = vld [vmem:[#allocation17 + $0x1b8] sm:$0xff] }
 0x717   : > { %v9950_v8 = vld [vmem:[#allocation17 + $0x128] sm:$0xff] }
 0x718   : > { %12055 = vmatpush1.bf16.msra.mxu0 %v12054_v22  ;;  %12183 = vmatpush1.bf16.msra.mxu1 %v12182_v36  ;;  %v8986_v22 = vld [vmem:[#allocation11 + $0xfe8] sm:$0xff]  ;;  %v8980_v36 = vld [vmem:[#allocation11 + $0xfb8] sm:$0xff] }
 0x719   : > { %12057 = vmatprep.subr.bf16.mxu0 %v12056_v29  ;;  %12185 = vmatprep.subr.bf16.mxu1 %v12184_v19  ;;  %v12202_v29 = vpack.c.bf16 %v8971_v21, %v8963_v32  ;;  %v8977_v19 = vld [vmem:[#allocation11 + $0xfa0] sm:$0xff]  ;;  %v12076_v45 = vpack.c.bf16 %v8986_v22, %v8978_v34  ;;  %v12204_v47 = vpack.c.bf16 %v8988_v37, %v8980_v36  ;;  %v9951_v34 = vld [vmem:[#allocation17 + $0x130] sm:$0xff]  ;;  %v9952_v22 = vld [vmem:[#allocation17 + $0x138] sm:$0xff] }
 0x71a   : > { %v12078_v63 = vpack.c.bf16 %v8985_v43, %v8977_v19  ;;  %v9937_v36 = vld [vmem:[#allocation17 + $0xc0] sm:$0xff]  ;;  %v9938_v37 = vld [vmem:[#allocation17 + $0xc8] sm:$0xff]  ;;  %v12254_v43 = vpack.c.bf16 %v9952_v22, %v9951_v34 }
 0x71c   : > { %12059 = vmatpush1.bf16.msra.mxu0 %v12058_v49  ;;  %12187 = vmatpush1.bf16.msra.mxu1 %v12186_v51  ;;  %v9930_v49 = vld [vmem:[#allocation17 + $0x88] sm:$0xff]  ;;  %v9961_v51 = vld [vmem:[#allocation17 + $0x180] sm:$0xff] }
 0x71d   : > { %12061 = vmatprep.subr.bf16.mxu0 %v12060_v38  ;;  %12189 = vmatprep.subr.bf16.mxu1 %v12188_v50  ;;  %v12206_v38 = vpack.c.bf16 %v8987_v35, %v8979_v25  ;;  %v9913_v50 = vld [vmem:[#allocation17] sm:$0xff]  ;;  %v12208_v62 = vpack.c.bf16 %v9930_v49, %v9929_v48  ;;  %v12240_v40 = vpack.c.bf16 %v9962_v27, %v9961_v51  ;;  %v9954_v49 = vld [vmem:[#allocation17 + $0x148] sm:$0xff]  ;;  %v9939_v51 = vld [vmem:[#allocation17 + $0xd0] sm:$0xff] }
 0x71e   : > { %v12210_v52 = vpack.c.bf16 %v9914_v42, %v9913_v50  ;;  %v12224_v25 = vpack.c.bf16 %v9938_v37, %v9937_v36  ;;  %v9953_v48 = vld [vmem:[#allocation17 + $0x140] sm:$0xff]  ;;  %v9940_v27 = vld [vmem:[#allocation17 + $0xd8] sm:$0xff] }
 0x71f   : > { %v12258_v42 = vpack.c.bf16 %v9954_v49, %v9953_v48 }
 0x720   : > { %12063 = vmatpush1.bf16.msra.mxu0 %v12062_v2  ;;  %12191 = vmatpush1.bf16.msra.mxu1 %v12190_v57  ;;  %v9932_v2 = vld [vmem:[#allocation17 + $0x98] sm:$0xff]  ;;  %v9963_v57 = vld [vmem:[#allocation17 + $0x190] sm:$0xff] }
 0x721   : > { %12065 = vmatprep.subr.bf16.mxu0 %v12064_v4  ;;  %12193 = vmatprep.subr.bf16.mxu1 %v12192_v5  ;;  %v12242_v4 = vpack.c.bf16 %v9946_v0, %v9945_v46  ;;  %v9915_v5 = vld [vmem:[#allocation17 + $0x10] sm:$0xff]  ;;  %v12212_v58 = vpack.c.bf16 %v9932_v2, %v9931_v1  ;;  %v12244_v9 = vpack.c.bf16 %v9964_v3, %v9963_v57  ;;  %v9956_v2 = vld [vmem:[#allocation17 + $0x158] sm:$0xff]  ;;  %v9941_v57 = vld [vmem:[#allocation17 + $0xe0] sm:$0xff] }
 0x722   : > { %v12214_v16 = vpack.c.bf16 %v9916_v33, %v9915_v5  ;;  %v12228_v46 = vpack.c.bf16 %v9940_v27, %v9939_v51  ;;  %v9955_v1 = vld [vmem:[#allocation17 + $0x150] sm:$0xff]  ;;  %v9942_v3 = vld [vmem:[#allocation17 + $0xe8] sm:$0xff] }
 0x723   : > { %v12262_v33 = vpack.c.bf16 %v9956_v2, %v9955_v1 }
 0x724   : > { %12067 = vmatpush1.bf16.msra.mxu0 %v12066_v13  ;;  %12195 = vmatpush1.bf16.msra.mxu1 %v12194_v61  ;;  %v9934_v13 = vld [vmem:[#allocation17 + $0xa8] sm:$0xff]  ;;  %v9965_v61 = vld [vmem:[#allocation17 + $0x1a0] sm:$0xff] }
 0x725   : > { %12069 = vmatprep.subr.bf16.mxu0 %v12068_v18  ;;  %12197 = vmatprep.subr.bf16.mxu1 %v12196_v6  ;;  %v12246_v18 = vpack.c.bf16 %v9948_v11, %v9947_v10  ;;  %v9917_v6 = vld [vmem:[#allocation17 + $0x20] sm:$0xff]  ;;  %v12216_v54 = vpack.c.bf16 %v9934_v13, %v9933_v55  ;;  %v12248_v17 = vpack.c.bf16 %v9966_v15, %v9965_v61  ;;  %v9958_v13 = vld [vmem:[#allocation17 + $0x168] sm:$0xff]  ;;  %v9943_v61 = vld [vmem:[#allocation17 + $0xf0] sm:$0xff] }
 0x726   : > { %v12218_v12 = vpack.c.bf16 %v9918_v53, %v9917_v6  ;;  %v12232_v10 = vpack.c.bf16 %v9942_v3, %v9941_v57  ;;  %v9957_v55 = vld [vmem:[#allocation17 + $0x160] sm:$0xff]  ;;  %v9944_v15 = vld [vmem:[#allocation17 + $0xf8] sm:$0xff] }
 0x727   : > { %v12266_v53 = vpack.c.bf16 %v9958_v13, %v9957_v55 }
 0x728   : > { %12071 = vmatpush1.bf16.msra.mxu0 %v12070_v24  ;;  %12199 = vmatpush1.bf16.msra.mxu1 %v12198_v28  ;;  %v9936_v24 = vld [vmem:[#allocation17 + $0xb8] sm:$0xff]  ;;  %v9967_v28 = vld [vmem:[#allocation17 + $0x1b0] sm:$0xff] }
 0x729   : > { %12073 = vmatprep.subr.bf16.mxu0 %v12072_v30  ;;  %12201 = vmatprep.subr.bf16.mxu1 %v12200_v31  ;;  %v9919_v30 = vld [vmem:[#allocation17 + $0x30] sm:$0xff]  ;;  %v9920_v31 = vld [vmem:[#allocation17 + $0x38] sm:$0xff]  ;;  %v12220_v32 = vpack.c.bf16 %v9936_v24, %v9935_v23  ;;  %v12252_v21 = vpack.c.bf16 %v9968_v14, %v9967_v28 }
 0x72a   : > { %v12222_v19 = vpack.c.bf16 %v9920_v31, %v9919_v30  ;;  %v9959_v23 = vld [vmem:[#allocation17 + $0x170] sm:$0xff]  ;;  %v9960_v24 = vld [vmem:[#allocation17 + $0x178] sm:$0xff] }
 0x72b   : > { %v12270_v14 = vpack.c.bf16 %v9960_v24, %v9959_v23 }
 0x72c   : > { %12075 = vmatpush1.bf16.msra.mxu0 %v12074_v7  ;;  %12203 = vmatpush1.bf16.msra.mxu1 %v12202_v29  ;;  %v9969_v7 = vld [vmem:[#allocation17 + $0x1c0] sm:$0xff]  ;;  %v9970_v29 = vld [vmem:[#allocation17 + $0x1c8] sm:$0xff] }
 0x72d   : > { %12077 = vmatprep.subr.bf16.mxu0 %v12076_v45  ;;  %12205 = vmatprep.subr.bf16.mxu1 %v12204_v47  ;;  %v9921_v45 = vld [vmem:[#allocation17 + $0x40] sm:$0xff]  ;;  %v9922_v47 = vld [vmem:[#allocation17 + $0x48] sm:$0xff]  ;;  %v12256_v35 = vpack.c.bf16 %v9970_v29, %v9969_v7 }
 0x72e   : > { %v12226_v50 = vpack.c.bf16 %v9922_v47, %v9921_v45 }
 0x730   : > { %12079 = vmatpush1.bf16.msra.mxu0 %v12078_v63  ;;  %12207 = vmatpush1.bf16.msra.mxu1 %v12206_v38  ;;  %v9971_v63 = vld [vmem:[#allocation17 + $0x1d0] sm:$0xff]  ;;  %v9972_v38 = vld [vmem:[#allocation17 + $0x1d8] sm:$0xff] }
 0x731   : > { %12209 = vmatprep.subr.bf16.mxu0 %v12208_v62  ;;  %12241 = vmatprep.subr.bf16.mxu1 %v12240_v40  ;;  %v9923_v62 = vld [vmem:[#allocation17 + $0x50] sm:$0xff]  ;;  %v9924_v40 = vld [vmem:[#allocation17 + $0x58] sm:$0xff]  ;;  %v12260_v0 = vpack.c.bf16 %v9972_v38, %v9971_v63 }
 0x732   : > { %v12230_v5 = vpack.c.bf16 %v9924_v40, %v9923_v62 }
 0x733   : > { %9473 = vmatmul.mubr.f32.vlgmr.msra.gmra.mrb[2].mxu0 %v16246_v26  ;;  %9615 = vmatmul.mubr.f32.vlgmr.msra.gmra.mrb[2].mxu1 %v16246_v26  ;;  %v12250_v26 = vpack.c.bf16 %v9950_v8, %v9949_v20  ;;  %v9928_v8 = vld [vmem:[#allocation17 + $0x78] sm:$0xff] }
 0x734   : > { %12211 = vmatpush3.bf16.msra.mxu0 %v12210_v52  ;;  %12243 = vmatpush3.bf16.msra.mxu1 %v12242_v4  ;;  %v9973_v52 = vld [vmem:[#allocation17 + $0x1e0] sm:$0xff]  ;;  %v9974_v4 = vld [vmem:[#allocation17 + $0x1e8] sm:$0xff] }
 0x735   : > { %12213 = vmatprep.subr.bf16.mxu0 %v12212_v58  ;;  %12245 = vmatprep.subr.bf16.mxu1 %v12244_v9  ;;  %v9925_v58 = vld [vmem:[#allocation17 + $0x60] sm:$0xff]  ;;  %v9926_v9 = vld [vmem:[#allocation17 + $0x68] sm:$0xff]  ;;  %v12264_v11 = vpack.c.bf16 %v9974_v4, %v9973_v52 }
 0x736   : > { %v12234_v6 = vpack.c.bf16 %v9926_v9, %v9925_v58 }
 0x738   : > { %12215 = vmatpush3.bf16.msra.mxu0 %v12214_v16  ;;  %12247 = vmatpush3.bf16.msra.mxu1 %v12246_v18  ;;  %v9975_v16 = vld [vmem:[#allocation17 + $0x1f0] sm:$0xff]  ;;  %v9976_v18 = vld [vmem:[#allocation17 + $0x1f8] sm:$0xff] }
 0x739   : > { %12217 = vmatprep.subr.bf16.mxu0 %v12216_v54  ;;  %12249 = vmatprep.subr.bf16.mxu1 %v12248_v17  ;;  %v9927_v54 = vld [vmem:[#allocation17 + $0x70] sm:$0xff]  ;;  %v12236_v17 = vpack.c.bf16 %v9944_v15, %v9943_v61  ;;  %v12268_v20 = vpack.c.bf16 %v9976_v18, %v9975_v16 }
 0x73a   : > { %v12238_v28 = vpack.c.bf16 %v9928_v8, %v9927_v54 }
 0x73c   : > { %12219 = vmatpush3.bf16.msra.mxu0 %v12218_v12  ;;  %12251 = vmatpush3.bf16.msra.mxu1 %v12250_v26  ;;  %v16268_v12 = vld [vmem:[#allocation12] sm:$0xff] }
 0x73d   : > { %12221 = vmatprep.subr.bf16.mxu0 %v12220_v32  ;;  %12253 = vmatprep.subr.bf16.mxu1 %v12252_v21  ;;  %v8994_v26 = vrot.slane %v16268_v12, %v16212_v56  ;;  %v9002_v30 = vrot.slane %v16268_v12, %v16218_v59  ;;  %v8998_v31 = vrot.slane %v16268_v12, %v16215_v41 }
 0x73e   : > { %v9006_v32 = vrot.slane %v16268_v12, %v16221_v60 }
 0x740   : > { %12223 = vmatpush3.bf16.msra.mxu0 %v12222_v19  ;;  %12255 = vmatpush3.bf16.msra.mxu1 %v12254_v43 }
 0x741   : > { %12225 = vmatprep.subr.bf16.mxu0 %v12224_v25  ;;  %12257 = vmatprep.subr.bf16.mxu1 %v12256_v35 }
 0x744   : > { %12227 = vmatpush3.bf16.msra.mxu0 %v12226_v50  ;;  %12259 = vmatpush3.bf16.msra.mxu1 %v12258_v42 }
 0x745   : > { %12229 = vmatprep.subr.bf16.mxu0 %v12228_v46  ;;  %12261 = vmatprep.subr.bf16.mxu1 %v12260_v0 }
 0x748   : > { %12231 = vmatpush3.bf16.msra.mxu0 %v12230_v5  ;;  %12263 = vmatpush3.bf16.msra.mxu1 %v12262_v33 }
 0x749   : > { %12233 = vmatprep.subr.bf16.mxu0 %v12232_v10  ;;  %12265 = vmatprep.subr.bf16.mxu1 %v12264_v11 }
 0x74c   : > { %12235 = vmatpush3.bf16.msra.mxu0 %v12234_v6  ;;  %12267 = vmatpush3.bf16.msra.mxu1 %v12266_v53 }
 0x74d   : > { %12237 = vmatprep.subr.bf16.mxu0 %v12236_v17  ;;  %12269 = vmatprep.subr.bf16.mxu1 %v12268_v20 }
 0x750   : > { %12239 = vmatpush3.bf16.msra.mxu0 %v12238_v28  ;;  %12271 = vmatpush3.bf16.msra.mxu1 %v12270_v14 }
 0x786   : > { %v9190_v21 = vpop.f32.mrb[0].mxu0  ;;  %v9332_v34 = vpop.f32.mrb[0].mxu1 }
 0x787   : > { %v12456_v22 = vadd.f32 %v9190_v21, %v8994_v26  ;;  %v12458_v36 = vadd.f32 %v9332_v34, %v9002_v30  ;;  %v9192_v37 = vpop.f32.mrb[1].mxu0  ;;  %v9334_v7 = vpop.f32.mrb[1].mxu1 }
 0x788   : > { %v12457_v29 = vadd.f32 %v9192_v37, %v8998_v31  ;;  %v12459_v19 = vadd.f32 %v9334_v7, %v9006_v32 }
 0x789   : > { %v9621_v43 = vsel %vm8260_vm0, %v12456_v22, 0.0  ;;  %v9635_v45 = vsel %vm8260_vm0, %v12458_v36, 0.0 }
 0x78a   : > { %v9622_v47 = vrot.slane %v9621_v43, 4  ;;  %v9636_v25 = vrot.slane %v9635_v45, 4  ;;  %v9628_v35 = vsel %vm8260_vm0, %v12457_v29, 0.0  ;;  %v9642_v48 = vsel %vm8260_vm0, %v12459_v19, 0.0 }
 0x78b   : > { %v9629_v49 = vrot.slane %v9628_v35, 4  ;;  %v9643_v51 = vrot.slane %v9642_v48, 4 }
 0x78c   : > { %v9623_v27 = vadd.f32 %v9622_v47, %v9621_v43  ;;  %v9637_v63 = vadd.f32 %v9636_v25, %v9635_v45  ;;  %v9994_v43 = vld [vmem:[#allocation17 + $0x288] sm:$0xff]  ;;  %v10025_v45 = vld [vmem:[#allocation17 + $0x380] sm:$0xff] }
 0x78d   : > { %v9630_v38 = vadd.f32 %v9629_v49, %v9628_v35  ;;  %v9644_v50 = vadd.f32 %v9643_v51, %v9642_v48  ;;  %v10026_v48 = vld [vmem:[#allocation17 + $0x388] sm:$0xff] }
 0x78e   : > { %v9624_v42 = vrot.slane %v9623_v27, 2  ;;  %v9638_v62 = vrot.slane %v9637_v63, 2 }
 0x78f   : > { %v9631_v40 = vrot.slane %v9630_v38, 2  ;;  %v9645_v46 = vrot.slane %v9644_v50, 2 }
 0x790   : > { %v9625_v0 = vadd.f32 %v9624_v42, %v9623_v27  ;;  %v9639_v1 = vadd.f32 %v9638_v62, %v9637_v63  ;;  %v12304_v27 = vpack.c.bf16 %v10026_v48, %v10025_v45 }
 0x791   : > { %v9632_v2 = vadd.f32 %v9631_v40, %v9630_v38  ;;  %v9646_v57 = vadd.f32 %v9645_v46, %v9644_v50 }
 0x792   : > { %v9626_v3 = vrot.slane %v9625_v0, 1  ;;  %v9640_v52 = vrot.slane %v9639_v1, 1  ;;  %12305 = vmatprep.subr.bf16.mxu1 %v12304_v27  ;;  %v10011_v27 = vld [vmem:[#allocation17 + $0x310] sm:$0xff] }
 0x793   : > { %v9633_v4 = vrot.slane %v9632_v2, 1  ;;  %v9647_v5 = vrot.slane %v9646_v57, 1 }
 0x794   : > { %v9627_v33 = vadd.f32 %v9626_v3, %v9625_v0  ;;  %v9641_v58 = vadd.f32 %v9640_v52, %v9639_v1 }
 0x795   : > { %v9634_v9 = vadd.f32 %v9633_v4, %v9632_v2  ;;  %v9648_v10 = vadd.f32 %v9647_v5, %v9646_v57 }
 0x796   : > { %v9677_v11 = vmul.f32 0.5, %v9627_v33  ;;  %v9679_v55 = vmul.f32 0.5, %v9641_v58  ;;  %v16298_v58 = vld [vmem:[#allocation14] sm:$0xff] }
 0x797   : > { %v9678_v13 = vmul.f32 0.5, %v9634_v9  ;;  %v9680_v61 = vmul.f32 0.5, %v9648_v10  ;;  %v16300_v9 = vld [vmem:[#allocation15] sm:$0xff]  ;;  %v9794_v10 = vrot.slane %v16298_v58, %v16212_v56 }
 0x798   : > { %v9685_v15 = vsub.f32 %v12456_v22, %v9677_v11  ;;  %v16282_v16 = vsub.f32 %v12458_v36, %v9679_v55  ;;  %v9802_v55 = vrot.slane %v16298_v58, %v16218_v59 }
 0x799   : > { %v16284_v18 = vsub.f32 %v12457_v29, %v9678_v13  ;;  %v16286_v6 = vsub.f32 %v12459_v19, %v9680_v61  ;;  %v9993_v19 = vld [vmem:[#allocation17 + $0x280] sm:$0xff] }
 0x79a   : > { %v9693_v53 = vmul.f32 %v9685_v15, %v9685_v15  ;;  %v9695_v54 = vmul.f32 %v16282_v16, %v16282_v16  ;;  %v12272_v35 = vpack.c.bf16 %v9994_v43, %v9993_v19  ;;  %v9996_v19 = vld [vmem:[#allocation17 + $0x298] sm:$0xff] }
 0x79b   : > { %v9694_v17 = vmul.f32 %v16284_v18, %v16284_v18  ;;  %v9696_v20 = vmul.f32 %v16286_v6, %v16286_v6  ;;  %v10028_v43 = vld [vmem:[#allocation17 + $0x398] sm:$0xff] }
 0x79c   : > { %v9701_v8 = vsel %vm8260_vm0, %v9693_v53, 0.0  ;;  %v9715_v23 = vsel %vm8260_vm0, %v9695_v54, 0.0  ;;  %12273 = vmatprep.subr.bf16.mxu0 %v12272_v35  ;;  %v9798_v53 = vrot.slane %v16298_v58, %v16215_v41  ;;  %v9844_v54 = vrot.slane %v16300_v9, %v16212_v56 }
 0x79d   : > { %v9702_v24 = vrot.slane %v9701_v8, 4  ;;  %v9716_v28 = vrot.slane %v9715_v23, 4  ;;  %v9708_v14 = vsel %vm8260_vm0, %v9694_v17, 0.0  ;;  %v9722_v26 = vsel %vm8260_vm0, %v9696_v20, 0.0 }
 0x79e   : > { %v9709_v30 = vrot.slane %v9708_v14, 4  ;;  %v9723_v31 = vrot.slane %v9722_v26, 4  ;;  %v9856_v56 = vrot.slane %v16300_v9, %v16221_v60 }
 0x79f   : > { %v9703_v32 = vadd.f32 %v9702_v24, %v9701_v8  ;;  %v9717_v21 = vadd.f32 %v9716_v28, %v9715_v23  ;;  %v9806_v8 = vrot.slane %v16298_v58, %v16221_v60  ;;  %v9852_v23 = vrot.slane %v16300_v9, %v16218_v59 }
 0x7a0   : > { %v9710_v34 = vadd.f32 %v9709_v30, %v9708_v14  ;;  %v9724_v22 = vadd.f32 %v9723_v31, %v9722_v26 }
 0x7a1   : > { %v9704_v36 = vrot.slane %v9703_v32, 2  ;;  %v9718_v37 = vrot.slane %v9717_v21, 2 }
 0x7a2   : > { %v9711_v7 = vrot.slane %v9710_v34, 2  ;;  %v9725_v29 = vrot.slane %v9724_v22, 2 }
 0x7a3   : > { %v9705_v47 = vadd.f32 %v9704_v36, %v9703_v32  ;;  %v9719_v25 = vadd.f32 %v9718_v37, %v9717_v21  ;;  %v10009_v36 = vld [vmem:[#allocation17 + $0x300] sm:$0xff]  ;;  %v10010_v37 = vld [vmem:[#allocation17 + $0x308] sm:$0xff] }
 0x7a4   : > { %v9712_v49 = vadd.f32 %v9711_v7, %v9710_v34  ;;  %v9726_v51 = vadd.f32 %v9725_v29, %v9724_v22  ;;  %v9977_v34 = vld [vmem:[#allocation17 + $0x200] sm:$0xff]  ;;  %v9978_v22 = vld [vmem:[#allocation17 + $0x208] sm:$0xff]  ;;  %v9995_v7 = vld [vmem:[#allocation17 + $0x290] sm:$0xff]  ;;  %v12306_v35 = vpack.c.bf16 %v10010_v37, %v10009_v36 }
 0x7a5   : > { %v9706_v63 = vrot.slane %v9705_v47, 1  ;;  %v9720_v38 = vrot.slane %v9719_v25, 1  ;;  %v12276_v48 = vpack.c.bf16 %v9996_v19, %v9995_v7  ;;  %v10003_v36 = vld [vmem:[#allocation17 + $0x2d0] sm:$0xff]  ;;  %v10004_v37 = vld [vmem:[#allocation17 + $0x2d8] sm:$0xff] }
 0x7a6   : > { %v9713_v50 = vrot.slane %v9712_v49, 1  ;;  %v9727_v42 = vrot.slane %v9726_v51, 1  ;;  %v10035_v7 = vld [vmem:[#allocation17 + $0x3d0] sm:$0xff] }
 0x7a7   : > { %v9707_v62 = vadd.f32 %v9706_v63, %v9705_v47  ;;  %v9721_v40 = vadd.f32 %v9720_v38, %v9719_v25  ;;  %v12274_v47 = vpack.c.bf16 %v9978_v22, %v9977_v34  ;;  %v10017_v34 = vld [vmem:[#allocation17 + $0x340] sm:$0xff] }
 0x7a8   : > { %v9714_v46 = vadd.f32 %v9713_v50, %v9712_v49  ;;  %v9728_v0 = vadd.f32 %v9727_v42, %v9726_v51  ;;  %v9979_v49 = vld [vmem:[#allocation17 + $0x210] sm:$0xff]  ;;  %v9980_v51 = vld [vmem:[#allocation17 + $0x218] sm:$0xff] }
 0x7a9   : > { %v9757_v1 = vmul.f32 0.5, %v9707_v62  ;;  %v9759_v2 = vmul.f32 0.5, %v9721_v40  ;;  %v10012_v42 = vld [vmem:[#allocation17 + $0x318] sm:$0xff]  ;;  %v9997_v62 = vld [vmem:[#allocation17 + $0x2a0] sm:$0xff]  ;;  %v9998_v40 = vld [vmem:[#allocation17 + $0x2a8] sm:$0xff] }
 0x7aa   : > { %v9758_v57 = vmul.f32 0.5, %v9714_v46  ;;  %v9760_v3 = vmul.f32 0.5, %v9728_v0  ;;  %v10029_v0 = vld [vmem:[#allocation17 + $0x3a0] sm:$0xff] }
 0x7ab   : > { %v9765_v52 = vadd.f32 1e-05, %v9757_v1  ;;  %v9767_v4 = vadd.f32 1e-05, %v9759_v2  ;;  %v10030_v1 = vld [vmem:[#allocation17 + $0x3a8] sm:$0xff]  ;;  %v12278_v2 = vpack.c.bf16 %v9980_v51, %v9979_v49 }
 0x7ac   : > { %v9766_v5 = vadd.f32 1e-05, %v9758_v57  ;;  %v9768_v33 = vadd.f32 1e-05, %v9760_v3  ;;  %v12310_v57 = vpack.c.bf16 %v10012_v42, %v10011_v27  ;;  %v12280_v3 = vpack.c.bf16 %v9998_v40, %v9997_v62  ;;  %v10038_v49 = vld [vmem:[#allocation17 + $0x3e8] sm:$0xff]  ;;  %v10021_v42 = vld [vmem:[#allocation17 + $0x360] sm:$0xff] }
 0x7ad   : > { %14163 = vrsqrt.f32 %v9765_v52  ;;  %v9981_v52 = vld [vmem:[#allocation17 + $0x220] sm:$0xff]  ;;  %v10022_v40 = vld [vmem:[#allocation17 + $0x368] sm:$0xff] }
 0x7ae   : > { %14165 = vrsqrt.f32 %v9767_v4  ;;  %v9982_v4 = vld [vmem:[#allocation17 + $0x228] sm:$0xff] }
 0x7af   : > { %14167 = vrsqrt.f32 %v9766_v5  ;;  %v10013_v5 = vld [vmem:[#allocation17 + $0x320] sm:$0xff] }
 0x7b0   : > { %14169 = vrsqrt.f32 %v9768_v33  ;;  %v12312_v33 = vpack.c.bf16 %v10030_v1, %v10029_v0  ;;  %v10008_v0 = vld [vmem:[#allocation17 + $0x2f8] sm:$0xff]  ;;  %v10039_v1 = vld [vmem:[#allocation17 + $0x3f0] sm:$0xff] }
 0x7b7   : > { %v14164_v11 = vpop.eup %14163 }
 0x7b8   : > { %v14166_v13 = vpop.eup %14165  ;;  %v9781_v61 = vmul.f32 %v14164_v11, %v9685_v15  ;;  %v9848_v15 = vrot.slane %v16300_v9, %v16215_v41  ;;  %v10027_v41 = vld [vmem:[#allocation17 + $0x390] sm:$0xff] }
 0x7b9   : > { %v14168_v17 = vpop.eup %14167  ;;  %v9783_v20 = vmul.f32 %v14166_v13, %v16282_v16  ;;  %v12308_v50 = vpack.c.bf16 %v10028_v43, %v10027_v41  ;;  %v9999_v11 = vld [vmem:[#allocation17 + $0x2b0] sm:$0xff]  ;;  %v12292_v41 = vpack.c.bf16 %v10004_v37, %v10003_v36 }
 0x7ba   : > { %v14170_v24 = vpop.eup %14169  ;;  %v9831_v28 = vmul.f32 %v9794_v10, %v9781_v61  ;;  %v9782_v14 = vmul.f32 %v14168_v17, %v16284_v18  ;;  %v10014_v10 = vld [vmem:[#allocation17 + $0x328] sm:$0xff]  ;;  %v10031_v13 = vld [vmem:[#allocation17 + $0x3b0] sm:$0xff]  ;;  %v10032_v61 = vld [vmem:[#allocation17 + $0x3b8] sm:$0xff] }
 0x7bb   : > { %v9833_v26 = vmul.f32 %v9802_v55, %v9783_v20  ;;  %v9784_v30 = vmul.f32 %v14170_v24, %v16286_v6  ;;  %v10000_v55 = vld [vmem:[#allocation17 + $0x2b8] sm:$0xff]  ;;  %v9983_v20 = vld [vmem:[#allocation17 + $0x230] sm:$0xff]  ;;  %v12316_v24 = vpack.c.bf16 %v10032_v61, %v10031_v13  ;;  %v16323_v61 = vsub.s32 4, %v15023_v44 }
 0x7bc   : > { %v9832_v16 = vmul.f32 %v9798_v53, %v9782_v14  ;;  %v9881_v31 = vadd.f32 %v9844_v54, %v9831_v28  ;;  %v12282_v53 = vpack.c.bf16 %v9982_v4, %v9981_v52  ;;  %v12314_v54 = vpack.c.bf16 %v10014_v10, %v10013_v5  ;;  %v10016_v28 = vld [vmem:[#allocation17 + $0x338] sm:$0xff]  ;;  %v10001_v14 = vld [vmem:[#allocation17 + $0x2c0] sm:$0xff]  ;;  %v9987_v43 = vld [vmem:[#allocation17 + $0x250] sm:$0xff] }
 0x7bd   : > { %v9834_v32 = vmul.f32 %v9806_v8, %v9784_v30  ;;  %v9883_v21 = vadd.f32 %v9852_v23, %v9833_v26  ;;  %v12284_v17 = vpack.c.bf16 %v10000_v55, %v9999_v11  ;;  %v9984_v8 = vld [vmem:[#allocation17 + $0x238] sm:$0xff]  ;;  %v10015_v23 = vld [vmem:[#allocation17 + $0x330] sm:$0xff]  ;;  %v10033_v26 = vld [vmem:[#allocation17 + $0x3c0] sm:$0xff] }
 0x7be   : > { %v9882_v59 = vadd.f32 %v9848_v15, %v9832_v16  ;;  %v9897_v29 = vmul.f32 0.1, %v9881_v31  ;;  %vm9889_vm2 = vcmp.gt.f32.partialorder %v9881_v31, 0.0  ;;  %v10002_v15 = vld [vmem:[#allocation17 + $0x2c8] sm:$0xff]  ;;  %v12318_v16 = vpack.c.bf16 %v10016_v28, %v10015_v23  ;;  %v9991_v4 = vld [vmem:[#allocation17 + $0x270] sm:$0xff]  ;;  %v9992_v5 = vld [vmem:[#allocation17 + $0x278] sm:$0xff] }
 0x7bf   : > { %v9884_v18 = vadd.f32 %v9856_v56, %v9834_v32  ;;  %v9899_v45 = vmul.f32 0.1, %v9883_v21  ;;  %vm9891_vm4 = vcmp.gt.f32.partialorder %v9883_v21, 0.0  ;;  %v10034_v30 = vld [vmem:[#allocation17 + $0x3c8] sm:$0xff]  ;;  %v12286_v56 = vpack.c.bf16 %v9984_v8, %v9983_v20  ;;  %v9985_v32 = vld [vmem:[#allocation17 + $0x240] sm:$0xff]  ;;  %v10023_v10 = vld [vmem:[#allocation17 + $0x370] sm:$0xff] }
 0x7c0   : > { %vm9890_vm1 = vcmp.gt.f32.partialorder %v9882_v59, 0.0  ;;  %v9898_v6 = vmul.f32 0.1, %v9882_v59  ;;  %v9905_v38 = vsel %vm9889_vm2, %v9881_v31, %v9897_v29  ;;  %v12288_v31 = vpack.c.bf16 %v10002_v15, %v10001_v14  ;;  %v10024_v11 = vld [vmem:[#allocation17 + $0x378] sm:$0xff] }
 0x7c1   : > { %vm9892_vm3 = vcmp.gt.f32.partialorder %v9884_v18, 0.0  ;;  %v9900_v60 = vmul.f32 0.1, %v9884_v18  ;;  %v9907_v46 = vsel %vm9891_vm4, %v9883_v21, %v9899_v45  ;;  %v9986_v21 = vld [vmem:[#allocation17 + $0x248] sm:$0xff]  ;;  %v12320_v22 = vpack.c.bf16 %v10034_v30, %v10033_v26  ;;  %v10019_v45 = vld [vmem:[#allocation17 + $0x350] sm:$0xff] }
 0x7c2   : > { %v9906_v25 = vsel %vm9890_vm1, %v9882_v59, %v9898_v6  ;;  %v10018_v59 = vld [vmem:[#allocation17 + $0x348] sm:$0xff]  ;;  %v12290_v29 = vpack.c.bf16 %v9986_v21, %v9985_v32  ;;  %v9988_v6 = vld [vmem:[#allocation17 + $0x258] sm:$0xff]  ;;  %v12302_v55 = vpack.c.bf16 %v9992_v5, %v9991_v4  ;;  %v12334_v13 = vpack.c.bf16 %v10024_v11, %v10023_v10 }
 0x7c3   : > { %10112 = vmatprep.mubr.f32.mxu0 %v9906_v25  ;;  %v9908_v63 = vsel %vm9892_vm3, %v9884_v18, %v9900_v60  ;;  %v10036_v18 = vld [vmem:[#allocation17 + $0x3d8] sm:$0xff]  ;;  %v12322_v19 = vpack.c.bf16 %v10018_v59, %v10017_v34  ;;  %v10005_v25 = vld [vmem:[#allocation17 + $0x2e0] sm:$0xff]  ;;  %v12294_v51 = vpack.c.bf16 %v9988_v6, %v9987_v43  ;;  %v9010_v20 = vrot.slane %v16268_v12, %v16323_v61 }
 0x7c4   : > { %10182 = vmatprep.mubr.f32.mxu1 %v9908_v63  ;;  %10113 = vmatmul.mubr.f32.vlgmr.msra.gmra.mrb[4].mxu0 %v9905_v38  ;;  %v12324_v60 = vpack.c.bf16 %v10036_v18, %v10035_v7  ;;  %v9989_v38 = vld [vmem:[#allocation17 + $0x260] sm:$0xff] }
 0x7c5   : > { %10183 = vmatmul.mubr.f32.vlgmr.msra.gmra.mrb[4].mxu1 %v9907_v46  ;;  %12275 = vmatpush3.bf16.msra.mxu0 %v12274_v47  ;;  %v10020_v47 = vld [vmem:[#allocation17 + $0x358] sm:$0xff]  ;;  %v10007_v46 = vld [vmem:[#allocation17 + $0x2f0] sm:$0xff] }
 0x7c6   : > { %12307 = vmatpush3.bf16.msra.mxu1 %v12306_v35  ;;  %12277 = vmatprep.subr.bf16.mxu0 %v12276_v48  ;;  %v10006_v35 = vld [vmem:[#allocation17 + $0x2e8] sm:$0xff]  ;;  %v10037_v48 = vld [vmem:[#allocation17 + $0x3e0] sm:$0xff]  ;;  %v12326_v27 = vpack.c.bf16 %v10020_v47, %v10019_v45  ;;  %v12300_v52 = vpack.c.bf16 %v10008_v0, %v10007_v46 }
 0x7c7   : > { %12309 = vmatprep.subr.bf16.mxu1 %v12308_v50  ;;  %v12296_v63 = vpack.c.bf16 %v10006_v35, %v10005_v25  ;;  %v9990_v50 = vld [vmem:[#allocation17 + $0x268] sm:$0xff]  ;;  %v12328_v62 = vpack.c.bf16 %v10038_v49, %v10037_v48 }
 0x7c9   : > { %12279 = vmatpush3.bf16.msra.mxu0 %v12278_v2  ;;  %v10040_v2 = vld [vmem:[#allocation17 + $0x3f8] sm:$0xff] }
 0x7ca   : > { %12311 = vmatpush3.bf16.msra.mxu1 %v12310_v57  ;;  %12281 = vmatprep.subr.bf16.mxu0 %v12280_v3  ;;  %v12298_v57 = vpack.c.bf16 %v9990_v50, %v9989_v38  ;;  %v12330_v3 = vpack.c.bf16 %v10022_v40, %v10021_v42 }
 0x7cb   : > { %12313 = vmatprep.subr.bf16.mxu1 %v12312_v33  ;;  %v12332_v33 = vpack.c.bf16 %v10040_v2, %v10039_v1 }
 0x7cd   : > { %12283 = vmatpush3.bf16.msra.mxu0 %v12282_v53  ;;  %v16326_v53 = vsub.s32 6, %v15023_v44 }
 0x7ce   : > { %12315 = vmatpush3.bf16.msra.mxu1 %v12314_v54  ;;  %12285 = vmatprep.subr.bf16.mxu0 %v12284_v17  ;;  %v16329_v54 = vsub.s32 5, %v15023_v44  ;;  %v16332_v17 = vsub.s32 7, %v15023_v44 }
 0x7cf   : > { %12317 = vmatprep.subr.bf16.mxu1 %v12316_v24  ;;  %v9018_v8 = vrot.slane %v16268_v12, %v16326_v53 }
 0x7d0   : > { %v9014_v23 = vrot.slane %v16268_v12, %v16329_v54  ;;  %v9022_v24 = vrot.slane %v16268_v12, %v16332_v17 }
 0x7d1   : > { %12287 = vmatpush3.bf16.msra.mxu0 %v12286_v56 }
 0x7d2   : > { %12319 = vmatpush3.bf16.msra.mxu1 %v12318_v16  ;;  %12289 = vmatprep.subr.bf16.mxu0 %v12288_v31 }
 0x7d3   : > { %12321 = vmatprep.subr.bf16.mxu1 %v12320_v22 }
 0x7d5   : > { %12291 = vmatpush3.bf16.msra.mxu0 %v12290_v29 }
 0x7d6   : > { %12323 = vmatpush3.bf16.msra.mxu1 %v12322_v19  ;;  %12293 = vmatprep.subr.bf16.mxu0 %v12292_v41 }
 0x7d7   : > { %12325 = vmatprep.subr.bf16.mxu1 %v12324_v60 }
 0x7d9   : > { %12295 = vmatpush3.bf16.msra.mxu0 %v12294_v51 }
 0x7da   : > { %12327 = vmatpush3.bf16.msra.mxu1 %v12326_v27  ;;  %12297 = vmatprep.subr.bf16.mxu0 %v12296_v63 }
 0x7db   : > { %12329 = vmatprep.subr.bf16.mxu1 %v12328_v62 }
 0x7dd   : > { %12299 = vmatpush3.bf16.msra.mxu0 %v12298_v57 }
 0x7de   : > { %12331 = vmatpush3.bf16.msra.mxu1 %v12330_v3  ;;  %12301 = vmatprep.subr.bf16.mxu0 %v12300_v52 }
 0x7df   : > { %12333 = vmatprep.subr.bf16.mxu1 %v12332_v33 }
 0x7e1   : > { %12303 = vmatpush3.bf16.msra.mxu0 %v12302_v55 }
 0x7e2   : > { %12335 = vmatpush3.bf16.msra.mxu1 %v12334_v13 }
 0x806   : > { %v9474_v28 = vpop.f32.mrb[2].mxu0  ;;  %v9616_v14 = vpop.f32.mrb[2].mxu1 }
 0x807   : > { %v12460_v15 = vadd.f32 %v9474_v28, %v9010_v20  ;;  %v12462_v26 = vadd.f32 %v9616_v14, %v9018_v8  ;;  %v9476_v30 = vpop.f32.mrb[3].mxu0  ;;  %v9618_v56 = vpop.f32.mrb[3].mxu1 }
 0x808   : > { %v12461_v44 = vadd.f32 %v9476_v30, %v9014_v23  ;;  %v12463_v16 = vadd.f32 %v9618_v56, %v9022_v24 }
 0x809   : > { %v9649_v31 = vsel %vm8260_vm0, %v12460_v15, 0.0  ;;  %v9663_v32 = vsel %vm8260_vm0, %v12462_v26, 0.0 }
 0x80a   : > { %v9650_v21 = vrot.slane %v9649_v31, 4  ;;  %v9664_v34 = vrot.slane %v9663_v32, 4  ;;  %v9656_v22 = vsel %vm8260_vm0, %v12461_v44, 0.0  ;;  %v9670_v59 = vsel %vm8260_vm0, %v12463_v16, 0.0 }
 0x80b   : > { %v9657_v36 = vrot.slane %v9656_v22, 4  ;;  %v9671_v12 = vrot.slane %v9670_v59, 4 }
 0x80c   : > { %v9651_v37 = vadd.f32 %v9650_v21, %v9649_v31  ;;  %v9665_v7 = vadd.f32 %v9664_v34, %v9663_v32 }
 0x80d   : > { %v9658_v18 = vadd.f32 %v9657_v36, %v9656_v22  ;;  %v9672_v29 = vadd.f32 %v9671_v12, %v9670_v59 }
 0x80e   : > { %v9652_v19 = vrot.slane %v9651_v37, 2  ;;  %v9666_v41 = vrot.slane %v9665_v7, 2 }
 0x80f   : > { %v9659_v43 = vrot.slane %v9658_v18, 2  ;;  %v9673_v6 = vrot.slane %v9672_v29, 2 }
 0x810   : > { %v9653_v45 = vadd.f32 %v9652_v19, %v9651_v37  ;;  %v9667_v60 = vadd.f32 %v9666_v41, %v9665_v7 }
 0x811   : > { %v9660_v47 = vadd.f32 %v9659_v43, %v9658_v18  ;;  %v9674_v25 = vadd.f32 %v9673_v6, %v9672_v29 }
 0x812   : > { %v9654_v35 = vrot.slane %v9653_v45, 1  ;;  %v9668_v48 = vrot.slane %v9667_v60, 1 }
 0x813   : > { %v9661_v49 = vrot.slane %v9660_v47, 1  ;;  %v9675_v51 = vrot.slane %v9674_v25, 1 }
 0x814   : > { %v9655_v27 = vadd.f32 %v9654_v35, %v9653_v45  ;;  %v9669_v63 = vadd.f32 %v9668_v48, %v9667_v60  ;;  %v9818_v48 = vrot.slane %v16298_v58, %v16326_v53 }
 0x815   : > { %v9662_v38 = vadd.f32 %v9661_v49, %v9660_v47  ;;  %v9676_v50 = vadd.f32 %v9675_v51, %v9674_v25  ;;  %v9810_v25 = vrot.slane %v16298_v58, %v16323_v61 }
 0x816   : > { %v9681_v42 = vmul.f32 0.5, %v9655_v27  ;;  %v9683_v62 = vmul.f32 0.5, %v9669_v63  ;;  %v9814_v27 = vrot.slane %v16298_v58, %v16329_v54  ;;  %v9860_v63 = vrot.slane %v16300_v9, %v16323_v61 }
 0x817   : > { %v9682_v40 = vmul.f32 0.5, %v9662_v38  ;;  %v9684_v46 = vmul.f32 0.5, %v9676_v50 }
 0x818   : > { %v9689_v0 = vsub.f32 %v12460_v15, %v9681_v42  ;;  %v9691_v1 = vsub.f32 %v12462_v26, %v9683_v62  ;;  %v9822_v42 = vrot.slane %v16298_v58, %v16332_v17  ;;  %v9868_v62 = vrot.slane %v16300_v9, %v16326_v53 }
 0x819   : > { %v9690_v2 = vsub.f32 %v12461_v44, %v9682_v40  ;;  %v9692_v57 = vsub.f32 %v12463_v16, %v9684_v46 }
 0x81a   : > { %v9697_v3 = vmul.f32 %v9689_v0, %v9689_v0  ;;  %v9699_v52 = vmul.f32 %v9691_v1, %v9691_v1 }
 0x81b   : > { %v9698_v4 = vmul.f32 %v9690_v2, %v9690_v2  ;;  %v9700_v5 = vmul.f32 %v9692_v57, %v9692_v57 }
 0x81c   : > { %v9729_v33 = vsel %vm8260_vm0, %v9697_v3, 0.0  ;;  %v9743_v10 = vsel %vm8260_vm0, %v9699_v52, 0.0 }
 0x81d   : > { %v9730_v11 = vrot.slane %v9729_v33, 4  ;;  %v9744_v55 = vrot.slane %v9743_v10, 4  ;;  %v9736_v13 = vsel %vm8260_vm0, %v9698_v4, 0.0  ;;  %v9750_v20 = vsel %vm8260_vm0, %v9700_v5, 0.0 }
 0x81e   : > { %v9737_v8 = vrot.slane %v9736_v13, 4  ;;  %v9751_v23 = vrot.slane %v9750_v20, 4  ;;  %v9872_v5 = vrot.slane %v16300_v9, %v16332_v17 }
 0x81f   : > { %v9731_v24 = vadd.f32 %v9730_v11, %v9729_v33  ;;  %v9745_v28 = vadd.f32 %v9744_v55, %v9743_v10 }
 0x820   : > { %v9738_v14 = vadd.f32 %v9737_v8, %v9736_v13  ;;  %v9752_v15 = vadd.f32 %v9751_v23, %v9750_v20  ;;  %v11548_v23 = vld [vmem:[#allocation18] ss:$0 sm:$0xff] }
 0x821   : > { %v9732_v26 = vrot.slane %v9731_v24, 2  ;;  %v9746_v30 = vrot.slane %v9745_v28, 2 }
 0x822   : > { %v9739_v56 = vrot.slane %v9738_v14, 2  ;;  %v9753_v44 = vrot.slane %v9752_v15, 2 }
 0x823   : > { %v9733_v16 = vadd.f32 %v9732_v26, %v9731_v24  ;;  %v9747_v31 = vadd.f32 %v9746_v30, %v9745_v28 }
 0x824   : > { %v9740_v32 = vadd.f32 %v9739_v56, %v9738_v14  ;;  %v9754_v21 = vadd.f32 %v9753_v44, %v9752_v15 }
 0x825   : > { %v9734_v34 = vrot.slane %v9733_v16, 1  ;;  %v9748_v22 = vrot.slane %v9747_v31, 1 }
 0x826   : > { %v9741_v59 = vrot.slane %v9740_v32, 1  ;;  %v9755_v36 = vrot.slane %v9754_v21, 1 }
 0x827   : > { %v9735_v12 = vadd.f32 %v9734_v34, %v9733_v16  ;;  %v9749_v37 = vadd.f32 %v9748_v22, %v9747_v31 }
 0x828   : > { %v9742_v7 = vadd.f32 %v9741_v59, %v9740_v32  ;;  %v9756_v18 = vadd.f32 %v9755_v36, %v9754_v21  ;;  %v10329_v36 = vand.u32 127, %v1553_v39 }
 0x829   : > { %v9761_v29 = vmul.f32 0.5, %v9735_v12  ;;  %v9763_v19 = vmul.f32 0.5, %v9749_v37 }
 0x82a   : > { %v9762_v41 = vmul.f32 0.5, %v9742_v7  ;;  %v9764_v43 = vmul.f32 0.5, %v9756_v18  ;;  %vm10330_vm9 = vcmp.ge.s32.totalorder %v10329_v36, 102  ;;  %vm10331_vm10 = vcmp.lt.s32.totalorder %v10329_v36, 104 }
 0x82b   : > { %v9769_v6 = vadd.f32 1e-05, %v9761_v29  ;;  %v9771_v45 = vadd.f32 1e-05, %v9763_v19  ;;  %vm10332_vm11 = vmand %vm10330_vm9, %vm10331_vm10 }
 0x82c   : > { %v9770_v60 = vadd.f32 1e-05, %v9762_v41  ;;  %v9772_v47 = vadd.f32 1e-05, %v9764_v43 }
 0x82d   : > { %14171 = vrsqrt.f32 %v9769_v6 }
 0x82e   : > { %14173 = vrsqrt.f32 %v9771_v45 }
 0x82f   : > { %14175 = vrsqrt.f32 %v9770_v60 }
 0x830   : > { %14177 = vrsqrt.f32 %v9772_v47 }
 0x837   : > { %v14172_v35 = vpop.eup %14171 }
 0x838   : > { %v14174_v49 = vpop.eup %14173  ;;  %v9785_v51 = vmul.f32 %v14172_v35, %v9689_v0  ;;  %v9864_v0 = vrot.slane %v16300_v9, %v16329_v54 }
 0x839   : > { %v14176_v38 = vpop.eup %14175  ;;  %v9787_v50 = vmul.f32 %v14174_v49, %v9691_v1 }
 0x83a   : > { %v14178_v40 = vpop.eup %14177  ;;  %v9835_v46 = vmul.f32 %v9810_v25, %v9785_v51  ;;  %v9786_v3 = vmul.f32 %v14176_v38, %v9690_v2 }
 0x83b   : > { %v9837_v52 = vmul.f32 %v9818_v48, %v9787_v50  ;;  %v9788_v4 = vmul.f32 %v14178_v40, %v9692_v57 }
 0x83c   : > { %v9836_v61 = vmul.f32 %v9814_v27, %v9786_v3  ;;  %v9885_v33 = vadd.f32 %v9860_v63, %v9835_v46 }
 0x83d   : > { %v9838_v1 = vmul.f32 %v9822_v42, %v9788_v4  ;;  %v9887_v10 = vadd.f32 %v9868_v62, %v9837_v52 }
 0x83e   : > { %v9886_v11 = vadd.f32 %v9864_v0, %v9836_v61  ;;  %v9901_v55 = vmul.f32 0.1, %v9885_v33  ;;  %vm9893_vm6 = vcmp.gt.f32.partialorder %v9885_v33, 0.0 }
 0x83f   : > { %v9888_v58 = vadd.f32 %v9872_v5, %v9838_v1  ;;  %v9903_v13 = vmul.f32 0.1, %v9887_v10  ;;  %vm9895_vm8 = vcmp.gt.f32.partialorder %v9887_v10, 0.0 }
 0x840   : > { %vm9894_vm5 = vcmp.gt.f32.partialorder %v9886_v11, 0.0  ;;  %v9902_v53 = vmul.f32 0.1, %v9886_v11  ;;  %v9909_v20 = vsel %vm9893_vm6, %v9885_v33, %v9901_v55 }
 0x841   : > { %vm9896_vm7 = vcmp.gt.f32.partialorder %v9888_v58, 0.0  ;;  %v9904_v2 = vmul.f32 0.1, %v9888_v58  ;;  %v9911_v9 = vsel %vm9895_vm8, %v9887_v10, %v9903_v13 }
 0x842   : > { %v9910_v54 = vsel %vm9894_vm5, %v9886_v11, %v9902_v53 }
 0x843   : > { %10252 = vmatprep.mubr.f32.mxu0 %v9910_v54  ;;  %v9912_v57 = vsel %vm9896_vm7, %v9888_v58, %v9904_v2 }
 0x844   : > { %10322 = vmatprep.mubr.f32.mxu1 %v9912_v57  ;;  %10253 = vmatmul.mubr.f32.vlgmr.msra.gmra.mrb[6].mxu0 %v9909_v20 }
 0x845   : > { %10323 = vmatmul.mubr.f32.vlgmr.msra.gmra.mrb[6].mxu1 %v9911_v9 }
 0x897   : > { %v11588_v17 = vpop.f32.mrb[4].mxu0 }
 0x898   : > { %v11623_v8 = vpop.f32.mrb[4].mxu1  ;;  %v11589_v24 = vpop.f32.mrb[5].mxu0 }
 0x899   : > { %v11590_v28 = vadd.f32 %v11589_v24, %v11588_v17  ;;  %v11624_v14 = vpop.f32.mrb[5].mxu1 }
 0x89a   : > { %v11625_v15 = vadd.f32 %v11624_v14, %v11623_v8 }
 0x89b   : > { %v10115_v26 = vadd.f32 %v11590_v28, %v11548_v23 }
 0x89d   : > { %v10185_v30 = vadd.f32 %v11625_v15, %v10115_v26 }
 0x917   : > { %v11658_v56 = vpop.f32.mrb[6].mxu0 }
 0x918   : > { %v11693_v44 = vpop.f32.mrb[6].mxu1  ;;  %v11659_v16 = vpop.f32.mrb[7].mxu0 }
 0x919   : > { %v11660_v31 = vadd.f32 %v11659_v16, %v11658_v56  ;;  %v11694_v32 = vpop.f32.mrb[7].mxu1 }
 0x91a   : > { %v11695_v21 = vadd.f32 %v11694_v32, %v11693_v44 }
 0x91b   : > { %v10255_v34 = vadd.f32 %v11660_v31, %v10185_v30 }
 0x91d   : > { %v10325_v22 = vadd.f32 %v11695_v21, %v10255_v34 }
 0x91f   : > { %v10333_v59 = vmul.f32 1.442695, %v10325_v22 }
 0x921   : > { %14179 = vpow2.f32 %v10333_v59 }
 0x92b   : > { %v14180_v12 = vpop.eup %14179 }
 0x92c   : > { %v10335_v37 = vsel %vm10332_vm11, %v14180_v12, %v10325_v22 }
 0x92d   : > { %10336 = vst [vmem:[#allocation20] sm:$0x3] %v10335_v37 }
 0x92e PF: > { %p12561_p5 = scmp.eq.s32.totalorder %s14652_s19, 1  ;;  %s14575_s20 = smov [#allocation20]  }
 0x92f   : > { %s10344_s22 = sshll.u32 %s14575_s20, 4  ;;  %s10345_s22 = int_to_ptr.vmem [resolvable:$true] %s10344_s22 }
 0x930   : > { %s14466_s3 = scalar_lea.vmem %s10345_s22, 32  ;;  %p14473_p9 = scmp.lt.s32.totalorder %s10345_s22, %s10345_s22 }
 0x931   : > { %p14467_p10 = scmp.ne.s32.totalorder %s10345_s22, %s14466_s3  ;;  %p14474_p3 = scmp.lt.s32.totalorder %s14466_s3, %s14466_s3 }
 0x933   : > { %p14468_p6 = pnand %p14467_p10, %p12561_p5  ;;  %p14475_p12 = por %p14474_p3, %p14473_p9 }
 0x935   : > { %p14469_p1 = pneg %p14468_p6 }
 0x937   : > { %p14476_p8 = pnand %p14475_p12, %p14469_p1 }
 0x939   : > { %14479 = shalt.err (!%p14476_p8)
}
 0x93a   : > { %s16442_s12 = sld [smem:[#allocation32_spill]] }
 0x940   : > { %s14480_s24 = scalar_lea.hbm %s16442_s12, 32 }
 0x941   : > { %p14481_p7 = scmp.ne.s32.totalorder %s16442_s12, %s14480_s24  ;;  %p14486_p0 = scmp.lt.u32.totalorder %s14480_s24, %s16442_s12 }
 0x943   : > { %p14482_p13 = pnand %p14481_p7, %p12561_p5 }
 0x945   : > { %p14483_p11 = pneg %p14482_p13 }
 0x947   : > { %p14488_p4 = pnand %p14486_p0, %p14483_p11 }
 0x949   : > { %14491 = shalt.err (!%p14488_p4)
}
 0x94a   : > { %12509 = dma.vmem_to_hbm [thread:$0]  (%p12561_p5), %s10345_s22, 32, %s16442_s12, [#allocation5]  }
 0x94b   : > { %14537 = dma.done.wait (%p12561_p5), [#allocation5], 32  }
 0x94c   : > { %14539 = vsyncadd (%p12561_p5), [#allocation5], 4294967264 }
 0x94d PF: > { %p28_p2 = scmp.ge.s32.totalorder %s14845_s17, 4   ;;  %s16443_s13 = smov %s14546_s14 }
 0x94e   : > { %s16444_s14 = smov %s14550_s15  ;;  %s16445_s15 = smov %s14857_s26 }
 0x94f   : > { %s16446_s16 = smov %s14845_s17  ;;  %30 = sbr.rel (!%p28_p2) target bundleno = 15 (0xf), region = 150 }
 0x956   :  { %10357 = vsyncpa [#allocation4], 1 }
 0x957   :  { %10359 = vsyncpa [#allocation4 + $0x1], 1 }
 0x958   :  { %10360 = vsyncpa [#allocation7], 1 }
 0x959   :  { %10362 = vsyncpa [#allocation7 + $0x1], 1 }
 0x95a   :  { %10363 = vsyncpa [#allocation10], 1 }
 0x95b   :  { %10364 = vsyncpa [#allocation13], 1 }
 0x95c   :  { %10365 = vsyncpa [#allocation16], 1 }
 0x95d   :  { %10366 = vsyncpa [#allocation19], 1 }
 0x95e   :  { %10367 = vsyncpa [#allocation5], 1 }
 0x95f   :  { %10369 = vsyncpa [#allocation5 + $0x1], 1 }

</bundles_post_ra>
